<compile_context>
chip_gen: v5e
topology: v5e:2x2
jax: 0.10.0
libtpu: 0.0.40
codegen_flags: <defaults>
</compile_context>

<pallas_src>
import jax
import jax.numpy as jnp
import numpy as np
from jax.experimental import pallas as pl
from jax.experimental.pallas import tpu as pltpu

_LANE = 128   # per-gate / padded-hidden lane width


def _gru_kernel(x_ref,            # (T*Bp, D)   time-major rows, batch padded to 8
                wih0_ref,         # (D, 3G)     layer-0 input proj, gate-padded
                whh_ref,          # (2G, 6G)    block-diag [Whh0 ; Whh1], gate-padded
                b0i_ref,          # (1, 3G)     layer-0 fused input bias (r,z fused; n = b_in)
                b0hn_ref,         # (1, G)      layer-0 b_hh n-gate
                wih1_ref,         # (G, 3G)     layer-1 input proj, gate-padded
                b1i_ref,          # (1, 3G)     layer-1 fused input bias
                b1hn_ref,         # (1, G)      layer-1 b_hh n-gate
                wfc_ref,          # (G, Opad)
                bfc_ref,          # (1, Opad)
                out_ref,          # (Bp, Opad)
                gi0_ref):         # scratch VMEM (T*Bp, 3G)
    TB = x_ref.shape[0]
    Bp = out_ref.shape[0]
    T = TB // Bp
    G = wih0_ref.shape[1] // 3

    # Hoisted, time-invariant layer-0 input projection: one big MXU matmul,
    # bias added once outside the recurrence.
    gi0_ref[...] = (jnp.dot(x_ref[...], wih0_ref[...],
                            preferred_element_type=jnp.float32)
                    + b0i_ref[...])

    # Loop-invariant weights + hoisted bias broadcasts (kept out of the
    # unrolled body; JAX does not CSE broadcast_in_dim).
    whh = whh_ref[...]
    wih1 = wih1_ref[...]
    b1i_b = jnp.broadcast_to(b1i_ref[...], (Bp, 3 * G))
    b0hn_b = jnp.broadcast_to(b0hn_ref[...], (Bp, G))
    b1hn_b = jnp.broadcast_to(b1hn_ref[...], (Bp, G))

    def step(t, carry):
        h1, h2 = carry                                       # (Bp, G) each

        # One fused MXU push for both layers' hidden-state projections.
        gh = jnp.dot(jnp.concatenate([h1, h2], axis=1), whh,
                     preferred_element_type=jnp.float32)     # (Bp, 6G)

        # ---- layer 0 (input projection precomputed, sublane-aligned load) ----
        row0 = pl.multiple_of(t * Bp, 8)
        gi0 = gi0_ref[pl.ds(row0, Bp), :]                    # (Bp, 3G)
        r0 = jax.nn.sigmoid(gi0[:, 0:G] + gh[:, 0:G])
        z0 = jax.nn.sigmoid(gi0[:, G:2 * G] + gh[:, G:2 * G])
        n0 = jnp.tanh(gi0[:, 2 * G:3 * G] + r0 * (gh[:, 2 * G:3 * G] + b0hn_b))
        h1 = (1.0 - z0) * n0 + z0 * h1

        # ---- layer 1 ----
        gi1 = jnp.dot(h1, wih1, preferred_element_type=jnp.float32) + b1i_b
        r1 = jax.nn.sigmoid(gi1[:, 0:G] + gh[:, 3 * G:4 * G])
        z1 = jax.nn.sigmoid(gi1[:, G:2 * G] + gh[:, 4 * G:5 * G])
        n1 = jnp.tanh(gi1[:, 2 * G:] + r1 * (gh[:, 5 * G:] + b1hn_b))
        h2 = (1.0 - z1) * n1 + z1 * h2
        return (h1, h2)

    h_init = jnp.zeros((Bp, G), jnp.float32)
    unroll = True if T <= 32 else 8       # full unroll only for short sequences
    _, h2 = jax.lax.fori_loop(0, T, step, (h_init, h_init), unroll=unroll)

    # fc + sigmoid on the last hidden state of the top layer (== h[:, -1, :]).
    logits = jnp.dot(h2, wfc_ref[...],
                     preferred_element_type=jnp.float32) + bfc_ref[...]
    out_ref[...] = jax.nn.sigmoid(logits)                    # unmasked lane-dense store


def _prepare_kernel_params(params, lane=_LANE):
    """Gate-pad all weights/biases to 128-lane gate blocks, fuse the r/z bias
    halves, build the block-diagonal hidden-state weight, and pad the fc
    projection to a lane-dense width."""
    (wih0, whh0, bih0, bhh0, wih1, whh1, bih1, bhh1, wfc, bfc) = params
    H = whh0.shape[0]
    O = wfc.shape[1]
    G = lane
    assert H <= G, "per-gate lane padding assumes hidden_size <= 128"

    def pad_gate_cols(w):
        # (in, 3H) -> (in, 3G): gate g occupies lanes [g*G, g*G + H); rest zero.
        out = jnp.zeros((w.shape[0], 3 * G), jnp.float32)
        for g in range(3):
            out = out.at[:, g * G:g * G + H].set(w[:, g * H:(g + 1) * H])
        return out

    def pad_rows(w, rows):
        return jnp.zeros((rows, w.shape[1]), jnp.float32).at[:w.shape[0]].set(w)

    def fuse_bias(bih, bhh):
        # r/z halves of b_ih + b_hh fused into the input-side bias; n-gate keeps
        # b_ih on the input side and b_hh separate (needed inside r * (...)).
        b_i = jnp.concatenate(
            [bih[:, :2 * H] + bhh[:, :2 * H], bih[:, 2 * H:]], axis=1)   # (1, 3H)
        b_hn = jnp.zeros((1, G), jnp.float32).at[:, :H].set(bhh[:, 2 * H:])
        return pad_gate_cols(b_i), b_hn

    wih0_p = pad_gate_cols(wih0)                          # (D, 3G)
    wih1_p = pad_rows(pad_gate_cols(wih1), G)             # (G, 3G)

    whh0_p = pad_rows(pad_gate_cols(whh0), G)             # (G, 3G)
    whh1_p = pad_rows(pad_gate_cols(whh1), G)             # (G, 3G)
    whh_fused = jnp.zeros((2 * G, 6 * G), jnp.float32)    # block-diagonal
    whh_fused = whh_fused.at[:G, :3 * G].set(whh0_p)
    whh_fused = whh_fused.at[G:, 3 * G:].set(whh1_p)

    b0i, b0hn = fuse_bias(bih0, bhh0)
    b1i, b1hn = fuse_bias(bih1, bhh1)

    o_pad = max(G, ((O + G - 1) // G) * G)
    wfc_p = jnp.zeros((G, o_pad), jnp.float32).at[:H, :O].set(wfc)
    bfc_p = jnp.zeros((1, o_pad), jnp.float32).at[:, :O].set(bfc)
    return (wih0_p, whh_fused, b0i, b0hn, wih1_p, b1i, b1hn, wfc_p, bfc_p), O, o_pad


@jax.jit
def gru_anomaly_detector_pallas(x, params):
    """x: (B, T, D) or (B, D); returns (B, output_size) float32."""
    if x.ndim == 2:                       # mirrors `x.unsqueeze(1)` in torch
        x = x[:, None, :]
    x = x.astype(jnp.float32)
    B, T, D = x.shape
    Bp = ((B + 7) // 8) * 8               # pad batch to full sublanes

    kp, O, O_pad = _prepare_kernel_params(params)
    (wih0, whh_fused, b0i, b0hn, wih1, b1i, b1hn, wfc_p, bfc_p) = kp
    G = _LANE

    # Time-major, batch-padded rows: row (t*Bp + b) is timestep t, batch b.
    x_p = jnp.zeros((Bp, T, D), jnp.float32).at[:B].set(x)
    x_rows = jnp.transpose(x_p, (1, 0, 2)).reshape(T * Bp, D)

    full = lambda i: (0, 0)

    out_pad = pl.pallas_call(
        _gru_kernel,
        out_shape=jax.ShapeDtypeStruct((Bp, O_pad), jnp.float32),
        grid_spec=pltpu.PrefetchScalarGridSpec(
            num_scalar_prefetch=0,
            grid=(1,),                                    # single invocation
            in_specs=[
                pl.BlockSpec((T * Bp, D), full),          # x rows (whole seq)
                pl.BlockSpec((D, 3 * G), full),           # W_ih layer0 (gate-padded)
                pl.BlockSpec((2 * G, 6 * G), full),       # block-diag W_hh (both layers)
                pl.BlockSpec((1, 3 * G), full),           # fused b layer0
                pl.BlockSpec((1, G), full),               # b_hh_n layer0
                pl.BlockSpec((G, 3 * G), full),           # W_ih layer1
                pl.BlockSpec((1, 3 * G), full),           # fused b layer1
                pl.BlockSpec((1, G), full),               # b_hh_n layer1
                pl.BlockSpec((G, O_pad), full),           # fc weight (padded)
                pl.BlockSpec((1, O_pad), full),           # fc bias (padded)
            ],
            out_specs=pl.BlockSpec((Bp, O_pad), full),
            scratch_shapes=[
                pltpu.VMEM((T * Bp, 3 * G), jnp.float32),  # hoisted gi0 (~100 KB)
            ],
        ),
        compiler_params=pltpu.CompilerParams(
            dimension_semantics=("arbitrary",)),
    )(x_rows, wih0, whh_fused, b0i, b0hn, wih1, b1i, b1hn, wfc_p, bfc_p)
    return out_pad[:B, :O]


def init_params(key, input_size, hidden_size, output_size):
    """Deterministic init matching torch.nn.GRU / nn.Linear shapes.

    Weights are stored transposed ((in, 3H) / (H, out)) for x @ W in-kernel.
    Gate order along the 3H axis is (r, z, n), matching torch.nn.GRU.
    """
    H = hidden_size
    k_gru = 1.0 / np.sqrt(H)
    keys = jax.random.split(key, 11)
    u = lambda k, shape, lim: jax.random.uniform(
        k, shape, jnp.float32, minval=-lim, maxval=lim)

    wih0 = u(keys[0], (input_size, 3 * H), k_gru)
    whh0 = u(keys[1], (H, 3 * H), k_gru)
    bih0 = u(keys[2], (1, 3 * H), k_gru)
    bhh0 = u(keys[3], (1, 3 * H), k_gru)
    wih1 = u(keys[4], (H, 3 * H), k_gru)
    whh1 = u(keys[5], (H, 3 * H), k_gru)
    bih1 = u(keys[6], (1, 3 * H), k_gru)
    bhh1 = u(keys[7], (1, 3 * H), k_gru)
    k_fc = 1.0 / np.sqrt(H)
    wfc = u(keys[8], (H, output_size), k_fc)
    bfc = u(keys[9], (1, output_size), k_fc)
    return (wih0, whh0, bih0, bhh0, wih1, whh1, bih1, bhh1, wfc, bfc)


def gru_anomaly_detector_ref(x, params):
    """Pure-JAX reference (unfused, unpadded, same math) for correctness checks."""
    if x.ndim == 2:
        x = x[:, None, :]
    x = x.astype(jnp.float32)
    (wih0, whh0, bih0, bhh0, wih1, whh1, bih1, bhh1, wfc, bfc) = params
    H = whh0.shape[0]
    B = x.shape[0]

    def cell(x_in, h_prev, wih, whh, bih, bhh):
        gi = x_in @ wih + bih
        gh = h_prev @ whh + bhh
        r = jax.nn.sigmoid(gi[:, :H] + gh[:, :H])
        z = jax.nn.sigmoid(gi[:, H:2 * H] + gh[:, H:2 * H])
        n = jnp.tanh(gi[:, 2 * H:] + r * gh[:, 2 * H:])
        return (1.0 - z) * n + z * h_prev

    def step(carry, x_t):
        h1, h2 = carry
        h1 = cell(x_t, h1, wih0, whh0, bih0, bhh0)
        h2 = cell(h1, h2, wih1, whh1, bih1, bhh1)
        return (h1, h2), None

    h0 = (jnp.zeros((B, H), jnp.float32), jnp.zeros((B, H), jnp.float32))
    (h1, h2), _ = jax.lax.scan(step, h0, jnp.transpose(x, (1, 0, 2)))
    return jax.nn.sigmoid(h2 @ wfc + bfc)


if __name__ == "__main__":
    # Small shapes consistent with the module: batch=2, seq=8, input=16, hidden=32.
    B, T, D, H, O = 2, 8, 16, 32, 1
    key = jax.random.PRNGKey(0)
    k_x, k_p = jax.random.split(key)
    x = jax.random.normal(k_x, (B, T, D), jnp.float32)
    params = init_params(k_p, input_size=D, hidden_size=H, output_size=O)

    out = gru_anomaly_detector_pallas(x, params)
    out = jax.block_until_ready(out)

    ref = gru_anomaly_detector_ref(x, params)
    np.testing.assert_allclose(np.asarray(out), np.asarray(ref),
                               rtol=1e-5, atol=1e-5)
    print("KERNEL_OK")
</pallas_src>

<mosaic_0001>
module attributes {stable_mosaic.version = 11 : i64} {
  func.func @_gru_kernel(%arg0: i32, %arg1: memref<64x16xf32, #tpu.memory_space<vmem>>, %arg2: memref<16x384xf32, #tpu.memory_space<vmem>>, %arg3: memref<256x768xf32, #tpu.memory_space<vmem>>, %arg4: memref<1x384xf32, #tpu.memory_space<vmem>>, %arg5: memref<1x128xf32, #tpu.memory_space<vmem>>, %arg6: memref<128x384xf32, #tpu.memory_space<vmem>>, %arg7: memref<1x384xf32, #tpu.memory_space<vmem>>, %arg8: memref<1x128xf32, #tpu.memory_space<vmem>>, %arg9: memref<128x128xf32, #tpu.memory_space<vmem>>, %arg10: memref<1x128xf32, #tpu.memory_space<vmem>>, %arg11: memref<8x128xf32, #tpu.memory_space<vmem>>, %arg12: memref<64x384xf32, #tpu.memory_space<vmem>>) attributes {dimension_semantics = [#tpu.dimension_semantics<arbitrary>], iteration_bounds = array<i64: 1>, scalar_prefetch = 0 : i64, scratch_operands = 1 : i64, tpu.core_type = #tpu.core_type<tc>, window_params = [{pipeline_mode = #tpu.pipeline_mode<synchronous>, transform_indices = @transform_0, window_bounds = array<i64: 64, 16>}, {pipeline_mode = #tpu.pipeline_mode<synchronous>, transform_indices = @transform_1, window_bounds = array<i64: 16, 384>}, {pipeline_mode = #tpu.pipeline_mode<synchronous>, transform_indices = @transform_2, window_bounds = array<i64: 256, 768>}, {pipeline_mode = #tpu.pipeline_mode<synchronous>, transform_indices = @transform_3, window_bounds = array<i64: 1, 384>}, {pipeline_mode = #tpu.pipeline_mode<synchronous>, transform_indices = @transform_4, window_bounds = array<i64: 1, 128>}, {pipeline_mode = #tpu.pipeline_mode<synchronous>, transform_indices = @transform_5, window_bounds = array<i64: 128, 384>}, {pipeline_mode = #tpu.pipeline_mode<synchronous>, transform_indices = @transform_6, window_bounds = array<i64: 1, 384>}, {pipeline_mode = #tpu.pipeline_mode<synchronous>, transform_indices = @transform_7, window_bounds = array<i64: 1, 128>}, {pipeline_mode = #tpu.pipeline_mode<synchronous>, transform_indices = @transform_8, window_bounds = array<i64: 128, 128>}, {pipeline_mode = #tpu.pipeline_mode<synchronous>, transform_indices = @transform_9, window_bounds = array<i64: 1, 128>}, {pipeline_mode = #tpu.pipeline_mode<synchronous>, transform_indices = @transform_10, window_bounds = array<i64: 8, 128>}]} {
    %c0 = arith.constant 0 : index
    %c0_0 = arith.constant 0 : index
    %0 = vector.load %arg1[%c0, %c0_0] : memref<64x16xf32, #tpu.memory_space<vmem>>, vector<64x16xf32>
    %c0_1 = arith.constant 0 : index
    %c0_2 = arith.constant 0 : index
    %1 = vector.load %arg2[%c0_1, %c0_2] : memref<16x384xf32, #tpu.memory_space<vmem>>, vector<16x384xf32>
    %cst = arith.constant dense<0.000000e+00> : vector<64x384xf32>
    %2 = tpu.matmul %0, %1, %cst {dimension_numbers = #tpu.dot_dimension_numbers<[1], [0], [0], [1], [0, 0, 1, 1], [], []>} : vector<64x16xf32>, vector<16x384xf32>, vector<64x384xf32> -> vector<64x384xf32>
    %c0_3 = arith.constant 0 : index
    %c0_4 = arith.constant 0 : index
    %3 = vector.load %arg4[%c0_3, %c0_4] : memref<1x384xf32, #tpu.memory_space<vmem>>, vector<1x384xf32>
    %4 = vector.broadcast %3 : vector<1x384xf32> to vector<64x384xf32>
    %5 = arith.addf %2, %4 : vector<64x384xf32>
    %c0_5 = arith.constant 0 : index
    %c0_6 = arith.constant 0 : index
    %6 = vector.load %arg12[%c0_5, %c0_6] : memref<64x384xf32, #tpu.memory_space<vmem>>, vector<64x384xf32>
    tpu.vector_store %arg12[%c0_5, %c0_6], %5 {strides = array<i32>} : memref<64x384xf32, #tpu.memory_space<vmem>>, vector<64x384xf32>,
    %c0_7 = arith.constant 0 : index
    %c0_8 = arith.constant 0 : index
    %7 = vector.load %arg3[%c0_7, %c0_8] : memref<256x768xf32, #tpu.memory_space<vmem>>, vector<256x768xf32>
    %c0_9 = arith.constant 0 : index
    %c0_10 = arith.constant 0 : index
    %8 = vector.load %arg6[%c0_9, %c0_10] : memref<128x384xf32, #tpu.memory_space<vmem>>, vector<128x384xf32>
    %c0_11 = arith.constant 0 : index
    %c0_12 = arith.constant 0 : index
    %9 = vector.load %arg7[%c0_11, %c0_12] : memref<1x384xf32, #tpu.memory_space<vmem>>, vector<1x384xf32>
    %10 = vector.shape_cast %9 : vector<1x384xf32> to vector<1x384xf32>
    %11 = vector.broadcast %10 : vector<1x384xf32> to vector<8x384xf32>
    %c0_13 = arith.constant 0 : index
    %c0_14 = arith.constant 0 : index
    %12 = vector.load %arg5[%c0_13, %c0_14] : memref<1x128xf32, #tpu.memory_space<vmem>>, vector<1x128xf32>
    %13 = vector.shape_cast %12 : vector<1x128xf32> to vector<1x128xf32>
    %14 = vector.broadcast %13 : vector<1x128xf32> to vector<8x128xf32>
    %c0_15 = arith.constant 0 : index
    %c0_16 = arith.constant 0 : index
    %15 = vector.load %arg8[%c0_15, %c0_16] : memref<1x128xf32, #tpu.memory_space<vmem>>, vector<1x128xf32>
    %16 = vector.shape_cast %15 : vector<1x128xf32> to vector<1x128xf32>
    %17 = vector.broadcast %16 : vector<1x128xf32> to vector<8x128xf32>
    %cst_17 = arith.constant 0.000000e+00 : f32
    %18 = vector.broadcast %cst_17 : f32 to vector<8x128xf32>
    %c0_i32 = arith.constant 0 : i32
    %19 = tpu.concatenate %18, %18 in 1 : vector<8x128xf32>, vector<8x128xf32> -> vector<8x256xf32>
    %cst_18 = arith.constant dense<0.000000e+00> : vector<8x768xf32>
    %20 = tpu.matmul %19, %7, %cst_18 {dimension_numbers = #tpu.dot_dimension_numbers<[1], [0], [0], [1], [0, 0, 1, 1], [], []>} : vector<8x256xf32>, vector<256x768xf32>, vector<8x768xf32> -> vector<8x768xf32>
    %c8_i32 = arith.constant 8 : i32
    %21 = arith.muli %c0_i32, %c8_i32 : i32
    %22 = tpu.assume_multiple %21, 8 : i32
    %23 = arith.index_cast %22 : i32 to index
    %c0_19 = arith.constant 0 : index
    %24 = vector.load %arg12[%23, %c0_19] : memref<64x384xf32, #tpu.memory_space<vmem>>, vector<8x384xf32>
    %25 = vector.extract_strided_slice %24 {offsets = [0, 0], sizes = [8, 128], strides = [1, 1]} : vector<8x384xf32> to vector<8x128xf32>
    %26 = vector.extract_strided_slice %20 {offsets = [0, 0], sizes = [8, 128], strides = [1, 1]} : vector<8x768xf32> to vector<8x128xf32>
    %27 = arith.addf %25, %26 : vector<8x128xf32>
    %28 = arith.negf %27 : vector<8x128xf32>
    %29 = math.exp %28 : vector<8x128xf32>
    %cst_20 = arith.constant 1.000000e+00 : f32
    %30 = vector.broadcast %cst_20 : f32 to vector<8x128xf32>
    %31 = arith.addf %30, %29 : vector<8x128xf32>
    %32 = arith.divf %30, %31 : vector<8x128xf32>
    %33 = vector.extract_strided_slice %24 {offsets = [0, 128], sizes = [8, 128], strides = [1, 1]} : vector<8x384xf32> to vector<8x128xf32>
    %34 = vector.extract_strided_slice %20 {offsets = [0, 128], sizes = [8, 128], strides = [1, 1]} : vector<8x768xf32> to vector<8x128xf32>
    %35 = arith.addf %33, %34 : vector<8x128xf32>
    %36 = arith.negf %35 : vector<8x128xf32>
    %37 = math.exp %36 : vector<8x128xf32>
    %cst_21 = arith.constant 1.000000e+00 : f32
    %38 = vector.broadcast %cst_21 : f32 to vector<8x128xf32>
    %39 = arith.addf %38, %37 : vector<8x128xf32>
    %40 = arith.divf %38, %39 : vector<8x128xf32>
    %41 = vector.extract_strided_slice %24 {offsets = [0, 256], sizes = [8, 128], strides = [1, 1]} : vector<8x384xf32> to vector<8x128xf32>
    %42 = vector.extract_strided_slice %20 {offsets = [0, 256], sizes = [8, 128], strides = [1, 1]} : vector<8x768xf32> to vector<8x128xf32>
    %43 = arith.addf %42, %14 : vector<8x128xf32>
    %44 = arith.mulf %32, %43 : vector<8x128xf32>
    %45 = arith.addf %41, %44 : vector<8x128xf32>
    %46 = math.tanh %45 : vector<8x128xf32>
    %cst_22 = arith.constant 1.000000e+00 : f32
    %47 = vector.broadcast %cst_22 : f32 to vector<8x128xf32>
    %48 = arith.subf %47, %40 : vector<8x128xf32>
    %49 = arith.mulf %48, %46 : vector<8x128xf32>
    %50 = arith.mulf %40, %18 : vector<8x128xf32>
    %51 = arith.addf %49, %50 : vector<8x128xf32>
    %cst_23 = arith.constant dense<0.000000e+00> : vector<8x384xf32>
    %52 = tpu.matmul %51, %8, %cst_23 {dimension_numbers = #tpu.dot_dimension_numbers<[1], [0], [0], [1], [0, 0, 1, 1], [], []>} : vector<8x128xf32>, vector<128x384xf32>, vector<8x384xf32> -> vector<8x384xf32>
    %53 = arith.addf %52, %11 : vector<8x384xf32>
    %54 = vector.extract_strided_slice %53 {offsets = [0, 0], sizes = [8, 128], strides = [1, 1]} : vector<8x384xf32> to vector<8x128xf32>
    %55 = vector.extract_strided_slice %20 {offsets = [0, 384], sizes = [8, 128], strides = [1, 1]} : vector<8x768xf32> to vector<8x128xf32>
    %56 = arith.addf %54, %55 : vector<8x128xf32>
    %57 = arith.negf %56 : vector<8x128xf32>
    %58 = math.exp %57 : vector<8x128xf32>
    %cst_24 = arith.constant 1.000000e+00 : f32
    %59 = vector.broadcast %cst_24 : f32 to vector<8x128xf32>
    %60 = arith.addf %59, %58 : vector<8x128xf32>
    %61 = arith.divf %59, %60 : vector<8x128xf32>
    %62 = vector.extract_strided_slice %53 {offsets = [0, 128], sizes = [8, 128], strides = [1, 1]} : vector<8x384xf32> to vector<8x128xf32>
    %63 = vector.extract_strided_slice %20 {offsets = [0, 512], sizes = [8, 128], strides = [1, 1]} : vector<8x768xf32> to vector<8x128xf32>
    %64 = arith.addf %62, %63 : vector<8x128xf32>
    %65 = arith.negf %64 : vector<8x128xf32>
    %66 = math.exp %65 : vector<8x128xf32>
    %cst_25 = arith.constant 1.000000e+00 : f32
    %67 = vector.broadcast %cst_25 : f32 to vector<8x128xf32>
    %68 = arith.addf %67, %66 : vector<8x128xf32>
    %69 = arith.divf %67, %68 : vector<8x128xf32>
    %70 = vector.extract_strided_slice %53 {offsets = [0, 256], sizes = [8, 128], strides = [1, 1]} : vector<8x384xf32> to vector<8x128xf32>
    %71 = vector.extract_strided_slice %20 {offsets = [0, 640], sizes = [8, 128], strides = [1, 1]} : vector<8x768xf32> to vector<8x128xf32>
    %72 = arith.addf %71, %17 : vector<8x128xf32>
    %73 = arith.mulf %61, %72 : vector<8x128xf32>
    %74 = arith.addf %70, %73 : vector<8x128xf32>
    %75 = math.tanh %74 : vector<8x128xf32>
    %cst_26 = arith.constant 1.000000e+00 : f32
    %76 = vector.broadcast %cst_26 : f32 to vector<8x128xf32>
    %77 = arith.subf %76, %69 : vector<8x128xf32>
    %78 = arith.mulf %77, %75 : vector<8x128xf32>
    %79 = arith.mulf %69, %18 : vector<8x128xf32>
    %80 = arith.addf %78, %79 : vector<8x128xf32>
    %c1_i32 = arith.constant 1 : i32
    %81 = tpu.concatenate %51, %80 in 1 : vector<8x128xf32>, vector<8x128xf32> -> vector<8x256xf32>
    %cst_27 = arith.constant dense<0.000000e+00> : vector<8x768xf32>
    %82 = tpu.matmul %81, %7, %cst_27 {dimension_numbers = #tpu.dot_dimension_numbers<[1], [0], [0], [1], [0, 0, 1, 1], [], []>} : vector<8x256xf32>, vector<256x768xf32>, vector<8x768xf32> -> vector<8x768xf32>
    %c8_i32_28 = arith.constant 8 : i32
    %83 = arith.muli %c1_i32, %c8_i32_28 : i32
    %84 = tpu.assume_multiple %83, 8 : i32
    %85 = arith.index_cast %84 : i32 to index
    %c0_29 = arith.constant 0 : index
    %86 = vector.load %arg12[%85, %c0_29] : memref<64x384xf32, #tpu.memory_space<vmem>>, vector<8x384xf32>
    %87 = vector.extract_strided_slice %86 {offsets = [0, 0], sizes = [8, 128], strides = [1, 1]} : vector<8x384xf32> to vector<8x128xf32>
    %88 = vector.extract_strided_slice %82 {offsets = [0, 0], sizes = [8, 128], strides = [1, 1]} : vector<8x768xf32> to vector<8x128xf32>
    %89 = arith.addf %87, %88 : vector<8x128xf32>
    %90 = arith.negf %89 : vector<8x128xf32>
    %91 = math.exp %90 : vector<8x128xf32>
    %cst_30 = arith.constant 1.000000e+00 : f32
    %92 = vector.broadcast %cst_30 : f32 to vector<8x128xf32>
    %93 = arith.addf %92, %91 : vector<8x128xf32>
    %94 = arith.divf %92, %93 : vector<8x128xf32>
    %95 = vector.extract_strided_slice %86 {offsets = [0, 128], sizes = [8, 128], strides = [1, 1]} : vector<8x384xf32> to vector<8x128xf32>
    %96 = vector.extract_strided_slice %82 {offsets = [0, 128], sizes = [8, 128], strides = [1, 1]} : vector<8x768xf32> to vector<8x128xf32>
    %97 = arith.addf %95, %96 : vector<8x128xf32>
    %98 = arith.negf %97 : vector<8x128xf32>
    %99 = math.exp %98 : vector<8x128xf32>
    %cst_31 = arith.constant 1.000000e+00 : f32
    %100 = vector.broadcast %cst_31 : f32 to vector<8x128xf32>
    %101 = arith.addf %100, %99 : vector<8x128xf32>
    %102 = arith.divf %100, %101 : vector<8x128xf32>
    %103 = vector.extract_strided_slice %86 {offsets = [0, 256], sizes = [8, 128], strides = [1, 1]} : vector<8x384xf32> to vector<8x128xf32>
    %104 = vector.extract_strided_slice %82 {offsets = [0, 256], sizes = [8, 128], strides = [1, 1]} : vector<8x768xf32> to vector<8x128xf32>
    %105 = arith.addf %104, %14 : vector<8x128xf32>
    %106 = arith.mulf %94, %105 : vector<8x128xf32>
    %107 = arith.addf %103, %106 : vector<8x128xf32>
    %108 = math.tanh %107 : vector<8x128xf32>
    %cst_32 = arith.constant 1.000000e+00 : f32
    %109 = vector.broadcast %cst_32 : f32 to vector<8x128xf32>
    %110 = arith.subf %109, %102 : vector<8x128xf32>
    %111 = arith.mulf %110, %108 : vector<8x128xf32>
    %112 = arith.mulf %102, %51 : vector<8x128xf32>
    %113 = arith.addf %111, %112 : vector<8x128xf32>
    %cst_33 = arith.constant dense<0.000000e+00> : vector<8x384xf32>
    %114 = tpu.matmul %113, %8, %cst_33 {dimension_numbers = #tpu.dot_dimension_numbers<[1], [0], [0], [1], [0, 0, 1, 1], [], []>} : vector<8x128xf32>, vector<128x384xf32>, vector<8x384xf32> -> vector<8x384xf32>
    %115 = arith.addf %114, %11 : vector<8x384xf32>
    %116 = vector.extract_strided_slice %115 {offsets = [0, 0], sizes = [8, 128], strides = [1, 1]} : vector<8x384xf32> to vector<8x128xf32>
    %117 = vector.extract_strided_slice %82 {offsets = [0, 384], sizes = [8, 128], strides = [1, 1]} : vector<8x768xf32> to vector<8x128xf32>
    %118 = arith.addf %116, %117 : vector<8x128xf32>
    %119 = arith.negf %118 : vector<8x128xf32>
    %120 = math.exp %119 : vector<8x128xf32>
    %cst_34 = arith.constant 1.000000e+00 : f32
    %121 = vector.broadcast %cst_34 : f32 to vector<8x128xf32>
    %122 = arith.addf %121, %120 : vector<8x128xf32>
    %123 = arith.divf %121, %122 : vector<8x128xf32>
    %124 = vector.extract_strided_slice %115 {offsets = [0, 128], sizes = [8, 128], strides = [1, 1]} : vector<8x384xf32> to vector<8x128xf32>
    %125 = vector.extract_strided_slice %82 {offsets = [0, 512], sizes = [8, 128], strides = [1, 1]} : vector<8x768xf32> to vector<8x128xf32>
    %126 = arith.addf %124, %125 : vector<8x128xf32>
    %127 = arith.negf %126 : vector<8x128xf32>
    %128 = math.exp %127 : vector<8x128xf32>
    %cst_35 = arith.constant 1.000000e+00 : f32
    %129 = vector.broadcast %cst_35 : f32 to vector<8x128xf32>
    %130 = arith.addf %129, %128 : vector<8x128xf32>
    %131 = arith.divf %129, %130 : vector<8x128xf32>
    %132 = vector.extract_strided_slice %115 {offsets = [0, 256], sizes = [8, 128], strides = [1, 1]} : vector<8x384xf32> to vector<8x128xf32>
    %133 = vector.extract_strided_slice %82 {offsets = [0, 640], sizes = [8, 128], strides = [1, 1]} : vector<8x768xf32> to vector<8x128xf32>
    %134 = arith.addf %133, %17 : vector<8x128xf32>
    %135 = arith.mulf %123, %134 : vector<8x128xf32>
    %136 = arith.addf %132, %135 : vector<8x128xf32>
    %137 = math.tanh %136 : vector<8x128xf32>
    %cst_36 = arith.constant 1.000000e+00 : f32
    %138 = vector.broadcast %cst_36 : f32 to vector<8x128xf32>
    %139 = arith.subf %138, %131 : vector<8x128xf32>
    %140 = arith.mulf %139, %137 : vector<8x128xf32>
    %141 = arith.mulf %131, %80 : vector<8x128xf32>
    %142 = arith.addf %140, %141 : vector<8x128xf32>
    %c2_i32 = arith.constant 2 : i32
    %143 = tpu.concatenate %113, %142 in 1 : vector<8x128xf32>, vector<8x128xf32> -> vector<8x256xf32>
    %cst_37 = arith.constant dense<0.000000e+00> : vector<8x768xf32>
    %144 = tpu.matmul %143, %7, %cst_37 {dimension_numbers = #tpu.dot_dimension_numbers<[1], [0], [0], [1], [0, 0, 1, 1], [], []>} : vector<8x256xf32>, vector<256x768xf32>, vector<8x768xf32> -> vector<8x768xf32>
    %c8_i32_38 = arith.constant 8 : i32
    %145 = arith.muli %c2_i32, %c8_i32_38 : i32
    %146 = tpu.assume_multiple %145, 8 : i32
    %147 = arith.index_cast %146 : i32 to index
    %c0_39 = arith.constant 0 : index
    %148 = vector.load %arg12[%147, %c0_39] : memref<64x384xf32, #tpu.memory_space<vmem>>, vector<8x384xf32>
    %149 = vector.extract_strided_slice %148 {offsets = [0, 0], sizes = [8, 128], strides = [1, 1]} : vector<8x384xf32> to vector<8x128xf32>
    %150 = vector.extract_strided_slice %144 {offsets = [0, 0], sizes = [8, 128], strides = [1, 1]} : vector<8x768xf32> to vector<8x128xf32>
    %151 = arith.addf %149, %150 : vector<8x128xf32>
    %152 = arith.negf %151 : vector<8x128xf32>
    %153 = math.exp %152 : vector<8x128xf32>
    %cst_40 = arith.constant 1.000000e+00 : f32
    %154 = vector.broadcast %cst_40 : f32 to vector<8x128xf32>
    %155 = arith.addf %154, %153 : vector<8x128xf32>
    %156 = arith.divf %154, %155 : vector<8x128xf32>
    %157 = vector.extract_strided_slice %148 {offsets = [0, 128], sizes = [8, 128], strides = [1, 1]} : vector<8x384xf32> to vector<8x128xf32>
    %158 = vector.extract_strided_slice %144 {offsets = [0, 128], sizes = [8, 128], strides = [1, 1]} : vector<8x768xf32> to vector<8x128xf32>
    %159 = arith.addf %157, %158 : vector<8x128xf32>
    %160 = arith.negf %159 : vector<8x128xf32>
    %161 = math.exp %160 : vector<8x128xf32>
    %cst_41 = arith.constant 1.000000e+00 : f32
    %162 = vector.broadcast %cst_41 : f32 to vector<8x128xf32>
    %163 = arith.addf %162, %161 : vector<8x128xf32>
    %164 = arith.divf %162, %163 : vector<8x128xf32>
    %165 = vector.extract_strided_slice %148 {offsets = [0, 256], sizes = [8, 128], strides = [1, 1]} : vector<8x384xf32> to vector<8x128xf32>
    %166 = vector.extract_strided_slice %144 {offsets = [0, 256], sizes = [8, 128], strides = [1, 1]} : vector<8x768xf32> to vector<8x128xf32>
    %167 = arith.addf %166, %14 : vector<8x128xf32>
    %168 = arith.mulf %156, %167 : vector<8x128xf32>
    %169 = arith.addf %165, %168 : vector<8x128xf32>
    %170 = math.tanh %169 : vector<8x128xf32>
    %cst_42 = arith.constant 1.000000e+00 : f32
    %171 = vector.broadcast %cst_42 : f32 to vector<8x128xf32>
    %172 = arith.subf %171, %164 : vector<8x128xf32>
    %173 = arith.mulf %172, %170 : vector<8x128xf32>
    %174 = arith.mulf %164, %113 : vector<8x128xf32>
    %175 = arith.addf %173, %174 : vector<8x128xf32>
    %cst_43 = arith.constant dense<0.000000e+00> : vector<8x384xf32>
    %176 = tpu.matmul %175, %8, %cst_43 {dimension_numbers = #tpu.dot_dimension_numbers<[1], [0], [0], [1], [0, 0, 1, 1], [], []>} : vector<8x128xf32>, vector<128x384xf32>, vector<8x384xf32> -> vector<8x384xf32>
    %177 = arith.addf %176, %11 : vector<8x384xf32>
    %178 = vector.extract_strided_slice %177 {offsets = [0, 0], sizes = [8, 128], strides = [1, 1]} : vector<8x384xf32> to vector<8x128xf32>
    %179 = vector.extract_strided_slice %144 {offsets = [0, 384], sizes = [8, 128], strides = [1, 1]} : vector<8x768xf32> to vector<8x128xf32>
    %180 = arith.addf %178, %179 : vector<8x128xf32>
    %181 = arith.negf %180 : vector<8x128xf32>
    %182 = math.exp %181 : vector<8x128xf32>
    %cst_44 = arith.constant 1.000000e+00 : f32
    %183 = vector.broadcast %cst_44 : f32 to vector<8x128xf32>
    %184 = arith.addf %183, %182 : vector<8x128xf32>
    %185 = arith.divf %183, %184 : vector<8x128xf32>
    %186 = vector.extract_strided_slice %177 {offsets = [0, 128], sizes = [8, 128], strides = [1, 1]} : vector<8x384xf32> to vector<8x128xf32>
    %187 = vector.extract_strided_slice %144 {offsets = [0, 512], sizes = [8, 128], strides = [1, 1]} : vector<8x768xf32> to vector<8x128xf32>
    %188 = arith.addf %186, %187 : vector<8x128xf32>
    %189 = arith.negf %188 : vector<8x128xf32>
    %190 = math.exp %189 : vector<8x128xf32>
    %cst_45 = arith.constant 1.000000e+00 : f32
    %191 = vector.broadcast %cst_45 : f32 to vector<8x128xf32>
    %192 = arith.addf %191, %190 : vector<8x128xf32>
    %193 = arith.divf %191, %192 : vector<8x128xf32>
    %194 = vector.extract_strided_slice %177 {offsets = [0, 256], sizes = [8, 128], strides = [1, 1]} : vector<8x384xf32> to vector<8x128xf32>
    %195 = vector.extract_strided_slice %144 {offsets = [0, 640], sizes = [8, 128], strides = [1, 1]} : vector<8x768xf32> to vector<8x128xf32>
    %196 = arith.addf %195, %17 : vector<8x128xf32>
    %197 = arith.mulf %185, %196 : vector<8x128xf32>
    %198 = arith.addf %194, %197 : vector<8x128xf32>
    %199 = math.tanh %198 : vector<8x128xf32>
    %cst_46 = arith.constant 1.000000e+00 : f32
    %200 = vector.broadcast %cst_46 : f32 to vector<8x128xf32>
    %201 = arith.subf %200, %193 : vector<8x128xf32>
    %202 = arith.mulf %201, %199 : vector<8x128xf32>
    %203 = arith.mulf %193, %142 : vector<8x128xf32>
    %204 = arith.addf %202, %203 : vector<8x128xf32>
    %c3_i32 = arith.constant 3 : i32
    %205 = tpu.concatenate %175, %204 in 1 : vector<8x128xf32>, vector<8x128xf32> -> vector<8x256xf32>
    %cst_47 = arith.constant dense<0.000000e+00> : vector<8x768xf32>
    %206 = tpu.matmul %205, %7, %cst_47 {dimension_numbers = #tpu.dot_dimension_numbers<[1], [0], [0], [1], [0, 0, 1, 1], [], []>} : vector<8x256xf32>, vector<256x768xf32>, vector<8x768xf32> -> vector<8x768xf32>
    %c8_i32_48 = arith.constant 8 : i32
    %207 = arith.muli %c3_i32, %c8_i32_48 : i32
    %208 = tpu.assume_multiple %207, 8 : i32
    %209 = arith.index_cast %208 : i32 to index
    %c0_49 = arith.constant 0 : index
    %210 = vector.load %arg12[%209, %c0_49] : memref<64x384xf32, #tpu.memory_space<vmem>>, vector<8x384xf32>
    %211 = vector.extract_strided_slice %210 {offsets = [0, 0], sizes = [8, 128], strides = [1, 1]} : vector<8x384xf32> to vector<8x128xf32>
    %212 = vector.extract_strided_slice %206 {offsets = [0, 0], sizes = [8, 128], strides = [1, 1]} : vector<8x768xf32> to vector<8x128xf32>
    %213 = arith.addf %211, %212 : vector<8x128xf32>
    %214 = arith.negf %213 : vector<8x128xf32>
    %215 = math.exp %214 : vector<8x128xf32>
    %cst_50 = arith.constant 1.000000e+00 : f32
    %216 = vector.broadcast %cst_50 : f32 to vector<8x128xf32>
    %217 = arith.addf %216, %215 : vector<8x128xf32>
    %218 = arith.divf %216, %217 : vector<8x128xf32>
    %219 = vector.extract_strided_slice %210 {offsets = [0, 128], sizes = [8, 128], strides = [1, 1]} : vector<8x384xf32> to vector<8x128xf32>
    %220 = vector.extract_strided_slice %206 {offsets = [0, 128], sizes = [8, 128], strides = [1, 1]} : vector<8x768xf32> to vector<8x128xf32>
    %221 = arith.addf %219, %220 : vector<8x128xf32>
    %222 = arith.negf %221 : vector<8x128xf32>
    %223 = math.exp %222 : vector<8x128xf32>
    %cst_51 = arith.constant 1.000000e+00 : f32
    %224 = vector.broadcast %cst_51 : f32 to vector<8x128xf32>
    %225 = arith.addf %224, %223 : vector<8x128xf32>
    %226 = arith.divf %224, %225 : vector<8x128xf32>
    %227 = vector.extract_strided_slice %210 {offsets = [0, 256], sizes = [8, 128], strides = [1, 1]} : vector<8x384xf32> to vector<8x128xf32>
    %228 = vector.extract_strided_slice %206 {offsets = [0, 256], sizes = [8, 128], strides = [1, 1]} : vector<8x768xf32> to vector<8x128xf32>
    %229 = arith.addf %228, %14 : vector<8x128xf32>
    %230 = arith.mulf %218, %229 : vector<8x128xf32>
    %231 = arith.addf %227, %230 : vector<8x128xf32>
    %232 = math.tanh %231 : vector<8x128xf32>
    %cst_52 = arith.constant 1.000000e+00 : f32
    %233 = vector.broadcast %cst_52 : f32 to vector<8x128xf32>
    %234 = arith.subf %233, %226 : vector<8x128xf32>
    %235 = arith.mulf %234, %232 : vector<8x128xf32>
    %236 = arith.mulf %226, %175 : vector<8x128xf32>
    %237 = arith.addf %235, %236 : vector<8x128xf32>
    %cst_53 = arith.constant dense<0.000000e+00> : vector<8x384xf32>
    %238 = tpu.matmul %237, %8, %cst_53 {dimension_numbers = #tpu.dot_dimension_numbers<[1], [0], [0], [1], [0, 0, 1, 1], [], []>} : vector<8x128xf32>, vector<128x384xf32>, vector<8x384xf32> -> vector<8x384xf32>
    %239 = arith.addf %238, %11 : vector<8x384xf32>
    %240 = vector.extract_strided_slice %239 {offsets = [0, 0], sizes = [8, 128], strides = [1, 1]} : vector<8x384xf32> to vector<8x128xf32>
    %241 = vector.extract_strided_slice %206 {offsets = [0, 384], sizes = [8, 128], strides = [1, 1]} : vector<8x768xf32> to vector<8x128xf32>
    %242 = arith.addf %240, %241 : vector<8x128xf32>
    %243 = arith.negf %242 : vector<8x128xf32>
    %244 = math.exp %243 : vector<8x128xf32>
    %cst_54 = arith.constant 1.000000e+00 : f32
    %245 = vector.broadcast %cst_54 : f32 to vector<8x128xf32>
    %246 = arith.addf %245, %244 : vector<8x128xf32>
    %247 = arith.divf %245, %246 : vector<8x128xf32>
    %248 = vector.extract_strided_slice %239 {offsets = [0, 128], sizes = [8, 128], strides = [1, 1]} : vector<8x384xf32> to vector<8x128xf32>
    %249 = vector.extract_strided_slice %206 {offsets = [0, 512], sizes = [8, 128], strides = [1, 1]} : vector<8x768xf32> to vector<8x128xf32>
    %250 = arith.addf %248, %249 : vector<8x128xf32>
    %251 = arith.negf %250 : vector<8x128xf32>
    %252 = math.exp %251 : vector<8x128xf32>
    %cst_55 = arith.constant 1.000000e+00 : f32
    %253 = vector.broadcast %cst_55 : f32 to vector<8x128xf32>
    %254 = arith.addf %253, %252 : vector<8x128xf32>
    %255 = arith.divf %253, %254 : vector<8x128xf32>
    %256 = vector.extract_strided_slice %239 {offsets = [0, 256], sizes = [8, 128], strides = [1, 1]} : vector<8x384xf32> to vector<8x128xf32>
    %257 = vector.extract_strided_slice %206 {offsets = [0, 640], sizes = [8, 128], strides = [1, 1]} : vector<8x768xf32> to vector<8x128xf32>
    %258 = arith.addf %257, %17 : vector<8x128xf32>
    %259 = arith.mulf %247, %258 : vector<8x128xf32>
    %260 = arith.addf %256, %259 : vector<8x128xf32>
    %261 = math.tanh %260 : vector<8x128xf32>
    %cst_56 = arith.constant 1.000000e+00 : f32
    %262 = vector.broadcast %cst_56 : f32 to vector<8x128xf32>
    %263 = arith.subf %262, %255 : vector<8x128xf32>
    %264 = arith.mulf %263, %261 : vector<8x128xf32>
    %265 = arith.mulf %255, %204 : vector<8x128xf32>
    %266 = arith.addf %264, %265 : vector<8x128xf32>
    %c4_i32 = arith.constant 4 : i32
    %267 = tpu.concatenate %237, %266 in 1 : vector<8x128xf32>, vector<8x128xf32> -> vector<8x256xf32>
    %cst_57 = arith.constant dense<0.000000e+00> : vector<8x768xf32>
    %268 = tpu.matmul %267, %7, %cst_57 {dimension_numbers = #tpu.dot_dimension_numbers<[1], [0], [0], [1], [0, 0, 1, 1], [], []>} : vector<8x256xf32>, vector<256x768xf32>, vector<8x768xf32> -> vector<8x768xf32>
    %c8_i32_58 = arith.constant 8 : i32
    %269 = arith.muli %c4_i32, %c8_i32_58 : i32
    %270 = tpu.assume_multiple %269, 8 : i32
    %271 = arith.index_cast %270 : i32 to index
    %c0_59 = arith.constant 0 : index
    %272 = vector.load %arg12[%271, %c0_59] : memref<64x384xf32, #tpu.memory_space<vmem>>, vector<8x384xf32>
    %273 = vector.extract_strided_slice %272 {offsets = [0, 0], sizes = [8, 128], strides = [1, 1]} : vector<8x384xf32> to vector<8x128xf32>
    %274 = vector.extract_strided_slice %268 {offsets = [0, 0], sizes = [8, 128], strides = [1, 1]} : vector<8x768xf32> to vector<8x128xf32>
    %275 = arith.addf %273, %274 : vector<8x128xf32>
    %276 = arith.negf %275 : vector<8x128xf32>
    %277 = math.exp %276 : vector<8x128xf32>
    %cst_60 = arith.constant 1.000000e+00 : f32
    %278 = vector.broadcast %cst_60 : f32 to vector<8x128xf32>
    %279 = arith.addf %278, %277 : vector<8x128xf32>
    %280 = arith.divf %278, %279 : vector<8x128xf32>
    %281 = vector.extract_strided_slice %272 {offsets = [0, 128], sizes = [8, 128], strides = [1, 1]} : vector<8x384xf32> to vector<8x128xf32>
    %282 = vector.extract_strided_slice %268 {offsets = [0, 128], sizes = [8, 128], strides = [1, 1]} : vector<8x768xf32> to vector<8x128xf32>
    %283 = arith.addf %281, %282 : vector<8x128xf32>
    %284 = arith.negf %283 : vector<8x128xf32>
    %285 = math.exp %284 : vector<8x128xf32>
    %cst_61 = arith.constant 1.000000e+00 : f32
    %286 = vector.broadcast %cst_61 : f32 to vector<8x128xf32>
    %287 = arith.addf %286, %285 : vector<8x128xf32>
    %288 = arith.divf %286, %287 : vector<8x128xf32>
    %289 = vector.extract_strided_slice %272 {offsets = [0, 256], sizes = [8, 128], strides = [1, 1]} : vector<8x384xf32> to vector<8x128xf32>
    %290 = vector.extract_strided_slice %268 {offsets = [0, 256], sizes = [8, 128], strides = [1, 1]} : vector<8x768xf32> to vector<8x128xf32>
    %291 = arith.addf %290, %14 : vector<8x128xf32>
    %292 = arith.mulf %280, %291 : vector<8x128xf32>
    %293 = arith.addf %289, %292 : vector<8x128xf32>
    %294 = math.tanh %293 : vector<8x128xf32>
    %cst_62 = arith.constant 1.000000e+00 : f32
    %295 = vector.broadcast %cst_62 : f32 to vector<8x128xf32>
    %296 = arith.subf %295, %288 : vector<8x128xf32>
    %297 = arith.mulf %296, %294 : vector<8x128xf32>
    %298 = arith.mulf %288, %237 : vector<8x128xf32>
    %299 = arith.addf %297, %298 : vector<8x128xf32>
    %cst_63 = arith.constant dense<0.000000e+00> : vector<8x384xf32>
    %300 = tpu.matmul %299, %8, %cst_63 {dimension_numbers = #tpu.dot_dimension_numbers<[1], [0], [0], [1], [0, 0, 1, 1], [], []>} : vector<8x128xf32>, vector<128x384xf32>, vector<8x384xf32> -> vector<8x384xf32>
    %301 = arith.addf %300, %11 : vector<8x384xf32>
    %302 = vector.extract_strided_slice %301 {offsets = [0, 0], sizes = [8, 128], strides = [1, 1]} : vector<8x384xf32> to vector<8x128xf32>
    %303 = vector.extract_strided_slice %268 {offsets = [0, 384], sizes = [8, 128], strides = [1, 1]} : vector<8x768xf32> to vector<8x128xf32>
    %304 = arith.addf %302, %303 : vector<8x128xf32>
    %305 = arith.negf %304 : vector<8x128xf32>
    %306 = math.exp %305 : vector<8x128xf32>
    %cst_64 = arith.constant 1.000000e+00 : f32
    %307 = vector.broadcast %cst_64 : f32 to vector<8x128xf32>
    %308 = arith.addf %307, %306 : vector<8x128xf32>
    %309 = arith.divf %307, %308 : vector<8x128xf32>
    %310 = vector.extract_strided_slice %301 {offsets = [0, 128], sizes = [8, 128], strides = [1, 1]} : vector<8x384xf32> to vector<8x128xf32>
    %311 = vector.extract_strided_slice %268 {offsets = [0, 512], sizes = [8, 128], strides = [1, 1]} : vector<8x768xf32> to vector<8x128xf32>
    %312 = arith.addf %310, %311 : vector<8x128xf32>
    %313 = arith.negf %312 : vector<8x128xf32>
    %314 = math.exp %313 : vector<8x128xf32>
    %cst_65 = arith.constant 1.000000e+00 : f32
    %315 = vector.broadcast %cst_65 : f32 to vector<8x128xf32>
    %316 = arith.addf %315, %314 : vector<8x128xf32>
    %317 = arith.divf %315, %316 : vector<8x128xf32>
    %318 = vector.extract_strided_slice %301 {offsets = [0, 256], sizes = [8, 128], strides = [1, 1]} : vector<8x384xf32> to vector<8x128xf32>
    %319 = vector.extract_strided_slice %268 {offsets = [0, 640], sizes = [8, 128], strides = [1, 1]} : vector<8x768xf32> to vector<8x128xf32>
    %320 = arith.addf %319, %17 : vector<8x128xf32>
    %321 = arith.mulf %309, %320 : vector<8x128xf32>
    %322 = arith.addf %318, %321 : vector<8x128xf32>
    %323 = math.tanh %322 : vector<8x128xf32>
    %cst_66 = arith.constant 1.000000e+00 : f32
    %324 = vector.broadcast %cst_66 : f32 to vector<8x128xf32>
    %325 = arith.subf %324, %317 : vector<8x128xf32>
    %326 = arith.mulf %325, %323 : vector<8x128xf32>
    %327 = arith.mulf %317, %266 : vector<8x128xf32>
    %328 = arith.addf %326, %327 : vector<8x128xf32>
    %c5_i32 = arith.constant 5 : i32
    %329 = tpu.concatenate %299, %328 in 1 : vector<8x128xf32>, vector<8x128xf32> -> vector<8x256xf32>
    %cst_67 = arith.constant dense<0.000000e+00> : vector<8x768xf32>
    %330 = tpu.matmul %329, %7, %cst_67 {dimension_numbers = #tpu.dot_dimension_numbers<[1], [0], [0], [1], [0, 0, 1, 1], [], []>} : vector<8x256xf32>, vector<256x768xf32>, vector<8x768xf32> -> vector<8x768xf32>
    %c8_i32_68 = arith.constant 8 : i32
    %331 = arith.muli %c5_i32, %c8_i32_68 : i32
    %332 = tpu.assume_multiple %331, 8 : i32
    %333 = arith.index_cast %332 : i32 to index
    %c0_69 = arith.constant 0 : index
    %334 = vector.load %arg12[%333, %c0_69] : memref<64x384xf32, #tpu.memory_space<vmem>>, vector<8x384xf32>
    %335 = vector.extract_strided_slice %334 {offsets = [0, 0], sizes = [8, 128], strides = [1, 1]} : vector<8x384xf32> to vector<8x128xf32>
    %336 = vector.extract_strided_slice %330 {offsets = [0, 0], sizes = [8, 128], strides = [1, 1]} : vector<8x768xf32> to vector<8x128xf32>
    %337 = arith.addf %335, %336 : vector<8x128xf32>
    %338 = arith.negf %337 : vector<8x128xf32>
    %339 = math.exp %338 : vector<8x128xf32>
    %cst_70 = arith.constant 1.000000e+00 : f32
    %340 = vector.broadcast %cst_70 : f32 to vector<8x128xf32>
    %341 = arith.addf %340, %339 : vector<8x128xf32>
    %342 = arith.divf %340, %341 : vector<8x128xf32>
    %343 = vector.extract_strided_slice %334 {offsets = [0, 128], sizes = [8, 128], strides = [1, 1]} : vector<8x384xf32> to vector<8x128xf32>
    %344 = vector.extract_strided_slice %330 {offsets = [0, 128], sizes = [8, 128], strides = [1, 1]} : vector<8x768xf32> to vector<8x128xf32>
    %345 = arith.addf %343, %344 : vector<8x128xf32>
    %346 = arith.negf %345 : vector<8x128xf32>
    %347 = math.exp %346 : vector<8x128xf32>
    %cst_71 = arith.constant 1.000000e+00 : f32
    %348 = vector.broadcast %cst_71 : f32 to vector<8x128xf32>
    %349 = arith.addf %348, %347 : vector<8x128xf32>
    %350 = arith.divf %348, %349 : vector<8x128xf32>
    %351 = vector.extract_strided_slice %334 {offsets = [0, 256], sizes = [8, 128], strides = [1, 1]} : vector<8x384xf32> to vector<8x128xf32>
    %352 = vector.extract_strided_slice %330 {offsets = [0, 256], sizes = [8, 128], strides = [1, 1]} : vector<8x768xf32> to vector<8x128xf32>
    %353 = arith.addf %352, %14 : vector<8x128xf32>
    %354 = arith.mulf %342, %353 : vector<8x128xf32>
    %355 = arith.addf %351, %354 : vector<8x128xf32>
    %356 = math.tanh %355 : vector<8x128xf32>
    %cst_72 = arith.constant 1.000000e+00 : f32
    %357 = vector.broadcast %cst_72 : f32 to vector<8x128xf32>
    %358 = arith.subf %357, %350 : vector<8x128xf32>
    %359 = arith.mulf %358, %356 : vector<8x128xf32>
    %360 = arith.mulf %350, %299 : vector<8x128xf32>
    %361 = arith.addf %359, %360 : vector<8x128xf32>
    %cst_73 = arith.constant dense<0.000000e+00> : vector<8x384xf32>
    %362 = tpu.matmul %361, %8, %cst_73 {dimension_numbers = #tpu.dot_dimension_numbers<[1], [0], [0], [1], [0, 0, 1, 1], [], []>} : vector<8x128xf32>, vector<128x384xf32>, vector<8x384xf32> -> vector<8x384xf32>
    %363 = arith.addf %362, %11 : vector<8x384xf32>
    %364 = vector.extract_strided_slice %363 {offsets = [0, 0], sizes = [8, 128], strides = [1, 1]} : vector<8x384xf32> to vector<8x128xf32>
    %365 = vector.extract_strided_slice %330 {offsets = [0, 384], sizes = [8, 128], strides = [1, 1]} : vector<8x768xf32> to vector<8x128xf32>
    %366 = arith.addf %364, %365 : vector<8x128xf32>
    %367 = arith.negf %366 : vector<8x128xf32>
    %368 = math.exp %367 : vector<8x128xf32>
    %cst_74 = arith.constant 1.000000e+00 : f32
    %369 = vector.broadcast %cst_74 : f32 to vector<8x128xf32>
    %370 = arith.addf %369, %368 : vector<8x128xf32>
    %371 = arith.divf %369, %370 : vector<8x128xf32>
    %372 = vector.extract_strided_slice %363 {offsets = [0, 128], sizes = [8, 128], strides = [1, 1]} : vector<8x384xf32> to vector<8x128xf32>
    %373 = vector.extract_strided_slice %330 {offsets = [0, 512], sizes = [8, 128], strides = [1, 1]} : vector<8x768xf32> to vector<8x128xf32>
    %374 = arith.addf %372, %373 : vector<8x128xf32>
    %375 = arith.negf %374 : vector<8x128xf32>
    %376 = math.exp %375 : vector<8x128xf32>
    %cst_75 = arith.constant 1.000000e+00 : f32
    %377 = vector.broadcast %cst_75 : f32 to vector<8x128xf32>
    %378 = arith.addf %377, %376 : vector<8x128xf32>
    %379 = arith.divf %377, %378 : vector<8x128xf32>
    %380 = vector.extract_strided_slice %363 {offsets = [0, 256], sizes = [8, 128], strides = [1, 1]} : vector<8x384xf32> to vector<8x128xf32>
    %381 = vector.extract_strided_slice %330 {offsets = [0, 640], sizes = [8, 128], strides = [1, 1]} : vector<8x768xf32> to vector<8x128xf32>
    %382 = arith.addf %381, %17 : vector<8x128xf32>
    %383 = arith.mulf %371, %382 : vector<8x128xf32>
    %384 = arith.addf %380, %383 : vector<8x128xf32>
    %385 = math.tanh %384 : vector<8x128xf32>
    %cst_76 = arith.constant 1.000000e+00 : f32
    %386 = vector.broadcast %cst_76 : f32 to vector<8x128xf32>
    %387 = arith.subf %386, %379 : vector<8x128xf32>
    %388 = arith.mulf %387, %385 : vector<8x128xf32>
    %389 = arith.mulf %379, %328 : vector<8x128xf32>
    %390 = arith.addf %388, %389 : vector<8x128xf32>
    %c6_i32 = arith.constant 6 : i32
    %391 = tpu.concatenate %361, %390 in 1 : vector<8x128xf32>, vector<8x128xf32> -> vector<8x256xf32>
    %cst_77 = arith.constant dense<0.000000e+00> : vector<8x768xf32>
    %392 = tpu.matmul %391, %7, %cst_77 {dimension_numbers = #tpu.dot_dimension_numbers<[1], [0], [0], [1], [0, 0, 1, 1], [], []>} : vector<8x256xf32>, vector<256x768xf32>, vector<8x768xf32> -> vector<8x768xf32>
    %c8_i32_78 = arith.constant 8 : i32
    %393 = arith.muli %c6_i32, %c8_i32_78 : i32
    %394 = tpu.assume_multiple %393, 8 : i32
    %395 = arith.index_cast %394 : i32 to index
    %c0_79 = arith.constant 0 : index
    %396 = vector.load %arg12[%395, %c0_79] : memref<64x384xf32, #tpu.memory_space<vmem>>, vector<8x384xf32>
    %397 = vector.extract_strided_slice %396 {offsets = [0, 0], sizes = [8, 128], strides = [1, 1]} : vector<8x384xf32> to vector<8x128xf32>
    %398 = vector.extract_strided_slice %392 {offsets = [0, 0], sizes = [8, 128], strides = [1, 1]} : vector<8x768xf32> to vector<8x128xf32>
    %399 = arith.addf %397, %398 : vector<8x128xf32>
    %400 = arith.negf %399 : vector<8x128xf32>
    %401 = math.exp %400 : vector<8x128xf32>
    %cst_80 = arith.constant 1.000000e+00 : f32
    %402 = vector.broadcast %cst_80 : f32 to vector<8x128xf32>
    %403 = arith.addf %402, %401 : vector<8x128xf32>
    %404 = arith.divf %402, %403 : vector<8x128xf32>
    %405 = vector.extract_strided_slice %396 {offsets = [0, 128], sizes = [8, 128], strides = [1, 1]} : vector<8x384xf32> to vector<8x128xf32>
    %406 = vector.extract_strided_slice %392 {offsets = [0, 128], sizes = [8, 128], strides = [1, 1]} : vector<8x768xf32> to vector<8x128xf32>
    %407 = arith.addf %405, %406 : vector<8x128xf32>
    %408 = arith.negf %407 : vector<8x128xf32>
    %409 = math.exp %408 : vector<8x128xf32>
    %cst_81 = arith.constant 1.000000e+00 : f32
    %410 = vector.broadcast %cst_81 : f32 to vector<8x128xf32>
    %411 = arith.addf %410, %409 : vector<8x128xf32>
    %412 = arith.divf %410, %411 : vector<8x128xf32>
    %413 = vector.extract_strided_slice %396 {offsets = [0, 256], sizes = [8, 128], strides = [1, 1]} : vector<8x384xf32> to vector<8x128xf32>
    %414 = vector.extract_strided_slice %392 {offsets = [0, 256], sizes = [8, 128], strides = [1, 1]} : vector<8x768xf32> to vector<8x128xf32>
    %415 = arith.addf %414, %14 : vector<8x128xf32>
    %416 = arith.mulf %404, %415 : vector<8x128xf32>
    %417 = arith.addf %413, %416 : vector<8x128xf32>
    %418 = math.tanh %417 : vector<8x128xf32>
    %cst_82 = arith.constant 1.000000e+00 : f32
    %419 = vector.broadcast %cst_82 : f32 to vector<8x128xf32>
    %420 = arith.subf %419, %412 : vector<8x128xf32>
    %421 = arith.mulf %420, %418 : vector<8x128xf32>
    %422 = arith.mulf %412, %361 : vector<8x128xf32>
    %423 = arith.addf %421, %422 : vector<8x128xf32>
    %cst_83 = arith.constant dense<0.000000e+00> : vector<8x384xf32>
    %424 = tpu.matmul %423, %8, %cst_83 {dimension_numbers = #tpu.dot_dimension_numbers<[1], [0], [0], [1], [0, 0, 1, 1], [], []>} : vector<8x128xf32>, vector<128x384xf32>, vector<8x384xf32> -> vector<8x384xf32>
    %425 = arith.addf %424, %11 : vector<8x384xf32>
    %426 = vector.extract_strided_slice %425 {offsets = [0, 0], sizes = [8, 128], strides = [1, 1]} : vector<8x384xf32> to vector<8x128xf32>
    %427 = vector.extract_strided_slice %392 {offsets = [0, 384], sizes = [8, 128], strides = [1, 1]} : vector<8x768xf32> to vector<8x128xf32>
    %428 = arith.addf %426, %427 : vector<8x128xf32>
    %429 = arith.negf %428 : vector<8x128xf32>
    %430 = math.exp %429 : vector<8x128xf32>
    %cst_84 = arith.constant 1.000000e+00 : f32
    %431 = vector.broadcast %cst_84 : f32 to vector<8x128xf32>
    %432 = arith.addf %431, %430 : vector<8x128xf32>
    %433 = arith.divf %431, %432 : vector<8x128xf32>
    %434 = vector.extract_strided_slice %425 {offsets = [0, 128], sizes = [8, 128], strides = [1, 1]} : vector<8x384xf32> to vector<8x128xf32>
    %435 = vector.extract_strided_slice %392 {offsets = [0, 512], sizes = [8, 128], strides = [1, 1]} : vector<8x768xf32> to vector<8x128xf32>
    %436 = arith.addf %434, %435 : vector<8x128xf32>
    %437 = arith.negf %436 : vector<8x128xf32>
    %438 = math.exp %437 : vector<8x128xf32>
    %cst_85 = arith.constant 1.000000e+00 : f32
    %439 = vector.broadcast %cst_85 : f32 to vector<8x128xf32>
    %440 = arith.addf %439, %438 : vector<8x128xf32>
    %441 = arith.divf %439, %440 : vector<8x128xf32>
    %442 = vector.extract_strided_slice %425 {offsets = [0, 256], sizes = [8, 128], strides = [1, 1]} : vector<8x384xf32> to vector<8x128xf32>
    %443 = vector.extract_strided_slice %392 {offsets = [0, 640], sizes = [8, 128], strides = [1, 1]} : vector<8x768xf32> to vector<8x128xf32>
    %444 = arith.addf %443, %17 : vector<8x128xf32>
    %445 = arith.mulf %433, %444 : vector<8x128xf32>
    %446 = arith.addf %442, %445 : vector<8x128xf32>
    %447 = math.tanh %446 : vector<8x128xf32>
    %cst_86 = arith.constant 1.000000e+00 : f32
    %448 = vector.broadcast %cst_86 : f32 to vector<8x128xf32>
    %449 = arith.subf %448, %441 : vector<8x128xf32>
    %450 = arith.mulf %449, %447 : vector<8x128xf32>
    %451 = arith.mulf %441, %390 : vector<8x128xf32>
    %452 = arith.addf %450, %451 : vector<8x128xf32>
    %c7_i32 = arith.constant 7 : i32
    %453 = tpu.concatenate %423, %452 in 1 : vector<8x128xf32>, vector<8x128xf32> -> vector<8x256xf32>
    %cst_87 = arith.constant dense<0.000000e+00> : vector<8x768xf32>
    %454 = tpu.matmul %453, %7, %cst_87 {dimension_numbers = #tpu.dot_dimension_numbers<[1], [0], [0], [1], [0, 0, 1, 1], [], []>} : vector<8x256xf32>, vector<256x768xf32>, vector<8x768xf32> -> vector<8x768xf32>
    %c8_i32_88 = arith.constant 8 : i32
    %455 = arith.muli %c7_i32, %c8_i32_88 : i32
    %456 = tpu.assume_multiple %455, 8 : i32
    %457 = arith.index_cast %456 : i32 to index
    %c0_89 = arith.constant 0 : index
    %458 = vector.load %arg12[%457, %c0_89] : memref<64x384xf32, #tpu.memory_space<vmem>>, vector<8x384xf32>
    %459 = vector.extract_strided_slice %458 {offsets = [0, 0], sizes = [8, 128], strides = [1, 1]} : vector<8x384xf32> to vector<8x128xf32>
    %460 = vector.extract_strided_slice %454 {offsets = [0, 0], sizes = [8, 128], strides = [1, 1]} : vector<8x768xf32> to vector<8x128xf32>
    %461 = arith.addf %459, %460 : vector<8x128xf32>
    %462 = arith.negf %461 : vector<8x128xf32>
    %463 = math.exp %462 : vector<8x128xf32>
    %cst_90 = arith.constant 1.000000e+00 : f32
    %464 = vector.broadcast %cst_90 : f32 to vector<8x128xf32>
    %465 = arith.addf %464, %463 : vector<8x128xf32>
    %466 = arith.divf %464, %465 : vector<8x128xf32>
    %467 = vector.extract_strided_slice %458 {offsets = [0, 128], sizes = [8, 128], strides = [1, 1]} : vector<8x384xf32> to vector<8x128xf32>
    %468 = vector.extract_strided_slice %454 {offsets = [0, 128], sizes = [8, 128], strides = [1, 1]} : vector<8x768xf32> to vector<8x128xf32>
    %469 = arith.addf %467, %468 : vector<8x128xf32>
    %470 = arith.negf %469 : vector<8x128xf32>
    %471 = math.exp %470 : vector<8x128xf32>
    %cst_91 = arith.constant 1.000000e+00 : f32
    %472 = vector.broadcast %cst_91 : f32 to vector<8x128xf32>
    %473 = arith.addf %472, %471 : vector<8x128xf32>
    %474 = arith.divf %472, %473 : vector<8x128xf32>
    %475 = vector.extract_strided_slice %458 {offsets = [0, 256], sizes = [8, 128], strides = [1, 1]} : vector<8x384xf32> to vector<8x128xf32>
    %476 = vector.extract_strided_slice %454 {offsets = [0, 256], sizes = [8, 128], strides = [1, 1]} : vector<8x768xf32> to vector<8x128xf32>
    %477 = arith.addf %476, %14 : vector<8x128xf32>
    %478 = arith.mulf %466, %477 : vector<8x128xf32>
    %479 = arith.addf %475, %478 : vector<8x128xf32>
    %480 = math.tanh %479 : vector<8x128xf32>
    %cst_92 = arith.constant 1.000000e+00 : f32
    %481 = vector.broadcast %cst_92 : f32 to vector<8x128xf32>
    %482 = arith.subf %481, %474 : vector<8x128xf32>
    %483 = arith.mulf %482, %480 : vector<8x128xf32>
    %484 = arith.mulf %474, %423 : vector<8x128xf32>
    %485 = arith.addf %483, %484 : vector<8x128xf32>
    %cst_93 = arith.constant dense<0.000000e+00> : vector<8x384xf32>
    %486 = tpu.matmul %485, %8, %cst_93 {dimension_numbers = #tpu.dot_dimension_numbers<[1], [0], [0], [1], [0, 0, 1, 1], [], []>} : vector<8x128xf32>, vector<128x384xf32>, vector<8x384xf32> -> vector<8x384xf32>
    %487 = arith.addf %486, %11 : vector<8x384xf32>
    %488 = vector.extract_strided_slice %487 {offsets = [0, 0], sizes = [8, 128], strides = [1, 1]} : vector<8x384xf32> to vector<8x128xf32>
    %489 = vector.extract_strided_slice %454 {offsets = [0, 384], sizes = [8, 128], strides = [1, 1]} : vector<8x768xf32> to vector<8x128xf32>
    %490 = arith.addf %488, %489 : vector<8x128xf32>
    %491 = arith.negf %490 : vector<8x128xf32>
    %492 = math.exp %491 : vector<8x128xf32>
    %cst_94 = arith.constant 1.000000e+00 : f32
    %493 = vector.broadcast %cst_94 : f32 to vector<8x128xf32>
    %494 = arith.addf %493, %492 : vector<8x128xf32>
    %495 = arith.divf %493, %494 : vector<8x128xf32>
    %496 = vector.extract_strided_slice %487 {offsets = [0, 128], sizes = [8, 128], strides = [1, 1]} : vector<8x384xf32> to vector<8x128xf32>
    %497 = vector.extract_strided_slice %454 {offsets = [0, 512], sizes = [8, 128], strides = [1, 1]} : vector<8x768xf32> to vector<8x128xf32>
    %498 = arith.addf %496, %497 : vector<8x128xf32>
    %499 = arith.negf %498 : vector<8x128xf32>
    %500 = math.exp %499 : vector<8x128xf32>
    %cst_95 = arith.constant 1.000000e+00 : f32
    %501 = vector.broadcast %cst_95 : f32 to vector<8x128xf32>
    %502 = arith.addf %501, %500 : vector<8x128xf32>
    %503 = arith.divf %501, %502 : vector<8x128xf32>
    %504 = vector.extract_strided_slice %487 {offsets = [0, 256], sizes = [8, 128], strides = [1, 1]} : vector<8x384xf32> to vector<8x128xf32>
    %505 = vector.extract_strided_slice %454 {offsets = [0, 640], sizes = [8, 128], strides = [1, 1]} : vector<8x768xf32> to vector<8x128xf32>
    %506 = arith.addf %505, %17 : vector<8x128xf32>
    %507 = arith.mulf %495, %506 : vector<8x128xf32>
    %508 = arith.addf %504, %507 : vector<8x128xf32>
    %509 = math.tanh %508 : vector<8x128xf32>
    %cst_96 = arith.constant 1.000000e+00 : f32
    %510 = vector.broadcast %cst_96 : f32 to vector<8x128xf32>
    %511 = arith.subf %510, %503 : vector<8x128xf32>
    %512 = arith.mulf %511, %509 : vector<8x128xf32>
    %513 = arith.mulf %503, %452 : vector<8x128xf32>
    %514 = arith.addf %512, %513 : vector<8x128xf32>
    %c8_i32_97 = arith.constant 8 : i32
    %c0_98 = arith.constant 0 : index
    %c0_99 = arith.constant 0 : index
    %515 = vector.load %arg9[%c0_98, %c0_99] : memref<128x128xf32, #tpu.memory_space<vmem>>, vector<128x128xf32>
    %cst_100 = arith.constant dense<0.000000e+00> : vector<8x128xf32>
    %516 = tpu.matmul %514, %515, %cst_100 {dimension_numbers = #tpu.dot_dimension_numbers<[1], [0], [0], [1], [0, 0, 1, 1], [], []>} : vector<8x128xf32>, vector<128x128xf32>, vector<8x128xf32> -> vector<8x128xf32>
    %c0_101 = arith.constant 0 : index
    %c0_102 = arith.constant 0 : index
    %517 = vector.load %arg10[%c0_101, %c0_102] : memref<1x128xf32, #tpu.memory_space<vmem>>, vector<1x128xf32>
    %518 = vector.broadcast %517 : vector<1x128xf32> to vector<8x128xf32>
    %519 = arith.addf %516, %518 : vector<8x128xf32>
    %520 = arith.negf %519 : vector<8x128xf32>
    %521 = math.exp %520 : vector<8x128xf32>
    %cst_103 = arith.constant 1.000000e+00 : f32
    %522 = vector.broadcast %cst_103 : f32 to vector<8x128xf32>
    %523 = arith.addf %522, %521 : vector<8x128xf32>
    %524 = arith.divf %522, %523 : vector<8x128xf32>
    %c0_104 = arith.constant 0 : index
    %c0_105 = arith.constant 0 : index
    %525 = vector.load %arg11[%c0_104, %c0_105] : memref<8x128xf32, #tpu.memory_space<vmem>>, vector<8x128xf32>
    tpu.vector_store %arg11[%c0_104, %c0_105], %524 {strides = array<i32>} : memref<8x128xf32, #tpu.memory_space<vmem>>, vector<8x128xf32>,
    return
  }
  func.func @transform_0(%arg0: i32) -> (i32, i32) {
    %c0_i32 = arith.constant 0 : i32
    %c0_i32_0 = arith.constant 0 : i32
    %c0_i32_1 = arith.constant 0 : i32
    return %c0_i32, %c0_i32_0 : i32, i32
  }
  func.func @transform_1(%arg0: i32) -> (i32, i32) {
    %c0_i32 = arith.constant 0 : i32
    %c0_i32_0 = arith.constant 0 : i32
    %c0_i32_1 = arith.constant 0 : i32
    return %c0_i32, %c0_i32_0 : i32, i32
  }
  func.func @transform_2(%arg0: i32) -> (i32, i32) {
    %c0_i32 = arith.constant 0 : i32
    %c0_i32_0 = arith.constant 0 : i32
    %c0_i32_1 = arith.constant 0 : i32
    return %c0_i32, %c0_i32_0 : i32, i32
  }
  func.func @transform_3(%arg0: i32) -> (i32, i32) {
    %c0_i32 = arith.constant 0 : i32
    %c0_i32_0 = arith.constant 0 : i32
    %c0_i32_1 = arith.constant 0 : i32
    return %c0_i32, %c0_i32_0 : i32, i32
  }
  func.func @transform_4(%arg0: i32) -> (i32, i32) {
    %c0_i32 = arith.constant 0 : i32
    %c0_i32_0 = arith.constant 0 : i32
    %c0_i32_1 = arith.constant 0 : i32
    return %c0_i32, %c0_i32_0 : i32, i32
  }
  func.func @transform_5(%arg0: i32) -> (i32, i32) {
    %c0_i32 = arith.constant 0 : i32
    %c0_i32_0 = arith.constant 0 : i32
    %c0_i32_1 = arith.constant 0 : i32
    return %c0_i32, %c0_i32_0 : i32, i32
  }
  func.func @transform_6(%arg0: i32) -> (i32, i32) {
    %c0_i32 = arith.constant 0 : i32
    %c0_i32_0 = arith.constant 0 : i32
    %c0_i32_1 = arith.constant 0 : i32
    return %c0_i32, %c0_i32_0 : i32, i32
  }
  func.func @transform_7(%arg0: i32) -> (i32, i32) {
    %c0_i32 = arith.constant 0 : i32
    %c0_i32_0 = arith.constant 0 : i32
    %c0_i32_1 = arith.constant 0 : i32
    return %c0_i32, %c0_i32_0 : i32, i32
  }
  func.func @transform_8(%arg0: i32) -> (i32, i32) {
    %c0_i32 = arith.constant 0 : i32
    %c0_i32_0 = arith.constant 0 : i32
    %c0_i32_1 = arith.constant 0 : i32
    return %c0_i32, %c0_i32_0 : i32, i32
  }
  func.func @transform_9(%arg0: i32) -> (i32, i32) {
    %c0_i32 = arith.constant 0 : i32
    %c0_i32_0 = arith.constant 0 : i32
    %c0_i32_1 = arith.constant 0 : i32
    return %c0_i32, %c0_i32_0 : i32, i32
  }
  func.func @transform_10(%arg0: i32) -> (i32, i32) {
    %c0_i32 = arith.constant 0 : i32
    %c0_i32_0 = arith.constant 0 : i32
    %c0_i32_1 = arith.constant 0 : i32
    return %c0_i32, %c0_i32_0 : i32, i32
  }
}

</mosaic_0001>

<bundles_post_ra>
// kernel: gru_anomaly_detector_pallas.1
= control target key start
LH: loop header
LB: loop body
LE: loop exit
PB: predicated region body
PF: predicated region fallthrough
CT: control target
= control target key end

     0   :  { %vm57_vm0 = vcmask 130048   ;;  %v12015_v62 = vmov 0.0   ;;  %s12004_s1 = inlined_call_operand.vmem [shape: f32[16,384], index: 1, kind: input, shape index: {}]   ;;  %s12005_s2 = inlined_call_operand.vmem [shape: f32[256,768], index: 2, kind: input, shape index: {}]   ;;  %s12006_s0 = inlined_call_operand.vmem [shape: f32[64,16], index: 0, kind: input, shape index: {}]   ;;  %s12007_s4 = inlined_call_operand.vmem [shape: f32[1,128], index: 4, kind: input, shape index: {}]   ;;  %s12008_s5 = inlined_call_operand.vmem [shape: f32[128,384], index: 5, kind: input, shape index: {}]   ;;  %s12009_s3 = inlined_call_operand.vmem [shape: f32[1,384], index: 3, kind: input, shape index: {}]   ;;  %s12010_s7 = inlined_call_operand.vmem [shape: f32[1,128], index: 7, kind: input, shape index: {}]   ;;  %s12011_s6 = inlined_call_operand.vmem [shape: f32[1,384], index: 6, kind: input, shape index: {}]   ;;  %s12012_s9 = inlined_call_operand.vmem [shape: f32[1,128], index: 9, kind: input, shape index: {}]   ;;  %s12013_s8 = inlined_call_operand.vmem [shape: f32[128,128], index: 8, kind: input, shape index: {}]   ;;  %s12014_s10 = inlined_call_operand.vmem [shape: f32[8,128], index: 10, kind: output, shape index: {}]  }
   0x1   :  { %v46_v0 = vld [vmem:[%s12004_s1 + $0x18] sm:$0xff]  ;;  %v47_v1 = vld [vmem:[%s12004_s1 + $0x20] sm:$0xff]  ;;  %v4889_v2 = vld [vmem:[%s12005_s2 + $0x2d0] sm:$0xff] }
   0x2   :  { %96 = vmatpush.msra.mxu0 %v46_v0  ;;  %137 = vmatpush.msra.mxu1 %v47_v1  ;;  %v43_v3 = vld [vmem:[%s12004_s1] sm:$0xff]  ;;  %v44_v4 = vld [vmem:[%s12004_s1 + $0x8] sm:$0xff]  ;;  %v4909_v7 = vld [vmem:[%s12005_s2 + $0x270] sm:$0xff] }
   0x3   :  { %v4900_v5 = vld [vmem:[%s12005_s2 + $0x2a0] sm:$0xff]  ;;  %485 = vmatpush.msra.mxu3 %v4889_v2  ;;  %v4922_v9 = vld [vmem:[%s12005_s2 + $0x2d8] sm:$0xff]  ;;  %v4932_v11 = vld [vmem:[%s12005_s2 + $0x2a8] sm:$0xff] }
   0x4   :  { %v35_v6 = vld [vmem:[%s12006_s0] sm:$0xff]  ;;  %97 = vmatpush.msra.mxu0 %v43_v3  ;;  %138 = vmatpush.msra.mxu1 %v44_v4  ;;  %v416_v10 = vld [vmem:[%s12005_s2 + $0x5d8] sm:$0xff]  ;;  %v4937_v12 = vld [vmem:[%s12005_s2 + $0x210] sm:$0xff] }
   0x5   :  { %486 = vmatpush.msra.mxu3 %v4900_v5  ;;  %3772 = vmatmul.msk.f32.vlgmr.msra.gmra.mxu0 %vm57_vm0, %v35_v6  ;;  %v4917_v8 = vld [vmem:[%s12005_s2 + $0x240] sm:$0xff]  ;;  %v410_v13 = vld [vmem:[%s12005_s2 + $0x5a8] sm:$0xff]  ;;  %v4947_v14 = vld [vmem:[%s12005_s2 + $0x278] sm:$0xff] }
   0x6   :  { %3780 = vmatmul.msk.f32.vlgmr.msra.gmra.mxu1 %vm57_vm0, %v35_v6  ;;  %525 = vmatpush.msrb.mxu0 %v4922_v9  ;;  %v404_v15 = vld [vmem:[%s12005_s2 + $0x578] sm:$0xff]  ;;  %v48_v16 = vld [vmem:[%s12004_s1 + $0x28] sm:$0xff]  ;;  %v4958_v17 = vld [vmem:[%s12005_s2 + $0x1e0] sm:$0xff] }
   0x7   :  { %487 = vmatpush.msra.mxu3 %v4909_v7  ;;  %545 = vmatpush.msrb.mxu1 %v416_v10  ;;  %v36_v18 = vld [vmem:[%s12006_s0 + $0x8] sm:$0xff]  ;;  %v45_v19 = vld [vmem:[%s12004_s1 + $0x10] sm:$0xff]  ;;  %v4986_v23 = vld [vmem:[%s12005_s2 + $0x218] sm:$0xff] }
   0x8   :  { %526 = vmatpush.msrb.mxu0 %v4932_v11  ;;  %178 = vmatpush.msra.mxu2 %v48_v16  ;;  %v4971_v20 = vld [vmem:[%s12005_s2 + $0x248] sm:$0xff]  ;;  %v4976_v21 = vld [vmem:[%s12005_s2 + $0x1b0] sm:$0xff]  ;;  %v4992_v24 = vld [vmem:[%s12005_s2 + $0x180] sm:$0xff] }
   0x9   :  { %488 = vmatpush.msra.mxu3 %v4917_v8  ;;  %546 = vmatpush.msrb.mxu1 %v410_v13  ;;  %v398_v22 = vld [vmem:[%s12005_s2 + $0x548] sm:$0xff]  ;;  %v4998_v25 = vld [vmem:[%s12005_s2 + $0x2e0] sm:$0xff]  ;;  %v392_v26 = vld [vmem:[%s12005_s2 + $0x518] sm:$0xff] }
   0xa   :  { %527 = vmatpush.msrb.mxu0 %v4947_v14  ;;  %179 = vmatpush.msra.mxu2 %v45_v19  ;;  %v5007_v27 = vld [vmem:[%s12005_s2 + $0x1e8] sm:$0xff]  ;;  %v5012_v28 = vld [vmem:[%s12005_s2 + $0x150] sm:$0xff]  ;;  %v5029_v31 = vld [vmem:[%s12005_s2 + $0x1b8] sm:$0xff] }
   0xb   :  { %489 = vmatpush.msra.mxu3 %v4937_v12  ;;  %547 = vmatpush.msrb.mxu1 %v404_v15  ;;  %v5019_v29 = vld [vmem:[%s12005_s2 + $0x2b0] sm:$0xff]  ;;  %v386_v30 = vld [vmem:[%s12005_s2 + $0x4e8] sm:$0xff]  ;;  %v5034_v32 = vld [vmem:[%s12005_s2 + $0x120] sm:$0xff] }
   0xc   :  { %528 = vmatpush.msrb.mxu0 %v4971_v20  ;;  %3788 = vmatmul.msk.f32.vlgmr.msra.gmra.mxu2 %vm57_vm0, %v35_v6  ;;  %v37_v33 = vld [vmem:[%s12006_s0 + $0x10] sm:$0xff]  ;;  %v5045_v34 = vld [vmem:[%s12005_s2 + $0x280] sm:$0xff]  ;;  %v380_v36 = vld [vmem:[%s12005_s2 + $0x4b8] sm:$0xff] }
   0xd   :  { %490 = vmatpush.msra.mxu3 %v4958_v17  ;;  %3773 = vmatmul.msk.f32.gmra.mxu0 %vm57_vm0, %v36_v18  ;;  %v5050_v35 = vld [vmem:[%s12005_s2 + $0xf0] sm:$0xff]  ;;  %v5061_v37 = vld [vmem:[%s12005_s2 + $0x188] sm:$0xff]  ;;  %v5067_v38 = vld [vmem:[%s12005_s2 + $0xc0] sm:$0xff] }
   0xe   :  { %3781 = vmatmul.msk.f32.gmra.mxu1 %vm57_vm0, %v36_v18  ;;  %529 = vmatpush.msrb.mxu0 %v4986_v23  ;;  %v5073_v39 = vld [vmem:[%s12005_s2 + $0x250] sm:$0xff]  ;;  %v374_v40 = vld [vmem:[%s12005_s2 + $0x488] sm:$0xff]  ;;  %v5082_v41 = vld [vmem:[%s12005_s2 + $0x158] sm:$0xff] }
   0xf   :  { %491 = vmatpush.msra.mxu3 %v4976_v21  ;;  %548 = vmatpush.msrb.mxu1 %v398_v22  ;;  %v5087_v42 = vld [vmem:[%s12005_s2 + $0x90] sm:$0xff]  ;;  %v5094_v43 = vld [vmem:[%s12005_s2 + $0x220] sm:$0xff]  ;;  %v368_v44 = vld [vmem:[%s12005_s2 + $0x458] sm:$0xff] }
  0x10   :  { %565 = vmatpush.msrb.mxu2 %v4998_v25  ;;  %530 = vmatpush.msrb.mxu0 %v5007_v27  ;;  %v5104_v45 = vld [vmem:[%s12005_s2 + $0x128] sm:$0xff]  ;;  %v5109_v46 = vld [vmem:[%s12005_s2 + $0x60] sm:$0xff]  ;;  %v38_v47 = vld [vmem:[%s12006_s0 + $0x18] sm:$0xff] }
  0x11   :  { %492 = vmatpush.msra.mxu3 %v4992_v24  ;;  %549 = vmatpush.msrb.mxu1 %v392_v26  ;;  %v5120_v48 = vld [vmem:[%s12005_s2 + $0x1f0] sm:$0xff]  ;;  %v362_v50 = vld [vmem:[%s12005_s2 + $0x428] sm:$0xff]  ;;  %v5136_v51 = vld [vmem:[%s12005_s2 + $0xf8] sm:$0xff] }
  0x12   :  { %566 = vmatpush.msrb.mxu2 %v5019_v29  ;;  %531 = vmatpush.msrb.mxu0 %v5029_v31  ;;  %v5125_v49 = vld [vmem:[%s12005_s2 + $0x30] sm:$0xff]  ;;  %v5142_v52 = vld [vmem:[%s12005_s2] sm:$0xff]  ;;  %v356_v55 = vld [vmem:[%s12005_s2 + $0x3f8] sm:$0xff] }
  0x13   :  { %493 = vmatpush.msra.mxu3 %v5012_v28  ;;  %550 = vmatpush.msrb.mxu1 %v386_v30  ;;  %v5148_v53 = vld [vmem:[%s12005_s2 + $0x1c0] sm:$0xff]  ;;  %v415_v54 = vld [vmem:[%s12005_s2 + $0x5d0] sm:$0xff]  ;;  %v5172_v58 = vld [vmem:[%s12005_s2 + $0xc8] sm:$0xff] }
  0x14   :  { %567 = vmatpush.msrb.mxu2 %v5045_v34  ;;  %532 = vmatpush.msrb.mxu0 %v5061_v37  ;;  %v5162_v56 = vld [vmem:[%s12005_s2 + $0x190] sm:$0xff]  ;;  %v409_v57 = vld [vmem:[%s12005_s2 + $0x5a0] sm:$0xff]  ;;  %v350_v60 = vld [vmem:[%s12005_s2 + $0x3c8] sm:$0xff] }
  0x15   :  { %494 = vmatpush.msra.mxu3 %v5034_v32  ;;  %3774 = vmatmul.msk.f32.gmra.mxu0 %vm57_vm0, %v37_v33  ;;  %v39_v59 = vld [vmem:[%s12006_s0 + $0x20] sm:$0xff]  ;;  %v403_v61 = vld [vmem:[%s12005_s2 + $0x570] sm:$0xff]  ;;  %v5189_v63 = vld [vmem:[%s12005_s2 + $0x98] sm:$0xff] }
  0x16   :  { %3782 = vmatmul.msk.f32.gmra.mxu1 %vm57_vm0, %v37_v33  ;;  %3789 = vmatmul.msk.f32.gmra.mxu2 %vm57_vm0, %v36_v18  ;;  %v344_v0 = vld [vmem:[%s12005_s2 + $0x398] sm:$0xff]  ;;  %v397_v1 = vld [vmem:[%s12005_s2 + $0x540] sm:$0xff]  ;;  %v5207_v4 = vld [vmem:[%s12005_s2 + $0x68] sm:$0xff] }
  0x17   :  { %495 = vmatpush.msra.mxu3 %v5050_v35  ;;  %551 = vmatpush.msrb.mxu1 %v380_v36  ;;  %v5202_v3 = vld [vmem:[%s12005_s2 + $0x160] sm:$0xff]  ;;  %v391_v6 = vld [vmem:[%s12005_s2 + $0x510] sm:$0xff]  ;;  %v338_v10 = vld [vmem:[%s12005_s2 + $0x368] sm:$0xff] }
  0x18   :  { %568 = vmatpush.msrb.mxu2 %v5073_v39  ;;  %533 = vmatpush.msrb.mxu0 %v5082_v41  ;;  %v5220_v13 = vld [vmem:[%s12005_s2 + $0x38] sm:$0xff]  ;;  %v5225_v15 = vld [vmem:[%s12005_s2 + $0x130] sm:$0xff]  ;;  %v385_v16 = vld [vmem:[%s12005_s2 + $0x4e0] sm:$0xff] }
  0x19   :  { %496 = vmatpush.msra.mxu3 %v5067_v38  ;;  %552 = vmatpush.msrb.mxu1 %v374_v40  ;;  %v332_v18 = vld [vmem:[%s12005_s2 + $0x338] sm:$0xff]  ;;  %v40_v19 = vld [vmem:[%s12006_s0 + $0x28] sm:$0xff]  ;;  %v5241_v22 = vld [vmem:[%s12005_s2 + $0x100] sm:$0xff] }
  0x1a   :  { %569 = vmatpush.msrb.mxu2 %v5094_v43  ;;  %534 = vmatpush.msrb.mxu0 %v5104_v45  ;;  %v379_v26 = vld [vmem:[%s12005_s2 + $0x4b0] sm:$0xff]  ;;  %v5251_v30 = vld [vmem:[%s12005_s2 + $0x8] sm:$0xff]  ;;  %v373_v36 = vld [vmem:[%s12005_s2 + $0x480] sm:$0xff] }
  0x1b   :  { %497 = vmatpush.msra.mxu3 %v5087_v42  ;;  %553 = vmatpush.msrb.mxu1 %v368_v44  ;;  %v5265_v40 = vld [vmem:[%s12005_s2 + $0xd0] sm:$0xff] }
  0x1c   :  { %570 = vmatpush.msrb.mxu2 %v5120_v48  ;;  %535 = vmatpush.msrb.mxu0 %v5136_v51  ;;  %v367_v44 = vld [vmem:[%s12005_s2 + $0x450] sm:$0xff] }
  0x1d   :  { %498 = vmatpush.msra.mxu3 %v5109_v46  ;;  %3775 = vmatmul.msk.f32.gmra.mxu0 %vm57_vm0, %v38_v47 }
  0x1e   :  { %3783 = vmatmul.msk.f32.gmra.mxu1 %vm57_vm0, %v38_v47  ;;  %3790 = vmatmul.msk.f32.gmra.mxu2 %vm57_vm0, %v37_v33  ;;  %v326_v33 = vld [vmem:[%s12005_s2 + $0x308] sm:$0xff] }
  0x1f   :  { %499 = vmatpush.msra.mxu3 %v5125_v49  ;;  %554 = vmatpush.msrb.mxu1 %v362_v50  ;;  %v361_v50 = vld [vmem:[%s12005_s2 + $0x420] sm:$0xff] }
  0x20   :  { %571 = vmatpush.msrb.mxu2 %v5148_v53  ;;  %536 = vmatpush.msrb.mxu0 %v5172_v58 }
  0x21   :  { %500 = vmatpush.msra.mxu3 %v5142_v52  ;;  %555 = vmatpush.msrb.mxu1 %v356_v55  ;;  %v355_v55 = vld [vmem:[%s12005_s2 + $0x3f0] sm:$0xff] }
  0x22   :  { %501 = vmatmul.f32.vlgmr.msra.gmra.mxu3 %v12015_v62  ;;  %572 = vmatpush.msrb.mxu2 %v5162_v56 }
  0x23   :  { %505 = vmatpush.msrb.mxu3 %v415_v54  ;;  %556 = vmatpush.msrb.mxu1 %v350_v60  ;;  %v41_v54 = vld [vmem:[%s12006_s0 + $0x30] sm:$0xff] }
  0x24   :  { %537 = vmatpush.msrb.mxu0 %v5189_v63  ;;  %573 = vmatpush.msrb.mxu2 %v5202_v3  ;;  %v343_v60 = vld [vmem:[%s12005_s2 + $0x390] sm:$0xff] }
  0x25   :  { %506 = vmatpush.msrb.mxu3 %v409_v57  ;;  %3776 = vmatmul.msk.f32.gmra.mxu0 %vm57_vm0, %v39_v59  ;;  %v5291_v57 = vld [vmem:[%s12005_s2 + $0x70] sm:$0xff] }
  0x26   :  { %3784 = vmatmul.msk.f32.gmra.mxu1 %vm57_vm0, %v39_v59  ;;  %3791 = vmatmul.msk.f32.gmra.mxu2 %vm57_vm0, %v38_v47  ;;  %v5275_v47 = vld [vmem:[%s12005_s2 + $0xa0] sm:$0xff] }
  0x27   :  { %507 = vmatpush.msrb.mxu3 %v403_v61  ;;  %557 = vmatpush.msrb.mxu1 %v344_v0  ;;  %v5306_v61 = vld [vmem:[%s12005_s2 + $0x40] sm:$0xff] }
  0x28   :  { %538 = vmatpush.msrb.mxu0 %v5207_v4  ;;  %574 = vmatpush.msrb.mxu2 %v5225_v15  ;;  %v337_v0 = vld [vmem:[%s12005_s2 + $0x360] sm:$0xff] }
  0x29   :  { %508 = vmatpush.msrb.mxu3 %v397_v1  ;;  %558 = vmatpush.msrb.mxu1 %v338_v10  ;;  %v42_v1 = vld [vmem:[%s12006_s0 + $0x38] sm:$0xff]  ;;  %v5321_v10 = vld [vmem:[%s12005_s2 + $0x10] sm:$0xff] }
  0x2a   :  { %539 = vmatpush.msrb.mxu0 %v5220_v13  ;;  %575 = vmatpush.msrb.mxu2 %v5241_v22 }
  0x2b   :  { %509 = vmatpush.msrb.mxu3 %v391_v6  ;;  %559 = vmatpush.msrb.mxu1 %v332_v18  ;;  %v331_v6 = vld [vmem:[%s12005_s2 + $0x330] sm:$0xff]  ;;  %v417_v18 = vld [vmem:[%s12005_s2 + $0x5e0] sm:$0xff] }
  0x2c   :  { %540 = vmatpush.msrb.mxu0 %v5251_v30  ;;  %576 = vmatpush.msrb.mxu2 %v5265_v40 }
  0x2d   :  { %510 = vmatpush.msrb.mxu3 %v385_v16  ;;  %3777 = vmatmul.msk.f32.gmra.mxu0 %vm57_vm0, %v40_v19  ;;  %v325_v16 = vld [vmem:[%s12005_s2 + $0x300] sm:$0xff] }
  0x2e   :  { %3785 = vmatmul.msk.f32.gmra.mxu1 %vm57_vm0, %v40_v19  ;;  %3792 = vmatmul.msk.f32.gmra.mxu2 %vm57_vm0, %v39_v59  ;;  %v349_v59 = vld [vmem:[%s12005_s2 + $0x3c0] sm:$0xff] }
  0x2f   :  { %511 = vmatpush.msrb.mxu3 %v379_v26  ;;  %560 = vmatpush.msrb.mxu1 %v326_v33  ;;  %v418_v26 = vld [vmem:[%s12005_s2 + $0x5e8] sm:$0xff]  ;;  %v412_v33 = vld [vmem:[%s12005_s2 + $0x5b8] sm:$0xff] }
  0x30   :  { %577 = vmatpush.msrb.mxu2 %v5275_v47 }
  0x31   :  { %512 = vmatpush.msrb.mxu3 %v373_v36  ;;  %625 = vmatpush.msra.mxu1 %v418_v26  ;;  %v405_v36 = vld [vmem:[%s12005_s2 + $0x580] sm:$0xff]  ;;  %v339_v26 = vld [vmem:[%s12005_s2 + $0x370] sm:$0xff] }
  0x32   :  { %578 = vmatpush.msrb.mxu2 %v5291_v57 }
  0x33   :  { %513 = vmatpush.msrb.mxu3 %v367_v44  ;;  %626 = vmatpush.msra.mxu1 %v412_v33  ;;  %v406_v44 = vld [vmem:[%s12005_s2 + $0x588] sm:$0xff]  ;;  %v333_v33 = vld [vmem:[%s12005_s2 + $0x340] sm:$0xff] }
  0x34   :  { %579 = vmatpush.msrb.mxu2 %v5306_v61 }
  0x35   :  { %514 = vmatpush.msrb.mxu3 %v361_v50  ;;  %3778 = vmatmul.msk.f32.gmra.mxu0 %vm57_vm0, %v41_v54  ;;  %v399_v50 = vld [vmem:[%s12005_s2 + $0x550] sm:$0xff] }
  0x36   :  { %3786 = vmatmul.msk.f32.gmra.mxu1 %vm57_vm0, %v41_v54  ;;  %3793 = vmatmul.msk.f32.gmra.mxu2 %vm57_vm0, %v40_v19  ;;  %v411_v19 = vld [vmem:[%s12005_s2 + $0x5b0] sm:$0xff] }
  0x37   :  { %515 = vmatpush.msrb.mxu3 %v355_v55  ;;  %580 = vmatpush.msrb.mxu2 %v5321_v10  ;;  %v393_v55 = vld [vmem:[%s12005_s2 + $0x520] sm:$0xff] }
  0x38   :  { %627 = vmatpush.msra.mxu1 %v406_v44  ;;  %v5399_v44 = vld [vmem:[%s12005_s2 + $0x528] sm:$0xff] }
  0x39   :  { %516 = vmatpush.msrb.mxu3 %v349_v59  ;;  %v387_v59 = vld [vmem:[%s12005_s2 + $0x4f0] sm:$0xff]  ;;  %12610 = vst [vmem:[#allocation3_spill] sm:$0xff] %v5399_v44 }
  0x3b   :  { %517 = vmatpush.msrb.mxu3 %v343_v60  ;;  %v381_v60 = vld [vmem:[%s12005_s2 + $0x4c0] sm:$0xff] }
  0x3d   :  { %518 = vmatpush.msrb.mxu3 %v337_v0  ;;  %3779 = vmatmul.msk.f32.gmra.mxu0 %vm57_vm0, %v42_v1  ;;  %v375_v0 = vld [vmem:[%s12005_s2 + $0x490] sm:$0xff] }
  0x3e   :  { %3787 = vmatmul.msk.f32.gmra.mxu1 %vm57_vm0, %v42_v1  ;;  %3794 = vmatmul.msk.f32.gmra.mxu2 %vm57_vm0, %v41_v54  ;;  %v400_v54 = vld [vmem:[%s12005_s2 + $0x558] sm:$0xff] }
  0x3f   :  { %519 = vmatpush.msrb.mxu3 %v331_v6  ;;  %628 = vmatpush.msra.mxu1 %v400_v54  ;;  %v363_v6 = vld [vmem:[%s12005_s2 + $0x430] sm:$0xff]  ;;  %v5410_v54 = vld [vmem:[%s12005_s2 + $0x4c8] sm:$0xff] }
  0x40   :  { %12612 = vst [vmem:[#allocation5_spill] sm:$0xff] %v5410_v54 }
  0x41   :  { %520 = vmatpush.msrb.mxu3 %v325_v16  ;;  %v357_v16 = vld [vmem:[%s12005_s2 + $0x400] sm:$0xff]  ;;  %629 = vmatpush.msra.mxu1 %v5399_v44  ;;  %v378_v44 = vld [vmem:[%s12005_s2 + $0x4a8] sm:$0xff] }
  0x42   :  { %521 = vmatmul.f32.vlgmr.msrb.gmra.mxu3 %v12015_v62 }
  0x43   :  { %585 = vmatpush.msra.mxu3 %v417_v18  ;;  %v351_v18 = vld [vmem:[%s12005_s2 + $0x3d0] sm:$0xff] }
  0x45   :  { %586 = vmatpush.msra.mxu3 %v411_v19  ;;  %541 = vmatmul.f32.vlgmr.msrb.gmra.mxu0 %v12015_v62  ;;  %v345_v19 = vld [vmem:[%s12005_s2 + $0x3a0] sm:$0xff] }
  0x46   :  { %561 = vmatmul.f32.vlgmr.msrb.gmra.mxu1 %v12015_v62  ;;  %3795 = vmatmul.msk.f32.gmra.mxu2 %vm57_vm0, %v42_v1  ;;  %v369_v1 = vld [vmem:[%s12005_s2 + $0x460] sm:$0xff] }
  0x47   :  { %587 = vmatpush.msra.mxu3 %v405_v36  ;;  %v327_v36 = vld [vmem:[%s12005_s2 + $0x310] sm:$0xff] }
  0x49   :  { %588 = vmatpush.msra.mxu3 %v399_v50  ;;  %v5405_v50 = vld [vmem:[%s12005_s2 + $0x4f8] sm:$0xff] }
  0x4a   :  { %12611 = vst [vmem:[#allocation4_spill] sm:$0xff] %v5405_v50  ;;  %630 = vmatpush.msra.mxu1 %v5405_v50  ;;  %v5550_v50 = vld [vmem:[%s12005_s2 + $0x198] sm:$0xff] }
  0x4b   :  { %589 = vmatpush.msra.mxu3 %v393_v55  ;;  %v5416_v55 = vld [vmem:[%s12005_s2 + $0x498] sm:$0xff]  ;;  %12624 = vst [vmem:[#allocation16_spill] sm:$0xff] %v5550_v50 }
  0x4c   :  { %12613 = vst [vmem:[#allocation6_spill] sm:$0xff] %v5416_v55  ;;  %631 = vmatpush.msra.mxu1 %v5410_v54  ;;  %v390_v54 = vld [vmem:[%s12005_s2 + $0x508] sm:$0xff] }
  0x4d   :  { %590 = vmatpush.msra.mxu3 %v387_v59  ;;  %v5423_v59 = vld [vmem:[%s12005_s2 + $0x468] sm:$0xff] }
  0x4e   :  { %581 = vmatmul.f32.vlgmr.msrb.gmra.mxu2 %v12015_v62  ;;  %632 = vmatpush.msra.mxu1 %v5416_v55  ;;  %12614 = vst [vmem:[#allocation7_spill] sm:$0xff] %v5423_v59  ;;  %v5527_v55 = vld [vmem:[%s12005_s2 + $0x1f8] sm:$0xff] }
  0x4f   :  { %591 = vmatpush.msra.mxu3 %v381_v60  ;;  %v5429_v60 = vld [vmem:[%s12005_s2 + $0x438] sm:$0xff]  ;;  %12622 = vst [vmem:[#allocation14_spill] sm:$0xff] %v5527_v55 }
  0x50   :  { %633 = vmatpush.msra.mxu1 %v5423_v59  ;;  %12615 = vst [vmem:[#allocation8_spill] sm:$0xff] %v5429_v60 }
  0x51   :  { %592 = vmatpush.msra.mxu3 %v375_v0  ;;  %v5434_v0 = vld [vmem:[%s12005_s2 + $0x408] sm:$0xff] }
  0x52   :  { %12616 = vst [vmem:[#allocation9_spill] sm:$0xff] %v5434_v0  ;;  %634 = vmatpush.msra.mxu1 %v5429_v60  ;;  %v395_v60 = vld [vmem:[%s12005_s2 + $0x530] sm:$0xff] }
  0x53   :  { %593 = vmatpush.msra.mxu3 %v369_v1  ;;  %v5440_v1 = vld [vmem:[%s12005_s2 + $0x3d8] sm:$0xff] }
  0x54   :  { %12617 = vst [vmem:[#allocation10_spill] sm:$0xff] %v5440_v1  ;;  %635 = vmatpush.msra.mxu1 %v5434_v0  ;;  %v402_v0 = vld [vmem:[%s12005_s2 + $0x568] sm:$0xff] }
  0x55   :  { %594 = vmatpush.msra.mxu3 %v363_v6  ;;  %v5447_v6 = vld [vmem:[%s12005_s2 + $0x3a8] sm:$0xff] }
  0x56   :  { %636 = vmatpush.msra.mxu1 %v5440_v1  ;;  %12618 = vst [vmem:[#allocation11_spill] sm:$0xff] %v5447_v6  ;;  %v5498_v1 = vld [vmem:[%s12005_s2 + $0x258] sm:$0xff] }
  0x57   :  { %595 = vmatpush.msra.mxu3 %v357_v16  ;;  %v340_v16 = vld [vmem:[%s12005_s2 + $0x378] sm:$0xff]  ;;  %12620 = vst [vmem:[#allocation12_spill] sm:$0xff] %v5498_v1 }
  0x58   :  { %637 = vmatpush.msra.mxu1 %v5447_v6  ;;  %v408_v6 = vld [vmem:[%s12005_s2 + $0x598] sm:$0xff] }
  0x59   :  { %596 = vmatpush.msra.mxu3 %v351_v18  ;;  %v334_v18 = vld [vmem:[%s12005_s2 + $0x348] sm:$0xff] }
  0x5a   :  { %638 = vmatpush.msra.mxu1 %v340_v16  ;;  %v413_v16 = vld [vmem:[%s12005_s2 + $0x5c0] sm:$0xff] }
  0x5b   :  { %597 = vmatpush.msra.mxu3 %v345_v19  ;;  %v5459_v19 = vld [vmem:[%s12005_s2 + $0x2e8] sm:$0xff] }
  0x5c   :  { %605 = vmatpush.msra.mxu0 %v5459_v19  ;;  %639 = vmatpush.msra.mxu1 %v334_v18  ;;  %v12619_v18 = vmov 0.0  }
  0x5d   :  { %598 = vmatpush.msra.mxu3 %v339_v26  ;;  %v419_v26 = vld [vmem:[%s12005_s2 + $0x5f0] sm:$0xff] }
  0x5f   :  { %599 = vmatpush.msra.mxu3 %v333_v33  ;;  %v328_v33 = vld [vmem:[%s12005_s2 + $0x318] sm:$0xff] }
  0x60   :  { %640 = vmatpush.msra.mxu1 %v328_v33  ;;  %v5487_v33 = vld [vmem:[%s12005_s2 + $0x288] sm:$0xff] }
  0x61   :  { %600 = vmatpush.msra.mxu3 %v327_v36  ;;  %v420_v36 = vld [vmem:[%s12005_s2 + $0x5f8] sm:$0xff]  ;;  %641 = vmatmul.f32.vlgmr.msra.gmra.mxu1 %v12619_v18 }
  0x62   :  { %601 = vmatmul.f32.vlgmr.msra.gmra.mxu3 %v12015_v62  ;;  %705 = vmatpush.msrb.mxu1 %v420_v36  ;;  %v5474_v62 = vld [vmem:[%s12005_s2 + $0x2b8] sm:$0xff]  ;;  %v407_v36 = vld [vmem:[%s12005_s2 + $0x590] sm:$0xff] }
  0x63   :  { %665 = vmatpush.msrb.mxu3 %v419_v26  ;;  %v414_v26 = vld [vmem:[%s12005_s2 + $0x5c8] sm:$0xff]  ;;  %606 = vmatpush.msra.mxu0 %v5474_v62 }
  0x64   :  { %706 = vmatpush.msrb.mxu1 %v414_v26  ;;  %v5510_v26 = vld [vmem:[%s12005_s2 + $0x228] sm:$0xff] }
  0x65   :  { %666 = vmatpush.msrb.mxu3 %v413_v16  ;;  %v401_v16 = vld [vmem:[%s12005_s2 + $0x560] sm:$0xff]  ;;  %607 = vmatpush.msra.mxu0 %v5487_v33  ;;  %12621 = vst [vmem:[#allocation13_spill] sm:$0xff] %v5510_v26 }
  0x66   :  { %707 = vmatpush.msrb.mxu1 %v408_v6 }
  0x67   :  { %667 = vmatpush.msrb.mxu3 %v407_v36  ;;  %608 = vmatpush.msra.mxu0 %v5498_v1  ;;  %v396_v36 = vld [vmem:[%s12005_s2 + $0x538] sm:$0xff] }
  0x68   :  { %708 = vmatpush.msrb.mxu1 %v402_v0  ;;  %v383_v0 = vld [vmem:[%s12005_s2 + $0x4d0] sm:$0xff] }
  0x69   :  { %668 = vmatpush.msrb.mxu3 %v401_v16  ;;  %609 = vmatpush.msra.mxu0 %v5510_v26  ;;  %v389_v16 = vld [vmem:[%s12005_s2 + $0x500] sm:$0xff]  ;;  %v5579_v26 = vld [vmem:[%s12005_s2 + $0x138] sm:$0xff] }
  0x6a   :  { %709 = vmatpush.msrb.mxu1 %v396_v36  ;;  %v384_v36 = vld [vmem:[%s12005_s2 + $0x4d8] sm:$0xff]  ;;  %12628 = vst [vmem:[#allocation20_spill] sm:$0xff] %v5579_v26 }
  0x6b   :  { %669 = vmatpush.msrb.mxu3 %v395_v60  ;;  %610 = vmatpush.msra.mxu0 %v5527_v55  ;;  %v5539_v60 = vld [vmem:[%s12005_s2 + $0x1c8] sm:$0xff]  ;;  %v371_v55 = vld [vmem:[%s12005_s2 + $0x470] sm:$0xff] }
  0x6c   :  { %12623 = vst [vmem:[#allocation15_spill] sm:$0xff] %v5539_v60  ;;  %710 = vmatpush.msrb.mxu1 %v390_v54  ;;  %v5562_v54 = vld [vmem:[%s12005_s2 + $0x168] sm:$0xff] }
  0x6d   :  { %670 = vmatpush.msrb.mxu3 %v389_v16  ;;  %v377_v16 = vld [vmem:[%s12005_s2 + $0x4a0] sm:$0xff]  ;;  %611 = vmatpush.msra.mxu0 %v5539_v60  ;;  %12625 = vst [vmem:[#allocation17_spill] sm:$0xff] %v5562_v54 }
  0x6e   :  { %711 = vmatpush.msrb.mxu1 %v384_v36 }
  0x6f   :  { %671 = vmatpush.msrb.mxu3 %v383_v0  ;;  %612 = vmatpush.msra.mxu0 %v5550_v50  ;;  %v372_v0 = vld [vmem:[%s12005_s2 + $0x478] sm:$0xff] }
  0x70   :  { %712 = vmatpush.msrb.mxu1 %v378_v44  ;;  %v5591_v44 = vld [vmem:[%s12005_s2 + $0x108] sm:$0xff] }
  0x71   :  { %672 = vmatpush.msrb.mxu3 %v377_v16  ;;  %613 = vmatpush.msra.mxu0 %v5562_v54  ;;  %v365_v16 = vld [vmem:[%s12005_s2 + $0x440] sm:$0xff]  ;;  %12629 = vst [vmem:[#allocation21_spill] sm:$0xff] %v5591_v44  ;;  %v347_v54 = vld [vmem:[%s12005_s2 + $0x3b0] sm:$0xff] }
  0x72   :  { %713 = vmatpush.msrb.mxu1 %v372_v0  ;;  %v360_v0 = vld [vmem:[%s12005_s2 + $0x418] sm:$0xff] }
  0x73   :  { %673 = vmatpush.msrb.mxu3 %v371_v55  ;;  %614 = vmatpush.msra.mxu0 %v5579_v26  ;;  %v359_v55 = vld [vmem:[%s12005_s2 + $0x410] sm:$0xff]  ;;  %v354_v26 = vld [vmem:[%s12005_s2 + $0x3e8] sm:$0xff] }
  0x75   :  { %674 = vmatpush.msrb.mxu3 %v365_v16  ;;  %v353_v16 = vld [vmem:[%s12005_s2 + $0x3e0] sm:$0xff]  ;;  %615 = vmatpush.msra.mxu0 %v5591_v44 }
  0x77   :  { %675 = vmatpush.msrb.mxu3 %v359_v55  ;;  %v348_v55 = vld [vmem:[%s12005_s2 + $0x3b8] sm:$0xff] }
  0x79   :  { %676 = vmatpush.msrb.mxu3 %v353_v16  ;;  %v341_v16 = vld [vmem:[%s12005_s2 + $0x380] sm:$0xff] }
  0x7b   :  { %677 = vmatpush.msrb.mxu3 %v347_v54  ;;  %v5645_v54 = vld [vmem:[%s12005_s2 + $0x48] sm:$0xff] }
  0x7c   :  { %12635 = vst [vmem:[#allocation27_spill] sm:$0xff] %v5645_v54 }
  0x7d   :  { %678 = vmatpush.msrb.mxu3 %v341_v16  ;;  %v329_v16 = vld [vmem:[%s12005_s2 + $0x320] sm:$0xff] }
  0x82   :  { %v5519_v59 = vpop.f32.mrf.mxu0 }
  0x83   :  { %v5521_v6 = vpop.f32.mrf.mxu1 }
  0x8a   :  { %v5571_v60 = vpop.f32.mrf.mxu0 }
  0x8b   :  { %12626 = vst [vmem:[#allocation18_spill] sm:$0xff] %v5571_v60  ;;  %v5573_v36 = vpop.f32.mrf.mxu1  ;;  %v366_v60 = vld [vmem:[%s12005_s2 + $0x448] sm:$0xff] }
  0x8c   :  { %12627 = vst [vmem:[#allocation19_spill] sm:$0xff] %v5573_v36  ;;  %714 = vmatpush.msrb.mxu1 %v366_v60  ;;  %v5602_v36 = vld [vmem:[%s12005_s2 + $0xd8] sm:$0xff]  ;;  %v5614_v60 = vld [vmem:[%s12005_s2 + $0xa8] sm:$0xff] }
  0x8d   :  { %12630 = vst [vmem:[#allocation22_spill] sm:$0xff] %v5602_v36  ;;  %616 = vmatpush.msra.mxu0 %v5602_v36  ;;  %v5633_v36 = vld [vmem:[%s12005_s2 + $0x78] sm:$0xff] }
  0x8e   :  { %715 = vmatpush.msrb.mxu1 %v360_v0  ;;  %12631 = vst [vmem:[#allocation23_spill] sm:$0xff] %v5614_v60 }
  0x8f   :  { %v5627_v50 = vpop.f32.mrf.mxu2  ;;  %617 = vmatpush.msra.mxu0 %v5614_v60  ;;  %12634 = vst [vmem:[#allocation26_spill] sm:$0xff] %v5633_v36  ;;  %v5673_v60 = vld [vmem:[%s12005_s2 + $0x2f8] sm:$0xff] }
  0x90   :  { %716 = vmatpush.msrb.mxu1 %v354_v26  ;;  %v342_v26 = vld [vmem:[%s12005_s2 + $0x388] sm:$0xff] }
  0x91   :  { %618 = vmatpush.msra.mxu0 %v5633_v36  ;;  %v330_v36 = vld [vmem:[%s12005_s2 + $0x328] sm:$0xff] }
  0x92   :  { %v5623_v44 = vpop.f32.mrf.mxu0  ;;  %717 = vmatpush.msrb.mxu1 %v348_v55  ;;  %v335_v55 = vld [vmem:[%s12005_s2 + $0x350] sm:$0xff] }
  0x93   :  { %12632 = vst [vmem:[#allocation24_spill] sm:$0xff] %v5623_v44  ;;  %v5625_v0 = vpop.f32.mrf.mxu1  ;;  %v5656_v44 = vld [vmem:[%s12005_s2 + $0x18] sm:$0xff]  ;;  %619 = vmatpush.msra.mxu0 %v5645_v54  ;;  %679 = vmatpush.msrb.mxu3 %v335_v55  ;;  %v467_v55 = vld [vmem:[%s12008_s5 + $0x170] sm:$0xff] }
  0x94   :  { %12633 = vst [vmem:[#allocation25_spill] sm:$0xff] %v5625_v0  ;;  %v336_v0 = vld [vmem:[%s12005_s2 + $0x358] sm:$0xff]  ;;  %718 = vmatpush.msrb.mxu1 %v342_v26  ;;  %v5668_v26 = vld [vmem:[%s12005_s2 + $0x2f0] sm:$0xff] }
  0x95   :  { %12636 = vst [vmem:[#allocation28_spill] sm:$0xff] %v5656_v44  ;;  %645 = vmatpush.msra.mxu2 %v5668_v26  ;;  %620 = vmatpush.msra.mxu0 %v5656_v44  ;;  %v5694_v44 = vld [vmem:[%s12005_s2 + $0x2c8] sm:$0xff] }
  0x96   :  { %719 = vmatpush.msrb.mxu1 %v336_v0  ;;  %680 = vmatpush.msrb.mxu3 %v329_v16  ;;  %v5689_v0 = vld [vmem:[%s12005_s2 + $0x2c0] sm:$0xff]  ;;  %12639 = vst [vmem:[#allocation31_spill] sm:$0xff] %v5694_v44 }
  0x97   :  { %685 = vmatpush.msrb.mxu0 %v5673_v60  ;;  %646 = vmatpush.msra.mxu2 %v5689_v0 }
  0x98   :  { %720 = vmatpush.msrb.mxu1 %v330_v36  ;;  %799 = vmatpush.msra.mxu3 %v467_v55  ;;  %v464_v36 = vld [vmem:[%s12008_s5 + $0x158] sm:$0xff] }
  0x99   :  { %v5699_v16 = vpop.f32.mrf.mxu2  ;;  %686 = vmatpush.msrb.mxu0 %v5694_v44  ;;  %v5711_v55 = vld [vmem:[%s12005_s2 + $0x298] sm:$0xff]  ;;  %681 = vmatmul.f32.vlgmr.msrb.gmra.mxu3 %v12619_v18 }
  0x9a   :  { %v5680_v54 = vpop.f32.mrf.mxu0  ;;  %887 = vmatpush.msra.mxu1 %v4889_v2  ;;  %12640 = vst [vmem:[#allocation32_spill] sm:$0xff] %v5699_v16  ;;  %v5706_v2 = vld [vmem:[%s12005_s2 + $0x290] sm:$0xff]  ;;  %800 = vmatpush.msra.mxu3 %v464_v36  ;;  %v5725_v16 = vld [vmem:[%s12005_s2 + $0x268] sm:$0xff]  ;;  %v5741_v44 = vld [vmem:[%s12005_s2 + $0x238] sm:$0xff] }
  0x9b   :  { %12637 = vst [vmem:[#allocation29_spill] sm:$0xff] %v5680_v54  ;;  %v5683_v1 = vpop.f32.mrf.mxu1  ;;  %v5720_v54 = vld [vmem:[%s12005_s2 + $0x260] sm:$0xff]  ;;  %647 = vmatpush.msra.mxu2 %v5706_v2  ;;  %687 = vmatpush.msrb.mxu0 %v5711_v55  ;;  %v458_v36 = vld [vmem:[%s12008_s5 + $0x128] sm:$0xff] }
  0x9c   :  { %12638 = vst [vmem:[#allocation30_spill] sm:$0xff] %v5683_v1  ;;  %v461_v1 = vld [vmem:[%s12008_s5 + $0x140] sm:$0xff]  ;;  %888 = vmatpush.msra.mxu1 %v4900_v5  ;;  %v5736_v5 = vld [vmem:[%s12005_s2 + $0x230] sm:$0xff]  ;;  %621 = vmatmul.f32.vlgmr.msra.gmra.mxu0 %v12619_v18 }
  0x9d   :  { %12641 = vst [vmem:[#allocation33_spill] sm:$0xff] %v5711_v55  ;;  %801 = vmatpush.msra.mxu3 %v461_v1  ;;  %648 = vmatpush.msra.mxu2 %v5720_v54  ;;  %v455_v1 = vld [vmem:[%s12008_s5 + $0x110] sm:$0xff] }
  0x9e   :  { %12642 = vst [vmem:[#allocation34_spill] sm:$0xff] %v5725_v16  ;;  %889 = vmatpush.msra.mxu1 %v4909_v7  ;;  %688 = vmatpush.msrb.mxu0 %v5725_v16  ;;  %v5759_v16 = vld [vmem:[%s12005_s2 + $0x200] sm:$0xff] }
  0x9f   :  { %12643 = vst [vmem:[#allocation35_spill] sm:$0xff] %v5741_v44  ;;  %802 = vmatpush.msra.mxu3 %v458_v36  ;;  %649 = vmatpush.msra.mxu2 %v5736_v5  ;;  %v452_v36 = vld [vmem:[%s12008_s5 + $0xf8] sm:$0xff] }
  0xa0   :  { %890 = vmatpush.msra.mxu1 %v4917_v8  ;;  %689 = vmatpush.msrb.mxu0 %v5741_v44  ;;  %v5764_v8 = vld [vmem:[%s12005_s2 + $0x208] sm:$0xff] }
  0xa1   :  { %803 = vmatpush.msra.mxu3 %v455_v1  ;;  %12646 = vst [vmem:[#allocation38_spill] sm:$0xff] %v5764_v8  ;;  %650 = vmatpush.msra.mxu2 %v5759_v16  ;;  %v5780_v1 = vld [vmem:[%s12005_s2 + $0x1d8] sm:$0xff] }
  0xa2   :  { %v5749_v7 = vpop.f32.mrf.mxu0  ;;  %891 = vmatpush.msra.mxu1 %v4937_v12  ;;  %690 = vmatpush.msrb.mxu0 %v5764_v8  ;;  %v5775_v12 = vld [vmem:[%s12005_s2 + $0x1d0] sm:$0xff]  ;;  %12647 = vst [vmem:[#allocation39_spill] sm:$0xff] %v5780_v1 }
  0xa3   :  { %12644 = vst [vmem:[#allocation36_spill] sm:$0xff] %v5749_v7  ;;  %v5753_v55 = vpop.f32.mrf.mxu1  ;;  %804 = vmatpush.msra.mxu3 %v452_v36  ;;  %v449_v7 = vld [vmem:[%s12008_s5 + $0xe0] sm:$0xff]  ;;  %651 = vmatpush.msra.mxu2 %v5775_v12  ;;  %v5798_v36 = vld [vmem:[%s12005_s2 + $0x1a8] sm:$0xff] }
  0xa4   :  { %12645 = vst [vmem:[#allocation37_spill] sm:$0xff] %v5753_v55  ;;  %892 = vmatpush.msra.mxu1 %v4958_v17  ;;  %v5785_v55 = vpop.f32.mrf.mxu2  ;;  %691 = vmatpush.msrb.mxu0 %v5780_v1  ;;  %v5793_v17 = vld [vmem:[%s12005_s2 + $0x1a0] sm:$0xff]  ;;  %v443_v1 = vld [vmem:[%s12008_s5 + $0xb0] sm:$0xff] }
  0xa5   :  { %12648 = vst [vmem:[#allocation40_spill] sm:$0xff] %v5785_v55  ;;  %805 = vmatpush.msra.mxu3 %v449_v7  ;;  %v446_v55 = vld [vmem:[%s12008_s5 + $0xc8] sm:$0xff]  ;;  %652 = vmatpush.msra.mxu2 %v5793_v17  ;;  %v5814_v7 = vld [vmem:[%s12005_s2 + $0x178] sm:$0xff] }
  0xa6   :  { %893 = vmatpush.msra.mxu1 %v4976_v21  ;;  %12649 = vst [vmem:[#allocation41_spill] sm:$0xff] %v5798_v36  ;;  %692 = vmatpush.msrb.mxu0 %v5798_v36  ;;  %v5809_v21 = vld [vmem:[%s12005_s2 + $0x170] sm:$0xff]  ;;  %v5834_v36 = vld [vmem:[%s12005_s2 + $0x148] sm:$0xff] }
  0xa7   :  { %806 = vmatpush.msra.mxu3 %v446_v55  ;;  %12650 = vst [vmem:[#allocation42_spill] sm:$0xff] %v5814_v7  ;;  %653 = vmatpush.msra.mxu2 %v5809_v21  ;;  %v5829_v55 = vld [vmem:[%s12005_s2 + $0x140] sm:$0xff] }
  0xa8   :  { %894 = vmatpush.msra.mxu1 %v4992_v24  ;;  %693 = vmatpush.msrb.mxu0 %v5814_v7  ;;  %12653 = vst [vmem:[#allocation45_spill] sm:$0xff] %v5834_v36 }
  0xa9   :  { %807 = vmatpush.msra.mxu3 %v443_v1  ;;  %654 = vmatpush.msra.mxu2 %v5829_v55  ;;  %v5850_v1 = vld [vmem:[%s12005_s2 + $0x118] sm:$0xff] }
  0xaa   :  { %v5819_v8 = vpop.f32.mrf.mxu0  ;;  %895 = vmatpush.msra.mxu1 %v5012_v28  ;;  %694 = vmatpush.msrb.mxu0 %v5834_v36  ;;  %v5845_v28 = vld [vmem:[%s12005_s2 + $0x110] sm:$0xff]  ;;  %12654 = vst [vmem:[#allocation46_spill] sm:$0xff] %v5850_v1  ;;  %v434_v36 = vld [vmem:[%s12008_s5 + $0x68] sm:$0xff] }
  0xab   :  { %12651 = vst [vmem:[#allocation43_spill] sm:$0xff] %v5819_v8  ;;  %v5823_v24 = vpop.f32.mrf.mxu1  ;;  %v440_v8 = vld [vmem:[%s12008_s5 + $0x98] sm:$0xff]  ;;  %655 = vmatpush.msra.mxu2 %v5845_v28  ;;  %721 = vmatmul.f32.vlgmr.msrb.gmra.mxu1 %v12619_v18 }
  0xac   :  { %12652 = vst [vmem:[#allocation44_spill] sm:$0xff] %v5823_v24  ;;  %808 = vmatpush.msra.mxu3 %v440_v8  ;;  %896 = vmatpush.msra.mxu1 %v5034_v32  ;;  %v437_v24 = vld [vmem:[%s12008_s5 + $0x80] sm:$0xff]  ;;  %v5866_v8 = vld [vmem:[%s12005_s2 + $0xe8] sm:$0xff]  ;;  %v5871_v7 = vpop.f32.mrf.mxu2 }
  0xad   :  { %695 = vmatpush.msrb.mxu0 %v5850_v1  ;;  %v5861_v32 = vld [vmem:[%s12005_s2 + $0xe0] sm:$0xff]  ;;  %12655 = vst [vmem:[#allocation47_spill] sm:$0xff] %v5866_v8 }
  0xae   :  { %809 = vmatpush.msra.mxu3 %v437_v24  ;;  %897 = vmatpush.msra.mxu1 %v5050_v35  ;;  %12656 = vst [vmem:[#allocation48_spill] sm:$0xff] %v5871_v7  ;;  %v5879_v35 = vld [vmem:[%s12005_s2 + $0xb0] sm:$0xff]  ;;  %v5884_v24 = vld [vmem:[%s12005_s2 + $0xb8] sm:$0xff] }
  0xaf   :  { %656 = vmatpush.msra.mxu2 %v5861_v32  ;;  %696 = vmatpush.msrb.mxu0 %v5866_v8  ;;  %12657 = vst [vmem:[#allocation49_spill] sm:$0xff] %v5884_v24  ;;  %v431_v7 = vld [vmem:[%s12008_s5 + $0x50] sm:$0xff]  ;;  %v5904_v8 = vld [vmem:[%s12005_s2 + $0x88] sm:$0xff] }
  0xb0   :  { %810 = vmatpush.msra.mxu3 %v434_v36  ;;  %898 = vmatpush.msra.mxu1 %v5067_v38  ;;  %v5899_v36 = vld [vmem:[%s12005_s2 + $0x80] sm:$0xff]  ;;  %12660 = vst [vmem:[#allocation52_spill] sm:$0xff] %v5904_v8 }
  0xb1   :  { %657 = vmatpush.msra.mxu2 %v5879_v35  ;;  %697 = vmatpush.msrb.mxu0 %v5884_v24 }
  0xb2   :  { %v5889_v1 = vpop.f32.mrf.mxu0  ;;  %811 = vmatpush.msra.mxu3 %v431_v7  ;;  %899 = vmatpush.msra.mxu1 %v5087_v42  ;;  %v5915_v42 = vld [vmem:[%s12005_s2 + $0x50] sm:$0xff]  ;;  %v5920_v7 = vld [vmem:[%s12005_s2 + $0x58] sm:$0xff] }
  0xb3   :  { %12658 = vst [vmem:[#allocation50_spill] sm:$0xff] %v5889_v1  ;;  %v5893_v38 = vpop.f32.mrf.mxu1  ;;  %v428_v1 = vld [vmem:[%s12008_s5 + $0x38] sm:$0xff]  ;;  %658 = vmatpush.msra.mxu2 %v5899_v36  ;;  %698 = vmatpush.msrb.mxu0 %v5904_v8  ;;  %v5944_v8 = vld [vmem:[%s12008_s5 + $0x8] sm:$0xff] }
  0xb4   :  { %12659 = vst [vmem:[#allocation51_spill] sm:$0xff] %v5893_v38  ;;  %812 = vmatpush.msra.mxu3 %v428_v1  ;;  %900 = vmatpush.msra.mxu1 %v5109_v46  ;;  %v5925_v38 = vld [vmem:[%s12008_s5 + $0x20] sm:$0xff]  ;;  %v5939_v1 = vld [vmem:[%s12005_s2 + $0x28] sm:$0xff]  ;;  %v5962_v44 = vpop.f32.mrf.mxu2 }
  0xb5   :  { %12661 = vst [vmem:[#allocation53_spill] sm:$0xff] %v5920_v7  ;;  %659 = vmatpush.msra.mxu2 %v5915_v42  ;;  %699 = vmatpush.msrb.mxu0 %v5920_v7  ;;  %v5934_v46 = vld [vmem:[%s12005_s2 + $0x20] sm:$0xff]  ;;  %v5958_v7 = vld [vmem:[%s12008_s5 + $0x178] sm:$0xff] }
  0xb6   :  { %12662 = vst [vmem:[#allocation54_spill] sm:$0xff] %v5925_v38  ;;  %813 = vmatpush.msra.mxu3 %v5925_v38  ;;  %901 = vmatpush.msra.mxu1 %v5125_v49  ;;  %v5951_v49 = vld [vmem:[%s12008_s5 + $0x168] sm:$0xff]  ;;  %v502_v38 = vpop.f32.mrf.mxu3 }
  0xb7   :  { %12663 = vst [vmem:[#allocation55_spill] sm:$0xff] %v5939_v1  ;;  %660 = vmatpush.msra.mxu2 %v5934_v46  ;;  %700 = vmatpush.msrb.mxu0 %v5939_v1  ;;  %v5969_v1 = vld [vmem:[%s12008_s5 + $0x150] sm:$0xff] }
  0xb8   :  { %12664 = vst [vmem:[#allocation56_spill] sm:$0xff] %v5944_v8  ;;  %814 = vmatpush.msra.mxu3 %v5944_v8  ;;  %902 = vmatpush.msra.mxu1 %v5142_v52  ;;  %v5978_v52 = vld [vmem:[%s12008_s5 + $0x160] sm:$0xff] }
  0xb9   :  { %12665 = vst [vmem:[#allocation57_spill] sm:$0xff] %v5951_v49  ;;  %779 = vmatpush.msrb.mxu2 %v5951_v49  ;;  %819 = vmatpush.msra.mxu0 %v5958_v7 }
  0xba   :  { %12666 = vst [vmem:[#allocation58_spill] sm:$0xff] %v5958_v7  ;;  %v5960_v24 = vpop.f32.mrf.mxu0  ;;  %927 = vmatpush.msrb.mxu3 %v4922_v9  ;;  %967 = vmatpush.msrb.mxu1 %v4998_v25  ;;  %v6004_v9 = vld [vmem:[%s12008_s5 + $0x120] sm:$0xff]  ;;  %v6011_v25 = vld [vmem:[%s12008_s5 + $0x130] sm:$0xff] }
  0xbb   :  { %12667 = vst [vmem:[#allocation59_spill] sm:$0xff] %v5960_v24  ;;  %v5971_v8 = vpop.f32.mrf.mxu1  ;;  %v5985_v24 = vld [vmem:[%s12008_s5 + $0x138] sm:$0xff]  ;;  %780 = vmatpush.msrb.mxu2 %v5969_v1  ;;  %820 = vmatpush.msra.mxu0 %v5978_v52 }
  0xbc   :  { %12668 = vst [vmem:[#allocation60_spill] sm:$0xff] %v5962_v44  ;;  %v5997_v44 = vld [vmem:[%s12008_s5 + $0x148] sm:$0xff]  ;;  %928 = vmatpush.msrb.mxu3 %v4932_v11  ;;  %968 = vmatpush.msrb.mxu1 %v5019_v29 }
  0xbd   :  { %12669 = vst [vmem:[#allocation61_spill] sm:$0xff] %v5969_v1  ;;  %781 = vmatpush.msrb.mxu2 %v5985_v24  ;;  %821 = vmatpush.msra.mxu0 %v5997_v44  ;;  %v6021_v11 = vld [vmem:[%s12008_s5 + $0x108] sm:$0xff]  ;;  %v6049_v1 = vpop.f32.mrf.mxu2 }
  0xbe   :  { %12670 = vst [vmem:[#allocation62_spill] sm:$0xff] %v5971_v8  ;;  %v5990_v8 = vld [vmem:[%s12009_s3] sm:$0x7]  ;;  %929 = vmatpush.msrb.mxu3 %v4947_v14  ;;  %969 = vmatpush.msrb.mxu1 %v5045_v34  ;;  %v6038_v14 = vld [vmem:[%s12008_s5 + $0xf0] sm:$0xff] }
  0xbf   :  { %12671 = vst [vmem:[#allocation63_spill] sm:$0xff] %v5978_v52  ;;  %v6014_v7 = vperm.slane %v5990_v8, 1  ;;  %v6024_v29 = vperm.slane %v5990_v8, 0  ;;  %782 = vmatpush.msrb.mxu2 %v6004_v9  ;;  %v6031_v52 = vld [vmem:[%s12008_s5 + $0x118] sm:$0xff]  ;;  %822 = vmatpush.msra.mxu0 %v6011_v25  ;;  %v6045_v34 = vld [vmem:[%s12008_s5 + $0x100] sm:$0xff] }
  0xc0   :  { %12672 = vst [vmem:[#allocation64_spill] sm:$0xff] %v5985_v24  ;;  %930 = vmatpush.msrb.mxu3 %v4971_v20  ;;  %970 = vmatpush.msrb.mxu1 %v5073_v39  ;;  %v6056_v39 = vld [vmem:[%s12008_s5 + $0xd8] sm:$0xff] }
  0xc1   :  { %12673 = vst [vmem:[#allocation65_spill] sm:$0xff] %v5997_v44  ;;  %783 = vmatpush.msrb.mxu2 %v6021_v11  ;;  %823 = vmatpush.msra.mxu0 %v6031_v52 }
  0xc2   :  { %12674 = vst [vmem:[#allocation66_spill] sm:$0xff] %v6004_v9  ;;  %v542_v44 = vpop.f32.mrf.mxu0  ;;  %931 = vmatpush.msrb.mxu3 %v4986_v23  ;;  %971 = vmatpush.msrb.mxu1 %v5094_v43  ;;  %v6072_v23 = vld [vmem:[%s12008_s5 + $0xc0] sm:$0xff]  ;;  %v6079_v43 = vld [vmem:[%s12008_s5 + $0xd0] sm:$0xff] }
  0xc3   :  { %12675 = vst [vmem:[#allocation67_spill] sm:$0xff] %v6011_v25  ;;  %v562_v24 = vpop.f32.mrf.mxu1  ;;  %v141_v25 = vadd.f32 %v5521_v6, %v6014_v7  ;;  %784 = vmatpush.msrb.mxu2 %v6038_v14  ;;  %v6065_v6 = vld [vmem:[%s12008_s5 + $0xe8] sm:$0xff]  ;;  %824 = vmatpush.msra.mxu0 %v6045_v34 }
  0xc4   :  { %12676 = vst [vmem:[#allocation68_spill] sm:$0xff] %v6014_v7  ;;  %v563_v9 = vadd.f32 %v562_v24, %v542_v44  ;;  %932 = vmatpush.msrb.mxu3 %v5007_v27  ;;  %972 = vmatpush.msrb.mxu1 %v5120_v48  ;;  %v6086_v27 = vld [vmem:[%s12008_s5 + $0xa8] sm:$0xff]  ;;  %v6093_v48 = vld [vmem:[%s12008_s5 + $0xb8] sm:$0xff] }
  0xc5   :  { %12677 = vst [vmem:[#allocation69_spill] sm:$0xff] %v6021_v11  ;;  %v522_v20 = vpop.f32.mrf.mxu3  ;;  %v100_v11 = vadd.f32 %v5519_v59, %v6024_v29  ;;  %785 = vmatpush.msrb.mxu2 %v6056_v39  ;;  %825 = vmatpush.msra.mxu0 %v6065_v6 }
  0xc6   :  { %12678 = vst [vmem:[#allocation70_spill] sm:$0xff] %v6024_v29  ;;  %v523_v49 = vadd.f32 %v522_v20, %v502_v38  ;;  %v751_v44 = vadd.f32 %v563_v9, %v141_v25  ;;  %933 = vmatpush.msrb.mxu3 %v5029_v31  ;;  %973 = vmatpush.msrb.mxu1 %v5148_v53  ;;  %v6100_v31 = vld [vmem:[%s12008_s5 + $0x90] sm:$0xff]  ;;  %v6107_v53 = vld [vmem:[%s12008_s5 + $0xa0] sm:$0xff]  ;;  %v6270_v29 = vld [vmem:[%s12005_s2 + $0x548] sm:$0xff] }
  0xc7   :  { %12679 = vst [vmem:[#allocation71_spill] sm:$0xff] %v6049_v1  ;;  %786 = vmatpush.msrb.mxu2 %v6072_v23  ;;  %826 = vmatpush.msra.mxu0 %v6079_v43 }
  0xc8   :  { %v731_v59 = vadd.f32 %v523_v49, %v100_v11  ;;  %v3797_v24 = vmul.f32 -1.442695, %v751_v44  ;;  %934 = vmatpush.msrb.mxu3 %v5061_v37  ;;  %974 = vmatpush.msrb.mxu1 %v5162_v56  ;;  %v6114_v37 = vld [vmem:[%s12008_s5 + $0x78] sm:$0xff]  ;;  %v6121_v56 = vld [vmem:[%s12008_s5 + $0x88] sm:$0xff]  ;;  %v6123_v49 = vpop.f32.mrf.mxu2  ;;  %12689 = vst [vmem:[#allocation81_spill] sm:$0xff] %v6270_v29 }
  0xc9   :  { %787 = vmatpush.msrb.mxu2 %v6086_v27  ;;  %827 = vmatpush.msra.mxu0 %v6093_v48  ;;  %12680 = vst [vmem:[#allocation72_spill] sm:$0xff] %v6123_v49 }
  0xca   :  { %v3796_v38 = vmul.f32 -1.442695, %v731_v59  ;;  %3833 = vpow2.f32 %v3797_v24  ;;  %935 = vmatpush.msrb.mxu3 %v5082_v41  ;;  %975 = vmatpush.msrb.mxu1 %v5202_v3  ;;  %v6130_v41 = vld [vmem:[%s12008_s5 + $0x60] sm:$0xff]  ;;  %v6137_v3 = vld [vmem:[%s12008_s5 + $0x70] sm:$0xff]  ;;  %v6226_v24 = vld [vmem:[%s12005_s2 + $0x5d8] sm:$0xff] }
  0xcb   :  { %788 = vmatpush.msrb.mxu2 %v6100_v31  ;;  %828 = vmatpush.msra.mxu0 %v6107_v53  ;;  %12685 = vst [vmem:[#allocation77_spill] sm:$0xff] %v6226_v24 }
  0xcc   :  { %3835 = vpow2.f32 %v3796_v38  ;;  %936 = vmatpush.msrb.mxu3 %v5104_v45  ;;  %976 = vmatpush.msrb.mxu1 %v5225_v15  ;;  %v6148_v15 = vld [vmem:[%s12008_s5 + $0x48] sm:$0xff] }
  0xcd   :  { %789 = vmatpush.msrb.mxu2 %v6114_v37  ;;  %829 = vmatpush.msra.mxu0 %v6121_v56  ;;  %v6238_v38 = vld [vmem:[%s12005_s2 + $0x5a8] sm:$0xff] }
  0xce   :  { %937 = vmatpush.msrb.mxu3 %v5136_v51  ;;  %977 = vmatpush.msrb.mxu1 %v5241_v22  ;;  %v6157_v51 = vld [vmem:[%s12008_s5 + $0x58] sm:$0xff]  ;;  %v6165_v22 = vld [vmem:[%s12008_s5 + $0x30] sm:$0xff]  ;;  %12686 = vst [vmem:[#allocation78_spill] sm:$0xff] %v6238_v38 }
  0xcf   :  { %790 = vmatpush.msrb.mxu2 %v6130_v41  ;;  %830 = vmatpush.msra.mxu0 %v6137_v3 }
  0xd0   :  { %v3834_v9 = vpop.eup %3833  ;;  %938 = vmatpush.msrb.mxu3 %v5172_v58  ;;  %978 = vmatpush.msrb.mxu1 %v5265_v40  ;;  %v6173_v58 = vld [vmem:[%s12008_s5 + $0x40] sm:$0xff]  ;;  %v6180_v40 = vld [vmem:[%s12008_s5 + $0x18] sm:$0xff]  ;;  %v6196_v20 = vpop.f32.mrf.mxu2 }
  0xd1   :  { %v6141_v25 = vadd.f32 1.0, %v3834_v9  ;;  %661 = vmatmul.f32.vlgmr.msra.gmra.mxu2 %v12619_v18  ;;  %701 = vmatmul.f32.vlgmr.msrb.gmra.mxu0 %v12619_v18  ;;  %12681 = vst [vmem:[#allocation73_spill] sm:$0xff] %v6173_v58  ;;  %v6187_v18 = vld [vmem:[%s12008_s5 + $0x28] sm:$0xff] }
  0xd2   :  { %v3836_v45 = vpop.eup %3835  ;;  %791 = vmatpush.msrb.mxu2 %v6148_v15  ;;  %831 = vmatpush.msra.mxu0 %v6157_v51  ;;  %12682 = vst [vmem:[#allocation74_spill] sm:$0xff] %v6187_v18 }
  0xd3   :  { %v6150_v11 = vadd.f32 1.0, %v3836_v45  ;;  %3837 = vrcp.f32 %v6141_v25  ;;  %939 = vmatpush.msrb.mxu3 %v5189_v63  ;;  %979 = vmatpush.msrb.mxu1 %v5275_v47  ;;  %v6194_v63 = vld [vmem:[%s12008_s5] sm:$0xff]  ;;  %12683 = vst [vmem:[#allocation75_spill] sm:$0xff] %v6196_v20  ;;  %v6203_v47 = vld [vmem:[%s12008_s5 + $0x10] sm:$0xff]  ;;  %vm761_vm6 = vweird.f32 %v6141_v25 }
  0xd4   :  { %792 = vmatpush.msrb.mxu2 %v6165_v22  ;;  %832 = vmatpush.msra.mxu0 %v6173_v58  ;;  %12684 = vst [vmem:[#allocation76_spill] sm:$0xff] %v6203_v47  ;;  %v6244_v45 = vld [vmem:[%s12005_s2 + $0x570] sm:$0xff]  ;;  %v6298_v58 = vld [vmem:[%s12005_s2 + $0x4e0] sm:$0xff] }
  0xd5   :  { %3839 = vrcp.f32 %v6150_v11  ;;  %940 = vmatpush.msrb.mxu3 %v5207_v4  ;;  %980 = vmatpush.msrb.mxu1 %v5291_v57  ;;  %v747_v49 = vand.u32 2147483648, %v6150_v11  ;;  %vm741_vm2 = vweird.f32 %v6150_v11  ;;  %v745_v1 = vand.u32 2147483647, %v6150_v11 }
  0xd6   :  { %793 = vmatpush.msrb.mxu2 %v6180_v40  ;;  %833 = vmatpush.msra.mxu0 %v6187_v18 }
  0xd7   :  { %941 = vmatpush.msrb.mxu3 %v5220_v13  ;;  %981 = vmatpush.msrb.mxu1 %v5306_v61  ;;  %v6220_v13 = vld [vmem:[%s12005_s2 + $0x5d0] sm:$0xff]  ;;  %v748_v18 = vor.u32 1.1754944e-38, %v747_v49  ;;  %vm746_vm4 = vcmp.eq.f32.partialorder %v745_v1, 8.507059e+37 }
  0xd8   :  { %794 = vmatpush.msrb.mxu2 %v6194_v63  ;;  %834 = vmatpush.msra.mxu0 %v6203_v47  ;;  %v582_v20 = vpop.f32.mrf.mxu2 }
  0xd9   :  { %v6205_v44 = vpop.eup %3837  ;;  %942 = vmatpush.msrb.mxu3 %v5251_v30  ;;  %982 = vmatpush.msrb.mxu1 %v5321_v10  ;;  %v6232_v30 = vld [vmem:[%s12005_s2 + $0x5a0] sm:$0xff] }
  0xda   :  { %v757_v59 = vmul.f32 %v6205_v44, %v6141_v25  ;;  %907 = vmatpush.msra.mxu2 %v6220_v13  ;;  %947 = vmatpush.msrb.mxu0 %v6226_v24  ;;  %v6281_v24 = vld [vmem:[%s12005_s2 + $0x510] sm:$0xff]  ;;  %vm762_vm5 = vweird.f32 %v6205_v44 }
  0xdb   :  { %v3840_v4 = vpop.eup %3839  ;;  %vm763_vm7 = vmor %vm761_vm6, %vm762_vm5 }
  0xdc   :  { %v737_v57 = vmul.f32 %v3840_v4, %v6150_v11  ;;  %908 = vmatpush.msra.mxu2 %v6232_v30  ;;  %948 = vmatpush.msrb.mxu0 %v6238_v38  ;;  %v758_v9 = vsub.f32 1.0, %v757_v59  ;;  %vm742_vm1 = vweird.f32 %v3840_v4  ;;  %v6257_v59 = vld [vmem:[%s12005_s2 + $0x540] sm:$0xff]  ;;  %v6285_v11 = vperm.slane %v5990_v8, 2  ;;  %v6313_v38 = vld [vmem:[%s12005_s2 + $0x4b0] sm:$0xff] }
  0xdd   :  { %vm6274_vm3 = vmor %vm741_vm2, %vm742_vm1 }
  0xde   :  { %v738_v61 = vsub.f32 1.0, %v737_v57  ;;  %909 = vmatpush.msra.mxu2 %v6244_v45  ;;  %v759_v7 = vmul.f32 %v6205_v44, %v758_v9  ;;  %12692 = vst [vmem:[#allocation82_spill] sm:$0xff] %v6285_v11  ;;  %v6292_v9 = vld [vmem:[%s12005_s2 + $0x518] sm:$0xff]  ;;  %v182_v1 = vadd.f32 %v5627_v50, %v6285_v11  ;;  %v6385_v11 = vld [vmem:[%s12005_s2 + $0x3c8] sm:$0xff] }
  0xe0   :  { %v739_v10 = vmul.f32 %v3840_v4, %v738_v61  ;;  %v6250_v61 = vld [vmem:[%s12005_s2 + $0x578] sm:$0xff]  ;;  %910 = vmatpush.msra.mxu2 %v6257_v59 }
  0xe1   :  { %12687 = vst [vmem:[#allocation79_spill] sm:$0xff] %v6250_v61  ;;  %949 = vmatpush.msrb.mxu0 %v6250_v61 }
  0xe2   :  { %v740_v57 = vadd.f32 %v3840_v4, %v739_v10  ;;  %v6263_v10 = vld [vmem:[%s12007_s4] ss:$0 sm:$0xff]  ;;  %911 = vmatpush.msra.mxu2 %v6281_v24 }
  0xe3   :  { %12688 = vst [vmem:[#allocation80_spill] sm:$0xff] %v6263_v10  ;;  %950 = vmatpush.msrb.mxu0 %v6270_v29 }
  0xe4   :  { %v744_v29 = vsel %vm6274_vm3, %v3840_v4, %v740_v57  ;;  %912 = vmatpush.msra.mxu2 %v6298_v58  ;;  %v760_v4 = vadd.f32 %v6205_v44, %v759_v7  ;;  %v6322_v7 = vld [vmem:[%s12005_s2 + $0x4b8] sm:$0xff] }
  0xe5   :  { %v602_v61 = vpop.f32.mrf.mxu3  ;;  %951 = vmatpush.msrb.mxu0 %v6292_v9  ;;  %v749_v49 = vsel %vm746_vm4, %v748_v18, %v744_v29  ;;  %v765_v29 = vand.u32 2147483647, %v6141_v25  ;;  %v6330_v18 = vld [vmem:[%s12005_s2 + $0x480] sm:$0xff] }
  0xe6   :  { %v603_v47 = vadd.f32 %v602_v61, %v582_v20  ;;  %v6305_v20 = vld [vmem:[%s12005_s2 + $0x4e8] sm:$0xff]  ;;  %913 = vmatpush.msra.mxu2 %v6313_v38 }
  0xe7   :  { %952 = vmatpush.msrb.mxu0 %v6305_v20  ;;  %v6336_v61 = vld [vmem:[%s12005_s2 + $0x488] sm:$0xff]  ;;  %vm766_vm8 = vcmp.eq.f32.partialorder %v765_v29, 8.507059e+37  ;;  %v6373_v29 = vld [vmem:[%s12005_s2 + $0x3f8] sm:$0xff] }
  0xe8   :  { %v771_v8 = vadd.f32 %v6263_v10, %v603_v47  ;;  %v767_v47 = vand.u32 2147483648, %v6141_v25  ;;  %914 = vmatpush.msra.mxu2 %v6330_v18  ;;  %12693 = vst [vmem:[#allocation83_spill] sm:$0xff] %v6336_v61  ;;  %v6343_v25 = vld [vmem:[%s12005_s2 + $0x450] sm:$0xff] }
  0xe9   :  { %953 = vmatpush.msrb.mxu0 %v6322_v7  ;;  %12696 = vst [vmem:[#allocation86_spill] sm:$0xff] %v6373_v29 }
  0xea   :  { %v772_v57 = vmul.f32 %v771_v8, %v749_v49  ;;  %v764_v8 = vsel %vm763_vm7, %v6205_v44, %v760_v4  ;;  %915 = vmatpush.msra.mxu2 %v6343_v25  ;;  %v768_v49 = vor.u32 1.1754944e-38, %v767_v47  ;;  %v6355_v44 = vld [vmem:[%s12005_s2 + $0x420] sm:$0xff]  ;;  %v6361_v47 = vld [vmem:[%s12005_s2 + $0x428] sm:$0xff] }
  0xeb   :  { %954 = vmatpush.msrb.mxu0 %v6336_v61  ;;  %12695 = vst [vmem:[#allocation85_spill] sm:$0xff] %v6361_v47 }
  0xec   :  { %v773_v50 = vadd.f32 %v772_v57, %v182_v1  ;;  %v6349_v1 = vld [vmem:[%s12005_s2 + $0x458] sm:$0xff]  ;;  %916 = vmatpush.msra.mxu2 %v6355_v44  ;;  %v769_v4 = vsel %vm766_vm8, %v768_v49, %v764_v8  ;;  %v6367_v57 = vld [vmem:[%s12005_s2 + $0x3f0] sm:$0xff]  ;;  %v6379_v8 = vld [vmem:[%s12005_s2 + $0x3c0] sm:$0xff] }
  0xed   :  { %12694 = vst [vmem:[#allocation84_spill] sm:$0xff] %v6349_v1  ;;  %955 = vmatpush.msrb.mxu0 %v6349_v1  ;;  %v6397_v1 = vld [vmem:[%s12005_s2 + $0x398] sm:$0xff] }
  0xee   :  { %3841 = vtanh.f32 %v773_v50  ;;  %917 = vmatpush.msra.mxu2 %v6367_v57  ;;  %v775_v50 = vsub.f32 1.0, %v769_v4 }
  0xef   :  { %956 = vmatpush.msrb.mxu0 %v6361_v47  ;;  %v777_v47 = vmul.f32 0.0, %v769_v4  ;;  %v6405_v4 = vld [vmem:[%s12005_s2 + $0x360] sm:$0xff] }
  0xf0   :  { %918 = vmatpush.msra.mxu2 %v6379_v8 }
  0xf1   :  { %957 = vmatpush.msrb.mxu0 %v6373_v29  ;;  %v6391_v29 = vld [vmem:[%s12005_s2 + $0x390] sm:$0xff] }
  0xf2   :  { %919 = vmatpush.msra.mxu2 %v6391_v29 }
  0xf3   :  { %958 = vmatpush.msrb.mxu0 %v6385_v11 }
  0xf4   :  { %v3842_v49 = vpop.eup %3841  ;;  %920 = vmatpush.msra.mxu2 %v6405_v4 }
  0xf5   :  { %v776_v10 = vmul.f32 %v3842_v49, %v775_v50  ;;  %959 = vmatpush.msrb.mxu0 %v6397_v1  ;;  %v6411_v50 = vld [vmem:[%s12005_s2 + $0x368] sm:$0xff] }
  0xf6   :  { %v12697_v49 = vld [vmem:[#allocation12_spill] sm:$0xff] }
  0xf7   :  { %v6400_v61 = vadd.f32 %v777_v47, %v776_v10  ;;  %960 = vmatpush.msrb.mxu0 %v6411_v50  ;;  %v6423_v10 = vld [vmem:[%s12005_s2 + $0x330] sm:$0xff]  ;;  %v6429_v47 = vld [vmem:[%s12005_s2 + $0x338] sm:$0xff] }
  0xf8   :  { %921 = vmatpush.msra.mxu2 %v6423_v10 }
  0xf9   :  { %795 = vmatmul.f32.vlgmr.msrb.gmra.mxu2 %v6400_v61  ;;  %815 = vmatmul.f32.vlgmr.msra.gmra.mxu3 %v6400_v61 }
  0xfa   :  { %835 = vmatmul.f32.vlgmr.msra.gmra.mxu0 %v6400_v61  ;;  %903 = vmatmul.f32.vlgmr.msra.gmra.mxu1 %v6400_v61 }
  0xfb   :  { %1007 = vmatpush.msra.mxu3 %v5459_v19  ;;  %1047 = vmatpush.msra.mxu1 %v5668_v26  ;;  %v6437_v19 = vld [vmem:[%s12005_s2 + $0x300] sm:$0xff]  ;;  %v6443_v26 = vld [vmem:[%s12005_s2 + $0x308] sm:$0xff] }
  0xfc   :  { %961 = vmatpush.msrb.mxu0 %v6429_v47  ;;  %922 = vmatpush.msra.mxu2 %v6437_v19 }
  0xfd   :  { %1008 = vmatpush.msra.mxu3 %v5474_v62  ;;  %1048 = vmatpush.msra.mxu1 %v5689_v0  ;;  %v6451_v62 = vld [vmem:[%s12005_s2 + $0x5e0] sm:$0xff]  ;;  %v6457_v0 = vld [vmem:[%s12005_s2 + $0x5e8] sm:$0xff] }
  0xfe   :  { %962 = vmatpush.msrb.mxu0 %v6443_v26  ;;  %987 = vmatpush.msrb.mxu2 %v6451_v62 }
  0xff   :  { %1009 = vmatpush.msra.mxu3 %v5487_v33  ;;  %1049 = vmatpush.msra.mxu1 %v5706_v2  ;;  %v12698_v33 = vld [vmem:[#allocation13_spill] sm:$0xff] }
 0x100   :  { %1027 = vmatpush.msra.mxu0 %v6457_v0  ;;  %v6469_v2 = vld [vmem:[%s12005_s2 + $0x5b0] sm:$0xff] }
 0x101   :  { %1010 = vmatpush.msra.mxu3 %v12697_v49  ;;  %1050 = vmatpush.msra.mxu1 %v5720_v54  ;;  %12699 = vst [vmem:[#allocation12_spill] sm:$0xff] %v6469_v2  ;;  %v6475_v49 = vld [vmem:[%s12005_s2 + $0x5b8] sm:$0xff] }
 0x102   :  { %943 = vmatmul.f32.vlgmr.msrb.gmra.mxu3 %v6400_v61  ;;  %983 = vmatmul.f32.vlgmr.msrb.gmra.mxu1 %v6400_v61  ;;  %v12700_v54 = vld [vmem:[#allocation14_spill] sm:$0xff] }
 0x103   :  { %1011 = vmatpush.msra.mxu3 %v12698_v33  ;;  %1051 = vmatpush.msra.mxu1 %v5736_v5  ;;  %v6483_v5 = vld [vmem:[%s12005_s2 + $0x580] sm:$0xff]  ;;  %v6489_v33 = vld [vmem:[%s12005_s2 + $0x588] sm:$0xff] }
 0x104   :  { %988 = vmatpush.msrb.mxu2 %v6469_v2  ;;  %1028 = vmatpush.msra.mxu0 %v6475_v49  ;;  %12701 = vst [vmem:[#allocation13_spill] sm:$0xff] %v6483_v5  ;;  %v12702_v2 = vld [vmem:[#allocation15_spill] sm:$0xff] }
 0x105   :  { %1012 = vmatpush.msra.mxu3 %v12700_v54  ;;  %1052 = vmatpush.msra.mxu1 %v5759_v16  ;;  %v6497_v16 = vld [vmem:[%s12005_s2 + $0x550] sm:$0xff]  ;;  %v6503_v54 = vld [vmem:[%s12005_s2 + $0x558] sm:$0xff] }
 0x106   :  { %989 = vmatpush.msrb.mxu2 %v6483_v5  ;;  %1029 = vmatpush.msra.mxu0 %v6489_v33  ;;  %12703 = vst [vmem:[#allocation14_spill] sm:$0xff] %v6497_v16  ;;  %v12705_v5 = vld [vmem:[#allocation16_spill] sm:$0xff] }
 0x107   :  { %1013 = vmatpush.msra.mxu3 %v12702_v2  ;;  %1053 = vmatpush.msra.mxu1 %v5775_v12  ;;  %12704 = vst [vmem:[#allocation15_spill] sm:$0xff] %v6503_v54  ;;  %v6511_v12 = vld [vmem:[%s12005_s2 + $0x520] sm:$0xff] }
 0x108   :  { %990 = vmatpush.msrb.mxu2 %v6497_v16  ;;  %1030 = vmatpush.msra.mxu0 %v6503_v54  ;;  %v12706_v2 = vld [vmem:[#allocation3_spill] sm:$0xff]  ;;  %v12707_v16 = vld [vmem:[#allocation17_spill] sm:$0xff] }
 0x109   :  { %1014 = vmatpush.msra.mxu3 %v12705_v5  ;;  %1054 = vmatpush.msra.mxu1 %v5793_v17  ;;  %v6520_v54 = vld [vmem:[%s12005_s2 + $0x4f0] sm:$0xff]  ;;  %v12708_v17 = vld [vmem:[#allocation4_spill] sm:$0xff] }
 0x10a   :  { %991 = vmatpush.msrb.mxu2 %v6511_v12  ;;  %1031 = vmatpush.msra.mxu0 %v12706_v2  ;;  %v12709_v5 = vld [vmem:[#allocation20_spill] sm:$0xff]  ;;  %v6529_v2 = vld [vmem:[%s12005_s2 + $0x4c0] sm:$0xff] }
 0x10b   :  { %1015 = vmatpush.msra.mxu3 %v12707_v16  ;;  %1055 = vmatpush.msra.mxu1 %v5809_v21  ;;  %v12710_v21 = vld [vmem:[#allocation5_spill] sm:$0xff] }
 0x10c   :  { %992 = vmatpush.msrb.mxu2 %v6520_v54  ;;  %1032 = vmatpush.msra.mxu0 %v12708_v17  ;;  %v12711_v16 = vld [vmem:[#allocation21_spill] sm:$0xff] }
 0x10d   :  { %1016 = vmatpush.msra.mxu3 %v12709_v5  ;;  %1056 = vmatpush.msra.mxu1 %v5829_v55  ;;  %v6538_v17 = vld [vmem:[%s12005_s2 + $0x490] sm:$0xff]  ;;  %v12712_v55 = vld [vmem:[#allocation6_spill] sm:$0xff] }
 0x10e   :  { %993 = vmatpush.msrb.mxu2 %v6529_v2  ;;  %1033 = vmatpush.msra.mxu0 %v12710_v21  ;;  %v12713_v5 = vld [vmem:[#allocation22_spill] sm:$0xff]  ;;  %v6547_v21 = vld [vmem:[%s12005_s2 + $0x460] sm:$0xff] }
 0x10f   :  { %1017 = vmatpush.msra.mxu3 %v12711_v16  ;;  %1057 = vmatpush.msra.mxu1 %v5845_v28  ;;  %v12714_v28 = vld [vmem:[#allocation7_spill] sm:$0xff] }
 0x110   :  { %994 = vmatpush.msrb.mxu2 %v6538_v17  ;;  %1034 = vmatpush.msra.mxu0 %v12712_v55  ;;  %v12715_v16 = vld [vmem:[#allocation23_spill] sm:$0xff]  ;;  %v6556_v55 = vld [vmem:[%s12005_s2 + $0x430] sm:$0xff] }
 0x111   :  { %1018 = vmatpush.msra.mxu3 %v12713_v5  ;;  %1058 = vmatpush.msra.mxu1 %v5861_v32  ;;  %v12716_v32 = vld [vmem:[#allocation8_spill] sm:$0xff]  ;;  %v12717_v5 = vld [vmem:[#allocation26_spill] sm:$0xff] }
 0x112   :  { %995 = vmatpush.msrb.mxu2 %v6547_v21  ;;  %1035 = vmatpush.msra.mxu0 %v12714_v28  ;;  %v6565_v28 = vld [vmem:[%s12005_s2 + $0x400] sm:$0xff] }
 0x113   :  { %1019 = vmatpush.msra.mxu3 %v12715_v16  ;;  %1059 = vmatpush.msra.mxu1 %v5879_v35  ;;  %v12718_v35 = vld [vmem:[#allocation9_spill] sm:$0xff]  ;;  %v12719_v16 = vld [vmem:[#allocation27_spill] sm:$0xff] }
 0x114   :  { %996 = vmatpush.msrb.mxu2 %v6556_v55  ;;  %1036 = vmatpush.msra.mxu0 %v12716_v32  ;;  %v6574_v32 = vld [vmem:[%s12005_s2 + $0x3d0] sm:$0xff] }
 0x115   :  { %1020 = vmatpush.msra.mxu3 %v12717_v5  ;;  %1060 = vmatpush.msra.mxu1 %v5899_v36  ;;  %12720 = vst [vmem:[#allocation16_spill] sm:$0xff] %v6574_v32  ;;  %v12721_v36 = vld [vmem:[#allocation10_spill] sm:$0xff]  ;;  %v12722_v5 = vld [vmem:[#allocation28_spill] sm:$0xff] }
 0x116   :  { %997 = vmatpush.msrb.mxu2 %v6565_v28  ;;  %1037 = vmatpush.msra.mxu0 %v12718_v35  ;;  %v12724_v35 = vld [vmem:[#allocation11_spill] sm:$0xff] }
 0x117   :  { %1021 = vmatpush.msra.mxu3 %v12719_v16  ;;  %1061 = vmatpush.msra.mxu1 %v5915_v42  ;;  %v6586_v42 = vld [vmem:[%s12005_s2 + $0x3a0] sm:$0xff]  ;;  %v12725_v16 = vld [vmem:[#allocation57_spill] sm:$0xff] }
 0x118   :  { %998 = vmatpush.msrb.mxu2 %v6574_v32  ;;  %1038 = vmatpush.msra.mxu0 %v12721_v36  ;;  %12723 = vst [vmem:[#allocation3_spill] sm:$0xff] %v6586_v42  ;;  %v12726_v36 = vld [vmem:[#allocation31_spill] sm:$0xff]  ;;  %v12742_v32 = vld [vmem:[#allocation42_spill] sm:$0xff] }
 0x119   :  { %1022 = vmatpush.msra.mxu3 %v12722_v5  ;;  %1062 = vmatpush.msra.mxu1 %v5934_v46  ;;  %v6595_v46 = vld [vmem:[%s12005_s2 + $0x370] sm:$0xff] }
 0x11a   :  { %1023 = vmatmul.f32.vlgmr.msra.gmra.mxu3 %v6400_v61  ;;  %1063 = vmatmul.f32.vlgmr.msra.gmra.mxu1 %v6400_v61  ;;  %12727 = vst [vmem:[#allocation17_spill] sm:$0xff] %v6595_v46  ;;  %v12729_v5 = vld [vmem:[#allocation61_spill] sm:$0xff] }
 0x11b   :  { %1087 = vmatpush.msrb.mxu3 %v5673_v60  ;;  %999 = vmatpush.msrb.mxu2 %v6586_v42  ;;  %v6601_v60 = vld [vmem:[%s12005_s2 + $0x378] sm:$0xff]  ;;  %v12740_v42 = vld [vmem:[#allocation39_spill] sm:$0xff] }
 0x11c   :  { %1039 = vmatpush.msra.mxu0 %v12724_v35  ;;  %1181 = vmatpush.msrb.mxu1 %v12725_v16  ;;  %12728 = vst [vmem:[#allocation4_spill] sm:$0xff] %v6601_v60  ;;  %v12730_v35 = vld [vmem:[#allocation33_spill] sm:$0xff]  ;;  %v6609_v16 = vld [vmem:[%s12005_s2 + $0x340] sm:$0xff] }
 0x11d   :  { %1088 = vmatpush.msrb.mxu3 %v12726_v36  ;;  %1000 = vmatpush.msrb.mxu2 %v6595_v46  ;;  %12731 = vst [vmem:[#allocation20_spill] sm:$0xff] %v6609_v16  ;;  %v6615_v36 = vld [vmem:[%s12005_s2 + $0x348] sm:$0xff] }
 0x11e   :  { %1040 = vmatpush.msra.mxu0 %v6601_v60  ;;  %1182 = vmatpush.msrb.mxu1 %v12729_v5  ;;  %12732 = vst [vmem:[#allocation5_spill] sm:$0xff] %v6615_v36  ;;  %v12733_v46 = vld [vmem:[#allocation64_spill] sm:$0xff]  ;;  %v12734_v60 = vld [vmem:[#allocation34_spill] sm:$0xff]  ;;  %v6623_v5 = vld [vmem:[%s12005_s2 + $0x310] sm:$0xff] }
 0x11f   :  { %1089 = vmatpush.msrb.mxu3 %v12730_v35  ;;  %1001 = vmatpush.msrb.mxu2 %v6609_v16  ;;  %12735 = vst [vmem:[#allocation21_spill] sm:$0xff] %v6623_v5  ;;  %v6629_v35 = vld [vmem:[%s12005_s2 + $0x318] sm:$0xff] }
 0x120   :  { %1041 = vmatpush.msra.mxu0 %v6615_v36  ;;  %1183 = vmatpush.msrb.mxu1 %v12733_v46  ;;  %v12736_v16 = vld [vmem:[#allocation66_spill] sm:$0xff]  ;;  %v12737_v36 = vld [vmem:[#allocation35_spill] sm:$0xff]  ;;  %v12738_v46 = vld [vmem:[#allocation69_spill] sm:$0xff] }
 0x121   :  { %1090 = vmatpush.msrb.mxu3 %v12734_v60  ;;  %1002 = vmatpush.msrb.mxu2 %v6623_v5  ;;  %v12739_v60 = vld [vmem:[#allocation38_spill] sm:$0xff]  ;;  %v12741_v5 = vld [vmem:[#allocation41_spill] sm:$0xff] }
 0x122   :  { %1042 = vmatpush.msra.mxu0 %v6629_v35  ;;  %1184 = vmatpush.msrb.mxu1 %v12736_v16  ;;  %v12743_v16 = vld [vmem:[#allocation45_spill] sm:$0xff] }
 0x123   :  { %1091 = vmatpush.msrb.mxu3 %v12737_v36  ;;  %v12744_v36 = vld [vmem:[#allocation46_spill] sm:$0xff] }
 0x124   :  { %1185 = vmatpush.msrb.mxu1 %v12738_v46 }
 0x125   :  { %1092 = vmatpush.msrb.mxu3 %v12739_v60 }
 0x126   :  { %1186 = vmatpush.msrb.mxu1 %v6038_v14  ;;  %v12745_v14 = vld [vmem:[#allocation47_spill] sm:$0xff] }
 0x127   :  { %1093 = vmatpush.msrb.mxu3 %v12740_v42 }
 0x128   :  { %1187 = vmatpush.msrb.mxu1 %v6056_v39  ;;  %v12746_v39 = vld [vmem:[#allocation49_spill] sm:$0xff] }
 0x129   :  { %1094 = vmatpush.msrb.mxu3 %v12741_v5 }
 0x12a   :  { %1188 = vmatpush.msrb.mxu1 %v6072_v23  ;;  %v12747_v23 = vld [vmem:[#allocation52_spill] sm:$0xff] }
 0x12b   :  { %1095 = vmatpush.msrb.mxu3 %v12742_v32 }
 0x12c   :  { %1189 = vmatpush.msrb.mxu1 %v6086_v27  ;;  %v12748_v27 = vld [vmem:[#allocation53_spill] sm:$0xff] }
 0x12d   :  { %1096 = vmatpush.msrb.mxu3 %v12743_v16 }
 0x12e   :  { %1190 = vmatpush.msrb.mxu1 %v6100_v31  ;;  %v12749_v31 = vld [vmem:[#allocation55_spill] sm:$0xff] }
 0x12f   :  { %1097 = vmatpush.msrb.mxu3 %v12744_v36  ;;  %v6718_v36 = vld [vmem:[%s12010_s7] ss:$0 sm:$0xff] }
 0x130   :  { %1191 = vmatpush.msrb.mxu1 %v6114_v37  ;;  %v12750_v37 = vld [vmem:[#allocation58_spill] sm:$0xff] }
 0x131   :  { %1098 = vmatpush.msrb.mxu3 %v12745_v14 }
 0x132   :  { %1192 = vmatpush.msrb.mxu1 %v6130_v41  ;;  %v12751_v41 = vld [vmem:[#allocation63_spill] sm:$0xff] }
 0x133   :  { %1099 = vmatpush.msrb.mxu3 %v12746_v39 }
 0x134   :  { %1193 = vmatpush.msrb.mxu1 %v6148_v15  ;;  %v12752_v15 = vld [vmem:[#allocation65_spill] sm:$0xff] }
 0x135   :  { %1100 = vmatpush.msrb.mxu3 %v12747_v23 }
 0x136   :  { %1194 = vmatpush.msrb.mxu1 %v6165_v22  ;;  %v12753_v22 = vld [vmem:[#allocation67_spill] sm:$0xff] }
 0x137   :  { %1101 = vmatpush.msrb.mxu3 %v12748_v27 }
 0x138   :  { %1195 = vmatpush.msrb.mxu1 %v6180_v40  ;;  %v12764_v40 = vld [vmem:[#allocation86_spill] sm:$0xff] }
 0x139   :  { %1102 = vmatpush.msrb.mxu3 %v12749_v31 }
 0x13a   :  { %1103 = vmatmul.f32.vlgmr.msrb.gmra.mxu3 %v6400_v61  ;;  %1196 = vmatpush.msrb.mxu1 %v6194_v63 }
 0x13b   :  { %1221 = vmatpush.msra.mxu3 %v12750_v37 }
 0x13c   :  { %1309 = vmatpush.msra.mxu1 %v6220_v13  ;;  %v682_v13 = vpop.f32.mrf.mxu3 }
 0x13d   :  { %1222 = vmatpush.msra.mxu3 %v12751_v41 }
 0x13e   :  { %1310 = vmatpush.msra.mxu1 %v6232_v30 }
 0x13f   :  { %1223 = vmatpush.msra.mxu3 %v12752_v15 }
 0x140   :  { %1311 = vmatpush.msra.mxu1 %v6244_v45 }
 0x141   :  { %1224 = vmatpush.msra.mxu3 %v12753_v22 }
 0x142   :  { %1312 = vmatpush.msra.mxu1 %v6257_v59  ;;  %v622_v59 = vpop.f32.mrf.mxu0 }
 0x143   :  { %1225 = vmatpush.msra.mxu3 %v6031_v52  ;;  %v12754_v52 = vld [vmem:[#allocation73_spill] sm:$0xff] }
 0x144   :  { %1313 = vmatpush.msra.mxu1 %v6281_v24  ;;  %v469_v24 = vld [vmem:[%s12011_s6] sm:$0x7] }
 0x145   :  { %1226 = vmatpush.msra.mxu3 %v6045_v34  ;;  %v12755_v34 = vld [vmem:[#allocation74_spill] sm:$0xff]  ;;  %v6709_v30 = vperm.slane %v469_v24, 0  ;;  %v6711_v45 = vperm.slane %v469_v24, 1  ;;  %v6720_v31 = vperm.slane %v469_v24, 2 }
 0x146   :  { %1314 = vmatpush.msra.mxu1 %v6298_v58  ;;  %v12763_v58 = vld [vmem:[#allocation85_spill] sm:$0xff] }
 0x147   :  { %1227 = vmatpush.msra.mxu3 %v6065_v6  ;;  %v12756_v6 = vld [vmem:[#allocation76_spill] sm:$0xff]  ;;  %12765 = vst [vmem:[#allocation6_spill] sm:$0xff] %v6709_v30 }
 0x148   :  { %1315 = vmatpush.msra.mxu1 %v6313_v38  ;;  %12766 = vst [vmem:[#allocation22_spill] sm:$0xff] %v6711_v45 }
 0x149   :  { %1228 = vmatpush.msra.mxu3 %v6079_v43  ;;  %v12757_v43 = vld [vmem:[#allocation77_spill] sm:$0xff] }
 0x14a   :  { %1316 = vmatpush.msra.mxu1 %v6330_v18 }
 0x14b   :  { %1229 = vmatpush.msra.mxu3 %v6093_v48  ;;  %v12758_v48 = vld [vmem:[#allocation78_spill] sm:$0xff] }
 0x14c   :  { %1317 = vmatpush.msra.mxu1 %v6343_v25 }
 0x14d   :  { %1230 = vmatpush.msra.mxu3 %v6107_v53  ;;  %v12759_v53 = vld [vmem:[#allocation79_spill] sm:$0xff] }
 0x14e   :  { %1318 = vmatpush.msra.mxu1 %v6355_v44 }
 0x14f   :  { %1231 = vmatpush.msra.mxu3 %v6121_v56  ;;  %v12760_v56 = vld [vmem:[#allocation81_spill] sm:$0xff] }
 0x150   :  { %1319 = vmatpush.msra.mxu1 %v6367_v57 }
 0x151   :  { %1232 = vmatpush.msra.mxu3 %v6137_v3  ;;  %v12761_v3 = vld [vmem:[#allocation83_spill] sm:$0xff] }
 0x152   :  { %1320 = vmatpush.msra.mxu1 %v6379_v8 }
 0x153   :  { %1233 = vmatpush.msra.mxu3 %v6157_v51  ;;  %v12762_v51 = vld [vmem:[#allocation84_spill] sm:$0xff] }
 0x154   :  { %1321 = vmatpush.msra.mxu1 %v6391_v29  ;;  %v662_v63 = vpop.f32.mrf.mxu2 }
 0x155   :  { %1234 = vmatpush.msra.mxu3 %v12754_v52 }
 0x156   :  { %1322 = vmatpush.msra.mxu1 %v6405_v4 }
 0x157   :  { %1235 = vmatpush.msra.mxu3 %v12755_v34 }
 0x158   :  { %1323 = vmatpush.msra.mxu1 %v6423_v10 }
 0x159   :  { %1236 = vmatpush.msra.mxu3 %v12756_v6 }
 0x15a   :  { %1324 = vmatpush.msra.mxu1 %v6437_v19 }
 0x15b   :  { %1349 = vmatpush.msrb.mxu3 %v12757_v43 }
 0x15d   :  { %1350 = vmatpush.msrb.mxu3 %v12758_v48 }
 0x15f   :  { %1351 = vmatpush.msrb.mxu3 %v12759_v53 }
 0x161   :  { %1352 = vmatpush.msrb.mxu3 %v12760_v56 }
 0x163   :  { %1353 = vmatpush.msrb.mxu3 %v6292_v9 }
 0x165   :  { %1354 = vmatpush.msrb.mxu3 %v6305_v20 }
 0x167   :  { %1355 = vmatpush.msrb.mxu3 %v6322_v7  ;;  %v683_v7 = vadd.f32 %v682_v13, %v662_v63 }
 0x169   :  { %1356 = vmatpush.msrb.mxu3 %v12761_v3 }
 0x16b   :  { %1357 = vmatpush.msrb.mxu3 %v12762_v51 }
 0x16d   :  { %1358 = vmatpush.msrb.mxu3 %v12763_v58 }
 0x16f   :  { %1359 = vmatpush.msrb.mxu3 %v12764_v40 }
 0x171   :  { %1360 = vmatpush.msrb.mxu3 %v6385_v11  ;;  %v642_v11 = vpop.f32.mrf.mxu1 }
 0x172   :  { %v643_v9 = vadd.f32 %v642_v11, %v622_v59 }
 0x173   :  { %1361 = vmatpush.msrb.mxu3 %v6397_v1 }
 0x175   :  { %1362 = vmatpush.msrb.mxu3 %v6411_v50 }
 0x177   :  { %1363 = vmatpush.msrb.mxu3 %v6429_v47  ;;  %v702_v47 = vpop.f32.mrf.mxu0 }
 0x179   :  { %1364 = vmatpush.msrb.mxu3 %v6443_v26  ;;  %v722_v46 = vpop.f32.mrf.mxu1 }
 0x17a   :  { %v723_v14 = vadd.f32 %v722_v46, %v702_v47  ;;  %v6817_v47 = vld [vmem:[%s12005_s2 + $0x4a0] sm:$0xff]  ;;  %v6853_v46 = vld [vmem:[%s12005_s2 + $0x410] sm:$0xff] }
 0x17c   :  { %v796_v20 = vpop.f32.mrf.mxu2  ;;  %v816_v38 = vpop.f32.mrf.mxu3  ;;  %v879_v22 = vadd.f32 %v6718_v36, %v723_v14  ;;  %v6871_v14 = vld [vmem:[%s12005_s2 + $0x3e8] sm:$0xff] }
 0x17d   :  { %v797_v18 = vadd.f32 %v796_v20, %v6709_v30  ;;  %v817_v25 = vadd.f32 %v816_v38, %v6711_v45  ;;  %v6737_v20 = vld [vmem:[%s12005_s2 + $0x5f8] sm:$0xff]  ;;  %v6743_v38 = vld [vmem:[%s12005_s2 + $0x5c0] sm:$0xff]  ;;  %12768 = vst [vmem:[#allocation23_spill] sm:$0xff] %v6871_v14 }
 0x17f   :  { %v839_v1 = vadd.f32 %v797_v18, %v643_v9  ;;  %v859_v44 = vadd.f32 %v817_v25, %v683_v7  ;;  %v836_v41 = vpop.f32.mrf.mxu0  ;;  %v6731_v9 = vld [vmem:[%s12005_s2 + $0x5f0] sm:$0xff]  ;;  %v6749_v7 = vld [vmem:[%s12005_s2 + $0x5c8] sm:$0xff]  ;;  %v6761_v25 = vld [vmem:[%s12005_s2 + $0x598] sm:$0xff] }
 0x180   :  { %v837_v43 = vadd.f32 %v836_v41, %v6720_v31  ;;  %v6755_v18 = vld [vmem:[%s12005_s2 + $0x590] sm:$0xff] }
 0x181   :  { %v3798_v57 = vmul.f32 -1.442695, %v839_v1  ;;  %v3799_v29 = vmul.f32 -1.442695, %v859_v44  ;;  %v6767_v1 = vld [vmem:[%s12005_s2 + $0x560] sm:$0xff]  ;;  %v6773_v44 = vld [vmem:[%s12005_s2 + $0x568] sm:$0xff] }
 0x182   :  { %v6901_v41 = vld [vmem:[%s12005_s2 + $0x350] sm:$0xff] }
 0x183   :  { %3843 = vpow2.f32 %v3798_v57  ;;  %v6781_v57 = vld [vmem:[%s12005_s2 + $0x530] sm:$0xff]  ;;  %12773 = vst [vmem:[#allocation10_spill] sm:$0xff] %v6901_v41 }
 0x184   :  { %3845 = vpow2.f32 %v3799_v29  ;;  %v6787_v29 = vld [vmem:[%s12005_s2 + $0x538] sm:$0xff] }
 0x189   :  { %v3844_v8 = vpop.eup %3843 }
 0x18a   :  { %v3846_v4 = vpop.eup %3845  ;;  %v843_v50 = vadd.f32 1.0, %v3844_v8  ;;  %v6793_v8 = vld [vmem:[%s12005_s2 + $0x500] sm:$0xff] }
 0x18b   :  { %v863_v10 = vadd.f32 1.0, %v3846_v4  ;;  %v6799_v4 = vld [vmem:[%s12005_s2 + $0x508] sm:$0xff] }
 0x18c   :  { %3847 = vrcp.f32 %v843_v50  ;;  %v855_v60 = vand.u32 2147483648, %v843_v50  ;;  %v853_v23 = vand.u32 2147483647, %v843_v50  ;;  %vm849_vm10 = vweird.f32 %v843_v50 }
 0x18d   :  { %3849 = vrcp.f32 %v863_v10  ;;  %v875_v53 = vand.u32 2147483648, %v863_v10  ;;  %vm869_vm14 = vweird.f32 %v863_v10  ;;  %v873_v56 = vand.u32 2147483647, %v863_v10 }
 0x18e   :  { %v856_v15 = vor.u32 1.1754944e-38, %v855_v60  ;;  %vm854_vm12 = vcmp.eq.f32.partialorder %v853_v23, 8.507059e+37  ;;  %v6859_v60 = vld [vmem:[%s12005_s2 + $0x418] sm:$0xff] }
 0x18f   :  { %v876_v58 = vor.u32 1.1754944e-38, %v875_v53  ;;  %vm874_vm0 = vcmp.eq.f32.partialorder %v873_v56, 8.507059e+37  ;;  %v6883_v23 = vld [vmem:[%s12005_s2 + $0x3b8] sm:$0xff]  ;;  %v6951_v53 = vld [vmem:[%s12008_s5 + $0x140] sm:$0xff]  ;;  %v6957_v56 = vld [vmem:[%s12005_s2 + $0x270] sm:$0xff] }
 0x190   :  { %12770 = vst [vmem:[#allocation26_spill] sm:$0xff] %v6883_v23 }
 0x191   :  { %12781 = vst [vmem:[#allocation34_spill] sm:$0xff] %v6951_v53 }
 0x192   :  { %v3848_v19 = vpop.eup %3847  ;;  %12782 = vst [vmem:[#allocation66_spill] sm:$0xff] %v6957_v56 }
 0x193   :  { %v3850_v26 = vpop.eup %3849  ;;  %v845_v32 = vmul.f32 %v3848_v19, %v843_v50  ;;  %vm850_vm9 = vweird.f32 %v3848_v19  ;;  %v6805_v50 = vld [vmem:[%s12005_s2 + $0x4d0] sm:$0xff] }
 0x194   :  { %v865_v42 = vmul.f32 %v3850_v26, %v863_v10  ;;  %vm851_vm11 = vmor %vm849_vm10, %vm850_vm9  ;;  %vm870_vm13 = vweird.f32 %v3850_v26  ;;  %v6811_v10 = vld [vmem:[%s12005_s2 + $0x4d8] sm:$0xff] }
 0x195   :  { %v846_v5 = vsub.f32 1.0, %v845_v32  ;;  %vm871_vm15 = vmor %vm869_vm14, %vm870_vm13  ;;  %v6835_v32 = vld [vmem:[%s12005_s2 + $0x478] sm:$0xff] }
 0x196   :  { %v866_v16 = vsub.f32 1.0, %v865_v42  ;;  %v6841_v42 = vld [vmem:[%s12005_s2 + $0x440] sm:$0xff] }
 0x197   :  { %v847_v39 = vmul.f32 %v3848_v19, %v846_v5  ;;  %v6847_v5 = vld [vmem:[%s12005_s2 + $0x448] sm:$0xff] }
 0x198   :  { %v867_v27 = vmul.f32 %v3850_v26, %v866_v16  ;;  %v6865_v16 = vld [vmem:[%s12005_s2 + $0x3e0] sm:$0xff] }
 0x199   :  { %v848_v37 = vadd.f32 %v3848_v19, %v847_v39  ;;  %12767 = vst [vmem:[#allocation7_spill] sm:$0xff] %v6865_v16  ;;  %v6877_v39 = vld [vmem:[%s12005_s2 + $0x3b0] sm:$0xff] }
 0x19a   :  { %v868_v6 = vadd.f32 %v3850_v26, %v867_v27  ;;  %12769 = vst [vmem:[#allocation8_spill] sm:$0xff] %v6877_v39  ;;  %v6889_v27 = vld [vmem:[%s12005_s2 + $0x380] sm:$0xff] }
 0x19b   :  { %v852_v52 = vsel %vm851_vm11, %v3848_v19, %v848_v37  ;;  %v6823_v19 = vld [vmem:[%s12005_s2 + $0x4a8] sm:$0xff]  ;;  %12771 = vst [vmem:[#allocation9_spill] sm:$0xff] %v6889_v27 }
 0x19c   :  { %v857_v34 = vsel %vm854_vm12, %v856_v15, %v852_v52  ;;  %v872_v51 = vsel %vm871_vm15, %v3850_v26, %v868_v6  ;;  %v6829_v26 = vld [vmem:[%s12005_s2 + $0x470] sm:$0xff]  ;;  %v6895_v37 = vld [vmem:[%s12005_s2 + $0x388] sm:$0xff]  ;;  %v6907_v15 = vld [vmem:[%s12005_s2 + $0x358] sm:$0xff] }
 0x19d   :  { %v880_v48 = vmul.f32 %v879_v22, %v857_v34  ;;  %v877_v40 = vsel %vm874_vm0, %v876_v58, %v872_v51  ;;  %12772 = vst [vmem:[#allocation27_spill] sm:$0xff] %v6895_v37  ;;  %v6913_v22 = vld [vmem:[%s12005_s2 + $0x320] sm:$0xff]  ;;  %v6919_v52 = vld [vmem:[%s12005_s2 + $0x328] sm:$0xff]  ;;  %v6927_v34 = vld [vmem:[%s12008_s5 + $0x170] sm:$0xff] }
 0x19e   :  { %v883_v63 = vsub.f32 1.0, %v877_v40  ;;  %v885_v59 = vmul.f32 0.0, %v877_v40  ;;  %12774 = vst [vmem:[#allocation28_spill] sm:$0xff] %v6907_v15  ;;  %v6933_v6 = vld [vmem:[%s12005_s2 + $0x2d0] sm:$0xff]  ;;  %v6969_v51 = vld [vmem:[%s12005_s2 + $0x240] sm:$0xff] }
 0x19f   :  { %v881_v3 = vadd.f32 %v880_v48, %v837_v43  ;;  %12775 = vst [vmem:[#allocation11_spill] sm:$0xff] %v6913_v22  ;;  %v6939_v43 = vld [vmem:[%s12008_s5 + $0x158] sm:$0xff]  ;;  %v6945_v48 = vld [vmem:[%s12005_s2 + $0x2a0] sm:$0xff]  ;;  %v6975_v58 = vld [vmem:[%s12008_s5 + $0x110] sm:$0xff] }
 0x1a0   :  { %12776 = vst [vmem:[#allocation57_spill] sm:$0xff] %v6919_v52  ;;  %v6981_v40 = vld [vmem:[%s12005_s2 + $0x210] sm:$0xff] }
 0x1a1   :  { %3851 = vtanh.f32 %v881_v3  ;;  %12777 = vst [vmem:[#allocation31_spill] sm:$0xff] %v6927_v34  ;;  %v6963_v3 = vld [vmem:[%s12008_s5 + $0x128] sm:$0xff] }
 0x1a2   :  { %12778 = vst [vmem:[#allocation61_spill] sm:$0xff] %v6933_v6 }
 0x1a3   :  { %12779 = vst [vmem:[#allocation33_spill] sm:$0xff] %v6939_v43 }
 0x1a4   :  { %12780 = vst [vmem:[#allocation64_spill] sm:$0xff] %v6945_v48 }
 0x1a5   :  { %12783 = vst [vmem:[#allocation35_spill] sm:$0xff] %v6963_v3 }
 0x1a6   :  { %12784 = vst [vmem:[#allocation69_spill] sm:$0xff] %v6969_v51 }
 0x1a7   :  { %v3852_v13 = vpop.eup %3851  ;;  %12785 = vst [vmem:[#allocation38_spill] sm:$0xff] %v6975_v58 }
 0x1a8   :  { %v884_v24 = vmul.f32 %v3852_v13, %v883_v63  ;;  %12786 = vst [vmem:[#allocation39_spill] sm:$0xff] %v6981_v40  ;;  %v6987_v63 = vld [vmem:[%s12008_s5 + $0xf8] sm:$0xff]  ;;  %v6993_v13 = vld [vmem:[%s12005_s2 + $0x1e0] sm:$0xff] }
 0x1a9   :  { %12787 = vst [vmem:[#allocation41_spill] sm:$0xff] %v6987_v63 }
 0x1aa   :  { %v6724_v11 = vadd.f32 %v885_v59, %v884_v24  ;;  %12788 = vst [vmem:[#allocation42_spill] sm:$0xff] %v6993_v13  ;;  %v6999_v24 = vld [vmem:[%s12008_s5 + $0xe0] sm:$0xff]  ;;  %v7005_v59 = vld [vmem:[%s12005_s2 + $0x1b0] sm:$0xff] }
 0x1ab   :  { %12789 = vst [vmem:[#allocation45_spill] sm:$0xff] %v6999_v24 }
 0x1ac   :  { %923 = vmatmul.f32.vlgmr.msra.gmra.mxu2 %v6724_v11  ;;  %963 = vmatmul.f32.vlgmr.msrb.gmra.mxu0 %v6724_v11  ;;  %12790 = vst [vmem:[#allocation46_spill] sm:$0xff] %v7005_v59 }
 0x1ad   :  { %1067 = vmatpush.msra.mxu2 %v6731_v9  ;;  %1107 = vmatpush.msrb.mxu0 %v6737_v20 }
 0x1af   :  { %1068 = vmatpush.msra.mxu2 %v6743_v38  ;;  %1108 = vmatpush.msrb.mxu0 %v6749_v7 }
 0x1b1   :  { %1069 = vmatpush.msra.mxu2 %v6755_v18  ;;  %1109 = vmatpush.msrb.mxu0 %v6761_v25 }
 0x1b3   :  { %1070 = vmatpush.msra.mxu2 %v6767_v1  ;;  %1110 = vmatpush.msrb.mxu0 %v6773_v44 }
 0x1b4   :  { %1003 = vmatmul.f32.vlgmr.msrb.gmra.mxu2 %v6724_v11  ;;  %1043 = vmatmul.f32.vlgmr.msra.gmra.mxu0 %v6724_v11 }
 0x1b5   :  { %1071 = vmatpush.msra.mxu2 %v6781_v57  ;;  %1111 = vmatpush.msrb.mxu0 %v6787_v29 }
 0x1b7   :  { %1072 = vmatpush.msra.mxu2 %v6793_v8  ;;  %1112 = vmatpush.msrb.mxu0 %v6799_v4 }
 0x1b9   :  { %1073 = vmatpush.msra.mxu2 %v6805_v50  ;;  %1113 = vmatpush.msrb.mxu0 %v6811_v10 }
 0x1bb   :  { %1074 = vmatpush.msra.mxu2 %v6817_v47  ;;  %1114 = vmatpush.msrb.mxu0 %v6823_v19 }
 0x1bd   :  { %1075 = vmatpush.msra.mxu2 %v6829_v26  ;;  %1115 = vmatpush.msrb.mxu0 %v6835_v32 }
 0x1bf   :  { %1076 = vmatpush.msra.mxu2 %v6841_v42  ;;  %1116 = vmatpush.msrb.mxu0 %v6847_v5 }
 0x1c1   :  { %1077 = vmatpush.msra.mxu2 %v6853_v46  ;;  %1117 = vmatpush.msrb.mxu0 %v6859_v60 }
 0x1c3   :  { %1078 = vmatpush.msra.mxu2 %v6865_v16  ;;  %1118 = vmatpush.msrb.mxu0 %v6871_v14 }
 0x1c5   :  { %1079 = vmatpush.msra.mxu2 %v6877_v39  ;;  %1119 = vmatpush.msrb.mxu0 %v6883_v23  ;;  %v12846_v39 = vld [vmem:[#allocation82_spill] sm:$0xff] }
 0x1c7   :  { %1080 = vmatpush.msra.mxu2 %v6889_v27  ;;  %1120 = vmatpush.msrb.mxu0 %v6895_v37 }
 0x1c9   :  { %1081 = vmatpush.msra.mxu2 %v6901_v41  ;;  %1121 = vmatpush.msrb.mxu0 %v6907_v15 }
 0x1cb   :  { %1082 = vmatpush.msra.mxu2 %v6913_v22  ;;  %1122 = vmatpush.msrb.mxu0 %v6919_v52 }
 0x1cc   :  { %1083 = vmatmul.f32.vlgmr.msra.gmra.mxu2 %v6724_v11  ;;  %1123 = vmatmul.f32.vlgmr.msrb.gmra.mxu0 %v6724_v11 }
 0x1cd   :  { %1201 = vmatpush.msrb.mxu2 %v6927_v34  ;;  %1289 = vmatpush.msra.mxu0 %v6933_v6  ;;  %v12843_v6 = vld [vmem:[#allocation70_spill] sm:$0xff] }
 0x1ce   :  { %v12844_v34 = vld [vmem:[#allocation18_spill] sm:$0xff] }
 0x1cf   :  { %1202 = vmatpush.msrb.mxu2 %v6939_v43  ;;  %1290 = vmatpush.msra.mxu0 %v6945_v48  ;;  %v904_v48 = vpop.f32.mrf.mxu1 }
 0x1d1   :  { %1203 = vmatpush.msrb.mxu2 %v6951_v53  ;;  %1291 = vmatpush.msra.mxu0 %v6957_v56 }
 0x1d3   :  { %1204 = vmatpush.msrb.mxu2 %v6963_v3  ;;  %1292 = vmatpush.msra.mxu0 %v6969_v51  ;;  %v12842_v51 = vld [vmem:[#allocation19_spill] sm:$0xff] }
 0x1d5   :  { %1205 = vmatpush.msrb.mxu2 %v6975_v58  ;;  %1293 = vmatpush.msra.mxu0 %v6981_v40  ;;  %v12807_v40 = vld [vmem:[#allocation56_spill] sm:$0xff] }
 0x1d6   :  { %v12841_v58 = vld [vmem:[#allocation68_spill] sm:$0xff] }
 0x1d7   :  { %1206 = vmatpush.msrb.mxu2 %v6987_v63  ;;  %1294 = vmatpush.msra.mxu0 %v6993_v13  ;;  %v7011_v63 = vld [vmem:[%s12008_s5 + $0xc8] sm:$0xff]  ;;  %v7017_v13 = vld [vmem:[%s12005_s2 + $0x180] sm:$0xff]  ;;  %v144_v3 = vadd.f32 %v12842_v51, %v12841_v58  ;;  %v984_v23 = vpop.f32.mrf.mxu1 }
 0x1d8   :  { %12791 = vst [vmem:[#allocation47_spill] sm:$0xff] %v7011_v63 }
 0x1d9   :  { %1207 = vmatpush.msrb.mxu2 %v6999_v24  ;;  %1295 = vmatpush.msra.mxu0 %v7005_v59  ;;  %12792 = vst [vmem:[#allocation49_spill] sm:$0xff] %v7017_v13  ;;  %v7023_v24 = vld [vmem:[%s12008_s5 + $0xb0] sm:$0xff] }
 0x1da   :  { %12793 = vst [vmem:[#allocation52_spill] sm:$0xff] %v7023_v24  ;;  %v7029_v59 = vld [vmem:[%s12005_s2 + $0x150] sm:$0xff] }
 0x1db   :  { %1208 = vmatpush.msrb.mxu2 %v7011_v63  ;;  %1296 = vmatpush.msra.mxu0 %v7017_v13  ;;  %12794 = vst [vmem:[#allocation53_spill] sm:$0xff] %v7029_v59  ;;  %v7035_v63 = vld [vmem:[%s12008_s5 + $0x98] sm:$0xff]  ;;  %v7041_v13 = vld [vmem:[%s12005_s2 + $0x120] sm:$0xff] }
 0x1dc   :  { %12795 = vst [vmem:[#allocation55_spill] sm:$0xff] %v7035_v63 }
 0x1dd   :  { %1209 = vmatpush.msrb.mxu2 %v7023_v24  ;;  %1297 = vmatpush.msra.mxu0 %v7029_v59  ;;  %12796 = vst [vmem:[#allocation58_spill] sm:$0xff] %v7041_v13  ;;  %v7047_v24 = vld [vmem:[%s12008_s5 + $0x80] sm:$0xff]  ;;  %v7053_v59 = vld [vmem:[%s12005_s2 + $0xf0] sm:$0xff] }
 0x1de   :  { %12797 = vst [vmem:[#allocation63_spill] sm:$0xff] %v7047_v24 }
 0x1df   :  { %1210 = vmatpush.msrb.mxu2 %v7035_v63  ;;  %1298 = vmatpush.msra.mxu0 %v7041_v13  ;;  %12798 = vst [vmem:[#allocation65_spill] sm:$0xff] %v7053_v59  ;;  %v7059_v63 = vld [vmem:[%s12008_s5 + $0x68] sm:$0xff]  ;;  %v7065_v13 = vld [vmem:[%s12005_s2 + $0xc0] sm:$0xff] }
 0x1e0   :  { %12799 = vst [vmem:[#allocation67_spill] sm:$0xff] %v7059_v63 }
 0x1e1   :  { %1211 = vmatpush.msrb.mxu2 %v7047_v24  ;;  %1299 = vmatpush.msra.mxu0 %v7053_v59  ;;  %12800 = vst [vmem:[#allocation73_spill] sm:$0xff] %v7065_v13  ;;  %v7071_v24 = vld [vmem:[%s12008_s5 + $0x50] sm:$0xff] }
 0x1e2   :  { %12801 = vst [vmem:[#allocation74_spill] sm:$0xff] %v7071_v24  ;;  %v7077_v59 = vld [vmem:[%s12005_s2 + $0x90] sm:$0xff] }
 0x1e3   :  { %1212 = vmatpush.msrb.mxu2 %v7059_v63  ;;  %1300 = vmatpush.msra.mxu0 %v7065_v13  ;;  %12802 = vst [vmem:[#allocation76_spill] sm:$0xff] %v7077_v59  ;;  %v7083_v63 = vld [vmem:[%s12008_s5 + $0x38] sm:$0xff]  ;;  %v7089_v13 = vld [vmem:[%s12005_s2 + $0x60] sm:$0xff] }
 0x1e4   :  { %12803 = vst [vmem:[#allocation77_spill] sm:$0xff] %v7083_v63 }
 0x1e5   :  { %1213 = vmatpush.msrb.mxu2 %v7071_v24  ;;  %1301 = vmatpush.msra.mxu0 %v7077_v59  ;;  %12804 = vst [vmem:[#allocation78_spill] sm:$0xff] %v7089_v13  ;;  %v12805_v24 = vld [vmem:[#allocation54_spill] sm:$0xff]  ;;  %v7096_v59 = vld [vmem:[%s12005_s2 + $0x30] sm:$0xff] }
 0x1e6   :  { %12806 = vst [vmem:[#allocation79_spill] sm:$0xff] %v7096_v59 }
 0x1e7   :  { %1214 = vmatpush.msrb.mxu2 %v7083_v63  ;;  %1302 = vmatpush.msra.mxu0 %v7089_v13  ;;  %v7103_v63 = vld [vmem:[%s12005_s2] sm:$0xff] }
 0x1e8   :  { %12808 = vst [vmem:[#allocation81_spill] sm:$0xff] %v7103_v63 }
 0x1e9   :  { %1215 = vmatpush.msrb.mxu2 %v12805_v24  ;;  %1303 = vmatpush.msra.mxu0 %v7096_v59  ;;  %v7109_v24 = vld [vmem:[%s12005_s2 + $0x2d8] sm:$0xff]  ;;  %v7115_v59 = vld [vmem:[%s12005_s2 + $0x2e0] sm:$0xff] }
 0x1ea   :  { %12809 = vst [vmem:[#allocation83_spill] sm:$0xff] %v7109_v24 }
 0x1eb   :  { %1216 = vmatpush.msrb.mxu2 %v12807_v40  ;;  %1304 = vmatpush.msra.mxu0 %v7103_v63  ;;  %12810 = vst [vmem:[#allocation84_spill] sm:$0xff] %v7115_v59  ;;  %v7121_v40 = vld [vmem:[%s12005_s2 + $0x2a8] sm:$0xff]  ;;  %v7127_v63 = vld [vmem:[%s12005_s2 + $0x2b0] sm:$0xff] }
 0x1ec   :  { %12811 = vst [vmem:[#allocation85_spill] sm:$0xff] %v7121_v40 }
 0x1ed   :  { %1329 = vmatpush.msra.mxu2 %v7109_v24  ;;  %1369 = vmatpush.msrb.mxu0 %v7115_v59  ;;  %12812 = vst [vmem:[#allocation86_spill] sm:$0xff] %v7127_v63  ;;  %v7133_v24 = vld [vmem:[%s12005_s2 + $0x278] sm:$0xff]  ;;  %v7139_v59 = vld [vmem:[%s12005_s2 + $0x280] sm:$0xff] }
 0x1ee   :  { %12813 = vst [vmem:[#allocation54_spill] sm:$0xff] %v7133_v24 }
 0x1ef   :  { %1330 = vmatpush.msra.mxu2 %v7121_v40  ;;  %1370 = vmatpush.msrb.mxu0 %v7127_v63  ;;  %12814 = vst [vmem:[#allocation56_spill] sm:$0xff] %v7139_v59  ;;  %v7145_v40 = vld [vmem:[%s12005_s2 + $0x248] sm:$0xff]  ;;  %v7151_v63 = vld [vmem:[%s12005_s2 + $0x250] sm:$0xff] }
 0x1f0   :  { %12815 = vst [vmem:[#allocation87_spill] sm:$0xff] %v7145_v40 }
 0x1f1   :  { %1331 = vmatpush.msra.mxu2 %v7133_v24  ;;  %1371 = vmatpush.msrb.mxu0 %v7139_v59  ;;  %12816 = vst [vmem:[#allocation88_spill] sm:$0xff] %v7151_v63  ;;  %v7157_v24 = vld [vmem:[%s12005_s2 + $0x218] sm:$0xff]  ;;  %v7163_v59 = vld [vmem:[%s12005_s2 + $0x220] sm:$0xff] }
 0x1f2   :  { %12817 = vst [vmem:[#allocation89_spill] sm:$0xff] %v7157_v24 }
 0x1f3   :  { %1332 = vmatpush.msra.mxu2 %v7145_v40  ;;  %1372 = vmatpush.msrb.mxu0 %v7151_v63  ;;  %12818 = vst [vmem:[#allocation90_spill] sm:$0xff] %v7163_v59  ;;  %v7169_v40 = vld [vmem:[%s12005_s2 + $0x1e8] sm:$0xff]  ;;  %v7175_v63 = vld [vmem:[%s12005_s2 + $0x1f0] sm:$0xff] }
 0x1f4   :  { %12819 = vst [vmem:[#allocation91_spill] sm:$0xff] %v7169_v40 }
 0x1f5   :  { %1333 = vmatpush.msra.mxu2 %v7157_v24  ;;  %1373 = vmatpush.msrb.mxu0 %v7163_v59  ;;  %12820 = vst [vmem:[#allocation92_spill] sm:$0xff] %v7175_v63  ;;  %v7181_v24 = vld [vmem:[%s12005_s2 + $0x1b8] sm:$0xff]  ;;  %v7187_v59 = vld [vmem:[%s12005_s2 + $0x1c0] sm:$0xff] }
 0x1f6   :  { %12821 = vst [vmem:[#allocation93_spill] sm:$0xff] %v7181_v24 }
 0x1f7   :  { %1334 = vmatpush.msra.mxu2 %v7169_v40  ;;  %1374 = vmatpush.msrb.mxu0 %v7175_v63  ;;  %12822 = vst [vmem:[#allocation94_spill] sm:$0xff] %v7187_v59  ;;  %v7193_v40 = vld [vmem:[%s12005_s2 + $0x188] sm:$0xff]  ;;  %v7199_v63 = vld [vmem:[%s12005_s2 + $0x190] sm:$0xff] }
 0x1f8   :  { %12823 = vst [vmem:[#allocation95_spill] sm:$0xff] %v7193_v40 }
 0x1f9   :  { %1335 = vmatpush.msra.mxu2 %v7181_v24  ;;  %1375 = vmatpush.msrb.mxu0 %v7187_v59  ;;  %12824 = vst [vmem:[#allocation96_spill] sm:$0xff] %v7199_v63  ;;  %v7205_v24 = vld [vmem:[%s12005_s2 + $0x158] sm:$0xff]  ;;  %v7211_v59 = vld [vmem:[%s12005_s2 + $0x160] sm:$0xff] }
 0x1fa   :  { %12825 = vst [vmem:[#allocation97_spill] sm:$0xff] %v7205_v24 }
 0x1fb   :  { %1336 = vmatpush.msra.mxu2 %v7193_v40  ;;  %1376 = vmatpush.msrb.mxu0 %v7199_v63  ;;  %12826 = vst [vmem:[#allocation98_spill] sm:$0xff] %v7211_v59  ;;  %v7217_v40 = vld [vmem:[%s12005_s2 + $0x128] sm:$0xff]  ;;  %v7223_v63 = vld [vmem:[%s12005_s2 + $0x130] sm:$0xff] }
 0x1fc   :  { %12827 = vst [vmem:[#allocation99_spill] sm:$0xff] %v7217_v40 }
 0x1fd   :  { %1337 = vmatpush.msra.mxu2 %v7205_v24  ;;  %1377 = vmatpush.msrb.mxu0 %v7211_v59  ;;  %12828 = vst [vmem:[#allocation100_spill] sm:$0xff] %v7223_v63  ;;  %v7229_v24 = vld [vmem:[%s12005_s2 + $0xf8] sm:$0xff]  ;;  %v7235_v59 = vld [vmem:[%s12005_s2 + $0x100] sm:$0xff] }
 0x1fe   :  { %12829 = vst [vmem:[#allocation101_spill] sm:$0xff] %v7229_v24 }
 0x1ff   :  { %1338 = vmatpush.msra.mxu2 %v7217_v40  ;;  %1378 = vmatpush.msrb.mxu0 %v7223_v63  ;;  %12830 = vst [vmem:[#allocation102_spill] sm:$0xff] %v7235_v59  ;;  %v7241_v40 = vld [vmem:[%s12005_s2 + $0xc8] sm:$0xff]  ;;  %v7247_v63 = vld [vmem:[%s12005_s2 + $0xd0] sm:$0xff] }
 0x200   :  { %12831 = vst [vmem:[#allocation103_spill] sm:$0xff] %v7241_v40 }
 0x201   :  { %1339 = vmatpush.msra.mxu2 %v7229_v24  ;;  %1379 = vmatpush.msrb.mxu0 %v7235_v59  ;;  %12832 = vst [vmem:[#allocation104_spill] sm:$0xff] %v7247_v63  ;;  %v7253_v24 = vld [vmem:[%s12005_s2 + $0x98] sm:$0xff]  ;;  %v7259_v59 = vld [vmem:[%s12005_s2 + $0xa0] sm:$0xff] }
 0x202   :  { %12833 = vst [vmem:[#allocation105_spill] sm:$0xff] %v7253_v24 }
 0x203   :  { %1340 = vmatpush.msra.mxu2 %v7241_v40  ;;  %1380 = vmatpush.msrb.mxu0 %v7247_v63  ;;  %12834 = vst [vmem:[#allocation106_spill] sm:$0xff] %v7259_v59  ;;  %v7265_v40 = vld [vmem:[%s12005_s2 + $0x68] sm:$0xff]  ;;  %v7271_v63 = vld [vmem:[%s12005_s2 + $0x70] sm:$0xff] }
 0x204   :  { %12835 = vst [vmem:[#allocation107_spill] sm:$0xff] %v7265_v40 }
 0x205   :  { %1341 = vmatpush.msra.mxu2 %v7253_v24  ;;  %1381 = vmatpush.msrb.mxu0 %v7259_v59  ;;  %12836 = vst [vmem:[#allocation108_spill] sm:$0xff] %v7271_v63  ;;  %v7277_v24 = vld [vmem:[%s12005_s2 + $0x38] sm:$0xff]  ;;  %v7283_v59 = vld [vmem:[%s12005_s2 + $0x40] sm:$0xff] }
 0x206   :  { %12837 = vst [vmem:[#allocation109_spill] sm:$0xff] %v7277_v24 }
 0x207   :  { %1342 = vmatpush.msra.mxu2 %v7265_v40  ;;  %1382 = vmatpush.msrb.mxu0 %v7271_v63  ;;  %12838 = vst [vmem:[#allocation110_spill] sm:$0xff] %v7283_v59  ;;  %v7289_v40 = vld [vmem:[%s12005_s2 + $0x8] sm:$0xff]  ;;  %v7295_v63 = vld [vmem:[%s12005_s2 + $0x10] sm:$0xff] }
 0x208   :  { %12839 = vst [vmem:[#allocation111_spill] sm:$0xff] %v7289_v40 }
 0x209   :  { %1343 = vmatpush.msra.mxu2 %v7277_v24  ;;  %1383 = vmatpush.msrb.mxu0 %v7283_v59  ;;  %12840 = vst [vmem:[#allocation112_spill] sm:$0xff] %v7295_v63  ;;  %v944_v24 = vpop.f32.mrf.mxu3 }
 0x20b   :  { %1344 = vmatpush.msra.mxu2 %v7289_v40  ;;  %1384 = vmatpush.msrb.mxu0 %v7295_v63  ;;  %v103_v40 = vadd.f32 %v12844_v34, %v12843_v6 }
 0x229   :  { %v964_v13 = vpop.f32.mrf.mxu0 }
 0x22a   :  { %v965_v59 = vadd.f32 %v964_v13, %v944_v24 }
 0x22c   :  { %v1153_v56 = vadd.f32 %v965_v59, %v144_v3 }
 0x22e   :  { %v3801_v53 = vmul.f32 -1.442695, %v1153_v56 }
 0x22f   :  { %v924_v43 = vpop.f32.mrf.mxu2 }
 0x230   :  { %3853 = vpow2.f32 %v3801_v53  ;;  %v925_v52 = vadd.f32 %v924_v43, %v904_v48  ;;  %v12845_v48 = vld [vmem:[#allocation80_spill] sm:$0xff] }
 0x232   :  { %v1133_v22 = vadd.f32 %v925_v52, %v103_v40 }
 0x234   :  { %v3800_v15 = vmul.f32 -1.442695, %v1133_v22 }
 0x236   :  { %v3854_v41 = vpop.eup %3853  ;;  %3855 = vpow2.f32 %v3800_v15 }
 0x237   :  { %v1157_v63 = vadd.f32 1.0, %v3854_v41  ;;  %v1004_v24 = vpop.f32.mrf.mxu2 }
 0x238   :  { %v1005_v53 = vadd.f32 %v1004_v24, %v984_v23 }
 0x239   :  { %3857 = vrcp.f32 %v1157_v63  ;;  %v1169_v16 = vand.u32 2147483648, %v1157_v63  ;;  %vm1163_vm6 = vweird.f32 %v1157_v63 }
 0x23a   :  { %v1173_v40 = vadd.f32 %v12845_v48, %v1005_v53  ;;  %v12851_v48 = vld [vmem:[#allocation15_spill] sm:$0xff] }
 0x23c   :  { %v3856_v37 = vpop.eup %3855 }
 0x23d   :  { %v1137_v27 = vadd.f32 1.0, %v3856_v37 }
 0x23f   :  { %3859 = vrcp.f32 %v1137_v27  ;;  %v3858_v51 = vpop.eup %3857  ;;  %v1149_v34 = vand.u32 2147483648, %v1137_v27  ;;  %v1147_v22 = vand.u32 2147483647, %v1137_v27  ;;  %vm1143_vm2 = vweird.f32 %v1137_v27 }
 0x240   :  { %v1159_v13 = vmul.f32 %v3858_v51, %v1157_v63  ;;  %vm1164_vm5 = vweird.f32 %v3858_v51 }
 0x241   :  { %v1150_v41 = vor.u32 1.1754944e-38, %v1149_v34  ;;  %vm1148_vm4 = vcmp.eq.f32.partialorder %v1147_v22, 8.507059e+37  ;;  %vm1165_vm7 = vmor %vm1163_vm6, %vm1164_vm5 }
 0x242   :  { %v1160_v59 = vsub.f32 1.0, %v1159_v13 }
 0x244   :  { %v1161_v52 = vmul.f32 %v3858_v51, %v1160_v59 }
 0x245   :  { %v3860_v3 = vpop.eup %3859 }
 0x246   :  { %v1139_v56 = vmul.f32 %v3860_v3, %v1137_v27  ;;  %vm1144_vm1 = vweird.f32 %v3860_v3  ;;  %v1162_v6 = vadd.f32 %v3858_v51, %v1161_v52  ;;  %v1170_v27 = vor.u32 1.1754944e-38, %v1169_v16  ;;  %v7315_v16 = vld [vmem:[%s12005_s2 + $0x2e8] sm:$0xff] }
 0x247   :  { %vm1145_vm3 = vmor %vm1143_vm2, %vm1144_vm1 }
 0x248   :  { %v1140_v58 = vsub.f32 1.0, %v1139_v56  ;;  %v12847_v56 = vld [vmem:[#allocation32_spill] sm:$0xff]  ;;  %v1166_v24 = vsel %vm1165_vm7, %v3858_v51, %v1162_v6  ;;  %v7335_v6 = vld [vmem:[%s12005_s2 + $0x2c0] sm:$0xff]  ;;  %v12849_v51 = vld [vmem:[#allocation13_spill] sm:$0xff] }
 0x249   :  { %v185_v14 = vadd.f32 %v12847_v56, %v12846_v39  ;;  %v7398_v56 = vld [vmem:[%s12005_s2 + $0x528] sm:$0xff] }
 0x24a   :  { %v1141_v43 = vmul.f32 %v3860_v3, %v1140_v58  ;;  %v1167_v58 = vand.u32 2147483647, %v1157_v63  ;;  %v12848_v63 = vld [vmem:[#allocation12_spill] sm:$0xff] }
 0x24c   :  { %v1142_v15 = vadd.f32 %v3860_v3, %v1141_v43  ;;  %vm1168_vm8 = vcmp.eq.f32.partialorder %v1167_v58, 8.507059e+37  ;;  %v7410_v58 = vld [vmem:[%s12005_s2 + $0x1d0] sm:$0xff] }
 0x24d   :  { %12852 = vst [vmem:[#allocation19_spill] sm:$0xff] %v7410_v58 }
 0x24e   :  { %v1146_v37 = vsel %vm1145_vm3, %v3860_v3, %v1142_v15  ;;  %v1171_v3 = vsel %vm1168_vm8, %v1170_v27, %v1166_v24  ;;  %v7363_v15 = vld [vmem:[%s12005_s2 + $0x260] sm:$0xff]  ;;  %v7442_v27 = vld [vmem:[%s12005_s2 + $0x168] sm:$0xff] }
 0x24f   :  { %v1151_v13 = vsel %vm1148_vm4, %v1150_v41, %v1146_v37  ;;  %v1177_v34 = vsub.f32 1.0, %v1171_v3  ;;  %v1179_v22 = vmul.f32 %v1171_v3, %v6400_v61  ;;  %v7321_v61 = vld [vmem:[%s12005_s2 + $0x2f0] sm:$0xff]  ;;  %v12850_v37 = vld [vmem:[#allocation14_spill] sm:$0xff]  ;;  %v7429_v24 = vld [vmem:[%s12005_s2 + $0x1a0] sm:$0xff]  ;;  %12857 = vst [vmem:[#allocation12_spill] sm:$0xff] %v7442_v27 }
 0x250   :  { %v1174_v23 = vmul.f32 %v1173_v40, %v1151_v13  ;;  %v7377_v41 = vld [vmem:[%s12005_s2 + $0x230] sm:$0xff]  ;;  %v7385_v40 = vld [vmem:[%s12005_s2 + $0x1f8] sm:$0xff]  ;;  %v7391_v13 = vld [vmem:[%s12005_s2 + $0x200] sm:$0xff]  ;;  %12855 = vst [vmem:[#allocation82_spill] sm:$0xff] %v7429_v24 }
 0x251   :  { %v7448_v3 = vld [vmem:[%s12005_s2 + $0x170] sm:$0xff] }
 0x252   :  { %v1175_v59 = vadd.f32 %v1174_v23, %v185_v14  ;;  %v7329_v14 = vld [vmem:[%s12005_s2 + $0x2b8] sm:$0xff]  ;;  %v7404_v23 = vld [vmem:[%s12005_s2 + $0x1c8] sm:$0xff]  ;;  %12858 = vst [vmem:[#allocation13_spill] sm:$0xff] %v7448_v3 }
 0x254   :  { %3861 = vtanh.f32 %v1175_v59  ;;  %v7423_v59 = vld [vmem:[%s12005_s2 + $0x198] sm:$0xff] }
 0x255   :  { %12854 = vst [vmem:[#allocation80_spill] sm:$0xff] %v7423_v59 }
 0x25a   :  { %v3862_v43 = vpop.eup %3861 }
 0x25b   :  { %v1178_v53 = vmul.f32 %v3862_v43, %v1177_v34  ;;  %v7461_v34 = vld [vmem:[%s12005_s2 + $0x138] sm:$0xff]  ;;  %v7467_v43 = vld [vmem:[%s12005_s2 + $0x140] sm:$0xff] }
 0x25c   :  { %12860 = vst [vmem:[#allocation15_spill] sm:$0xff] %v7461_v34 }
 0x25d   :  { %v7306_v52 = vadd.f32 %v1179_v22, %v1178_v53  ;;  %12861 = vst [vmem:[#allocation113_spill] sm:$0xff] %v7467_v43  ;;  %v7480_v53 = vld [vmem:[%s12005_s2 + $0x108] sm:$0xff]  ;;  %v7486_v22 = vld [vmem:[%s12005_s2 + $0x110] sm:$0xff] }
 0x25e   :  { %12863 = vst [vmem:[#allocation115_spill] sm:$0xff] %v7480_v53 }
 0x25f   :  { %1197 = vmatmul.f32.vlgmr.msrb.gmra.mxu1 %v7306_v52  ;;  %1217 = vmatmul.f32.vlgmr.msrb.gmra.mxu2 %v7306_v52  ;;  %12864 = vst [vmem:[#allocation116_spill] sm:$0xff] %v7486_v22 }
 0x260   :  { %1237 = vmatmul.f32.vlgmr.msra.gmra.mxu3 %v7306_v52  ;;  %1305 = vmatmul.f32.vlgmr.msra.gmra.mxu0 %v7306_v52 }
 0x261   :  { %1409 = vmatpush.msrb.mxu2 %v7315_v16  ;;  %1449 = vmatpush.msra.mxu0 %v7321_v61 }
 0x262   :  { %1389 = vmatpush.msrb.mxu1 %v6451_v62  ;;  %1429 = vmatpush.msra.mxu3 %v6457_v0  ;;  %v7343_v62 = vld [vmem:[%s12005_s2 + $0x288] sm:$0xff]  ;;  %v7349_v0 = vld [vmem:[%s12005_s2 + $0x290] sm:$0xff] }
 0x263   :  { %1410 = vmatpush.msrb.mxu2 %v7329_v14  ;;  %1450 = vmatpush.msra.mxu0 %v7335_v6 }
 0x264   :  { %1390 = vmatpush.msrb.mxu1 %v12848_v63  ;;  %1430 = vmatpush.msra.mxu3 %v6475_v49  ;;  %v7357_v49 = vld [vmem:[%s12005_s2 + $0x258] sm:$0xff] }
 0x265   :  { %1411 = vmatpush.msrb.mxu2 %v7343_v62  ;;  %1451 = vmatpush.msra.mxu0 %v7349_v0  ;;  %v7499_v63 = vld [vmem:[%s12005_s2 + $0xd8] sm:$0xff] }
 0x266   :  { %1391 = vmatpush.msrb.mxu1 %v12849_v51  ;;  %1431 = vmatpush.msra.mxu3 %v6489_v33  ;;  %v7371_v33 = vld [vmem:[%s12005_s2 + $0x228] sm:$0xff]  ;;  %12866 = vst [vmem:[#allocation118_spill] sm:$0xff] %v7499_v63  ;;  %v7505_v51 = vld [vmem:[%s12005_s2 + $0xe0] sm:$0xff] }
 0x267   :  { %1412 = vmatpush.msrb.mxu2 %v7357_v49  ;;  %1452 = vmatpush.msra.mxu0 %v7363_v15  ;;  %12867 = vst [vmem:[#allocation119_spill] sm:$0xff] %v7505_v51 }
 0x268   :  { %1345 = vmatmul.f32.vlgmr.msra.gmra.mxu2 %v7306_v52  ;;  %1385 = vmatmul.f32.vlgmr.msrb.gmra.mxu0 %v7306_v52 }
 0x269   :  { %1413 = vmatpush.msrb.mxu2 %v7371_v33  ;;  %1453 = vmatpush.msra.mxu0 %v7377_v41 }
 0x26a   :  { %1392 = vmatpush.msrb.mxu1 %v12850_v37  ;;  %1432 = vmatpush.msra.mxu3 %v12851_v48  ;;  %v7518_v37 = vld [vmem:[%s12005_s2 + $0xa8] sm:$0xff]  ;;  %v7524_v48 = vld [vmem:[%s12005_s2 + $0xb0] sm:$0xff] }
 0x26b   :  { %1414 = vmatpush.msrb.mxu2 %v7385_v40  ;;  %1454 = vmatpush.msra.mxu0 %v7391_v13  ;;  %12869 = vst [vmem:[#allocation121_spill] sm:$0xff] %v7518_v37 }
 0x26c   :  { %1393 = vmatpush.msrb.mxu1 %v6511_v12  ;;  %1433 = vmatpush.msra.mxu3 %v7398_v56  ;;  %v7417_v12 = vld [vmem:[%s12005_s2 + $0x4f8] sm:$0xff]  ;;  %12870 = vst [vmem:[#allocation122_spill] sm:$0xff] %v7524_v48 }
 0x26d   :  { %1415 = vmatpush.msrb.mxu2 %v7404_v23  ;;  %1455 = vmatpush.msra.mxu0 %v7410_v58  ;;  %12853 = vst [vmem:[#allocation18_spill] sm:$0xff] %v7417_v12 }
 0x26e   :  { %1394 = vmatpush.msrb.mxu1 %v6520_v54  ;;  %1434 = vmatpush.msra.mxu3 %v7417_v12  ;;  %v7436_v54 = vld [vmem:[%s12005_s2 + $0x4c8] sm:$0xff] }
 0x26f   :  { %1416 = vmatpush.msrb.mxu2 %v7423_v59  ;;  %1456 = vmatpush.msra.mxu0 %v7429_v24  ;;  %12856 = vst [vmem:[#allocation32_spill] sm:$0xff] %v7436_v54 }
 0x270   :  { %1395 = vmatpush.msrb.mxu1 %v6529_v2  ;;  %1435 = vmatpush.msra.mxu3 %v7436_v54  ;;  %v7455_v2 = vld [vmem:[%s12005_s2 + $0x498] sm:$0xff] }
 0x271   :  { %1417 = vmatpush.msrb.mxu2 %v7442_v27  ;;  %1457 = vmatpush.msra.mxu0 %v7448_v3  ;;  %12859 = vst [vmem:[#allocation14_spill] sm:$0xff] %v7455_v2 }
 0x272   :  { %1396 = vmatpush.msrb.mxu1 %v6538_v17  ;;  %1436 = vmatpush.msra.mxu3 %v7455_v2  ;;  %v7474_v17 = vld [vmem:[%s12005_s2 + $0x468] sm:$0xff] }
 0x273   :  { %1418 = vmatpush.msrb.mxu2 %v7461_v34  ;;  %1458 = vmatpush.msra.mxu0 %v7467_v43  ;;  %12862 = vst [vmem:[#allocation114_spill] sm:$0xff] %v7474_v17 }
 0x274   :  { %1397 = vmatpush.msrb.mxu1 %v6547_v21  ;;  %1437 = vmatpush.msra.mxu3 %v7474_v17  ;;  %v7493_v21 = vld [vmem:[%s12005_s2 + $0x438] sm:$0xff] }
 0x275   :  { %1419 = vmatpush.msrb.mxu2 %v7480_v53  ;;  %1459 = vmatpush.msra.mxu0 %v7486_v22  ;;  %12865 = vst [vmem:[#allocation117_spill] sm:$0xff] %v7493_v21  ;;  %v8064_v53 = vld [vmem:[%s12005_s2 + $0x308] sm:$0xff] }
 0x276   :  { %1398 = vmatpush.msrb.mxu1 %v6556_v55  ;;  %1438 = vmatpush.msra.mxu3 %v7493_v21  ;;  %v7512_v55 = vld [vmem:[%s12005_s2 + $0x408] sm:$0xff]  ;;  %12965 = vst [vmem:[#allocation203_spill] sm:$0xff] %v8064_v53 }
 0x277   :  { %1420 = vmatpush.msrb.mxu2 %v7499_v63  ;;  %1460 = vmatpush.msra.mxu0 %v7505_v51  ;;  %12868 = vst [vmem:[#allocation120_spill] sm:$0xff] %v7512_v55  ;;  %v12880_v51 = vld [vmem:[#allocation4_spill] sm:$0xff]  ;;  %v12888_v63 = vld [vmem:[#allocation21_spill] sm:$0xff] }
 0x278   :  { %1399 = vmatpush.msrb.mxu1 %v6565_v28  ;;  %1439 = vmatpush.msra.mxu3 %v7512_v55  ;;  %v12871_v28 = vld [vmem:[#allocation16_spill] sm:$0xff]  ;;  %v7531_v55 = vld [vmem:[%s12005_s2 + $0x3d8] sm:$0xff] }
 0x279   :  { %1421 = vmatpush.msrb.mxu2 %v7518_v37  ;;  %1461 = vmatpush.msra.mxu0 %v7524_v48  ;;  %12872 = vst [vmem:[#allocation16_spill] sm:$0xff] %v7531_v55  ;;  %v7537_v37 = vld [vmem:[%s12005_s2 + $0x78] sm:$0xff]  ;;  %v7543_v48 = vld [vmem:[%s12005_s2 + $0x80] sm:$0xff] }
 0x27a   :  { %1400 = vmatpush.msrb.mxu1 %v12871_v28  ;;  %1440 = vmatpush.msra.mxu3 %v7531_v55  ;;  %12873 = vst [vmem:[#allocation123_spill] sm:$0xff] %v7537_v37  ;;  %v12875_v28 = vld [vmem:[#allocation3_spill] sm:$0xff]  ;;  %v7550_v55 = vld [vmem:[%s12005_s2 + $0x3a8] sm:$0xff] }
 0x27b   :  { %1422 = vmatpush.msrb.mxu2 %v7537_v37  ;;  %12874 = vst [vmem:[#allocation124_spill] sm:$0xff] %v7543_v48  ;;  %1462 = vmatpush.msra.mxu0 %v7543_v48  ;;  %v7556_v37 = vld [vmem:[%s12005_s2 + $0x48] sm:$0xff]  ;;  %v7562_v48 = vld [vmem:[%s12005_s2 + $0x50] sm:$0xff] }
 0x27c   :  { %1401 = vmatpush.msrb.mxu1 %v12875_v28  ;;  %12876 = vst [vmem:[#allocation3_spill] sm:$0xff] %v7550_v55  ;;  %1441 = vmatpush.msra.mxu3 %v7550_v55  ;;  %v12879_v28 = vld [vmem:[#allocation17_spill] sm:$0xff]  ;;  %v7570_v55 = vld [vmem:[%s12005_s2 + $0x18] sm:$0xff] }
 0x27d   :  { %12877 = vst [vmem:[#allocation125_spill] sm:$0xff] %v7556_v37  ;;  %1423 = vmatpush.msrb.mxu2 %v7556_v37  ;;  %1463 = vmatpush.msra.mxu0 %v7562_v48  ;;  %v7576_v37 = vld [vmem:[%s12005_s2 + $0x20] sm:$0xff] }
 0x27e   :  { %12878 = vst [vmem:[#allocation126_spill] sm:$0xff] %v7562_v48  ;;  %1402 = vmatpush.msrb.mxu1 %v12879_v28  ;;  %1442 = vmatpush.msra.mxu3 %v12880_v51  ;;  %v7584_v51 = vld [vmem:[%s12005_s2 + $0x2f8] sm:$0xff]  ;;  %v12884_v28 = vld [vmem:[#allocation20_spill] sm:$0xff] }
 0x27f   :  { %12881 = vst [vmem:[#allocation17_spill] sm:$0xff] %v7570_v55  ;;  %1424 = vmatpush.msrb.mxu2 %v7570_v55  ;;  %1464 = vmatpush.msra.mxu0 %v7576_v37  ;;  %v12885_v55 = vld [vmem:[#allocation5_spill] sm:$0xff]  ;;  %v7592_v48 = vld [vmem:[%s12008_s5 + $0x168] sm:$0xff] }
 0x280   :  { %12882 = vst [vmem:[#allocation4_spill] sm:$0xff] %v7576_v37  ;;  %1425 = vmatmul.f32.vlgmr.msrb.gmra.mxu2 %v7306_v52  ;;  %1465 = vmatmul.f32.vlgmr.msra.gmra.mxu0 %v7306_v52  ;;  %v7598_v37 = vld [vmem:[%s12005_s2 + $0x2c8] sm:$0xff] }
 0x281   :  { %12883 = vst [vmem:[#allocation127_spill] sm:$0xff] %v7584_v51  ;;  %1489 = vmatpush.msra.mxu2 %v7584_v51  ;;  %1403 = vmatpush.msrb.mxu1 %v12884_v28  ;;  %v7612_v28 = vld [vmem:[%s12005_s2 + $0x298] sm:$0xff]  ;;  %v1024_v51 = vpop.f32.mrf.mxu3 }
 0x282   :  { %1443 = vmatpush.msra.mxu3 %v12885_v55  ;;  %12886 = vst [vmem:[#allocation20_spill] sm:$0xff] %v7592_v48  ;;  %1583 = vmatpush.msrb.mxu0 %v7592_v48  ;;  %v7606_v55 = vld [vmem:[%s12008_s5 + $0x150] sm:$0xff]  ;;  %v1084_v48 = vpop.f32.mrf.mxu2 }
 0x283   :  { %12887 = vst [vmem:[#allocation5_spill] sm:$0xff] %v7598_v37  ;;  %1490 = vmatpush.msra.mxu2 %v7598_v37  ;;  %1404 = vmatpush.msrb.mxu1 %v12888_v63  ;;  %v7618_v63 = vld [vmem:[%s12008_s5 + $0x138] sm:$0xff] }
 0x284   :  { %1444 = vmatpush.msra.mxu3 %v6629_v35  ;;  %12889 = vst [vmem:[#allocation21_spill] sm:$0xff] %v7606_v55  ;;  %1584 = vmatpush.msrb.mxu0 %v7606_v55  ;;  %v7624_v35 = vld [vmem:[%s12005_s2 + $0x268] sm:$0xff]  ;;  %v7630_v55 = vld [vmem:[%s12008_s5 + $0x120] sm:$0xff]  ;;  %v8033_v37 = vld [vmem:[%s12005_s2 + $0x3f8] sm:$0xff] }
 0x285   :  { %12890 = vst [vmem:[#allocation128_spill] sm:$0xff] %v7612_v28  ;;  %1491 = vmatpush.msra.mxu2 %v7612_v28  ;;  %v7636_v28 = vld [vmem:[%s12005_s2 + $0x238] sm:$0xff] }
 0x286   :  { %12891 = vst [vmem:[#allocation129_spill] sm:$0xff] %v7618_v63  ;;  %1585 = vmatpush.msrb.mxu0 %v7618_v63  ;;  %v7642_v63 = vld [vmem:[%s12008_s5 + $0x108] sm:$0xff] }
 0x287   :  { %12892 = vst [vmem:[#allocation130_spill] sm:$0xff] %v7624_v35  ;;  %1492 = vmatpush.msra.mxu2 %v7624_v35  ;;  %v7648_v35 = vld [vmem:[%s12005_s2 + $0x208] sm:$0xff] }
 0x288   :  { %12893 = vst [vmem:[#allocation131_spill] sm:$0xff] %v7630_v55  ;;  %1586 = vmatpush.msrb.mxu0 %v7630_v55  ;;  %v7654_v55 = vld [vmem:[%s12008_s5 + $0xf0] sm:$0xff] }
 0x289   :  { %12894 = vst [vmem:[#allocation132_spill] sm:$0xff] %v7636_v28  ;;  %1493 = vmatpush.msra.mxu2 %v7636_v28  ;;  %v7660_v28 = vld [vmem:[%s12005_s2 + $0x1d8] sm:$0xff] }
 0x28a   :  { %12895 = vst [vmem:[#allocation133_spill] sm:$0xff] %v7642_v63  ;;  %1587 = vmatpush.msrb.mxu0 %v7642_v63  ;;  %v7666_v63 = vld [vmem:[%s12008_s5 + $0xd8] sm:$0xff] }
 0x28b   :  { %12896 = vst [vmem:[#allocation134_spill] sm:$0xff] %v7648_v35  ;;  %1494 = vmatpush.msra.mxu2 %v7648_v35  ;;  %v7672_v35 = vld [vmem:[%s12005_s2 + $0x1a8] sm:$0xff] }
 0x28c   :  { %12897 = vst [vmem:[#allocation135_spill] sm:$0xff] %v7654_v55  ;;  %1588 = vmatpush.msrb.mxu0 %v7654_v55  ;;  %v7678_v55 = vld [vmem:[%s12008_s5 + $0xc0] sm:$0xff] }
 0x28d   :  { %12898 = vst [vmem:[#allocation136_spill] sm:$0xff] %v7660_v28  ;;  %1495 = vmatpush.msra.mxu2 %v7660_v28  ;;  %v7684_v28 = vld [vmem:[%s12005_s2 + $0x178] sm:$0xff] }
 0x28e   :  { %12899 = vst [vmem:[#allocation137_spill] sm:$0xff] %v7666_v63  ;;  %1589 = vmatpush.msrb.mxu0 %v7666_v63  ;;  %v7690_v63 = vld [vmem:[%s12008_s5 + $0xa8] sm:$0xff] }
 0x28f   :  { %12900 = vst [vmem:[#allocation138_spill] sm:$0xff] %v7672_v35  ;;  %1496 = vmatpush.msra.mxu2 %v7672_v35  ;;  %v7696_v35 = vld [vmem:[%s12005_s2 + $0x148] sm:$0xff] }
 0x290   :  { %12901 = vst [vmem:[#allocation139_spill] sm:$0xff] %v7678_v55  ;;  %1590 = vmatpush.msrb.mxu0 %v7678_v55  ;;  %v7702_v55 = vld [vmem:[%s12008_s5 + $0x90] sm:$0xff] }
 0x291   :  { %12902 = vst [vmem:[#allocation140_spill] sm:$0xff] %v7684_v28  ;;  %1497 = vmatpush.msra.mxu2 %v7684_v28  ;;  %v7708_v28 = vld [vmem:[%s12005_s2 + $0x118] sm:$0xff] }
 0x292   :  { %12903 = vst [vmem:[#allocation141_spill] sm:$0xff] %v7690_v63  ;;  %1591 = vmatpush.msrb.mxu0 %v7690_v63  ;;  %v7714_v63 = vld [vmem:[%s12008_s5 + $0x78] sm:$0xff] }
 0x293   :  { %12904 = vst [vmem:[#allocation142_spill] sm:$0xff] %v7696_v35  ;;  %1498 = vmatpush.msra.mxu2 %v7696_v35  ;;  %v7720_v35 = vld [vmem:[%s12005_s2 + $0xe8] sm:$0xff] }
 0x294   :  { %12905 = vst [vmem:[#allocation143_spill] sm:$0xff] %v7702_v55  ;;  %1592 = vmatpush.msrb.mxu0 %v7702_v55  ;;  %v7726_v55 = vld [vmem:[%s12008_s5 + $0x60] sm:$0xff] }
 0x295   :  { %12906 = vst [vmem:[#allocation144_spill] sm:$0xff] %v7708_v28  ;;  %1499 = vmatpush.msra.mxu2 %v7708_v28  ;;  %v7732_v28 = vld [vmem:[%s12005_s2 + $0xb8] sm:$0xff] }
 0x296   :  { %12907 = vst [vmem:[#allocation145_spill] sm:$0xff] %v7714_v63  ;;  %1593 = vmatpush.msrb.mxu0 %v7714_v63  ;;  %v7738_v63 = vld [vmem:[%s12008_s5 + $0x48] sm:$0xff] }
 0x297   :  { %12908 = vst [vmem:[#allocation146_spill] sm:$0xff] %v7720_v35  ;;  %1500 = vmatpush.msra.mxu2 %v7720_v35  ;;  %v7744_v35 = vld [vmem:[%s12005_s2 + $0x88] sm:$0xff] }
 0x298   :  { %12909 = vst [vmem:[#allocation147_spill] sm:$0xff] %v7726_v55  ;;  %1594 = vmatpush.msrb.mxu0 %v7726_v55  ;;  %v7750_v55 = vld [vmem:[%s12008_s5 + $0x30] sm:$0xff] }
 0x299   :  { %12910 = vst [vmem:[#allocation148_spill] sm:$0xff] %v7732_v28  ;;  %1501 = vmatpush.msra.mxu2 %v7732_v28  ;;  %v7756_v28 = vld [vmem:[%s12005_s2 + $0x58] sm:$0xff] }
 0x29a   :  { %12911 = vst [vmem:[#allocation149_spill] sm:$0xff] %v7738_v63  ;;  %1595 = vmatpush.msrb.mxu0 %v7738_v63  ;;  %v7762_v63 = vld [vmem:[%s12008_s5 + $0x18] sm:$0xff] }
 0x29b   :  { %12912 = vst [vmem:[#allocation150_spill] sm:$0xff] %v7744_v35  ;;  %1502 = vmatpush.msra.mxu2 %v7744_v35  ;;  %v7768_v35 = vld [vmem:[%s12005_s2 + $0x28] sm:$0xff] }
 0x29c   :  { %12913 = vst [vmem:[#allocation151_spill] sm:$0xff] %v7750_v55  ;;  %1596 = vmatpush.msrb.mxu0 %v7750_v55  ;;  %v7793_v55 = vld [vmem:[%s12008_s5 + $0x160] sm:$0xff] }
 0x29d   :  { %12914 = vst [vmem:[#allocation152_spill] sm:$0xff] %v7756_v28  ;;  %1503 = vmatpush.msra.mxu2 %v7756_v28  ;;  %v7775_v28 = vld [vmem:[%s12008_s5] sm:$0xff] }
 0x29e   :  { %12915 = vst [vmem:[#allocation153_spill] sm:$0xff] %v7762_v63  ;;  %1597 = vmatpush.msrb.mxu0 %v7762_v63  ;;  %v7781_v63 = vld [vmem:[%s12008_s5 + $0x178] sm:$0xff] }
 0x29f   :  { %12916 = vst [vmem:[#allocation154_spill] sm:$0xff] %v7768_v35  ;;  %1504 = vmatpush.msra.mxu2 %v7768_v35  ;;  %v7787_v35 = vld [vmem:[%s12005_s2 + $0x5d0] sm:$0xff] }
 0x2a0   :  { %1505 = vmatmul.f32.vlgmr.msra.gmra.mxu2 %v7306_v52  ;;  %12917 = vst [vmem:[#allocation155_spill] sm:$0xff] %v7775_v28  ;;  %1598 = vmatpush.msrb.mxu0 %v7775_v28  ;;  %v7799_v28 = vld [vmem:[%s12005_s2 + $0x5a0] sm:$0xff] }
 0x2a1   :  { %12918 = vst [vmem:[#allocation156_spill] sm:$0xff] %v7781_v63  ;;  %1623 = vmatpush.msrb.mxu2 %v7781_v63  ;;  %v7805_v63 = vld [vmem:[%s12008_s5 + $0x148] sm:$0xff] }
 0x2a2   :  { %12919 = vst [vmem:[#allocation157_spill] sm:$0xff] %v7787_v35  ;;  %1711 = vmatpush.msra.mxu0 %v7787_v35  ;;  %v7811_v35 = vld [vmem:[%s12005_s2 + $0x570] sm:$0xff] }
 0x2a3   :  { %12920 = vst [vmem:[#allocation158_spill] sm:$0xff] %v7793_v55  ;;  %1624 = vmatpush.msrb.mxu2 %v7793_v55  ;;  %v7817_v55 = vld [vmem:[%s12008_s5 + $0x130] sm:$0xff] }
 0x2a4   :  { %12921 = vst [vmem:[#allocation159_spill] sm:$0xff] %v7799_v28  ;;  %1712 = vmatpush.msra.mxu0 %v7799_v28  ;;  %v7823_v28 = vld [vmem:[%s12005_s2 + $0x540] sm:$0xff] }
 0x2a5   :  { %12922 = vst [vmem:[#allocation160_spill] sm:$0xff] %v7805_v63  ;;  %1625 = vmatpush.msrb.mxu2 %v7805_v63  ;;  %v7829_v63 = vld [vmem:[%s12008_s5 + $0x118] sm:$0xff] }
 0x2a6   :  { %12923 = vst [vmem:[#allocation161_spill] sm:$0xff] %v7811_v35  ;;  %1713 = vmatpush.msra.mxu0 %v7811_v35  ;;  %v7835_v35 = vld [vmem:[%s12005_s2 + $0x510] sm:$0xff] }
 0x2a7   :  { %12924 = vst [vmem:[#allocation162_spill] sm:$0xff] %v7817_v55  ;;  %1626 = vmatpush.msrb.mxu2 %v7817_v55  ;;  %v7841_v55 = vld [vmem:[%s12008_s5 + $0x100] sm:$0xff] }
 0x2a8   :  { %12925 = vst [vmem:[#allocation163_spill] sm:$0xff] %v7823_v28  ;;  %1714 = vmatpush.msra.mxu0 %v7823_v28  ;;  %v7847_v28 = vld [vmem:[%s12005_s2 + $0x4e0] sm:$0xff] }
 0x2a9   :  { %12926 = vst [vmem:[#allocation164_spill] sm:$0xff] %v7829_v63  ;;  %1627 = vmatpush.msrb.mxu2 %v7829_v63  ;;  %v7853_v63 = vld [vmem:[%s12008_s5 + $0xe8] sm:$0xff] }
 0x2aa   :  { %12927 = vst [vmem:[#allocation165_spill] sm:$0xff] %v7835_v35  ;;  %1715 = vmatpush.msra.mxu0 %v7835_v35  ;;  %v7859_v35 = vld [vmem:[%s12005_s2 + $0x4b0] sm:$0xff] }
 0x2ab   :  { %12928 = vst [vmem:[#allocation166_spill] sm:$0xff] %v7841_v55  ;;  %1628 = vmatpush.msrb.mxu2 %v7841_v55  ;;  %v7865_v55 = vld [vmem:[%s12008_s5 + $0xd0] sm:$0xff] }
 0x2ac   :  { %12929 = vst [vmem:[#allocation167_spill] sm:$0xff] %v7847_v28  ;;  %1716 = vmatpush.msra.mxu0 %v7847_v28  ;;  %v7871_v28 = vld [vmem:[%s12005_s2 + $0x480] sm:$0xff] }
 0x2ad   :  { %12930 = vst [vmem:[#allocation168_spill] sm:$0xff] %v7853_v63  ;;  %1629 = vmatpush.msrb.mxu2 %v7853_v63  ;;  %v7877_v63 = vld [vmem:[%s12008_s5 + $0xb8] sm:$0xff] }
 0x2ae   :  { %12931 = vst [vmem:[#allocation169_spill] sm:$0xff] %v7859_v35  ;;  %1717 = vmatpush.msra.mxu0 %v7859_v35  ;;  %v7883_v35 = vld [vmem:[%s12005_s2 + $0x450] sm:$0xff] }
 0x2af   :  { %12932 = vst [vmem:[#allocation170_spill] sm:$0xff] %v7865_v55  ;;  %1630 = vmatpush.msrb.mxu2 %v7865_v55  ;;  %v7889_v55 = vld [vmem:[%s12008_s5 + $0xa0] sm:$0xff] }
 0x2b0   :  { %12933 = vst [vmem:[#allocation171_spill] sm:$0xff] %v7871_v28  ;;  %1718 = vmatpush.msra.mxu0 %v7871_v28  ;;  %v7895_v28 = vld [vmem:[%s12005_s2 + $0x420] sm:$0xff] }
 0x2b1   :  { %12934 = vst [vmem:[#allocation172_spill] sm:$0xff] %v7877_v63  ;;  %1631 = vmatpush.msrb.mxu2 %v7877_v63  ;;  %v7901_v63 = vld [vmem:[%s12008_s5 + $0x88] sm:$0xff] }
 0x2b2   :  { %12935 = vst [vmem:[#allocation173_spill] sm:$0xff] %v7883_v35  ;;  %1719 = vmatpush.msra.mxu0 %v7883_v35  ;;  %v7907_v35 = vld [vmem:[%s12005_s2 + $0x3f0] sm:$0xff] }
 0x2b3   :  { %12936 = vst [vmem:[#allocation174_spill] sm:$0xff] %v7889_v55  ;;  %1632 = vmatpush.msrb.mxu2 %v7889_v55  ;;  %v7913_v55 = vld [vmem:[%s12008_s5 + $0x70] sm:$0xff] }
 0x2b4   :  { %12937 = vst [vmem:[#allocation175_spill] sm:$0xff] %v7895_v28  ;;  %1720 = vmatpush.msra.mxu0 %v7895_v28  ;;  %v7919_v28 = vld [vmem:[%s12005_s2 + $0x3c0] sm:$0xff] }
 0x2b5   :  { %12938 = vst [vmem:[#allocation176_spill] sm:$0xff] %v7901_v63  ;;  %1633 = vmatpush.msrb.mxu2 %v7901_v63  ;;  %v7925_v63 = vld [vmem:[%s12008_s5 + $0x58] sm:$0xff] }
 0x2b6   :  { %12939 = vst [vmem:[#allocation177_spill] sm:$0xff] %v7907_v35  ;;  %1721 = vmatpush.msra.mxu0 %v7907_v35  ;;  %v7931_v35 = vld [vmem:[%s12005_s2 + $0x390] sm:$0xff] }
 0x2b7   :  { %12940 = vst [vmem:[#allocation178_spill] sm:$0xff] %v7913_v55  ;;  %1634 = vmatpush.msrb.mxu2 %v7913_v55  ;;  %v7937_v55 = vld [vmem:[%s12008_s5 + $0x40] sm:$0xff] }
 0x2b8   :  { %12941 = vst [vmem:[#allocation179_spill] sm:$0xff] %v7919_v28  ;;  %1722 = vmatpush.msra.mxu0 %v7919_v28  ;;  %v7943_v28 = vld [vmem:[%s12005_s2 + $0x360] sm:$0xff] }
 0x2b9   :  { %12942 = vst [vmem:[#allocation180_spill] sm:$0xff] %v7925_v63  ;;  %1635 = vmatpush.msrb.mxu2 %v7925_v63  ;;  %v7949_v63 = vld [vmem:[%s12008_s5 + $0x28] sm:$0xff] }
 0x2ba   :  { %12943 = vst [vmem:[#allocation181_spill] sm:$0xff] %v7931_v35  ;;  %1723 = vmatpush.msra.mxu0 %v7931_v35  ;;  %v7955_v35 = vld [vmem:[%s12005_s2 + $0x330] sm:$0xff] }
 0x2bb   :  { %12944 = vst [vmem:[#allocation182_spill] sm:$0xff] %v7937_v55  ;;  %1636 = vmatpush.msrb.mxu2 %v7937_v55  ;;  %v7961_v55 = vld [vmem:[%s12008_s5 + $0x10] sm:$0xff] }
 0x2bc   :  { %12945 = vst [vmem:[#allocation183_spill] sm:$0xff] %v7943_v28  ;;  %1724 = vmatpush.msra.mxu0 %v7943_v28  ;;  %v7967_v28 = vld [vmem:[%s12005_s2 + $0x300] sm:$0xff] }
 0x2bd   :  { %12946 = vst [vmem:[#allocation184_spill] sm:$0xff] %v7949_v63  ;;  %1637 = vmatpush.msrb.mxu2 %v7949_v63  ;;  %v7973_v63 = vld [vmem:[%s12005_s2 + $0x5d8] sm:$0xff] }
 0x2be   :  { %12947 = vst [vmem:[#allocation185_spill] sm:$0xff] %v7955_v35  ;;  %1725 = vmatpush.msra.mxu0 %v7955_v35  ;;  %v7979_v35 = vld [vmem:[%s12005_s2 + $0x5a8] sm:$0xff] }
 0x2bf   :  { %12948 = vst [vmem:[#allocation186_spill] sm:$0xff] %v7961_v55  ;;  %1638 = vmatpush.msrb.mxu2 %v7961_v55  ;;  %v7985_v55 = vld [vmem:[%s12005_s2 + $0x578] sm:$0xff] }
 0x2c0   :  { %12949 = vst [vmem:[#allocation187_spill] sm:$0xff] %v7967_v28  ;;  %1726 = vmatpush.msra.mxu0 %v7967_v28  ;;  %v7991_v28 = vld [vmem:[%s12005_s2 + $0x548] sm:$0xff] }
 0x2c1   :  { %12950 = vst [vmem:[#allocation188_spill] sm:$0xff] %v7973_v63  ;;  %1751 = vmatpush.msra.mxu2 %v7973_v63  ;;  %v7997_v63 = vld [vmem:[%s12005_s2 + $0x518] sm:$0xff] }
 0x2c2   :  { %12951 = vst [vmem:[#allocation189_spill] sm:$0xff] %v7979_v35 }
 0x2c3   :  { %1752 = vmatpush.msra.mxu2 %v7979_v35  ;;  %12952 = vst [vmem:[#allocation190_spill] sm:$0xff] %v7985_v55  ;;  %v8003_v35 = vld [vmem:[%s12005_s2 + $0x4e8] sm:$0xff] }
 0x2c4   :  { %12953 = vst [vmem:[#allocation191_spill] sm:$0xff] %v7991_v28 }
 0x2c5   :  { %1753 = vmatpush.msra.mxu2 %v7985_v55  ;;  %12954 = vst [vmem:[#allocation192_spill] sm:$0xff] %v7997_v63  ;;  %v8009_v55 = vld [vmem:[%s12005_s2 + $0x4b8] sm:$0xff] }
 0x2c6   :  { %12955 = vst [vmem:[#allocation193_spill] sm:$0xff] %v8003_v35 }
 0x2c7   :  { %1754 = vmatpush.msra.mxu2 %v7991_v28  ;;  %12956 = vst [vmem:[#allocation194_spill] sm:$0xff] %v8009_v55  ;;  %v8015_v28 = vld [vmem:[%s12005_s2 + $0x488] sm:$0xff] }
 0x2c8   :  { %12957 = vst [vmem:[#allocation195_spill] sm:$0xff] %v8015_v28 }
 0x2c9   :  { %1755 = vmatpush.msra.mxu2 %v7997_v63  ;;  %v8021_v63 = vld [vmem:[%s12005_s2 + $0x458] sm:$0xff]  ;;  %12960 = vst [vmem:[#allocation198_spill] sm:$0xff] %v8033_v37 }
 0x2ca   :  { %12958 = vst [vmem:[#allocation196_spill] sm:$0xff] %v8021_v63 }
 0x2cb   :  { %1756 = vmatpush.msra.mxu2 %v8003_v35  ;;  %v8027_v35 = vld [vmem:[%s12005_s2 + $0x428] sm:$0xff] }
 0x2cc   :  { %12959 = vst [vmem:[#allocation197_spill] sm:$0xff] %v8027_v35 }
 0x2cd   :  { %1757 = vmatpush.msra.mxu2 %v8009_v55  ;;  %v1064_v55 = vpop.f32.mrf.mxu1 }
 0x2ce   :  { %v1085_v34 = vadd.f32 %v1084_v48, %v1064_v55 }
 0x2cf   :  { %1758 = vmatpush.msra.mxu2 %v8015_v28  ;;  %v8039_v28 = vld [vmem:[%s12005_s2 + $0x3c8] sm:$0xff] }
 0x2d0   :  { %12961 = vst [vmem:[#allocation199_spill] sm:$0xff] %v8039_v28 }
 0x2d1   :  { %1759 = vmatpush.msra.mxu2 %v8021_v63  ;;  %v8045_v63 = vld [vmem:[%s12005_s2 + $0x398] sm:$0xff] }
 0x2d2   :  { %12962 = vst [vmem:[#allocation200_spill] sm:$0xff] %v8045_v63 }
 0x2d3   :  { %1760 = vmatpush.msra.mxu2 %v8027_v35  ;;  %v1044_v35 = vpop.f32.mrf.mxu0 }
 0x2d4   :  { %v1045_v22 = vadd.f32 %v1044_v35, %v1024_v51 }
 0x2d5   :  { %1761 = vmatpush.msra.mxu2 %v8033_v37  ;;  %v8051_v37 = vld [vmem:[%s12005_s2 + $0x368] sm:$0xff] }
 0x2d6   :  { %12963 = vst [vmem:[#allocation201_spill] sm:$0xff] %v8051_v37 }
 0x2d7   :  { %1762 = vmatpush.msra.mxu2 %v8039_v28  ;;  %v8057_v28 = vld [vmem:[%s12005_s2 + $0x338] sm:$0xff] }
 0x2d8   :  { %12964 = vst [vmem:[#allocation202_spill] sm:$0xff] %v8057_v28 }
 0x2d9   :  { %1763 = vmatpush.msra.mxu2 %v8045_v63 }
 0x2db   :  { %1764 = vmatpush.msra.mxu2 %v8051_v37 }
 0x2dc   :  { %v1198_v21 = vpop.f32.mrf.mxu1 }
 0x2dd   :  { %1765 = vmatpush.msra.mxu2 %v8057_v28  ;;  %v1199_v63 = vadd.f32 %v1198_v21, %v6709_v30  ;;  %v1104_v30 = vpop.f32.mrf.mxu3 }
 0x2df   :  { %1766 = vmatpush.msra.mxu2 %v8064_v53  ;;  %v1241_v37 = vadd.f32 %v1199_v63, %v1045_v22  ;;  %v1124_v53 = vpop.f32.mrf.mxu0 }
 0x2e0   :  { %v1125_v63 = vadd.f32 %v1124_v53, %v1104_v30 }
 0x2e1   :  { %v3802_v17 = vmul.f32 -1.442695, %v1241_v37 }
 0x2e2   :  { %v1218_v43 = vpop.f32.mrf.mxu2  ;;  %v1281_v55 = vadd.f32 %v6718_v36, %v1125_v63 }
 0x2e3   :  { %3863 = vpow2.f32 %v3802_v17  ;;  %v1219_v2 = vadd.f32 %v1218_v43, %v6711_v45 }
 0x2e5   :  { %v1261_v3 = vadd.f32 %v1219_v2, %v1085_v34 }
 0x2e7   :  { %v3803_v27 = vmul.f32 -1.442695, %v1261_v3  ;;  %v1238_v3 = vpop.f32.mrf.mxu3 }
 0x2e8   :  { %v1239_v45 = vadd.f32 %v1238_v3, %v6720_v31  ;;  %v12995_v3 = vld [vmem:[#allocation58_spill] sm:$0xff] }
 0x2e9   :  { %v3864_v28 = vpop.eup %3863  ;;  %3865 = vpow2.f32 %v3803_v27 }
 0x2ea   :  { %v1245_v51 = vadd.f32 1.0, %v3864_v28 }
 0x2ec   :  { %3867 = vrcp.f32 %v1245_v51  ;;  %v1257_v37 = vand.u32 2147483648, %v1245_v51  ;;  %v1255_v17 = vand.u32 2147483647, %v1245_v51  ;;  %vm1251_vm10 = vweird.f32 %v1245_v51 }
 0x2ee   :  { %v1258_v27 = vor.u32 1.1754944e-38, %v1257_v37  ;;  %vm1256_vm12 = vcmp.eq.f32.partialorder %v1255_v17, 8.507059e+37 }
 0x2ef   :  { %v3866_v21 = vpop.eup %3865 }
 0x2f0   :  { %v1265_v35 = vadd.f32 1.0, %v3866_v21 }
 0x2f2   :  { %v3868_v54 = vpop.eup %3867  ;;  %3869 = vrcp.f32 %v1265_v35  ;;  %v1277_v30 = vand.u32 2147483648, %v1265_v35  ;;  %vm1271_vm14 = vweird.f32 %v1265_v35 }
 0x2f3   :  { %v1247_v24 = vmul.f32 %v3868_v54, %v1245_v51  ;;  %vm1252_vm9 = vweird.f32 %v3868_v54 }
 0x2f4   :  { %vm1253_vm11 = vmor %vm1251_vm10, %vm1252_vm9 }
 0x2f5   :  { %v1248_v22 = vsub.f32 1.0, %v1247_v24 }
 0x2f7   :  { %v1249_v48 = vmul.f32 %v3868_v54, %v1248_v22  ;;  %v1275_v22 = vand.u32 2147483647, %v1265_v35 }
 0x2f8   :  { %v3870_v43 = vpop.eup %3869 }
 0x2f9   :  { %v1267_v2 = vmul.f32 %v3870_v43, %v1265_v35  ;;  %v1250_v34 = vadd.f32 %v3868_v54, %v1249_v48  ;;  %vm1272_vm13 = vweird.f32 %v3870_v43  ;;  %v1278_v48 = vor.u32 1.1754944e-38, %v1277_v30  ;;  %v12993_v35 = vld [vmem:[#allocation53_spill] sm:$0xff] }
 0x2fa   :  { %vm1273_vm15 = vmor %vm1271_vm14, %vm1272_vm13  ;;  %vm1276_vm0 = vcmp.eq.f32.partialorder %v1275_v22, 8.507059e+37  ;;  %v13002_v30 = vld [vmem:[#allocation77_spill] sm:$0xff]  ;;  %v8142_v22 = vld [vmem:[%s12008_s5 + $0x20] sm:$0xff] }
 0x2fb   :  { %v1268_v28 = vsub.f32 1.0, %v1267_v2  ;;  %v1254_v21 = vsel %vm1253_vm11, %v3868_v54, %v1250_v34  ;;  %v12996_v34 = vld [vmem:[#allocation63_spill] sm:$0xff] }
 0x2fc   :  { %v1259_v24 = vsel %vm1256_vm12, %v1258_v27, %v1254_v21  ;;  %v12997_v27 = vld [vmem:[#allocation65_spill] sm:$0xff]  ;;  %v13000_v21 = vld [vmem:[#allocation74_spill] sm:$0xff] }
 0x2fd   :  { %v1269_v59 = vmul.f32 %v3870_v43, %v1268_v28  ;;  %v1282_v53 = vmul.f32 %v1281_v55, %v1259_v24  ;;  %v12998_v55 = vld [vmem:[#allocation67_spill] sm:$0xff]  ;;  %v12999_v28 = vld [vmem:[#allocation73_spill] sm:$0xff]  ;;  %v13001_v24 = vld [vmem:[#allocation76_spill] sm:$0xff] }
 0x2ff   :  { %v1270_v12 = vadd.f32 %v3870_v43, %v1269_v59  ;;  %v1283_v58 = vadd.f32 %v1282_v53, %v1239_v45  ;;  %v12966_v45 = vld [vmem:[#allocation7_spill] sm:$0xff]  ;;  %v12992_v59 = vld [vmem:[#allocation52_spill] sm:$0xff]  ;;  %v13003_v53 = vld [vmem:[#allocation78_spill] sm:$0xff] }
 0x301   :  { %v1274_v51 = vsel %vm1273_vm15, %v3870_v43, %v1270_v12  ;;  %3871 = vtanh.f32 %v1283_v58  ;;  %v12990_v58 = vld [vmem:[#allocation47_spill] sm:$0xff]  ;;  %v12991_v12 = vld [vmem:[#allocation49_spill] sm:$0xff] }
 0x302   :  { %v1279_v36 = vsel %vm1276_vm0, %v1278_v48, %v1274_v51  ;;  %v12994_v43 = vld [vmem:[#allocation55_spill] sm:$0xff]  ;;  %v8149_v48 = vld [vmem:[%s12008_s5 + $0x8] sm:$0xff] }
 0x303   :  { %v1285_v37 = vsub.f32 1.0, %v1279_v36  ;;  %v1287_v17 = vmul.f32 %v1279_v36, %v6724_v11  ;;  %v12967_v11 = vld [vmem:[#allocation23_spill] sm:$0xff]  ;;  %v13005_v36 = vld [vmem:[#allocation81_spill] sm:$0xff] }
 0x304   :  { %v13004_v51 = vld [vmem:[#allocation79_spill] sm:$0xff] }
 0x307   :  { %v3872_v54 = vpop.eup %3871 }
 0x308   :  { %v1286_v63 = vmul.f32 %v3872_v54, %v1285_v37  ;;  %v13006_v37 = vld [vmem:[#allocation83_spill] sm:$0xff]  ;;  %v13007_v54 = vld [vmem:[#allocation84_spill] sm:$0xff] }
 0x30a   :  { %v8071_v2 = vadd.f32 %v1287_v17, %v1286_v63  ;;  %v13008_v63 = vld [vmem:[#allocation85_spill] sm:$0xff]  ;;  %v13009_v17 = vld [vmem:[#allocation86_spill] sm:$0xff] }
 0x30c   :  { %1325 = vmatmul.f32.vlgmr.msra.gmra.mxu1 %v8071_v2  ;;  %1365 = vmatmul.f32.vlgmr.msrb.gmra.mxu3 %v8071_v2 }
 0x30d   :  { %1469 = vmatpush.msra.mxu1 %v6731_v9  ;;  %1509 = vmatpush.msrb.mxu3 %v6737_v20  ;;  %v12968_v9 = vld [vmem:[#allocation8_spill] sm:$0xff]  ;;  %v12969_v20 = vld [vmem:[#allocation26_spill] sm:$0xff] }
 0x30f   :  { %1470 = vmatpush.msra.mxu1 %v6743_v38  ;;  %1510 = vmatpush.msrb.mxu3 %v6749_v7  ;;  %v12970_v38 = vld [vmem:[#allocation9_spill] sm:$0xff]  ;;  %v12971_v7 = vld [vmem:[#allocation27_spill] sm:$0xff] }
 0x311   :  { %1471 = vmatpush.msra.mxu1 %v6755_v18  ;;  %1511 = vmatpush.msrb.mxu3 %v6761_v25  ;;  %v12972_v18 = vld [vmem:[#allocation10_spill] sm:$0xff]  ;;  %v12973_v25 = vld [vmem:[#allocation28_spill] sm:$0xff] }
 0x313   :  { %1472 = vmatpush.msra.mxu1 %v6767_v1  ;;  %1512 = vmatpush.msrb.mxu3 %v6773_v44  ;;  %v12974_v1 = vld [vmem:[#allocation11_spill] sm:$0xff]  ;;  %v12975_v44 = vld [vmem:[#allocation57_spill] sm:$0xff] }
 0x314   :  { %1405 = vmatmul.f32.vlgmr.msrb.gmra.mxu1 %v8071_v2  ;;  %1445 = vmatmul.f32.vlgmr.msra.gmra.mxu3 %v8071_v2 }
 0x315   :  { %1473 = vmatpush.msra.mxu1 %v6781_v57  ;;  %1513 = vmatpush.msrb.mxu3 %v6787_v29  ;;  %v12976_v57 = vld [vmem:[#allocation31_spill] sm:$0xff]  ;;  %v12977_v29 = vld [vmem:[#allocation61_spill] sm:$0xff] }
 0x317   :  { %1474 = vmatpush.msra.mxu1 %v6793_v8  ;;  %1514 = vmatpush.msrb.mxu3 %v6799_v4  ;;  %v12978_v8 = vld [vmem:[#allocation33_spill] sm:$0xff]  ;;  %v12979_v4 = vld [vmem:[#allocation64_spill] sm:$0xff] }
 0x319   :  { %1475 = vmatpush.msra.mxu1 %v6805_v50  ;;  %1515 = vmatpush.msrb.mxu3 %v6811_v10  ;;  %v12980_v50 = vld [vmem:[#allocation34_spill] sm:$0xff] }
 0x31a   :  { %v12981_v10 = vld [vmem:[#allocation66_spill] sm:$0xff] }
 0x31b   :  { %1476 = vmatpush.msra.mxu1 %v6817_v47  ;;  %1516 = vmatpush.msrb.mxu3 %v6823_v19  ;;  %v12982_v47 = vld [vmem:[#allocation35_spill] sm:$0xff]  ;;  %v12983_v19 = vld [vmem:[#allocation69_spill] sm:$0xff] }
 0x31d   :  { %1477 = vmatpush.msra.mxu1 %v6829_v26  ;;  %1517 = vmatpush.msrb.mxu3 %v6835_v32  ;;  %v12984_v26 = vld [vmem:[#allocation38_spill] sm:$0xff]  ;;  %v12985_v32 = vld [vmem:[#allocation39_spill] sm:$0xff] }
 0x31f   :  { %1478 = vmatpush.msra.mxu1 %v6841_v42  ;;  %1518 = vmatpush.msrb.mxu3 %v6847_v5  ;;  %v12986_v42 = vld [vmem:[#allocation41_spill] sm:$0xff]  ;;  %v12987_v5 = vld [vmem:[#allocation42_spill] sm:$0xff] }
 0x321   :  { %1479 = vmatpush.msra.mxu1 %v6853_v46  ;;  %1519 = vmatpush.msrb.mxu3 %v6859_v60  ;;  %v12988_v46 = vld [vmem:[#allocation45_spill] sm:$0xff]  ;;  %v12989_v60 = vld [vmem:[#allocation46_spill] sm:$0xff] }
 0x323   :  { %1480 = vmatpush.msra.mxu1 %v12966_v45  ;;  %1520 = vmatpush.msrb.mxu3 %v12967_v11  ;;  %v13010_v45 = vld [vmem:[#allocation54_spill] sm:$0xff]  ;;  %v13011_v11 = vld [vmem:[#allocation56_spill] sm:$0xff] }
 0x325   :  { %1481 = vmatpush.msra.mxu1 %v12968_v9  ;;  %1521 = vmatpush.msrb.mxu3 %v12969_v20  ;;  %v13012_v9 = vld [vmem:[#allocation87_spill] sm:$0xff]  ;;  %v13013_v20 = vld [vmem:[#allocation88_spill] sm:$0xff] }
 0x327   :  { %1482 = vmatpush.msra.mxu1 %v12970_v38  ;;  %1522 = vmatpush.msrb.mxu3 %v12971_v7  ;;  %v13014_v38 = vld [vmem:[#allocation89_spill] sm:$0xff]  ;;  %v13015_v7 = vld [vmem:[#allocation90_spill] sm:$0xff] }
 0x329   :  { %1483 = vmatpush.msra.mxu1 %v12972_v18  ;;  %1523 = vmatpush.msrb.mxu3 %v12973_v25  ;;  %v13016_v18 = vld [vmem:[#allocation91_spill] sm:$0xff]  ;;  %v13017_v25 = vld [vmem:[#allocation92_spill] sm:$0xff] }
 0x32b   :  { %1484 = vmatpush.msra.mxu1 %v12974_v1  ;;  %1524 = vmatpush.msrb.mxu3 %v12975_v44  ;;  %v13018_v1 = vld [vmem:[#allocation93_spill] sm:$0xff]  ;;  %v13019_v44 = vld [vmem:[#allocation94_spill] sm:$0xff] }
 0x32c   :  { %1485 = vmatmul.f32.vlgmr.msra.gmra.mxu1 %v8071_v2  ;;  %1525 = vmatmul.f32.vlgmr.msrb.gmra.mxu3 %v8071_v2 }
 0x32d   :  { %1603 = vmatpush.msrb.mxu1 %v12976_v57  ;;  %1691 = vmatpush.msra.mxu3 %v12977_v29  ;;  %v13020_v57 = vld [vmem:[#allocation95_spill] sm:$0xff]  ;;  %v13021_v29 = vld [vmem:[#allocation96_spill] sm:$0xff] }
 0x32f   :  { %1604 = vmatpush.msrb.mxu1 %v12978_v8  ;;  %1692 = vmatpush.msra.mxu3 %v12979_v4  ;;  %v13022_v8 = vld [vmem:[#allocation97_spill] sm:$0xff]  ;;  %v13023_v4 = vld [vmem:[#allocation98_spill] sm:$0xff] }
 0x331   :  { %1605 = vmatpush.msrb.mxu1 %v12980_v50  ;;  %1693 = vmatpush.msra.mxu3 %v12981_v10  ;;  %v13024_v50 = vld [vmem:[#allocation99_spill] sm:$0xff]  ;;  %v13025_v10 = vld [vmem:[#allocation100_spill] sm:$0xff] }
 0x333   :  { %1606 = vmatpush.msrb.mxu1 %v12982_v47  ;;  %1694 = vmatpush.msra.mxu3 %v12983_v19  ;;  %v13026_v47 = vld [vmem:[#allocation101_spill] sm:$0xff]  ;;  %v13027_v19 = vld [vmem:[#allocation102_spill] sm:$0xff] }
 0x335   :  { %1607 = vmatpush.msrb.mxu1 %v12984_v26  ;;  %1695 = vmatpush.msra.mxu3 %v12985_v32  ;;  %v13028_v26 = vld [vmem:[#allocation103_spill] sm:$0xff]  ;;  %v13029_v32 = vld [vmem:[#allocation104_spill] sm:$0xff] }
 0x337   :  { %1608 = vmatpush.msrb.mxu1 %v12986_v42  ;;  %1696 = vmatpush.msra.mxu3 %v12987_v5  ;;  %v13030_v42 = vld [vmem:[#allocation105_spill] sm:$0xff]  ;;  %v13031_v5 = vld [vmem:[#allocation106_spill] sm:$0xff] }
 0x339   :  { %1609 = vmatpush.msrb.mxu1 %v12988_v46  ;;  %1697 = vmatpush.msra.mxu3 %v12989_v60  ;;  %v13032_v46 = vld [vmem:[#allocation107_spill] sm:$0xff]  ;;  %v13033_v60 = vld [vmem:[#allocation108_spill] sm:$0xff] }
 0x33b   :  { %1610 = vmatpush.msrb.mxu1 %v12990_v58  ;;  %1698 = vmatpush.msra.mxu3 %v12991_v12  ;;  %v13034_v58 = vld [vmem:[#allocation109_spill] sm:$0xff]  ;;  %v13035_v12 = vld [vmem:[#allocation110_spill] sm:$0xff] }
 0x33d   :  { %1611 = vmatpush.msrb.mxu1 %v12992_v59  ;;  %1699 = vmatpush.msra.mxu3 %v12993_v35  ;;  %v13036_v59 = vld [vmem:[#allocation111_spill] sm:$0xff]  ;;  %v13037_v35 = vld [vmem:[#allocation112_spill] sm:$0xff] }
 0x33f   :  { %1612 = vmatpush.msrb.mxu1 %v12994_v43  ;;  %1700 = vmatpush.msra.mxu3 %v12995_v3  ;;  %v1306_v43 = vpop.f32.mrf.mxu0 }
 0x341   :  { %1613 = vmatpush.msrb.mxu1 %v12996_v34  ;;  %1701 = vmatpush.msra.mxu3 %v12997_v27  ;;  %v13038_v34 = vld [vmem:[#allocation70_spill] sm:$0xff]  ;;  %v13039_v27 = vld [vmem:[#allocation24_spill] sm:$0xff] }
 0x343   :  { %1614 = vmatpush.msrb.mxu1 %v12998_v55  ;;  %1702 = vmatpush.msra.mxu3 %v12999_v28  ;;  %v106_v55 = vadd.f32 %v13039_v27, %v13038_v34 }
 0x345   :  { %1615 = vmatpush.msrb.mxu1 %v13000_v21  ;;  %1703 = vmatpush.msra.mxu3 %v13001_v24 }
 0x347   :  { %1616 = vmatpush.msrb.mxu1 %v13002_v30  ;;  %1704 = vmatpush.msra.mxu3 %v13003_v53  ;;  %v1346_v30 = vpop.f32.mrf.mxu2 }
 0x349   :  { %1617 = vmatpush.msrb.mxu1 %v8142_v22  ;;  %1705 = vmatpush.msra.mxu3 %v13004_v51  ;;  %v13040_v51 = vld [vmem:[#allocation68_spill] sm:$0xff] }
 0x34b   :  { %1618 = vmatpush.msrb.mxu1 %v8149_v48  ;;  %1706 = vmatpush.msra.mxu3 %v13005_v36  ;;  %v13041_v36 = vld [vmem:[#allocation25_spill] sm:$0xff] }
 0x34d   :  { %1731 = vmatpush.msra.mxu1 %v13006_v37  ;;  %1771 = vmatpush.msrb.mxu3 %v13007_v54  ;;  %v147_v37 = vadd.f32 %v13041_v36, %v13040_v51 }
 0x34f   :  { %1732 = vmatpush.msra.mxu1 %v13008_v63  ;;  %1772 = vmatpush.msrb.mxu3 %v13009_v17 }
 0x351   :  { %1733 = vmatpush.msra.mxu1 %v13010_v45  ;;  %1773 = vmatpush.msrb.mxu3 %v13011_v11 }
 0x353   :  { %1734 = vmatpush.msra.mxu1 %v13012_v9  ;;  %1774 = vmatpush.msrb.mxu3 %v13013_v20 }
 0x355   :  { %1735 = vmatpush.msra.mxu1 %v13014_v38  ;;  %1775 = vmatpush.msrb.mxu3 %v13015_v7 }
 0x357   :  { %1736 = vmatpush.msra.mxu1 %v13016_v18  ;;  %1776 = vmatpush.msrb.mxu3 %v13017_v25 }
 0x359   :  { %1737 = vmatpush.msra.mxu1 %v13018_v1  ;;  %1777 = vmatpush.msrb.mxu3 %v13019_v44  ;;  %v1386_v1 = vpop.f32.mrf.mxu0 }
 0x35b   :  { %1738 = vmatpush.msra.mxu1 %v13020_v57  ;;  %1778 = vmatpush.msrb.mxu3 %v13021_v29 }
 0x35d   :  { %1739 = vmatpush.msra.mxu1 %v13022_v8  ;;  %1779 = vmatpush.msrb.mxu3 %v13023_v4 }
 0x35f   :  { %1740 = vmatpush.msra.mxu1 %v13024_v50  ;;  %1780 = vmatpush.msrb.mxu3 %v13025_v10 }
 0x361   :  { %1741 = vmatpush.msra.mxu1 %v13026_v47  ;;  %1781 = vmatpush.msrb.mxu3 %v13027_v19 }
 0x363   :  { %1742 = vmatpush.msra.mxu1 %v13028_v26  ;;  %1782 = vmatpush.msrb.mxu3 %v13029_v32  ;;  %v8192_v32 = vld [vmem:[%s12007_s4] ss:$0 sm:$0xff] }
 0x365   :  { %1743 = vmatpush.msra.mxu1 %v13030_v42  ;;  %1783 = vmatpush.msrb.mxu3 %v13031_v5  ;;  %v13042_v5 = vld [vmem:[#allocation40_spill] sm:$0xff] }
 0x367   :  { %1744 = vmatpush.msra.mxu1 %v13032_v46  ;;  %1784 = vmatpush.msrb.mxu3 %v13033_v60  ;;  %v188_v46 = vadd.f32 %v13042_v5, %v12846_v39  ;;  %v13065_v5 = vld [vmem:[#allocation3_spill] sm:$0xff] }
 0x369   :  { %1745 = vmatpush.msra.mxu1 %v13034_v58  ;;  %1785 = vmatpush.msrb.mxu3 %v13035_v12 }
 0x36b   :  { %1746 = vmatpush.msra.mxu1 %v13036_v59  ;;  %1786 = vmatpush.msrb.mxu3 %v13037_v35 }
 0x389   :  { %v1326_v3 = vpop.f32.mrf.mxu1 }
 0x38a   :  { %v1327_v28 = vadd.f32 %v1326_v3, %v1306_v43 }
 0x38c   :  { %v1535_v21 = vadd.f32 %v1327_v28, %v106_v55 }
 0x38e   :  { %v3804_v24 = vmul.f32 -1.442695, %v1535_v21 }
 0x38f   :  { %v1366_v53 = vpop.f32.mrf.mxu3 }
 0x390   :  { %3873 = vpow2.f32 %v3804_v24  ;;  %v1367_v54 = vadd.f32 %v1366_v53, %v1346_v30 }
 0x391   :  { %v1406_v18 = vpop.f32.mrf.mxu1 }
 0x392   :  { %v1555_v63 = vadd.f32 %v1367_v54, %v147_v37  ;;  %v1407_v57 = vadd.f32 %v1406_v18, %v1386_v1  ;;  %v8209_v37 = vld [vmem:[%s12005_s2 + $0x5e0] sm:$0xff]  ;;  %v13048_v54 = vld [vmem:[#allocation12_spill] sm:$0xff]  ;;  %v13056_v1 = vld [vmem:[#allocation117_spill] sm:$0xff] }
 0x393   :  { %v13055_v18 = vld [vmem:[#allocation116_spill] sm:$0xff] }
 0x394   :  { %v3805_v17 = vmul.f32 -1.442695, %v1555_v63  ;;  %v1575_v42 = vadd.f32 %v8192_v32, %v1407_v57  ;;  %v13049_v63 = vld [vmem:[#allocation13_spill] sm:$0xff]  ;;  %v13058_v57 = vld [vmem:[#allocation119_spill] sm:$0xff] }
 0x396   :  { %v3874_v45 = vpop.eup %3873  ;;  %3875 = vpow2.f32 %v3805_v17  ;;  %v8296_v17 = vld [vmem:[%s12005_s2 + $0x490] sm:$0xff] }
 0x397   :  { %v1539_v11 = vadd.f32 1.0, %v3874_v45  ;;  %v13050_v45 = vld [vmem:[#allocation14_spill] sm:$0xff] }
 0x399   :  { %3877 = vrcp.f32 %v1539_v11  ;;  %v1551_v44 = vand.u32 2147483648, %v1539_v11  ;;  %v1549_v8 = vand.u32 2147483647, %v1539_v11  ;;  %vm1545_vm2 = vweird.f32 %v1539_v11 }
 0x39b   :  { %v1552_v47 = vor.u32 1.1754944e-38, %v1551_v44  ;;  %vm1550_vm4 = vcmp.eq.f32.partialorder %v1549_v8, 8.507059e+37  ;;  %v13057_v44 = vld [vmem:[#allocation118_spill] sm:$0xff]  ;;  %v13059_v8 = vld [vmem:[#allocation120_spill] sm:$0xff] }
 0x39c   :  { %v3876_v9 = vpop.eup %3875 }
 0x39d   :  { %v1559_v20 = vadd.f32 1.0, %v3876_v9  ;;  %v13052_v9 = vld [vmem:[#allocation113_spill] sm:$0xff] }
 0x39f   :  { %v3878_v38 = vpop.eup %3877  ;;  %3879 = vrcp.f32 %v1559_v20  ;;  %v1571_v12 = vand.u32 2147483648, %v1559_v20  ;;  %v1569_v35 = vand.u32 2147483647, %v1559_v20  ;;  %vm1565_vm6 = vweird.f32 %v1559_v20 }
 0x3a0   :  { %v1541_v7 = vmul.f32 %v3878_v38, %v1539_v11  ;;  %vm1546_vm1 = vweird.f32 %v3878_v38  ;;  %v13051_v11 = vld [vmem:[#allocation15_spill] sm:$0xff] }
 0x3a1   :  { %vm1547_vm3 = vmor %vm1545_vm2, %vm1546_vm1  ;;  %v1572_v27 = vor.u32 1.1754944e-38, %v1571_v12  ;;  %vm1570_vm8 = vcmp.eq.f32.partialorder %v1569_v35, 8.507059e+37  ;;  %v8356_v12 = vld [vmem:[%s12005_s2 + $0x378] sm:$0xff]  ;;  %v13069_v35 = vld [vmem:[#allocation4_spill] sm:$0xff] }
 0x3a2   :  { %v1542_v25 = vsub.f32 1.0, %v1541_v7  ;;  %v13054_v7 = vld [vmem:[#allocation115_spill] sm:$0xff] }
 0x3a4   :  { %v1543_v29 = vmul.f32 %v3878_v38, %v1542_v25  ;;  %v8314_v25 = vld [vmem:[%s12005_s2 + $0x430] sm:$0xff] }
 0x3a5   :  { %v3880_v4 = vpop.eup %3879 }
 0x3a6   :  { %v1561_v50 = vmul.f32 %v3880_v4, %v1559_v20  ;;  %v1544_v10 = vadd.f32 %v3878_v38, %v1543_v29  ;;  %vm1566_vm5 = vweird.f32 %v3880_v4  ;;  %v8305_v20 = vld [vmem:[%s12005_s2 + $0x460] sm:$0xff] }
 0x3a7   :  { %vm1567_vm7 = vmor %vm1565_vm6, %vm1566_vm5  ;;  %v8323_v29 = vld [vmem:[%s12005_s2 + $0x400] sm:$0xff] }
 0x3a8   :  { %v1562_v19 = vsub.f32 1.0, %v1561_v50  ;;  %v1548_v26 = vsel %vm1547_vm3, %v3878_v38, %v1544_v10  ;;  %v13053_v38 = vld [vmem:[#allocation114_spill] sm:$0xff]  ;;  %v8332_v10 = vld [vmem:[%s12005_s2 + $0x3d0] sm:$0xff] }
 0x3a9   :  { %v1553_v60 = vsel %vm1550_vm4, %v1552_v47, %v1548_v26  ;;  %v13061_v50 = vld [vmem:[#allocation122_spill] sm:$0xff]  ;;  %v13062_v47 = vld [vmem:[#allocation16_spill] sm:$0xff] }
 0x3aa   :  { %v1563_v58 = vmul.f32 %v3880_v4, %v1562_v19  ;;  %v1576_v59 = vmul.f32 %v1575_v42, %v1553_v60  ;;  %v13063_v19 = vld [vmem:[#allocation123_spill] sm:$0xff]  ;;  %v13064_v26 = vld [vmem:[#allocation124_spill] sm:$0xff]  ;;  %v13067_v60 = vld [vmem:[#allocation126_spill] sm:$0xff] }
 0x3ab   :  { %v8341_v42 = vld [vmem:[%s12005_s2 + $0x3a0] sm:$0xff] }
 0x3ac   :  { %v1564_v43 = vadd.f32 %v3880_v4, %v1563_v58  ;;  %v1577_v3 = vadd.f32 %v1576_v59, %v188_v46  ;;  %v13066_v46 = vld [vmem:[#allocation125_spill] sm:$0xff] }
 0x3ad   :  { %v8350_v58 = vld [vmem:[%s12005_s2 + $0x370] sm:$0xff] }
 0x3ae   :  { %v1568_v55 = vsel %vm1567_vm7, %v3880_v4, %v1564_v43  ;;  %3881 = vtanh.f32 %v1577_v3  ;;  %v13060_v4 = vld [vmem:[#allocation121_spill] sm:$0xff]  ;;  %v13070_v43 = vld [vmem:[#allocation127_spill] sm:$0xff] }
 0x3af   :  { %v1573_v28 = vsel %vm1570_vm8, %v1572_v27, %v1568_v55  ;;  %v13068_v59 = vld [vmem:[#allocation17_spill] sm:$0xff]  ;;  %v8367_v3 = vld [vmem:[%s12005_s2 + $0x340] sm:$0xff]  ;;  %v8373_v27 = vld [vmem:[%s12005_s2 + $0x348] sm:$0xff] }
 0x3b0   :  { %v1579_v21 = vsub.f32 1.0, %v1573_v28  ;;  %v1581_v53 = vmul.f32 %v1573_v28, %v7306_v52  ;;  %v8215_v52 = vld [vmem:[%s12005_s2 + $0x5e8] sm:$0xff]  ;;  %v13072_v28 = vld [vmem:[#allocation5_spill] sm:$0xff] }
 0x3b1   :  { %v13071_v55 = vld [vmem:[#allocation20_spill] sm:$0xff] }
 0x3b4   :  { %v3882_v24 = vpop.eup %3881 }
 0x3b5   :  { %v1580_v30 = vmul.f32 %v3882_v24, %v1579_v21  ;;  %v8381_v21 = vld [vmem:[%s12005_s2 + $0x310] sm:$0xff]  ;;  %v8387_v24 = vld [vmem:[%s12005_s2 + $0x318] sm:$0xff] }
 0x3b7   :  { %v8198_v36 = vadd.f32 %v1581_v53, %v1580_v30  ;;  %v13073_v30 = vld [vmem:[#allocation21_spill] sm:$0xff]  ;;  %v13074_v53 = vld [vmem:[#allocation128_spill] sm:$0xff] }
 0x3b9   :  { %1599 = vmatmul.f32.vlgmr.msrb.gmra.mxu0 %v8198_v36  ;;  %1619 = vmatmul.f32.vlgmr.msrb.gmra.mxu1 %v8198_v36 }
 0x3ba   :  { %1639 = vmatmul.f32.vlgmr.msrb.gmra.mxu2 %v8198_v36  ;;  %1707 = vmatmul.f32.vlgmr.msra.gmra.mxu3 %v8198_v36 }
 0x3bb   :  { %1811 = vmatpush.msrb.mxu1 %v7315_v16  ;;  %1851 = vmatpush.msra.mxu3 %v7321_v61  ;;  %v8223_v16 = vld [vmem:[%s12005_s2 + $0x5b0] sm:$0xff]  ;;  %v8229_v61 = vld [vmem:[%s12005_s2 + $0x5b8] sm:$0xff] }
 0x3bc   :  { %1791 = vmatpush.msrb.mxu0 %v8209_v37  ;;  %1831 = vmatpush.msrb.mxu2 %v8215_v52 }
 0x3bd   :  { %1812 = vmatpush.msrb.mxu1 %v7329_v14  ;;  %1852 = vmatpush.msra.mxu3 %v7335_v6  ;;  %v8237_v14 = vld [vmem:[%s12005_s2 + $0x580] sm:$0xff]  ;;  %v8243_v6 = vld [vmem:[%s12005_s2 + $0x588] sm:$0xff] }
 0x3be   :  { %1792 = vmatpush.msrb.mxu0 %v8223_v16  ;;  %1832 = vmatpush.msrb.mxu2 %v8229_v61 }
 0x3bf   :  { %1813 = vmatpush.msrb.mxu1 %v7343_v62  ;;  %1853 = vmatpush.msra.mxu3 %v7349_v0  ;;  %v8255_v62 = vld [vmem:[%s12005_s2 + $0x550] sm:$0xff]  ;;  %v8261_v0 = vld [vmem:[%s12005_s2 + $0x558] sm:$0xff] }
 0x3c0   :  { %1793 = vmatpush.msrb.mxu0 %v8237_v14  ;;  %1833 = vmatpush.msrb.mxu2 %v8243_v6 }
 0x3c1   :  { %1814 = vmatpush.msrb.mxu1 %v7357_v49  ;;  %1854 = vmatpush.msra.mxu3 %v7363_v15  ;;  %v8269_v49 = vld [vmem:[%s12005_s2 + $0x520] sm:$0xff] }
 0x3c2   :  { %1747 = vmatmul.f32.vlgmr.msra.gmra.mxu1 %v8198_v36  ;;  %1787 = vmatmul.f32.vlgmr.msrb.gmra.mxu3 %v8198_v36  ;;  %v13043_v15 = vld [vmem:[#allocation19_spill] sm:$0xff] }
 0x3c3   :  { %1815 = vmatpush.msrb.mxu1 %v7371_v33  ;;  %1855 = vmatpush.msra.mxu3 %v7377_v41  ;;  %v8278_v33 = vld [vmem:[%s12005_s2 + $0x4f0] sm:$0xff]  ;;  %v13044_v41 = vld [vmem:[#allocation18_spill] sm:$0xff] }
 0x3c4   :  { %1794 = vmatpush.msrb.mxu0 %v8255_v62  ;;  %1834 = vmatpush.msrb.mxu2 %v8261_v0 }
 0x3c5   :  { %1816 = vmatpush.msrb.mxu1 %v7385_v40  ;;  %1856 = vmatpush.msra.mxu3 %v7391_v13  ;;  %v13045_v40 = vld [vmem:[#allocation80_spill] sm:$0xff]  ;;  %v13046_v13 = vld [vmem:[#allocation82_spill] sm:$0xff] }
 0x3c6   :  { %1795 = vmatpush.msrb.mxu0 %v8269_v49  ;;  %1835 = vmatpush.msrb.mxu2 %v7398_v56  ;;  %v8287_v56 = vld [vmem:[%s12005_s2 + $0x4c0] sm:$0xff] }
 0x3c7   :  { %1817 = vmatpush.msrb.mxu1 %v7404_v23  ;;  %1857 = vmatpush.msra.mxu3 %v13043_v15  ;;  %v13047_v23 = vld [vmem:[#allocation32_spill] sm:$0xff]  ;;  %v13075_v15 = vld [vmem:[#allocation129_spill] sm:$0xff] }
 0x3c8   :  { %1796 = vmatpush.msrb.mxu0 %v8278_v33  ;;  %1836 = vmatpush.msrb.mxu2 %v13044_v41  ;;  %v13076_v41 = vld [vmem:[#allocation130_spill] sm:$0xff] }
 0x3c9   :  { %1818 = vmatpush.msrb.mxu1 %v13045_v40  ;;  %1858 = vmatpush.msra.mxu3 %v13046_v13  ;;  %v13077_v40 = vld [vmem:[#allocation131_spill] sm:$0xff]  ;;  %v13078_v13 = vld [vmem:[#allocation132_spill] sm:$0xff] }
 0x3ca   :  { %1797 = vmatpush.msrb.mxu0 %v8287_v56  ;;  %1837 = vmatpush.msrb.mxu2 %v13047_v23  ;;  %v13079_v23 = vld [vmem:[#allocation133_spill] sm:$0xff] }
 0x3cb   :  { %1819 = vmatpush.msrb.mxu1 %v13048_v54  ;;  %1859 = vmatpush.msra.mxu3 %v13049_v63  ;;  %v13080_v54 = vld [vmem:[#allocation134_spill] sm:$0xff]  ;;  %v13081_v63 = vld [vmem:[#allocation135_spill] sm:$0xff] }
 0x3cc   :  { %1798 = vmatpush.msrb.mxu0 %v8296_v17  ;;  %1838 = vmatpush.msrb.mxu2 %v13050_v45  ;;  %v13082_v45 = vld [vmem:[#allocation136_spill] sm:$0xff] }
 0x3cd   :  { %1820 = vmatpush.msrb.mxu1 %v13051_v11  ;;  %1860 = vmatpush.msra.mxu3 %v13052_v9  ;;  %v13083_v11 = vld [vmem:[#allocation137_spill] sm:$0xff]  ;;  %v13084_v9 = vld [vmem:[#allocation138_spill] sm:$0xff] }
 0x3ce   :  { %1799 = vmatpush.msrb.mxu0 %v8305_v20  ;;  %1839 = vmatpush.msrb.mxu2 %v13053_v38  ;;  %v13085_v38 = vld [vmem:[#allocation139_spill] sm:$0xff] }
 0x3cf   :  { %1821 = vmatpush.msrb.mxu1 %v13054_v7  ;;  %1861 = vmatpush.msra.mxu3 %v13055_v18  ;;  %v13086_v7 = vld [vmem:[#allocation140_spill] sm:$0xff]  ;;  %v13087_v18 = vld [vmem:[#allocation141_spill] sm:$0xff] }
 0x3d0   :  { %1800 = vmatpush.msrb.mxu0 %v8314_v25  ;;  %1840 = vmatpush.msrb.mxu2 %v13056_v1  ;;  %v13088_v1 = vld [vmem:[#allocation142_spill] sm:$0xff] }
 0x3d1   :  { %1822 = vmatpush.msrb.mxu1 %v13057_v44  ;;  %1862 = vmatpush.msra.mxu3 %v13058_v57  ;;  %v13089_v44 = vld [vmem:[#allocation143_spill] sm:$0xff]  ;;  %v13090_v57 = vld [vmem:[#allocation144_spill] sm:$0xff] }
 0x3d2   :  { %1801 = vmatpush.msrb.mxu0 %v8323_v29  ;;  %1841 = vmatpush.msrb.mxu2 %v13059_v8  ;;  %v13091_v8 = vld [vmem:[#allocation145_spill] sm:$0xff] }
 0x3d3   :  { %1823 = vmatpush.msrb.mxu1 %v13060_v4  ;;  %1863 = vmatpush.msra.mxu3 %v13061_v50  ;;  %v13092_v4 = vld [vmem:[#allocation146_spill] sm:$0xff]  ;;  %v13093_v50 = vld [vmem:[#allocation147_spill] sm:$0xff] }
 0x3d4   :  { %1802 = vmatpush.msrb.mxu0 %v8332_v10  ;;  %1842 = vmatpush.msrb.mxu2 %v13062_v47  ;;  %v13094_v47 = vld [vmem:[#allocation148_spill] sm:$0xff] }
 0x3d5   :  { %1824 = vmatpush.msrb.mxu1 %v13063_v19  ;;  %1864 = vmatpush.msra.mxu3 %v13064_v26  ;;  %v13095_v19 = vld [vmem:[#allocation149_spill] sm:$0xff]  ;;  %v13096_v26 = vld [vmem:[#allocation150_spill] sm:$0xff] }
 0x3d6   :  { %1803 = vmatpush.msrb.mxu0 %v8341_v42  ;;  %1843 = vmatpush.msrb.mxu2 %v13065_v5  ;;  %v13097_v5 = vld [vmem:[#allocation151_spill] sm:$0xff] }
 0x3d7   :  { %1825 = vmatpush.msrb.mxu1 %v13066_v46  ;;  %1865 = vmatpush.msra.mxu3 %v13067_v60  ;;  %v13098_v46 = vld [vmem:[#allocation152_spill] sm:$0xff]  ;;  %v13099_v60 = vld [vmem:[#allocation153_spill] sm:$0xff] }
 0x3d8   :  { %1804 = vmatpush.msrb.mxu0 %v8350_v58  ;;  %1844 = vmatpush.msrb.mxu2 %v8356_v12 }
 0x3d9   :  { %1826 = vmatpush.msrb.mxu1 %v13068_v59  ;;  %1866 = vmatpush.msra.mxu3 %v13069_v35  ;;  %v13100_v59 = vld [vmem:[#allocation154_spill] sm:$0xff]  ;;  %v13101_v35 = vld [vmem:[#allocation155_spill] sm:$0xff] }
 0x3da   :  { %1827 = vmatmul.f32.vlgmr.msrb.gmra.mxu1 %v8198_v36  ;;  %1867 = vmatmul.f32.vlgmr.msra.gmra.mxu3 %v8198_v36 }
 0x3db   :  { %1891 = vmatpush.msra.mxu1 %v13070_v43  ;;  %1805 = vmatpush.msrb.mxu0 %v8367_v3  ;;  %v13102_v43 = vld [vmem:[#allocation156_spill] sm:$0xff] }
 0x3dc   :  { %1845 = vmatpush.msrb.mxu2 %v8373_v27  ;;  %1985 = vmatpush.msrb.mxu3 %v13071_v55  ;;  %v13103_v55 = vld [vmem:[#allocation157_spill] sm:$0xff] }
 0x3dd   :  { %1892 = vmatpush.msra.mxu1 %v13072_v28  ;;  %1806 = vmatpush.msrb.mxu0 %v8381_v21  ;;  %v13104_v28 = vld [vmem:[#allocation158_spill] sm:$0xff] }
 0x3de   :  { %1846 = vmatpush.msrb.mxu2 %v8387_v24  ;;  %1986 = vmatpush.msrb.mxu3 %v13073_v30  ;;  %v13105_v30 = vld [vmem:[#allocation159_spill] sm:$0xff] }
 0x3df   :  { %1893 = vmatpush.msra.mxu1 %v13074_v53  ;;  %v13106_v53 = vld [vmem:[#allocation160_spill] sm:$0xff] }
 0x3e0   :  { %1987 = vmatpush.msrb.mxu3 %v13075_v15  ;;  %v13107_v15 = vld [vmem:[#allocation161_spill] sm:$0xff] }
 0x3e1   :  { %1894 = vmatpush.msra.mxu1 %v13076_v41  ;;  %v13108_v41 = vld [vmem:[#allocation162_spill] sm:$0xff] }
 0x3e2   :  { %1988 = vmatpush.msrb.mxu3 %v13077_v40  ;;  %v13109_v40 = vld [vmem:[#allocation163_spill] sm:$0xff] }
 0x3e3   :  { %1895 = vmatpush.msra.mxu1 %v13078_v13  ;;  %v13110_v13 = vld [vmem:[#allocation164_spill] sm:$0xff] }
 0x3e4   :  { %1989 = vmatpush.msrb.mxu3 %v13079_v23  ;;  %v13111_v23 = vld [vmem:[#allocation165_spill] sm:$0xff] }
 0x3e5   :  { %1896 = vmatpush.msra.mxu1 %v13080_v54  ;;  %v13112_v54 = vld [vmem:[#allocation166_spill] sm:$0xff] }
 0x3e6   :  { %1990 = vmatpush.msrb.mxu3 %v13081_v63  ;;  %v13113_v63 = vld [vmem:[#allocation167_spill] sm:$0xff] }
 0x3e7   :  { %1897 = vmatpush.msra.mxu1 %v13082_v45  ;;  %v13114_v45 = vld [vmem:[#allocation168_spill] sm:$0xff] }
 0x3e8   :  { %1991 = vmatpush.msrb.mxu3 %v13083_v11  ;;  %v13115_v11 = vld [vmem:[#allocation169_spill] sm:$0xff] }
 0x3e9   :  { %1898 = vmatpush.msra.mxu1 %v13084_v9  ;;  %v13116_v9 = vld [vmem:[#allocation170_spill] sm:$0xff] }
 0x3ea   :  { %1992 = vmatpush.msrb.mxu3 %v13085_v38  ;;  %v13117_v38 = vld [vmem:[#allocation171_spill] sm:$0xff] }
 0x3eb   :  { %1899 = vmatpush.msra.mxu1 %v13086_v7  ;;  %v13118_v7 = vld [vmem:[#allocation172_spill] sm:$0xff] }
 0x3ec   :  { %1993 = vmatpush.msrb.mxu3 %v13087_v18  ;;  %v13119_v18 = vld [vmem:[#allocation173_spill] sm:$0xff] }
 0x3ed   :  { %1900 = vmatpush.msra.mxu1 %v13088_v1  ;;  %v13120_v1 = vld [vmem:[#allocation174_spill] sm:$0xff] }
 0x3ee   :  { %1994 = vmatpush.msrb.mxu3 %v13089_v44  ;;  %v13121_v44 = vld [vmem:[#allocation175_spill] sm:$0xff] }
 0x3ef   :  { %1901 = vmatpush.msra.mxu1 %v13090_v57  ;;  %v13122_v57 = vld [vmem:[#allocation176_spill] sm:$0xff] }
 0x3f0   :  { %1995 = vmatpush.msrb.mxu3 %v13091_v8  ;;  %v13123_v8 = vld [vmem:[#allocation177_spill] sm:$0xff] }
 0x3f1   :  { %1902 = vmatpush.msra.mxu1 %v13092_v4  ;;  %v13124_v4 = vld [vmem:[#allocation178_spill] sm:$0xff] }
 0x3f2   :  { %1996 = vmatpush.msrb.mxu3 %v13093_v50  ;;  %v13125_v50 = vld [vmem:[#allocation179_spill] sm:$0xff] }
 0x3f3   :  { %1903 = vmatpush.msra.mxu1 %v13094_v47  ;;  %v13126_v47 = vld [vmem:[#allocation180_spill] sm:$0xff] }
 0x3f4   :  { %1997 = vmatpush.msrb.mxu3 %v13095_v19  ;;  %v13127_v19 = vld [vmem:[#allocation181_spill] sm:$0xff] }
 0x3f5   :  { %1904 = vmatpush.msra.mxu1 %v13096_v26  ;;  %v13128_v26 = vld [vmem:[#allocation182_spill] sm:$0xff] }
 0x3f6   :  { %1998 = vmatpush.msrb.mxu3 %v13097_v5  ;;  %v13129_v5 = vld [vmem:[#allocation183_spill] sm:$0xff] }
 0x3f7   :  { %1905 = vmatpush.msra.mxu1 %v13098_v46  ;;  %v13130_v46 = vld [vmem:[#allocation184_spill] sm:$0xff] }
 0x3f8   :  { %1999 = vmatpush.msrb.mxu3 %v13099_v60  ;;  %v13131_v60 = vld [vmem:[#allocation185_spill] sm:$0xff] }
 0x3f9   :  { %1906 = vmatpush.msra.mxu1 %v13100_v59  ;;  %v13132_v59 = vld [vmem:[#allocation186_spill] sm:$0xff] }
 0x3fa   :  { %1907 = vmatmul.f32.vlgmr.msra.gmra.mxu1 %v8198_v36  ;;  %2000 = vmatpush.msrb.mxu3 %v13101_v35  ;;  %v13133_v35 = vld [vmem:[#allocation187_spill] sm:$0xff] }
 0x3fb   :  { %2025 = vmatpush.msrb.mxu1 %v13102_v43  ;;  %v13134_v43 = vld [vmem:[#allocation188_spill] sm:$0xff] }
 0x3fc   :  { %2113 = vmatpush.msra.mxu3 %v13103_v55  ;;  %v13135_v55 = vld [vmem:[#allocation189_spill] sm:$0xff] }
 0x3fd   :  { %2026 = vmatpush.msrb.mxu1 %v13104_v28  ;;  %v13136_v28 = vld [vmem:[#allocation190_spill] sm:$0xff] }
 0x3fe   :  { %2114 = vmatpush.msra.mxu3 %v13105_v30  ;;  %v13137_v30 = vld [vmem:[#allocation191_spill] sm:$0xff] }
 0x3ff   :  { %2027 = vmatpush.msrb.mxu1 %v13106_v53  ;;  %v13138_v53 = vld [vmem:[#allocation192_spill] sm:$0xff] }
 0x400   :  { %2115 = vmatpush.msra.mxu3 %v13107_v15  ;;  %v13139_v15 = vld [vmem:[#allocation193_spill] sm:$0xff] }
 0x401   :  { %2028 = vmatpush.msrb.mxu1 %v13108_v41  ;;  %v13140_v41 = vld [vmem:[#allocation194_spill] sm:$0xff] }
 0x402   :  { %2116 = vmatpush.msra.mxu3 %v13109_v40  ;;  %v13141_v40 = vld [vmem:[#allocation195_spill] sm:$0xff] }
 0x403   :  { %2029 = vmatpush.msrb.mxu1 %v13110_v13  ;;  %v13142_v13 = vld [vmem:[#allocation196_spill] sm:$0xff] }
 0x404   :  { %2117 = vmatpush.msra.mxu3 %v13111_v23  ;;  %v13143_v23 = vld [vmem:[#allocation197_spill] sm:$0xff] }
 0x405   :  { %2030 = vmatpush.msrb.mxu1 %v13112_v54  ;;  %v1466_v54 = vpop.f32.mrf.mxu0 }
 0x406   :  { %2118 = vmatpush.msra.mxu3 %v13113_v63  ;;  %v1486_v63 = vpop.f32.mrf.mxu1 }
 0x407   :  { %2031 = vmatpush.msrb.mxu1 %v13114_v45  ;;  %v13144_v45 = vld [vmem:[#allocation198_spill] sm:$0xff] }
 0x408   :  { %2119 = vmatpush.msra.mxu3 %v13115_v11  ;;  %v13145_v11 = vld [vmem:[#allocation199_spill] sm:$0xff] }
 0x409   :  { %2032 = vmatpush.msrb.mxu1 %v13116_v9  ;;  %v13146_v9 = vld [vmem:[#allocation200_spill] sm:$0xff] }
 0x40a   :  { %2120 = vmatpush.msra.mxu3 %v13117_v38  ;;  %v1446_v38 = vpop.f32.mrf.mxu3 }
 0x40b   :  { %2033 = vmatpush.msrb.mxu1 %v13118_v7  ;;  %v13147_v7 = vld [vmem:[#allocation201_spill] sm:$0xff] }
 0x40c   :  { %2121 = vmatpush.msra.mxu3 %v13119_v18  ;;  %v1426_v18 = vpop.f32.mrf.mxu2 }
 0x40d   :  { %2034 = vmatpush.msrb.mxu1 %v13120_v1 }
 0x40e   :  { %2122 = vmatpush.msra.mxu3 %v13121_v44 }
 0x40f   :  { %2035 = vmatpush.msrb.mxu1 %v13122_v57  ;;  %v13148_v57 = vld [vmem:[#allocation202_spill] sm:$0xff] }
 0x410   :  { %2123 = vmatpush.msra.mxu3 %v13123_v8  ;;  %v1447_v8 = vadd.f32 %v1446_v38, %v1426_v18 }
 0x411   :  { %2036 = vmatpush.msrb.mxu1 %v13124_v4  ;;  %v1487_v4 = vadd.f32 %v1486_v63, %v1466_v54 }
 0x412   :  { %2124 = vmatpush.msra.mxu3 %v13125_v50  ;;  %v13149_v50 = vld [vmem:[#allocation6_spill] sm:$0xff] }
 0x413   :  { %2037 = vmatpush.msrb.mxu1 %v13126_v47 }
 0x414   :  { %2125 = vmatpush.msra.mxu3 %v13127_v19  ;;  %v13150_v19 = vld [vmem:[#allocation22_spill] sm:$0xff] }
 0x415   :  { %2038 = vmatpush.msrb.mxu1 %v13128_v26 }
 0x416   :  { %2126 = vmatpush.msra.mxu3 %v13129_v5  ;;  %v13151_v5 = vld [vmem:[#allocation203_spill] sm:$0xff] }
 0x417   :  { %2039 = vmatpush.msrb.mxu1 %v13130_v46 }
 0x418   :  { %2127 = vmatpush.msra.mxu3 %v13131_v60 }
 0x419   :  { %2040 = vmatpush.msrb.mxu1 %v13132_v59 }
 0x41a   :  { %2128 = vmatpush.msra.mxu3 %v13133_v35 }
 0x41b   :  { %2153 = vmatpush.msra.mxu1 %v13134_v43 }
 0x41d   :  { %2154 = vmatpush.msra.mxu1 %v13135_v55 }
 0x41f   :  { %2155 = vmatpush.msra.mxu1 %v13136_v28 }
 0x421   :  { %2156 = vmatpush.msra.mxu1 %v13137_v30 }
 0x423   :  { %2157 = vmatpush.msra.mxu1 %v13138_v53 }
 0x425   :  { %2158 = vmatpush.msra.mxu1 %v13139_v15  ;;  %v1506_v15 = vpop.f32.mrf.mxu2 }
 0x427   :  { %2159 = vmatpush.msra.mxu1 %v13140_v41 }
 0x429   :  { %2160 = vmatpush.msra.mxu1 %v13141_v40 }
 0x42b   :  { %2161 = vmatpush.msra.mxu1 %v13142_v13  ;;  %v1526_v13 = vpop.f32.mrf.mxu3 }
 0x42d   :  { %2162 = vmatpush.msra.mxu1 %v13143_v23 }
 0x42f   :  { %2163 = vmatpush.msra.mxu1 %v13144_v45 }
 0x431   :  { %2164 = vmatpush.msra.mxu1 %v13145_v11  ;;  %v1527_v11 = vadd.f32 %v1526_v13, %v1506_v15 }
 0x433   :  { %2165 = vmatpush.msra.mxu1 %v13146_v9 }
 0x435   :  { %2166 = vmatpush.msra.mxu1 %v13147_v7 }
 0x436   :  { %v1600_v1 = vpop.f32.mrf.mxu0  ;;  %v1620_v44 = vpop.f32.mrf.mxu1 }
 0x437   :  { %2167 = vmatpush.msra.mxu1 %v13148_v57  ;;  %v1601_v47 = vadd.f32 %v1600_v1, %v13149_v50  ;;  %v1621_v26 = vadd.f32 %v1620_v44, %v13150_v19  ;;  %v8473_v57 = vld [vmem:[%s12010_s7] ss:$0 sm:$0xff] }
 0x439   :  { %2168 = vmatpush.msra.mxu1 %v13151_v5  ;;  %v1643_v46 = vadd.f32 %v1601_v47, %v1447_v8  ;;  %v1663_v60 = vadd.f32 %v1621_v26, %v1487_v4  ;;  %v1683_v8 = vadd.f32 %v8473_v57, %v1527_v11  ;;  %v8521_v11 = vld [vmem:[%s12005_s2 + $0x560] sm:$0xff] }
 0x43b   :  { %v3806_v59 = vmul.f32 -1.442695, %v1643_v46  ;;  %v3807_v35 = vmul.f32 -1.442695, %v1663_v60 }
 0x43d   :  { %3883 = vpow2.f32 %v3806_v59  ;;  %v1640_v1 = vpop.f32.mrf.mxu2 }
 0x43e   :  { %3885 = vpow2.f32 %v3807_v35  ;;  %v1641_v46 = vadd.f32 %v1640_v1, %v6720_v31  ;;  %v8553_v1 = vld [vmem:[%s12005_s2 + $0x508] sm:$0xff] }
 0x43f   :  { %13152 = vst [vmem:[#allocation7_spill] sm:$0xff] %v8553_v1 }
 0x443   :  { %v3884_v43 = vpop.eup %3883 }
 0x444   :  { %v3886_v55 = vpop.eup %3885  ;;  %v1647_v28 = vadd.f32 1.0, %v3884_v43 }
 0x445   :  { %v1667_v30 = vadd.f32 1.0, %v3886_v55 }
 0x446   :  { %3887 = vrcp.f32 %v1647_v28  ;;  %v1659_v45 = vand.u32 2147483648, %v1647_v28  ;;  %v1657_v38 = vand.u32 2147483647, %v1647_v28  ;;  %vm1653_vm10 = vweird.f32 %v1647_v28 }
 0x447   :  { %3889 = vrcp.f32 %v1667_v30  ;;  %v1679_v5 = vand.u32 2147483648, %v1667_v30  ;;  %vm1673_vm14 = vweird.f32 %v1667_v30  ;;  %v1677_v59 = vand.u32 2147483647, %v1667_v30 }
 0x448   :  { %v1660_v44 = vor.u32 1.1754944e-38, %v1659_v45  ;;  %vm1658_vm12 = vcmp.eq.f32.partialorder %v1657_v38, 8.507059e+37  ;;  %v8515_v45 = vld [vmem:[%s12005_s2 + $0x598] sm:$0xff]  ;;  %v8535_v38 = vld [vmem:[%s12005_s2 + $0x530] sm:$0xff] }
 0x449   :  { %v1680_v55 = vor.u32 1.1754944e-38, %v1679_v5  ;;  %vm1678_vm0 = vcmp.eq.f32.partialorder %v1677_v59, 8.507059e+37  ;;  %v8589_v5 = vld [vmem:[%s12005_s2 + $0x478] sm:$0xff]  ;;  %v8607_v59 = vld [vmem:[%s12005_s2 + $0x410] sm:$0xff] }
 0x44a   :  { %13158 = vst [vmem:[#allocation10_spill] sm:$0xff] %v8589_v5 }
 0x44b   :  { %13161 = vst [vmem:[#allocation57_spill] sm:$0xff] %v8607_v59 }
 0x44c   :  { %v3888_v53 = vpop.eup %3887 }
 0x44d   :  { %v3890_v41 = vpop.eup %3889  ;;  %v1649_v40 = vmul.f32 %v3888_v53, %v1647_v28  ;;  %vm1654_vm9 = vweird.f32 %v3888_v53 }
 0x44e   :  { %v1669_v23 = vmul.f32 %v3890_v41, %v1667_v30  ;;  %vm1655_vm11 = vmor %vm1653_vm10, %vm1654_vm9  ;;  %vm1674_vm13 = vweird.f32 %v3890_v41  ;;  %v8485_v30 = vld [vmem:[%s12005_s2 + $0x5f0] sm:$0xff] }
 0x44f   :  { %v1650_v54 = vsub.f32 1.0, %v1649_v40  ;;  %vm1675_vm15 = vmor %vm1673_vm14, %vm1674_vm13 }
 0x450   :  { %v1670_v63 = vsub.f32 1.0, %v1669_v23 }
 0x451   :  { %v1651_v9 = vmul.f32 %v3888_v53, %v1650_v54  ;;  %v8503_v54 = vld [vmem:[%s12005_s2 + $0x5c8] sm:$0xff] }
 0x452   :  { %v1671_v7 = vmul.f32 %v3890_v41, %v1670_v63  ;;  %v8509_v63 = vld [vmem:[%s12005_s2 + $0x590] sm:$0xff] }
 0x453   :  { %v1652_v18 = vadd.f32 %v3888_v53, %v1651_v9  ;;  %v8527_v9 = vld [vmem:[%s12005_s2 + $0x568] sm:$0xff] }
 0x454   :  { %v1672_v26 = vadd.f32 %v3890_v41, %v1671_v7  ;;  %v8541_v7 = vld [vmem:[%s12005_s2 + $0x538] sm:$0xff] }
 0x455   :  { %v1656_v4 = vsel %vm1655_vm11, %v3888_v53, %v1652_v18  ;;  %v8547_v18 = vld [vmem:[%s12005_s2 + $0x500] sm:$0xff] }
 0x456   :  { %v1661_v47 = vsel %vm1658_vm12, %v1660_v44, %v1656_v4  ;;  %v1676_v43 = vsel %vm1675_vm15, %v3890_v41, %v1672_v26  ;;  %v8491_v41 = vld [vmem:[%s12005_s2 + $0x5f8] sm:$0xff]  ;;  %v8559_v44 = vld [vmem:[%s12005_s2 + $0x4d0] sm:$0xff]  ;;  %v8571_v4 = vld [vmem:[%s12005_s2 + $0x4a0] sm:$0xff] }
 0x457   :  { %v1684_v60 = vmul.f32 %v1683_v8, %v1661_v47  ;;  %v1681_v28 = vsel %vm1678_vm0, %v1680_v55, %v1676_v43  ;;  %13153 = vst [vmem:[#allocation23_spill] sm:$0xff] %v8559_v44  ;;  %v8565_v8 = vld [vmem:[%s12005_s2 + $0x4d8] sm:$0xff]  ;;  %v8577_v47 = vld [vmem:[%s12005_s2 + $0x4a8] sm:$0xff]  ;;  %v8583_v26 = vld [vmem:[%s12005_s2 + $0x470] sm:$0xff] }
 0x458   :  { %v1687_v15 = vsub.f32 1.0, %v1681_v28  ;;  %v1689_v13 = vmul.f32 %v1681_v28, %v8071_v2  ;;  %v8497_v2 = vld [vmem:[%s12005_s2 + $0x5c0] sm:$0xff]  ;;  %13154 = vst [vmem:[#allocation8_spill] sm:$0xff] %v8565_v8  ;;  %v8625_v55 = vld [vmem:[%s12005_s2 + $0x3e8] sm:$0xff]  ;;  %v8631_v28 = vld [vmem:[%s12005_s2 + $0x3b0] sm:$0xff] }
 0x459   :  { %v1685_v35 = vadd.f32 %v1684_v60, %v1641_v46  ;;  %13155 = vst [vmem:[#allocation26_spill] sm:$0xff] %v8571_v4  ;;  %v8595_v46 = vld [vmem:[%s12005_s2 + $0x440] sm:$0xff]  ;;  %v8601_v60 = vld [vmem:[%s12005_s2 + $0x448] sm:$0xff] }
 0x45a   :  { %13156 = vst [vmem:[#allocation9_spill] sm:$0xff] %v8577_v47  ;;  %v8619_v43 = vld [vmem:[%s12005_s2 + $0x3e0] sm:$0xff] }
 0x45b   :  { %3891 = vtanh.f32 %v1685_v35  ;;  %13157 = vst [vmem:[#allocation27_spill] sm:$0xff] %v8583_v26  ;;  %v8613_v35 = vld [vmem:[%s12005_s2 + $0x418] sm:$0xff] }
 0x45c   :  { %13159 = vst [vmem:[#allocation28_spill] sm:$0xff] %v8595_v46 }
 0x45d   :  { %13160 = vst [vmem:[#allocation11_spill] sm:$0xff] %v8601_v60 }
 0x45e   :  { %13162 = vst [vmem:[#allocation31_spill] sm:$0xff] %v8613_v35 }
 0x45f   :  { %13163 = vst [vmem:[#allocation61_spill] sm:$0xff] %v8619_v43 }
 0x460   :  { %13164 = vst [vmem:[#allocation33_spill] sm:$0xff] %v8625_v55 }
 0x461   :  { %v3892_v40 = vpop.eup %3891  ;;  %13165 = vst [vmem:[#allocation64_spill] sm:$0xff] %v8631_v28 }
 0x462   :  { %v1688_v53 = vmul.f32 %v3892_v40, %v1687_v15  ;;  %v8637_v15 = vld [vmem:[%s12005_s2 + $0x3b8] sm:$0xff]  ;;  %v8643_v40 = vld [vmem:[%s12005_s2 + $0x380] sm:$0xff] }
 0x463   :  { %13166 = vst [vmem:[#allocation34_spill] sm:$0xff] %v8637_v15 }
 0x464   :  { %v8478_v23 = vadd.f32 %v1689_v13, %v1688_v53  ;;  %13167 = vst [vmem:[#allocation66_spill] sm:$0xff] %v8643_v40  ;;  %v8649_v53 = vld [vmem:[%s12005_s2 + $0x388] sm:$0xff]  ;;  %v8655_v13 = vld [vmem:[%s12005_s2 + $0x350] sm:$0xff] }
 0x465   :  { %13168 = vst [vmem:[#allocation35_spill] sm:$0xff] %v8649_v53 }
 0x466   :  { %1727 = vmatmul.f32.vlgmr.msra.gmra.mxu0 %v8478_v23  ;;  %1767 = vmatmul.f32.vlgmr.msra.gmra.mxu2 %v8478_v23  ;;  %13169 = vst [vmem:[#allocation69_spill] sm:$0xff] %v8655_v13 }
 0x467   :  { %1871 = vmatpush.msra.mxu0 %v8485_v30  ;;  %1911 = vmatpush.msra.mxu2 %v8491_v41 }
 0x469   :  { %1872 = vmatpush.msra.mxu0 %v8497_v2  ;;  %1912 = vmatpush.msra.mxu2 %v8503_v54 }
 0x46b   :  { %1873 = vmatpush.msra.mxu0 %v8509_v63  ;;  %1913 = vmatpush.msra.mxu2 %v8515_v45 }
 0x46d   :  { %1874 = vmatpush.msra.mxu0 %v8521_v11  ;;  %1914 = vmatpush.msra.mxu2 %v8527_v9 }
 0x46e   :  { %1807 = vmatmul.f32.vlgmr.msrb.gmra.mxu0 %v8478_v23  ;;  %1847 = vmatmul.f32.vlgmr.msrb.gmra.mxu2 %v8478_v23 }
 0x46f   :  { %1875 = vmatpush.msra.mxu0 %v8535_v38  ;;  %1915 = vmatpush.msra.mxu2 %v8541_v7 }
 0x471   :  { %1876 = vmatpush.msra.mxu0 %v8547_v18  ;;  %1916 = vmatpush.msra.mxu2 %v8553_v1 }
 0x473   :  { %1877 = vmatpush.msra.mxu0 %v8559_v44  ;;  %1917 = vmatpush.msra.mxu2 %v8565_v8 }
 0x475   :  { %1878 = vmatpush.msra.mxu0 %v8571_v4  ;;  %1918 = vmatpush.msra.mxu2 %v8577_v47 }
 0x477   :  { %1879 = vmatpush.msra.mxu0 %v8583_v26  ;;  %1919 = vmatpush.msra.mxu2 %v8589_v5 }
 0x479   :  { %1880 = vmatpush.msra.mxu0 %v8595_v46  ;;  %1920 = vmatpush.msra.mxu2 %v8601_v60  ;;  %v13236_v60 = vld [vmem:[#allocation30_spill] sm:$0xff] }
 0x47b   :  { %1881 = vmatpush.msra.mxu0 %v8607_v59  ;;  %1921 = vmatpush.msra.mxu2 %v8613_v35  ;;  %v1748_v35 = vpop.f32.mrf.mxu1 }
 0x47d   :  { %1882 = vmatpush.msra.mxu0 %v8619_v43  ;;  %1922 = vmatpush.msra.mxu2 %v8625_v55 }
 0x47f   :  { %1883 = vmatpush.msra.mxu0 %v8631_v28  ;;  %1923 = vmatpush.msra.mxu2 %v8637_v15  ;;  %v8661_v15 = vld [vmem:[%s12005_s2 + $0x358] sm:$0xff] }
 0x480   :  { %13170 = vst [vmem:[#allocation38_spill] sm:$0xff] %v8661_v15 }
 0x481   :  { %1884 = vmatpush.msra.mxu0 %v8643_v40  ;;  %1924 = vmatpush.msra.mxu2 %v8649_v53  ;;  %v8667_v40 = vld [vmem:[%s12005_s2 + $0x320] sm:$0xff]  ;;  %v8673_v53 = vld [vmem:[%s12005_s2 + $0x328] sm:$0xff] }
 0x482   :  { %13171 = vst [vmem:[#allocation39_spill] sm:$0xff] %v8667_v40 }
 0x483   :  { %1885 = vmatpush.msra.mxu0 %v8655_v13  ;;  %1925 = vmatpush.msra.mxu2 %v8661_v15  ;;  %13172 = vst [vmem:[#allocation41_spill] sm:$0xff] %v8673_v53  ;;  %v8681_v15 = vld [vmem:[%s12008_s5 + $0x170] sm:$0xff]  ;;  %v8699_v13 = vld [vmem:[%s12005_s2 + $0x2a0] sm:$0xff] }
 0x484   :  { %13173 = vst [vmem:[#allocation42_spill] sm:$0xff] %v8681_v15 }
 0x485   :  { %1886 = vmatpush.msra.mxu0 %v8667_v40  ;;  %1926 = vmatpush.msra.mxu2 %v8673_v53  ;;  %v8687_v40 = vld [vmem:[%s12005_s2 + $0x2d0] sm:$0xff]  ;;  %v8693_v53 = vld [vmem:[%s12008_s5 + $0x158] sm:$0xff]  ;;  %13176 = vst [vmem:[#allocation47_spill] sm:$0xff] %v8699_v13 }
 0x486   :  { %1887 = vmatmul.f32.vlgmr.msra.gmra.mxu0 %v8478_v23  ;;  %1927 = vmatmul.f32.vlgmr.msra.gmra.mxu2 %v8478_v23  ;;  %13174 = vst [vmem:[#allocation45_spill] sm:$0xff] %v8687_v40 }
 0x487   :  { %2005 = vmatpush.msrb.mxu0 %v8681_v15  ;;  %2093 = vmatpush.msrb.mxu2 %v8687_v40  ;;  %13175 = vst [vmem:[#allocation46_spill] sm:$0xff] %v8693_v53  ;;  %v8705_v15 = vld [vmem:[%s12008_s5 + $0x140] sm:$0xff]  ;;  %v8711_v40 = vld [vmem:[%s12005_s2 + $0x270] sm:$0xff] }
 0x488   :  { %13177 = vst [vmem:[#allocation49_spill] sm:$0xff] %v8705_v15 }
 0x489   :  { %2006 = vmatpush.msrb.mxu0 %v8693_v53  ;;  %2094 = vmatpush.msrb.mxu2 %v8699_v13  ;;  %13178 = vst [vmem:[#allocation52_spill] sm:$0xff] %v8711_v40  ;;  %v8717_v53 = vld [vmem:[%s12008_s5 + $0x128] sm:$0xff]  ;;  %v8723_v13 = vld [vmem:[%s12005_s2 + $0x240] sm:$0xff] }
 0x48a   :  { %13179 = vst [vmem:[#allocation53_spill] sm:$0xff] %v8717_v53 }
 0x48b   :  { %2007 = vmatpush.msrb.mxu0 %v8705_v15  ;;  %2095 = vmatpush.msrb.mxu2 %v8711_v40  ;;  %13180 = vst [vmem:[#allocation55_spill] sm:$0xff] %v8723_v13  ;;  %v8729_v15 = vld [vmem:[%s12008_s5 + $0x110] sm:$0xff] }
 0x48c   :  { %13181 = vst [vmem:[#allocation58_spill] sm:$0xff] %v8729_v15  ;;  %v8735_v40 = vld [vmem:[%s12005_s2 + $0x210] sm:$0xff] }
 0x48d   :  { %2008 = vmatpush.msrb.mxu0 %v8717_v53  ;;  %2096 = vmatpush.msrb.mxu2 %v8723_v13  ;;  %13182 = vst [vmem:[#allocation63_spill] sm:$0xff] %v8735_v40  ;;  %v8741_v53 = vld [vmem:[%s12008_s5 + $0xf8] sm:$0xff]  ;;  %v8747_v13 = vld [vmem:[%s12005_s2 + $0x1e0] sm:$0xff] }
 0x48e   :  { %13183 = vst [vmem:[#allocation65_spill] sm:$0xff] %v8741_v53 }
 0x48f   :  { %2009 = vmatpush.msrb.mxu0 %v8729_v15  ;;  %2097 = vmatpush.msrb.mxu2 %v8735_v40  ;;  %13184 = vst [vmem:[#allocation67_spill] sm:$0xff] %v8747_v13  ;;  %v8753_v15 = vld [vmem:[%s12008_s5 + $0xe0] sm:$0xff]  ;;  %v8759_v40 = vld [vmem:[%s12005_s2 + $0x1b0] sm:$0xff] }
 0x490   :  { %13185 = vst [vmem:[#allocation73_spill] sm:$0xff] %v8753_v15 }
 0x491   :  { %2010 = vmatpush.msrb.mxu0 %v8741_v53  ;;  %2098 = vmatpush.msrb.mxu2 %v8747_v13  ;;  %13186 = vst [vmem:[#allocation74_spill] sm:$0xff] %v8759_v40  ;;  %v8765_v53 = vld [vmem:[%s12008_s5 + $0xc8] sm:$0xff]  ;;  %v8771_v13 = vld [vmem:[%s12005_s2 + $0x180] sm:$0xff] }
 0x492   :  { %13187 = vst [vmem:[#allocation76_spill] sm:$0xff] %v8765_v53 }
 0x493   :  { %2011 = vmatpush.msrb.mxu0 %v8753_v15  ;;  %2099 = vmatpush.msrb.mxu2 %v8759_v40  ;;  %13188 = vst [vmem:[#allocation77_spill] sm:$0xff] %v8771_v13  ;;  %v8777_v15 = vld [vmem:[%s12008_s5 + $0xb0] sm:$0xff] }
 0x494   :  { %13189 = vst [vmem:[#allocation78_spill] sm:$0xff] %v8777_v15  ;;  %v8783_v40 = vld [vmem:[%s12005_s2 + $0x150] sm:$0xff] }
 0x495   :  { %2012 = vmatpush.msrb.mxu0 %v8765_v53  ;;  %2100 = vmatpush.msrb.mxu2 %v8771_v13  ;;  %13190 = vst [vmem:[#allocation79_spill] sm:$0xff] %v8783_v40  ;;  %v8789_v53 = vld [vmem:[%s12008_s5 + $0x98] sm:$0xff]  ;;  %v8795_v13 = vld [vmem:[%s12005_s2 + $0x120] sm:$0xff] }
 0x496   :  { %13191 = vst [vmem:[#allocation81_spill] sm:$0xff] %v8789_v53 }
 0x497   :  { %2013 = vmatpush.msrb.mxu0 %v8777_v15  ;;  %2101 = vmatpush.msrb.mxu2 %v8783_v40  ;;  %13192 = vst [vmem:[#allocation83_spill] sm:$0xff] %v8795_v13  ;;  %v8801_v15 = vld [vmem:[%s12008_s5 + $0x80] sm:$0xff]  ;;  %v8807_v40 = vld [vmem:[%s12005_s2 + $0xf0] sm:$0xff] }
 0x498   :  { %13193 = vst [vmem:[#allocation84_spill] sm:$0xff] %v8801_v15 }
 0x499   :  { %2014 = vmatpush.msrb.mxu0 %v8789_v53  ;;  %2102 = vmatpush.msrb.mxu2 %v8795_v13  ;;  %13194 = vst [vmem:[#allocation85_spill] sm:$0xff] %v8807_v40  ;;  %v8813_v53 = vld [vmem:[%s12008_s5 + $0x68] sm:$0xff]  ;;  %v8819_v13 = vld [vmem:[%s12005_s2 + $0xc0] sm:$0xff] }
 0x49a   :  { %13195 = vst [vmem:[#allocation86_spill] sm:$0xff] %v8813_v53 }
 0x49b   :  { %2015 = vmatpush.msrb.mxu0 %v8801_v15  ;;  %2103 = vmatpush.msrb.mxu2 %v8807_v40  ;;  %13196 = vst [vmem:[#allocation54_spill] sm:$0xff] %v8819_v13  ;;  %v8825_v15 = vld [vmem:[%s12008_s5 + $0x50] sm:$0xff] }
 0x49c   :  { %13197 = vst [vmem:[#allocation56_spill] sm:$0xff] %v8825_v15  ;;  %v8831_v40 = vld [vmem:[%s12005_s2 + $0x90] sm:$0xff] }
 0x49d   :  { %2016 = vmatpush.msrb.mxu0 %v8813_v53  ;;  %2104 = vmatpush.msrb.mxu2 %v8819_v13  ;;  %13198 = vst [vmem:[#allocation87_spill] sm:$0xff] %v8831_v40  ;;  %v8837_v53 = vld [vmem:[%s12008_s5 + $0x38] sm:$0xff]  ;;  %v8843_v13 = vld [vmem:[%s12005_s2 + $0x60] sm:$0xff] }
 0x49e   :  { %13199 = vst [vmem:[#allocation88_spill] sm:$0xff] %v8837_v53 }
 0x49f   :  { %2017 = vmatpush.msrb.mxu0 %v8825_v15  ;;  %2105 = vmatpush.msrb.mxu2 %v8831_v40  ;;  %13200 = vst [vmem:[#allocation89_spill] sm:$0xff] %v8843_v13  ;;  %v8850_v40 = vld [vmem:[%s12005_s2 + $0x30] sm:$0xff] }
 0x4a0   :  { %13201 = vst [vmem:[#allocation90_spill] sm:$0xff] %v8850_v40  ;;  %v13235_v15 = vld [vmem:[#allocation29_spill] sm:$0xff] }
 0x4a1   :  { %2018 = vmatpush.msrb.mxu0 %v8837_v53  ;;  %2106 = vmatpush.msrb.mxu2 %v8843_v13  ;;  %v8857_v53 = vld [vmem:[%s12005_s2] sm:$0xff]  ;;  %v109_v28 = vadd.f32 %v13235_v15, %v13038_v34 }
 0x4a2   :  { %13202 = vst [vmem:[#allocation91_spill] sm:$0xff] %v8857_v53 }
 0x4a3   :  { %2019 = vmatpush.msrb.mxu0 %v8142_v22  ;;  %2107 = vmatpush.msrb.mxu2 %v8850_v40  ;;  %v8863_v22 = vld [vmem:[%s12005_s2 + $0x2d8] sm:$0xff]  ;;  %v8869_v40 = vld [vmem:[%s12005_s2 + $0x2e0] sm:$0xff] }
 0x4a4   :  { %13203 = vst [vmem:[#allocation92_spill] sm:$0xff] %v8863_v22 }
 0x4a5   :  { %2020 = vmatpush.msrb.mxu0 %v8149_v48  ;;  %2108 = vmatpush.msrb.mxu2 %v8857_v53  ;;  %13204 = vst [vmem:[#allocation93_spill] sm:$0xff] %v8869_v40  ;;  %v8875_v48 = vld [vmem:[%s12005_s2 + $0x2a8] sm:$0xff]  ;;  %v8881_v53 = vld [vmem:[%s12005_s2 + $0x2b0] sm:$0xff] }
 0x4a6   :  { %13205 = vst [vmem:[#allocation94_spill] sm:$0xff] %v8875_v48 }
 0x4a7   :  { %2133 = vmatpush.msra.mxu0 %v8863_v22  ;;  %2173 = vmatpush.msra.mxu2 %v8869_v40  ;;  %13206 = vst [vmem:[#allocation95_spill] sm:$0xff] %v8881_v53  ;;  %v8887_v22 = vld [vmem:[%s12005_s2 + $0x278] sm:$0xff]  ;;  %v8893_v40 = vld [vmem:[%s12005_s2 + $0x280] sm:$0xff] }
 0x4a8   :  { %13207 = vst [vmem:[#allocation96_spill] sm:$0xff] %v8887_v22 }
 0x4a9   :  { %2134 = vmatpush.msra.mxu0 %v8875_v48  ;;  %2174 = vmatpush.msra.mxu2 %v8881_v53  ;;  %13208 = vst [vmem:[#allocation97_spill] sm:$0xff] %v8893_v40  ;;  %v8899_v48 = vld [vmem:[%s12005_s2 + $0x248] sm:$0xff]  ;;  %v8905_v53 = vld [vmem:[%s12005_s2 + $0x250] sm:$0xff] }
 0x4aa   :  { %13209 = vst [vmem:[#allocation98_spill] sm:$0xff] %v8899_v48 }
 0x4ab   :  { %2135 = vmatpush.msra.mxu0 %v8887_v22  ;;  %2175 = vmatpush.msra.mxu2 %v8893_v40  ;;  %13210 = vst [vmem:[#allocation99_spill] sm:$0xff] %v8905_v53  ;;  %v8911_v22 = vld [vmem:[%s12005_s2 + $0x218] sm:$0xff]  ;;  %v8917_v40 = vld [vmem:[%s12005_s2 + $0x220] sm:$0xff] }
 0x4ac   :  { %13211 = vst [vmem:[#allocation100_spill] sm:$0xff] %v8911_v22 }
 0x4ad   :  { %2136 = vmatpush.msra.mxu0 %v8899_v48  ;;  %2176 = vmatpush.msra.mxu2 %v8905_v53  ;;  %13212 = vst [vmem:[#allocation101_spill] sm:$0xff] %v8917_v40  ;;  %v8923_v48 = vld [vmem:[%s12005_s2 + $0x1e8] sm:$0xff]  ;;  %v8929_v53 = vld [vmem:[%s12005_s2 + $0x1f0] sm:$0xff] }
 0x4ae   :  { %13213 = vst [vmem:[#allocation102_spill] sm:$0xff] %v8923_v48 }
 0x4af   :  { %2137 = vmatpush.msra.mxu0 %v8911_v22  ;;  %2177 = vmatpush.msra.mxu2 %v8917_v40  ;;  %13214 = vst [vmem:[#allocation103_spill] sm:$0xff] %v8929_v53  ;;  %v8935_v22 = vld [vmem:[%s12005_s2 + $0x1b8] sm:$0xff]  ;;  %v8941_v40 = vld [vmem:[%s12005_s2 + $0x1c0] sm:$0xff] }
 0x4b0   :  { %13215 = vst [vmem:[#allocation104_spill] sm:$0xff] %v8935_v22 }
 0x4b1   :  { %2138 = vmatpush.msra.mxu0 %v8923_v48  ;;  %2178 = vmatpush.msra.mxu2 %v8929_v53  ;;  %13216 = vst [vmem:[#allocation105_spill] sm:$0xff] %v8941_v40  ;;  %v8947_v48 = vld [vmem:[%s12005_s2 + $0x188] sm:$0xff]  ;;  %v8953_v53 = vld [vmem:[%s12005_s2 + $0x190] sm:$0xff] }
 0x4b2   :  { %13217 = vst [vmem:[#allocation106_spill] sm:$0xff] %v8947_v48 }
 0x4b3   :  { %2139 = vmatpush.msra.mxu0 %v8935_v22  ;;  %2179 = vmatpush.msra.mxu2 %v8941_v40  ;;  %13218 = vst [vmem:[#allocation107_spill] sm:$0xff] %v8953_v53  ;;  %v8959_v22 = vld [vmem:[%s12005_s2 + $0x158] sm:$0xff]  ;;  %v8965_v40 = vld [vmem:[%s12005_s2 + $0x160] sm:$0xff] }
 0x4b4   :  { %13219 = vst [vmem:[#allocation108_spill] sm:$0xff] %v8959_v22 }
 0x4b5   :  { %2140 = vmatpush.msra.mxu0 %v8947_v48  ;;  %2180 = vmatpush.msra.mxu2 %v8953_v53  ;;  %13220 = vst [vmem:[#allocation109_spill] sm:$0xff] %v8965_v40  ;;  %v8971_v48 = vld [vmem:[%s12005_s2 + $0x128] sm:$0xff]  ;;  %v8977_v53 = vld [vmem:[%s12005_s2 + $0x130] sm:$0xff] }
 0x4b6   :  { %13221 = vst [vmem:[#allocation110_spill] sm:$0xff] %v8971_v48 }
 0x4b7   :  { %2141 = vmatpush.msra.mxu0 %v8959_v22  ;;  %2181 = vmatpush.msra.mxu2 %v8965_v40  ;;  %13222 = vst [vmem:[#allocation111_spill] sm:$0xff] %v8977_v53  ;;  %v8983_v22 = vld [vmem:[%s12005_s2 + $0xf8] sm:$0xff]  ;;  %v8989_v40 = vld [vmem:[%s12005_s2 + $0x100] sm:$0xff] }
 0x4b8   :  { %13223 = vst [vmem:[#allocation112_spill] sm:$0xff] %v8983_v22 }
 0x4b9   :  { %2142 = vmatpush.msra.mxu0 %v8971_v48  ;;  %2182 = vmatpush.msra.mxu2 %v8977_v53  ;;  %13224 = vst [vmem:[#allocation24_spill] sm:$0xff] %v8989_v40  ;;  %v8995_v48 = vld [vmem:[%s12005_s2 + $0xc8] sm:$0xff]  ;;  %v9001_v53 = vld [vmem:[%s12005_s2 + $0xd0] sm:$0xff] }
 0x4ba   :  { %13225 = vst [vmem:[#allocation25_spill] sm:$0xff] %v8995_v48 }
 0x4bb   :  { %2143 = vmatpush.msra.mxu0 %v8983_v22  ;;  %2183 = vmatpush.msra.mxu2 %v8989_v40  ;;  %13226 = vst [vmem:[#allocation40_spill] sm:$0xff] %v9001_v53  ;;  %v9007_v22 = vld [vmem:[%s12005_s2 + $0x98] sm:$0xff]  ;;  %v9013_v40 = vld [vmem:[%s12005_s2 + $0xa0] sm:$0xff] }
 0x4bc   :  { %13227 = vst [vmem:[#allocation19_spill] sm:$0xff] %v9007_v22 }
 0x4bd   :  { %2144 = vmatpush.msra.mxu0 %v8995_v48  ;;  %2184 = vmatpush.msra.mxu2 %v9001_v53  ;;  %13228 = vst [vmem:[#allocation18_spill] sm:$0xff] %v9013_v40  ;;  %v9019_v48 = vld [vmem:[%s12005_s2 + $0x68] sm:$0xff]  ;;  %v9025_v53 = vld [vmem:[%s12005_s2 + $0x70] sm:$0xff] }
 0x4be   :  { %13229 = vst [vmem:[#allocation80_spill] sm:$0xff] %v9019_v48 }
 0x4bf   :  { %2145 = vmatpush.msra.mxu0 %v9007_v22  ;;  %2185 = vmatpush.msra.mxu2 %v9013_v40  ;;  %13230 = vst [vmem:[#allocation82_spill] sm:$0xff] %v9025_v53  ;;  %v9031_v22 = vld [vmem:[%s12005_s2 + $0x38] sm:$0xff]  ;;  %v9037_v40 = vld [vmem:[%s12005_s2 + $0x40] sm:$0xff] }
 0x4c0   :  { %13231 = vst [vmem:[#allocation32_spill] sm:$0xff] %v9031_v22 }
 0x4c1   :  { %2146 = vmatpush.msra.mxu0 %v9019_v48  ;;  %2186 = vmatpush.msra.mxu2 %v9025_v53  ;;  %13232 = vst [vmem:[#allocation12_spill] sm:$0xff] %v9037_v40  ;;  %v9043_v48 = vld [vmem:[%s12005_s2 + $0x8] sm:$0xff]  ;;  %v9049_v53 = vld [vmem:[%s12005_s2 + $0x10] sm:$0xff] }
 0x4c2   :  { %13233 = vst [vmem:[#allocation13_spill] sm:$0xff] %v9043_v48 }
 0x4c3   :  { %2147 = vmatpush.msra.mxu0 %v9031_v22  ;;  %2187 = vmatpush.msra.mxu2 %v9037_v40  ;;  %13234 = vst [vmem:[#allocation14_spill] sm:$0xff] %v9049_v53  ;;  %v1708_v22 = vpop.f32.mrf.mxu3 }
 0x4c5   :  { %2148 = vmatpush.msra.mxu0 %v9043_v48  ;;  %2188 = vmatpush.msra.mxu2 %v9049_v53  ;;  %v150_v48 = vadd.f32 %v13236_v60, %v13040_v51 }
 0x4e3   :  { %v1728_v13 = vpop.f32.mrf.mxu0 }
 0x4e4   :  { %v1729_v40 = vadd.f32 %v1728_v13, %v1708_v22 }
 0x4e6   :  { %v1937_v55 = vadd.f32 %v1729_v40, %v109_v28  ;;  %v1788_v40 = vpop.f32.mrf.mxu3 }
 0x4e8   :  { %v3808_v43 = vmul.f32 -1.442695, %v1937_v55 }
 0x4e9   :  { %v1768_v59 = vpop.f32.mrf.mxu2 }
 0x4ea   :  { %3893 = vpow2.f32 %v3808_v43  ;;  %v1769_v46 = vadd.f32 %v1768_v59, %v1748_v35  ;;  %v13237_v43 = vld [vmem:[#allocation48_spill] sm:$0xff] }
 0x4eb   :  { %v1808_v28 = vpop.f32.mrf.mxu0 }
 0x4ec   :  { %v1957_v5 = vadd.f32 %v1769_v46, %v150_v48  ;;  %v1809_v22 = vadd.f32 %v1808_v28, %v1788_v40  ;;  %v191_v48 = vadd.f32 %v13237_v43, %v12846_v39  ;;  %v9196_v43 = vld [vmem:[%s12005_s2 + $0x168] sm:$0xff] }
 0x4ee   :  { %v3809_v26 = vmul.f32 -1.442695, %v1957_v5 }
 0x4f0   :  { %v3894_v47 = vpop.eup %3893  ;;  %3895 = vpow2.f32 %v3809_v26 }
 0x4f1   :  { %v1941_v53 = vadd.f32 1.0, %v3894_v47 }
 0x4f3   :  { %3897 = vrcp.f32 %v1941_v53  ;;  %v1953_v13 = vand.u32 2147483648, %v1941_v53  ;;  %v1951_v60 = vand.u32 2147483647, %v1941_v53  ;;  %vm1947_vm2 = vweird.f32 %v1941_v53 }
 0x4f5   :  { %v1954_v47 = vor.u32 1.1754944e-38, %v1953_v13  ;;  %vm1952_vm4 = vcmp.eq.f32.partialorder %v1951_v60, 8.507059e+37 }
 0x4f6   :  { %v3896_v4 = vpop.eup %3895 }
 0x4f7   :  { %v1961_v8 = vadd.f32 1.0, %v3896_v4  ;;  %v1977_v4 = vadd.f32 %v8192_v32, %v1809_v22 }
 0x4f9   :  { %v3898_v44 = vpop.eup %3897  ;;  %3899 = vrcp.f32 %v1961_v8  ;;  %v1973_v28 = vand.u32 2147483648, %v1961_v8  ;;  %v1971_v40 = vand.u32 2147483647, %v1961_v8  ;;  %vm1967_vm6 = vweird.f32 %v1961_v8 }
 0x4fa   :  { %v1943_v15 = vmul.f32 %v3898_v44, %v1941_v53  ;;  %vm1948_vm1 = vweird.f32 %v3898_v44 }
 0x4fb   :  { %vm1949_vm3 = vmor %vm1947_vm2, %vm1948_vm1  ;;  %v1974_v53 = vor.u32 1.1754944e-38, %v1973_v28  ;;  %vm1972_vm8 = vcmp.eq.f32.partialorder %v1971_v40, 8.507059e+37  ;;  %v9221_v28 = vld [vmem:[%s12005_s2 + $0x140] sm:$0xff]  ;;  %v9240_v40 = vld [vmem:[%s12005_s2 + $0x110] sm:$0xff] }
 0x4fc   :  { %v1944_v55 = vsub.f32 1.0, %v1943_v15  ;;  %13238 = vst [vmem:[#allocation15_spill] sm:$0xff] %v9240_v40 }
 0x4fe   :  { %v1945_v34 = vmul.f32 %v3898_v44, %v1944_v55 }
 0x4ff   :  { %v3900_v59 = vpop.eup %3899 }
 0x500   :  { %v1963_v46 = vmul.f32 %v3900_v59, %v1961_v8  ;;  %v1946_v5 = vadd.f32 %v3898_v44, %v1945_v34  ;;  %vm1968_vm5 = vweird.f32 %v3900_v59  ;;  %v9089_v8 = vld [vmem:[%s12005_s2 + $0x2c0] sm:$0xff] }
 0x501   :  { %vm1969_vm7 = vmor %vm1967_vm6, %vm1968_vm5 }
 0x502   :  { %v1964_v26 = vsub.f32 1.0, %v1963_v46  ;;  %v1950_v35 = vsel %vm1949_vm3, %v3898_v44, %v1946_v5 }
 0x503   :  { %v1955_v15 = vsel %vm1952_vm4, %v1954_v47, %v1950_v35  ;;  %v9145_v47 = vld [vmem:[%s12005_s2 + $0x200] sm:$0xff]  ;;  %v9177_v35 = vld [vmem:[%s12005_s2 + $0x198] sm:$0xff] }
 0x504   :  { %v1965_v51 = vmul.f32 %v3900_v59, %v1964_v26  ;;  %v1978_v55 = vmul.f32 %v1977_v4, %v1955_v15  ;;  %v9164_v26 = vld [vmem:[%s12005_s2 + $0x1d0] sm:$0xff]  ;;  %v9183_v4 = vld [vmem:[%s12005_s2 + $0x1a0] sm:$0xff]  ;;  %v9215_v15 = vld [vmem:[%s12005_s2 + $0x138] sm:$0xff] }
 0x506   :  { %v1966_v1 = vadd.f32 %v3900_v59, %v1965_v51  ;;  %v1979_v34 = vadd.f32 %v1978_v55, %v191_v48  ;;  %v9069_v51 = vld [vmem:[%s12005_s2 + $0x2e8] sm:$0xff]  ;;  %v9202_v48 = vld [vmem:[%s12005_s2 + $0x170] sm:$0xff] }
 0x507   :  { %v9234_v55 = vld [vmem:[%s12005_s2 + $0x108] sm:$0xff] }
 0x508   :  { %v1970_v13 = vsel %vm1969_vm7, %v3900_v59, %v1966_v1  ;;  %3901 = vtanh.f32 %v1979_v34  ;;  %v9083_v1 = vld [vmem:[%s12005_s2 + $0x2b8] sm:$0xff] }
 0x509   :  { %v1975_v44 = vsel %vm1972_vm8, %v1974_v53, %v1970_v13  ;;  %v9139_v59 = vld [vmem:[%s12005_s2 + $0x1f8] sm:$0xff]  ;;  %v9259_v53 = vld [vmem:[%s12005_s2 + $0xe0] sm:$0xff]  ;;  %v9272_v13 = vld [vmem:[%s12005_s2 + $0xa8] sm:$0xff] }
 0x50a   :  { %v1981_v60 = vsub.f32 1.0, %v1975_v44  ;;  %v1983_v46 = vmul.f32 %v1975_v44, %v8198_v36  ;;  %v9075_v36 = vld [vmem:[%s12005_s2 + $0x2f0] sm:$0xff]  ;;  %v9253_v34 = vld [vmem:[%s12005_s2 + $0xd8] sm:$0xff]  ;;  %13241 = vst [vmem:[#allocation115_spill] sm:$0xff] %v9259_v53 }
 0x50b   :  { %13240 = vst [vmem:[#allocation114_spill] sm:$0xff] %v9253_v34  ;;  %v9278_v44 = vld [vmem:[%s12005_s2 + $0xb0] sm:$0xff] }
 0x50c   :  { %13243 = vst [vmem:[#allocation117_spill] sm:$0xff] %v9272_v13 }
 0x50d   :  { %13244 = vst [vmem:[#allocation118_spill] sm:$0xff] %v9278_v44 }
 0x50e   :  { %v3902_v32 = vpop.eup %3901 }
 0x50f   :  { %v1982_v22 = vmul.f32 %v3902_v32, %v1981_v60  ;;  %v9291_v60 = vld [vmem:[%s12005_s2 + $0x78] sm:$0xff]  ;;  %v9297_v32 = vld [vmem:[%s12005_s2 + $0x80] sm:$0xff] }
 0x510   :  { %13246 = vst [vmem:[#allocation120_spill] sm:$0xff] %v9291_v60 }
 0x511   :  { %v9060_v5 = vadd.f32 %v1983_v46, %v1982_v22  ;;  %13247 = vst [vmem:[#allocation121_spill] sm:$0xff] %v9297_v32  ;;  %v9310_v22 = vld [vmem:[%s12005_s2 + $0x48] sm:$0xff]  ;;  %v9316_v46 = vld [vmem:[%s12005_s2 + $0x50] sm:$0xff] }
 0x512   :  { %13249 = vst [vmem:[#allocation16_spill] sm:$0xff] %v9310_v22 }
 0x513   :  { %2001 = vmatmul.f32.vlgmr.msrb.gmra.mxu3 %v9060_v5  ;;  %2021 = vmatmul.f32.vlgmr.msrb.gmra.mxu0 %v9060_v5  ;;  %13250 = vst [vmem:[#allocation123_spill] sm:$0xff] %v9316_v46 }
 0x514   :  { %2041 = vmatmul.f32.vlgmr.msrb.gmra.mxu1 %v9060_v5  ;;  %2109 = vmatmul.f32.vlgmr.msrb.gmra.mxu2 %v9060_v5 }
 0x515   :  { %2213 = vmatpush.msrb.mxu0 %v9069_v51  ;;  %2253 = vmatpush.msrb.mxu2 %v9075_v36 }
 0x516   :  { %2193 = vmatpush.msrb.mxu3 %v8209_v37  ;;  %2233 = vmatpush.msrb.mxu1 %v8215_v52  ;;  %v9097_v37 = vld [vmem:[%s12005_s2 + $0x288] sm:$0xff]  ;;  %v9103_v52 = vld [vmem:[%s12005_s2 + $0x290] sm:$0xff] }
 0x517   :  { %2214 = vmatpush.msrb.mxu0 %v9083_v1  ;;  %2254 = vmatpush.msrb.mxu2 %v9089_v8 }
 0x518   :  { %2194 = vmatpush.msrb.mxu3 %v8223_v16  ;;  %2234 = vmatpush.msrb.mxu1 %v8229_v61  ;;  %v9111_v16 = vld [vmem:[%s12005_s2 + $0x258] sm:$0xff]  ;;  %v9117_v61 = vld [vmem:[%s12005_s2 + $0x260] sm:$0xff] }
 0x519   :  { %2215 = vmatpush.msrb.mxu0 %v9097_v37  ;;  %2255 = vmatpush.msrb.mxu2 %v9103_v52 }
 0x51a   :  { %2195 = vmatpush.msrb.mxu3 %v8237_v14  ;;  %2235 = vmatpush.msrb.mxu1 %v8243_v6  ;;  %v9125_v14 = vld [vmem:[%s12005_s2 + $0x228] sm:$0xff]  ;;  %v9131_v6 = vld [vmem:[%s12005_s2 + $0x230] sm:$0xff] }
 0x51b   :  { %2216 = vmatpush.msrb.mxu0 %v9111_v16  ;;  %2256 = vmatpush.msrb.mxu2 %v9117_v61 }
 0x51c   :  { %2149 = vmatmul.f32.vlgmr.msra.gmra.mxu0 %v9060_v5  ;;  %2189 = vmatmul.f32.vlgmr.msra.gmra.mxu2 %v9060_v5 }
 0x51d   :  { %2217 = vmatpush.msrb.mxu0 %v9125_v14  ;;  %2257 = vmatpush.msrb.mxu2 %v9131_v6 }
 0x51e   :  { %2196 = vmatpush.msrb.mxu3 %v8255_v62  ;;  %2236 = vmatpush.msrb.mxu1 %v8261_v0  ;;  %v9152_v62 = vld [vmem:[%s12005_s2 + $0x528] sm:$0xff] }
 0x51f   :  { %2218 = vmatpush.msrb.mxu0 %v9139_v59  ;;  %2258 = vmatpush.msrb.mxu2 %v9145_v47  ;;  %v9158_v0 = vld [vmem:[%s12005_s2 + $0x1c8] sm:$0xff] }
 0x520   :  { %2197 = vmatpush.msrb.mxu3 %v8269_v49  ;;  %2237 = vmatpush.msrb.mxu1 %v9152_v62  ;;  %v9171_v49 = vld [vmem:[%s12005_s2 + $0x4f8] sm:$0xff] }
 0x521   :  { %2219 = vmatpush.msrb.mxu0 %v9158_v0  ;;  %2259 = vmatpush.msrb.mxu2 %v9164_v26 }
 0x522   :  { %2198 = vmatpush.msrb.mxu3 %v8278_v33  ;;  %2238 = vmatpush.msrb.mxu1 %v9171_v49  ;;  %v9190_v33 = vld [vmem:[%s12005_s2 + $0x4c8] sm:$0xff] }
 0x523   :  { %2220 = vmatpush.msrb.mxu0 %v9177_v35  ;;  %2260 = vmatpush.msrb.mxu2 %v9183_v4 }
 0x524   :  { %2199 = vmatpush.msrb.mxu3 %v8287_v56  ;;  %2239 = vmatpush.msrb.mxu1 %v9190_v33  ;;  %v9209_v56 = vld [vmem:[%s12005_s2 + $0x498] sm:$0xff] }
 0x525   :  { %2221 = vmatpush.msrb.mxu0 %v9196_v43  ;;  %2261 = vmatpush.msrb.mxu2 %v9202_v48 }
 0x526   :  { %2200 = vmatpush.msrb.mxu3 %v8296_v17  ;;  %2240 = vmatpush.msrb.mxu1 %v9209_v56  ;;  %v9228_v17 = vld [vmem:[%s12005_s2 + $0x468] sm:$0xff] }
 0x527   :  { %2222 = vmatpush.msrb.mxu0 %v9215_v15  ;;  %2262 = vmatpush.msrb.mxu2 %v9221_v28 }
 0x528   :  { %2201 = vmatpush.msrb.mxu3 %v8305_v20  ;;  %2241 = vmatpush.msrb.mxu1 %v9228_v17  ;;  %v9247_v20 = vld [vmem:[%s12005_s2 + $0x438] sm:$0xff] }
 0x529   :  { %2223 = vmatpush.msrb.mxu0 %v9234_v55  ;;  %2263 = vmatpush.msrb.mxu2 %v9240_v40  ;;  %13239 = vst [vmem:[#allocation113_spill] sm:$0xff] %v9247_v20 }
 0x52a   :  { %2202 = vmatpush.msrb.mxu3 %v8314_v25  ;;  %2242 = vmatpush.msrb.mxu1 %v9247_v20  ;;  %v9266_v25 = vld [vmem:[%s12005_s2 + $0x408] sm:$0xff] }
 0x52b   :  { %2224 = vmatpush.msrb.mxu0 %v9253_v34  ;;  %2264 = vmatpush.msrb.mxu2 %v9259_v53  ;;  %13242 = vst [vmem:[#allocation116_spill] sm:$0xff] %v9266_v25 }
 0x52c   :  { %2203 = vmatpush.msrb.mxu3 %v8323_v29  ;;  %2243 = vmatpush.msrb.mxu1 %v9266_v25  ;;  %v9285_v29 = vld [vmem:[%s12005_s2 + $0x3d8] sm:$0xff] }
 0x52d   :  { %2225 = vmatpush.msrb.mxu0 %v9272_v13  ;;  %2265 = vmatpush.msrb.mxu2 %v9278_v44  ;;  %13245 = vst [vmem:[#allocation119_spill] sm:$0xff] %v9285_v29 }
 0x52e   :  { %2204 = vmatpush.msrb.mxu3 %v8332_v10  ;;  %2244 = vmatpush.msrb.mxu1 %v9285_v29  ;;  %v9304_v10 = vld [vmem:[%s12005_s2 + $0x3a8] sm:$0xff] }
 0x52f   :  { %2226 = vmatpush.msrb.mxu0 %v9291_v60  ;;  %2266 = vmatpush.msrb.mxu2 %v9297_v32  ;;  %13248 = vst [vmem:[#allocation122_spill] sm:$0xff] %v9304_v10  ;;  %v1828_v32 = vpop.f32.mrf.mxu1 }
 0x530   :  { %2205 = vmatpush.msrb.mxu3 %v8341_v42  ;;  %2245 = vmatpush.msrb.mxu1 %v9304_v10  ;;  %v9324_v42 = vld [vmem:[%s12005_s2 + $0x18] sm:$0xff] }
 0x531   :  { %2227 = vmatpush.msrb.mxu0 %v9310_v22  ;;  %2267 = vmatpush.msrb.mxu2 %v9316_v46  ;;  %13251 = vst [vmem:[#allocation124_spill] sm:$0xff] %v9324_v42  ;;  %v9330_v22 = vld [vmem:[%s12005_s2 + $0x20] sm:$0xff] }
 0x532   :  { %2206 = vmatpush.msrb.mxu3 %v8350_v58  ;;  %2246 = vmatpush.msrb.mxu1 %v8356_v12  ;;  %13252 = vst [vmem:[#allocation3_spill] sm:$0xff] %v9330_v22  ;;  %v9338_v58 = vld [vmem:[%s12005_s2 + $0x2f8] sm:$0xff]  ;;  %v9346_v12 = vld [vmem:[%s12008_s5 + $0x168] sm:$0xff] }
 0x533   :  { %2228 = vmatpush.msrb.mxu0 %v9324_v42  ;;  %2268 = vmatpush.msrb.mxu2 %v9330_v22  ;;  %13253 = vst [vmem:[#allocation125_spill] sm:$0xff] %v9338_v58  ;;  %v9352_v22 = vld [vmem:[%s12005_s2 + $0x2c8] sm:$0xff] }
 0x534   :  { %2229 = vmatmul.f32.vlgmr.msrb.gmra.mxu0 %v9060_v5  ;;  %2269 = vmatmul.f32.vlgmr.msrb.gmra.mxu2 %v9060_v5  ;;  %13254 = vst [vmem:[#allocation126_spill] sm:$0xff] %v9346_v12 }
 0x535   :  { %2293 = vmatpush.msra.mxu0 %v9338_v58  ;;  %2207 = vmatpush.msrb.mxu3 %v8367_v3  ;;  %13255 = vst [vmem:[#allocation17_spill] sm:$0xff] %v9352_v22  ;;  %v9360_v3 = vld [vmem:[%s12008_s5 + $0x150] sm:$0xff] }
 0x536   :  { %2247 = vmatpush.msrb.mxu1 %v8373_v27  ;;  %2387 = vmatpush.msra.mxu2 %v9346_v12  ;;  %13256 = vst [vmem:[#allocation4_spill] sm:$0xff] %v9360_v3  ;;  %v9366_v27 = vld [vmem:[%s12005_s2 + $0x298] sm:$0xff]  ;;  %v9805_v12 = vld [vmem:[%s12005_s2 + $0x368] sm:$0xff] }
 0x537   :  { %2294 = vmatpush.msra.mxu0 %v9352_v22  ;;  %2208 = vmatpush.msrb.mxu3 %v8381_v21  ;;  %13257 = vst [vmem:[#allocation127_spill] sm:$0xff] %v9366_v27  ;;  %v9372_v21 = vld [vmem:[%s12008_s5 + $0x138] sm:$0xff] }
 0x538   :  { %2248 = vmatpush.msrb.mxu1 %v8387_v24  ;;  %2388 = vmatpush.msra.mxu2 %v9360_v3  ;;  %13258 = vst [vmem:[#allocation20_spill] sm:$0xff] %v9372_v21  ;;  %v9378_v24 = vld [vmem:[%s12005_s2 + $0x268] sm:$0xff]  ;;  %v9384_v3 = vld [vmem:[%s12008_s5 + $0x120] sm:$0xff]  ;;  %v9787_v22 = vld [vmem:[%s12005_s2 + $0x3f8] sm:$0xff] }
 0x539   :  { %2295 = vmatpush.msra.mxu0 %v9366_v27  ;;  %13259 = vst [vmem:[#allocation5_spill] sm:$0xff] %v9378_v24  ;;  %v9390_v27 = vld [vmem:[%s12005_s2 + $0x238] sm:$0xff] }
 0x53a   :  { %2389 = vmatpush.msra.mxu2 %v9372_v21  ;;  %13260 = vst [vmem:[#allocation21_spill] sm:$0xff] %v9384_v3  ;;  %v9396_v21 = vld [vmem:[%s12008_s5 + $0x108] sm:$0xff] }
 0x53b   :  { %2296 = vmatpush.msra.mxu0 %v9378_v24  ;;  %13261 = vst [vmem:[#allocation128_spill] sm:$0xff] %v9390_v27  ;;  %v9402_v24 = vld [vmem:[%s12005_s2 + $0x208] sm:$0xff] }
 0x53c   :  { %2390 = vmatpush.msra.mxu2 %v9384_v3  ;;  %13262 = vst [vmem:[#allocation129_spill] sm:$0xff] %v9396_v21  ;;  %v9408_v3 = vld [vmem:[%s12008_s5 + $0xf0] sm:$0xff] }
 0x53d   :  { %2297 = vmatpush.msra.mxu0 %v9390_v27  ;;  %13263 = vst [vmem:[#allocation130_spill] sm:$0xff] %v9402_v24  ;;  %v9414_v27 = vld [vmem:[%s12005_s2 + $0x1d8] sm:$0xff] }
 0x53e   :  { %2391 = vmatpush.msra.mxu2 %v9396_v21  ;;  %13264 = vst [vmem:[#allocation131_spill] sm:$0xff] %v9408_v3  ;;  %v9420_v21 = vld [vmem:[%s12008_s5 + $0xd8] sm:$0xff] }
 0x53f   :  { %2298 = vmatpush.msra.mxu0 %v9402_v24  ;;  %13265 = vst [vmem:[#allocation132_spill] sm:$0xff] %v9414_v27  ;;  %v9426_v24 = vld [vmem:[%s12005_s2 + $0x1a8] sm:$0xff] }
 0x540   :  { %2392 = vmatpush.msra.mxu2 %v9408_v3  ;;  %13266 = vst [vmem:[#allocation133_spill] sm:$0xff] %v9420_v21  ;;  %v9432_v3 = vld [vmem:[%s12008_s5 + $0xc0] sm:$0xff] }
 0x541   :  { %2299 = vmatpush.msra.mxu0 %v9414_v27  ;;  %13267 = vst [vmem:[#allocation134_spill] sm:$0xff] %v9426_v24  ;;  %v9438_v27 = vld [vmem:[%s12005_s2 + $0x178] sm:$0xff] }
 0x542   :  { %2393 = vmatpush.msra.mxu2 %v9420_v21  ;;  %13268 = vst [vmem:[#allocation135_spill] sm:$0xff] %v9432_v3  ;;  %v9444_v21 = vld [vmem:[%s12008_s5 + $0xa8] sm:$0xff] }
 0x543   :  { %2300 = vmatpush.msra.mxu0 %v9426_v24  ;;  %13269 = vst [vmem:[#allocation136_spill] sm:$0xff] %v9438_v27  ;;  %v9450_v24 = vld [vmem:[%s12005_s2 + $0x148] sm:$0xff] }
 0x544   :  { %2394 = vmatpush.msra.mxu2 %v9432_v3  ;;  %13270 = vst [vmem:[#allocation137_spill] sm:$0xff] %v9444_v21  ;;  %v9456_v3 = vld [vmem:[%s12008_s5 + $0x90] sm:$0xff] }
 0x545   :  { %2301 = vmatpush.msra.mxu0 %v9438_v27  ;;  %13271 = vst [vmem:[#allocation138_spill] sm:$0xff] %v9450_v24  ;;  %v9462_v27 = vld [vmem:[%s12005_s2 + $0x118] sm:$0xff] }
 0x546   :  { %2395 = vmatpush.msra.mxu2 %v9444_v21  ;;  %13272 = vst [vmem:[#allocation139_spill] sm:$0xff] %v9456_v3  ;;  %v9468_v21 = vld [vmem:[%s12008_s5 + $0x78] sm:$0xff] }
 0x547   :  { %2302 = vmatpush.msra.mxu0 %v9450_v24  ;;  %13273 = vst [vmem:[#allocation140_spill] sm:$0xff] %v9462_v27  ;;  %v9474_v24 = vld [vmem:[%s12005_s2 + $0xe8] sm:$0xff] }
 0x548   :  { %2396 = vmatpush.msra.mxu2 %v9456_v3  ;;  %13274 = vst [vmem:[#allocation141_spill] sm:$0xff] %v9468_v21  ;;  %v9480_v3 = vld [vmem:[%s12008_s5 + $0x60] sm:$0xff] }
 0x549   :  { %2303 = vmatpush.msra.mxu0 %v9462_v27  ;;  %13275 = vst [vmem:[#allocation142_spill] sm:$0xff] %v9474_v24  ;;  %v9486_v27 = vld [vmem:[%s12005_s2 + $0xb8] sm:$0xff] }
 0x54a   :  { %2397 = vmatpush.msra.mxu2 %v9468_v21  ;;  %13276 = vst [vmem:[#allocation143_spill] sm:$0xff] %v9480_v3  ;;  %v9492_v21 = vld [vmem:[%s12008_s5 + $0x48] sm:$0xff] }
 0x54b   :  { %2304 = vmatpush.msra.mxu0 %v9474_v24  ;;  %13277 = vst [vmem:[#allocation144_spill] sm:$0xff] %v9486_v27  ;;  %v9498_v24 = vld [vmem:[%s12005_s2 + $0x88] sm:$0xff] }
 0x54c   :  { %2398 = vmatpush.msra.mxu2 %v9480_v3  ;;  %13278 = vst [vmem:[#allocation145_spill] sm:$0xff] %v9492_v21  ;;  %v9504_v3 = vld [vmem:[%s12008_s5 + $0x30] sm:$0xff] }
 0x54d   :  { %2305 = vmatpush.msra.mxu0 %v9486_v27  ;;  %13279 = vst [vmem:[#allocation146_spill] sm:$0xff] %v9498_v24  ;;  %v9510_v27 = vld [vmem:[%s12005_s2 + $0x58] sm:$0xff] }
 0x54e   :  { %2399 = vmatpush.msra.mxu2 %v9492_v21  ;;  %13280 = vst [vmem:[#allocation147_spill] sm:$0xff] %v9504_v3  ;;  %v9516_v21 = vld [vmem:[%s12008_s5 + $0x18] sm:$0xff] }
 0x54f   :  { %2306 = vmatpush.msra.mxu0 %v9498_v24  ;;  %13281 = vst [vmem:[#allocation148_spill] sm:$0xff] %v9510_v27  ;;  %v9522_v24 = vld [vmem:[%s12005_s2 + $0x28] sm:$0xff] }
 0x550   :  { %2400 = vmatpush.msra.mxu2 %v9504_v3  ;;  %13282 = vst [vmem:[#allocation149_spill] sm:$0xff] %v9516_v21  ;;  %v9547_v3 = vld [vmem:[%s12008_s5 + $0x160] sm:$0xff] }
 0x551   :  { %2307 = vmatpush.msra.mxu0 %v9510_v27  ;;  %13283 = vst [vmem:[#allocation150_spill] sm:$0xff] %v9522_v24  ;;  %v9529_v27 = vld [vmem:[%s12008_s5] sm:$0xff] }
 0x552   :  { %2401 = vmatpush.msra.mxu2 %v9516_v21  ;;  %13284 = vst [vmem:[#allocation151_spill] sm:$0xff] %v9529_v27  ;;  %v9535_v21 = vld [vmem:[%s12008_s5 + $0x178] sm:$0xff] }
 0x553   :  { %2308 = vmatpush.msra.mxu0 %v9522_v24  ;;  %13285 = vst [vmem:[#allocation152_spill] sm:$0xff] %v9535_v21  ;;  %v9541_v24 = vld [vmem:[%s12005_s2 + $0x5d0] sm:$0xff] }
 0x554   :  { %2309 = vmatmul.f32.vlgmr.msra.gmra.mxu0 %v9060_v5  ;;  %2402 = vmatpush.msra.mxu2 %v9529_v27  ;;  %13286 = vst [vmem:[#allocation153_spill] sm:$0xff] %v9541_v24  ;;  %v9553_v27 = vld [vmem:[%s12005_s2 + $0x5a0] sm:$0xff] }
 0x555   :  { %2427 = vmatpush.msrb.mxu0 %v9535_v21  ;;  %13287 = vst [vmem:[#allocation154_spill] sm:$0xff] %v9547_v3  ;;  %v9559_v21 = vld [vmem:[%s12008_s5 + $0x148] sm:$0xff] }
 0x556   :  { %2515 = vmatpush.msrb.mxu2 %v9541_v24  ;;  %13288 = vst [vmem:[#allocation155_spill] sm:$0xff] %v9553_v27  ;;  %v9565_v24 = vld [vmem:[%s12005_s2 + $0x570] sm:$0xff] }
 0x557   :  { %2428 = vmatpush.msrb.mxu0 %v9547_v3  ;;  %13289 = vst [vmem:[#allocation156_spill] sm:$0xff] %v9559_v21  ;;  %v9571_v3 = vld [vmem:[%s12008_s5 + $0x130] sm:$0xff] }
 0x558   :  { %2516 = vmatpush.msrb.mxu2 %v9553_v27  ;;  %13290 = vst [vmem:[#allocation157_spill] sm:$0xff] %v9565_v24  ;;  %v9577_v27 = vld [vmem:[%s12005_s2 + $0x540] sm:$0xff] }
 0x559   :  { %2429 = vmatpush.msrb.mxu0 %v9559_v21  ;;  %13291 = vst [vmem:[#allocation158_spill] sm:$0xff] %v9571_v3  ;;  %v9583_v21 = vld [vmem:[%s12008_s5 + $0x118] sm:$0xff] }
 0x55a   :  { %2517 = vmatpush.msrb.mxu2 %v9565_v24  ;;  %13292 = vst [vmem:[#allocation159_spill] sm:$0xff] %v9577_v27  ;;  %v9589_v24 = vld [vmem:[%s12005_s2 + $0x510] sm:$0xff] }
 0x55b   :  { %2430 = vmatpush.msrb.mxu0 %v9571_v3  ;;  %13293 = vst [vmem:[#allocation160_spill] sm:$0xff] %v9583_v21  ;;  %v9595_v3 = vld [vmem:[%s12008_s5 + $0x100] sm:$0xff] }
 0x55c   :  { %2518 = vmatpush.msrb.mxu2 %v9577_v27  ;;  %13294 = vst [vmem:[#allocation161_spill] sm:$0xff] %v9589_v24  ;;  %v9601_v27 = vld [vmem:[%s12005_s2 + $0x4e0] sm:$0xff] }
 0x55d   :  { %2431 = vmatpush.msrb.mxu0 %v9583_v21  ;;  %13295 = vst [vmem:[#allocation162_spill] sm:$0xff] %v9595_v3  ;;  %v9607_v21 = vld [vmem:[%s12008_s5 + $0xe8] sm:$0xff] }
 0x55e   :  { %2519 = vmatpush.msrb.mxu2 %v9589_v24  ;;  %13296 = vst [vmem:[#allocation163_spill] sm:$0xff] %v9601_v27  ;;  %v9613_v24 = vld [vmem:[%s12005_s2 + $0x4b0] sm:$0xff] }
 0x55f   :  { %2432 = vmatpush.msrb.mxu0 %v9595_v3  ;;  %13297 = vst [vmem:[#allocation164_spill] sm:$0xff] %v9607_v21  ;;  %v9619_v3 = vld [vmem:[%s12008_s5 + $0xd0] sm:$0xff] }
 0x560   :  { %2520 = vmatpush.msrb.mxu2 %v9601_v27  ;;  %13298 = vst [vmem:[#allocation165_spill] sm:$0xff] %v9613_v24  ;;  %v9625_v27 = vld [vmem:[%s12005_s2 + $0x480] sm:$0xff] }
 0x561   :  { %2433 = vmatpush.msrb.mxu0 %v9607_v21  ;;  %13299 = vst [vmem:[#allocation166_spill] sm:$0xff] %v9619_v3  ;;  %v9631_v21 = vld [vmem:[%s12008_s5 + $0xb8] sm:$0xff] }
 0x562   :  { %2521 = vmatpush.msrb.mxu2 %v9613_v24  ;;  %13300 = vst [vmem:[#allocation167_spill] sm:$0xff] %v9625_v27  ;;  %v9637_v24 = vld [vmem:[%s12005_s2 + $0x450] sm:$0xff] }
 0x563   :  { %2434 = vmatpush.msrb.mxu0 %v9619_v3  ;;  %13301 = vst [vmem:[#allocation168_spill] sm:$0xff] %v9631_v21  ;;  %v9643_v3 = vld [vmem:[%s12008_s5 + $0xa0] sm:$0xff] }
 0x564   :  { %2522 = vmatpush.msrb.mxu2 %v9625_v27  ;;  %13302 = vst [vmem:[#allocation169_spill] sm:$0xff] %v9637_v24  ;;  %v9649_v27 = vld [vmem:[%s12005_s2 + $0x420] sm:$0xff] }
 0x565   :  { %2435 = vmatpush.msrb.mxu0 %v9631_v21  ;;  %13303 = vst [vmem:[#allocation170_spill] sm:$0xff] %v9643_v3  ;;  %v9655_v21 = vld [vmem:[%s12008_s5 + $0x88] sm:$0xff] }
 0x566   :  { %2523 = vmatpush.msrb.mxu2 %v9637_v24  ;;  %13304 = vst [vmem:[#allocation171_spill] sm:$0xff] %v9649_v27  ;;  %v9661_v24 = vld [vmem:[%s12005_s2 + $0x3f0] sm:$0xff] }
 0x567   :  { %2436 = vmatpush.msrb.mxu0 %v9643_v3  ;;  %13305 = vst [vmem:[#allocation172_spill] sm:$0xff] %v9655_v21  ;;  %v9667_v3 = vld [vmem:[%s12008_s5 + $0x70] sm:$0xff] }
 0x568   :  { %2524 = vmatpush.msrb.mxu2 %v9649_v27  ;;  %13306 = vst [vmem:[#allocation173_spill] sm:$0xff] %v9661_v24  ;;  %v9673_v27 = vld [vmem:[%s12005_s2 + $0x3c0] sm:$0xff] }
 0x569   :  { %2437 = vmatpush.msrb.mxu0 %v9655_v21  ;;  %13307 = vst [vmem:[#allocation174_spill] sm:$0xff] %v9667_v3  ;;  %v9679_v21 = vld [vmem:[%s12008_s5 + $0x58] sm:$0xff] }
 0x56a   :  { %2525 = vmatpush.msrb.mxu2 %v9661_v24  ;;  %13308 = vst [vmem:[#allocation175_spill] sm:$0xff] %v9673_v27  ;;  %v9685_v24 = vld [vmem:[%s12005_s2 + $0x390] sm:$0xff] }
 0x56b   :  { %2438 = vmatpush.msrb.mxu0 %v9667_v3  ;;  %13309 = vst [vmem:[#allocation176_spill] sm:$0xff] %v9679_v21  ;;  %v9691_v3 = vld [vmem:[%s12008_s5 + $0x40] sm:$0xff] }
 0x56c   :  { %2526 = vmatpush.msrb.mxu2 %v9673_v27  ;;  %13310 = vst [vmem:[#allocation177_spill] sm:$0xff] %v9685_v24  ;;  %v9697_v27 = vld [vmem:[%s12005_s2 + $0x360] sm:$0xff] }
 0x56d   :  { %2439 = vmatpush.msrb.mxu0 %v9679_v21  ;;  %13311 = vst [vmem:[#allocation178_spill] sm:$0xff] %v9691_v3  ;;  %v9703_v21 = vld [vmem:[%s12008_s5 + $0x28] sm:$0xff] }
 0x56e   :  { %2527 = vmatpush.msrb.mxu2 %v9685_v24  ;;  %13312 = vst [vmem:[#allocation179_spill] sm:$0xff] %v9697_v27  ;;  %v9709_v24 = vld [vmem:[%s12005_s2 + $0x330] sm:$0xff] }
 0x56f   :  { %2440 = vmatpush.msrb.mxu0 %v9691_v3  ;;  %13313 = vst [vmem:[#allocation180_spill] sm:$0xff] %v9703_v21  ;;  %v9715_v3 = vld [vmem:[%s12008_s5 + $0x10] sm:$0xff] }
 0x570   :  { %2528 = vmatpush.msrb.mxu2 %v9697_v27  ;;  %13314 = vst [vmem:[#allocation181_spill] sm:$0xff] %v9709_v24  ;;  %v9721_v27 = vld [vmem:[%s12005_s2 + $0x300] sm:$0xff] }
 0x571   :  { %2441 = vmatpush.msrb.mxu0 %v9703_v21  ;;  %13315 = vst [vmem:[#allocation182_spill] sm:$0xff] %v9715_v3  ;;  %v9727_v21 = vld [vmem:[%s12005_s2 + $0x5d8] sm:$0xff] }
 0x572   :  { %2529 = vmatpush.msrb.mxu2 %v9709_v24  ;;  %13316 = vst [vmem:[#allocation183_spill] sm:$0xff] %v9721_v27  ;;  %v9733_v24 = vld [vmem:[%s12005_s2 + $0x5a8] sm:$0xff] }
 0x573   :  { %2442 = vmatpush.msrb.mxu0 %v9715_v3  ;;  %13317 = vst [vmem:[#allocation184_spill] sm:$0xff] %v9727_v21  ;;  %v9739_v3 = vld [vmem:[%s12005_s2 + $0x578] sm:$0xff] }
 0x574   :  { %2530 = vmatpush.msrb.mxu2 %v9721_v27  ;;  %13318 = vst [vmem:[#allocation185_spill] sm:$0xff] %v9733_v24  ;;  %v9745_v27 = vld [vmem:[%s12005_s2 + $0x548] sm:$0xff] }
 0x575   :  { %2555 = vmatpush.msra.mxu0 %v9727_v21  ;;  %13319 = vst [vmem:[#allocation186_spill] sm:$0xff] %v9739_v3  ;;  %v9751_v21 = vld [vmem:[%s12005_s2 + $0x518] sm:$0xff] }
 0x576   :  { %13320 = vst [vmem:[#allocation187_spill] sm:$0xff] %v9745_v27 }
 0x577   :  { %2556 = vmatpush.msra.mxu0 %v9733_v24  ;;  %13321 = vst [vmem:[#allocation188_spill] sm:$0xff] %v9751_v21  ;;  %v9757_v24 = vld [vmem:[%s12005_s2 + $0x4e8] sm:$0xff] }
 0x578   :  { %13322 = vst [vmem:[#allocation189_spill] sm:$0xff] %v9757_v24 }
 0x579   :  { %2557 = vmatpush.msra.mxu0 %v9739_v3  ;;  %v9763_v3 = vld [vmem:[%s12005_s2 + $0x4b8] sm:$0xff]  ;;  %13327 = vst [vmem:[#allocation194_spill] sm:$0xff] %v9787_v22 }
 0x57a   :  { %13323 = vst [vmem:[#allocation190_spill] sm:$0xff] %v9763_v3 }
 0x57b   :  { %2558 = vmatpush.msra.mxu0 %v9745_v27  ;;  %v9769_v27 = vld [vmem:[%s12005_s2 + $0x488] sm:$0xff]  ;;  %13330 = vst [vmem:[#allocation197_spill] sm:$0xff] %v9805_v12 }
 0x57c   :  { %13324 = vst [vmem:[#allocation191_spill] sm:$0xff] %v9769_v27 }
 0x57d   :  { %2559 = vmatpush.msra.mxu0 %v9751_v21  ;;  %v9775_v21 = vld [vmem:[%s12005_s2 + $0x458] sm:$0xff] }
 0x57e   :  { %13325 = vst [vmem:[#allocation192_spill] sm:$0xff] %v9775_v21 }
 0x57f   :  { %2560 = vmatpush.msra.mxu0 %v9757_v24  ;;  %v9781_v24 = vld [vmem:[%s12005_s2 + $0x428] sm:$0xff] }
 0x580   :  { %13326 = vst [vmem:[#allocation193_spill] sm:$0xff] %v9781_v24 }
 0x581   :  { %2561 = vmatpush.msra.mxu0 %v9763_v3  ;;  %v1888_v3 = vpop.f32.mrf.mxu0 }
 0x583   :  { %2562 = vmatpush.msra.mxu0 %v9769_v27  ;;  %v9793_v27 = vld [vmem:[%s12005_s2 + $0x3c8] sm:$0xff] }
 0x584   :  { %13328 = vst [vmem:[#allocation195_spill] sm:$0xff] %v9793_v27 }
 0x585   :  { %2563 = vmatpush.msra.mxu0 %v9775_v21  ;;  %v9799_v21 = vld [vmem:[%s12005_s2 + $0x398] sm:$0xff] }
 0x586   :  { %13329 = vst [vmem:[#allocation196_spill] sm:$0xff] %v9799_v21 }
 0x587   :  { %2564 = vmatpush.msra.mxu0 %v9781_v24  ;;  %v1868_v24 = vpop.f32.mrf.mxu3 }
 0x588   :  { %v1889_v58 = vadd.f32 %v1888_v3, %v1868_v24 }
 0x589   :  { %2565 = vmatpush.msra.mxu0 %v9787_v22 }
 0x58b   :  { %2566 = vmatpush.msra.mxu0 %v9793_v27  ;;  %v9811_v27 = vld [vmem:[%s12005_s2 + $0x338] sm:$0xff] }
 0x58c   :  { %13331 = vst [vmem:[#allocation198_spill] sm:$0xff] %v9811_v27 }
 0x58d   :  { %2567 = vmatpush.msra.mxu0 %v9799_v21  ;;  %v9818_v21 = vld [vmem:[%s12005_s2 + $0x308] sm:$0xff] }
 0x58e   :  { %13332 = vst [vmem:[#allocation199_spill] sm:$0xff] %v9818_v21 }
 0x58f   :  { %2568 = vmatpush.msra.mxu0 %v9805_v12  ;;  %v1848_v12 = vpop.f32.mrf.mxu2 }
 0x590   :  { %v2022_v22 = vpop.f32.mrf.mxu0  ;;  %v1849_v29 = vadd.f32 %v1848_v12, %v1828_v32 }
 0x591   :  { %2569 = vmatpush.msra.mxu0 %v9811_v27  ;;  %v2023_v42 = vadd.f32 %v2022_v22, %v13150_v19 }
 0x593   :  { %2570 = vmatpush.msra.mxu0 %v9818_v21  ;;  %v2065_v46 = vadd.f32 %v2023_v42, %v1889_v58  ;;  %v1908_v58 = vpop.f32.mrf.mxu1 }
 0x595   :  { %v3811_v10 = vmul.f32 -1.442695, %v2065_v46 }
 0x596   :  { %v2002_v60 = vpop.f32.mrf.mxu3 }
 0x597   :  { %3903 = vpow2.f32 %v3811_v10  ;;  %v2003_v44 = vadd.f32 %v2002_v60, %v13149_v50  ;;  %v1928_v53 = vpop.f32.mrf.mxu2 }
 0x598   :  { %v1929_v12 = vadd.f32 %v1928_v53, %v1908_v58 }
 0x599   :  { %v2045_v27 = vadd.f32 %v2003_v44, %v1849_v29 }
 0x59b   :  { %v3810_v3 = vmul.f32 -1.442695, %v2045_v27 }
 0x59d   :  { %v3904_v24 = vpop.eup %3903  ;;  %3905 = vpow2.f32 %v3810_v3  ;;  %v2042_v3 = vpop.f32.mrf.mxu1 }
 0x59e   :  { %v2069_v22 = vadd.f32 1.0, %v3904_v24  ;;  %v2085_v24 = vadd.f32 %v8473_v57, %v1929_v12 }
 0x5a0   :  { %3907 = vrcp.f32 %v2069_v22  ;;  %vm2075_vm14 = vweird.f32 %v2069_v22  ;;  %v2079_v58 = vand.u32 2147483647, %v2069_v22 }
 0x5a2   :  { %vm2080_vm0 = vcmp.eq.f32.partialorder %v2079_v58, 8.507059e+37  ;;  %v13358_v58 = vld [vmem:[#allocation49_spill] sm:$0xff] }
 0x5a3   :  { %v3906_v19 = vpop.eup %3905 }
 0x5a4   :  { %v2049_v13 = vadd.f32 1.0, %v3906_v19 }
 0x5a6   :  { %3909 = vrcp.f32 %v2049_v13  ;;  %v3908_v25 = vpop.eup %3907  ;;  %v2061_v10 = vand.u32 2147483648, %v2049_v13  ;;  %v2059_v44 = vand.u32 2147483647, %v2049_v13  ;;  %vm2055_vm10 = vweird.f32 %v2049_v13 }
 0x5a7   :  { %v2071_v21 = vmul.f32 %v3908_v25, %v2069_v22  ;;  %vm2076_vm13 = vweird.f32 %v3908_v25 }
 0x5a8   :  { %v2062_v19 = vor.u32 1.1754944e-38, %v2061_v10  ;;  %vm2060_vm12 = vcmp.eq.f32.partialorder %v2059_v44, 8.507059e+37  ;;  %vm2077_vm15 = vmor %vm2075_vm14, %vm2076_vm13 }
 0x5a9   :  { %v2072_v34 = vsub.f32 1.0, %v2071_v21  ;;  %v2081_v21 = vand.u32 2147483648, %v2069_v22  ;;  %v13349_v22 = vld [vmem:[#allocation35_spill] sm:$0xff] }
 0x5ab   :  { %v2073_v29 = vmul.f32 %v3908_v25, %v2072_v34 }
 0x5ac   :  { %v3910_v42 = vpop.eup %3909 }
 0x5ad   :  { %v2051_v46 = vmul.f32 %v3910_v42, %v2049_v13  ;;  %vm2056_vm9 = vweird.f32 %v3910_v42  ;;  %v2074_v20 = vadd.f32 %v3908_v25, %v2073_v29  ;;  %v2082_v13 = vor.u32 1.1754944e-38, %v2081_v21  ;;  %v13350_v29 = vld [vmem:[#allocation69_spill] sm:$0xff] }
 0x5ae   :  { %vm2057_vm11 = vmor %vm2055_vm10, %vm2056_vm9  ;;  %v13355_v21 = vld [vmem:[#allocation45_spill] sm:$0xff] }
 0x5af   :  { %v2052_v32 = vsub.f32 1.0, %v2051_v46  ;;  %v2043_v46 = vadd.f32 %v2042_v3, %v6720_v31  ;;  %v13352_v3 = vld [vmem:[#allocation39_spill] sm:$0xff] }
 0x5b1   :  { %v2053_v60 = vmul.f32 %v3910_v42, %v2052_v32  ;;  %v2078_v32 = vsel %vm2077_vm15, %v3908_v25, %v2074_v20  ;;  %v13347_v20 = vld [vmem:[#allocation34_spill] sm:$0xff] }
 0x5b2   :  { %v2083_v10 = vsel %vm2080_vm0, %v2082_v13, %v2078_v32  ;;  %v13348_v25 = vld [vmem:[#allocation66_spill] sm:$0xff]  ;;  %v13360_v32 = vld [vmem:[#allocation53_spill] sm:$0xff]  ;;  %v13361_v13 = vld [vmem:[#allocation55_spill] sm:$0xff] }
 0x5b3   :  { %v2054_v27 = vadd.f32 %v3910_v42, %v2053_v60  ;;  %v2089_v60 = vsub.f32 1.0, %v2083_v10 }
 0x5b5   :  { %v2058_v50 = vsel %vm2057_vm11, %v3910_v42, %v2054_v27  ;;  %v2091_v42 = vmul.f32 %v2083_v10, %v8478_v23  ;;  %v13334_v23 = vld [vmem:[#allocation23_spill] sm:$0xff]  ;;  %v13351_v27 = vld [vmem:[#allocation38_spill] sm:$0xff] }
 0x5b6   :  { %v2063_v40 = vsel %vm2060_vm12, %v2062_v19, %v2058_v50  ;;  %v13333_v50 = vld [vmem:[#allocation7_spill] sm:$0xff]  ;;  %v13353_v19 = vld [vmem:[#allocation41_spill] sm:$0xff]  ;;  %v13362_v10 = vld [vmem:[#allocation58_spill] sm:$0xff] }
 0x5b7   :  { %v2086_v53 = vmul.f32 %v2085_v24, %v2063_v40  ;;  %v13346_v40 = vld [vmem:[#allocation64_spill] sm:$0xff]  ;;  %v13354_v24 = vld [vmem:[#allocation42_spill] sm:$0xff] }
 0x5b9   :  { %v2087_v34 = vadd.f32 %v2086_v53, %v2043_v46  ;;  %v13356_v46 = vld [vmem:[#allocation46_spill] sm:$0xff]  ;;  %v13357_v53 = vld [vmem:[#allocation47_spill] sm:$0xff] }
 0x5bb   :  { %3911 = vtanh.f32 %v2087_v34  ;;  %v13359_v34 = vld [vmem:[#allocation52_spill] sm:$0xff] }
 0x5c1   :  { %v3912_v57 = vpop.eup %3911 }
 0x5c2   :  { %v2090_v12 = vmul.f32 %v3912_v57, %v2089_v60  ;;  %v13363_v60 = vld [vmem:[#allocation63_spill] sm:$0xff]  ;;  %v13364_v57 = vld [vmem:[#allocation65_spill] sm:$0xff] }
 0x5c4   :  { %v9825_v44 = vadd.f32 %v2091_v42, %v2090_v12  ;;  %v13365_v42 = vld [vmem:[#allocation67_spill] sm:$0xff]  ;;  %v13366_v12 = vld [vmem:[#allocation73_spill] sm:$0xff] }
 0x5c6   :  { %2129 = vmatmul.f32.vlgmr.msra.gmra.mxu3 %v9825_v44  ;;  %2169 = vmatmul.f32.vlgmr.msra.gmra.mxu1 %v9825_v44 }
 0x5c7   :  { %2273 = vmatpush.msra.mxu3 %v8485_v30  ;;  %2313 = vmatpush.msra.mxu1 %v8491_v41  ;;  %v13335_v30 = vld [vmem:[#allocation8_spill] sm:$0xff]  ;;  %v13336_v41 = vld [vmem:[#allocation26_spill] sm:$0xff] }
 0x5c9   :  { %2274 = vmatpush.msra.mxu3 %v8497_v2  ;;  %2314 = vmatpush.msra.mxu1 %v8503_v54  ;;  %v13337_v2 = vld [vmem:[#allocation9_spill] sm:$0xff]  ;;  %v13338_v54 = vld [vmem:[#allocation27_spill] sm:$0xff] }
 0x5cb   :  { %2275 = vmatpush.msra.mxu3 %v8509_v63  ;;  %2315 = vmatpush.msra.mxu1 %v8515_v45  ;;  %v13339_v63 = vld [vmem:[#allocation10_spill] sm:$0xff]  ;;  %v13340_v45 = vld [vmem:[#allocation28_spill] sm:$0xff] }
 0x5cd   :  { %2276 = vmatpush.msra.mxu3 %v8521_v11  ;;  %2316 = vmatpush.msra.mxu1 %v8527_v9  ;;  %v13341_v11 = vld [vmem:[#allocation11_spill] sm:$0xff]  ;;  %v13342_v9 = vld [vmem:[#allocation57_spill] sm:$0xff] }
 0x5ce   :  { %2209 = vmatmul.f32.vlgmr.msrb.gmra.mxu3 %v9825_v44  ;;  %2249 = vmatmul.f32.vlgmr.msrb.gmra.mxu1 %v9825_v44 }
 0x5cf   :  { %2277 = vmatpush.msra.mxu3 %v8535_v38  ;;  %2317 = vmatpush.msra.mxu1 %v8541_v7  ;;  %v13343_v38 = vld [vmem:[#allocation31_spill] sm:$0xff]  ;;  %v13344_v7 = vld [vmem:[#allocation61_spill] sm:$0xff] }
 0x5d1   :  { %2278 = vmatpush.msra.mxu3 %v8547_v18  ;;  %2318 = vmatpush.msra.mxu1 %v13333_v50  ;;  %v13345_v18 = vld [vmem:[#allocation33_spill] sm:$0xff]  ;;  %v13367_v50 = vld [vmem:[#allocation74_spill] sm:$0xff] }
 0x5d3   :  { %2279 = vmatpush.msra.mxu3 %v13334_v23  ;;  %2319 = vmatpush.msra.mxu1 %v13335_v30  ;;  %v13368_v23 = vld [vmem:[#allocation76_spill] sm:$0xff]  ;;  %v13369_v30 = vld [vmem:[#allocation77_spill] sm:$0xff] }
 0x5d5   :  { %2280 = vmatpush.msra.mxu3 %v13336_v41  ;;  %2320 = vmatpush.msra.mxu1 %v13337_v2  ;;  %v13370_v41 = vld [vmem:[#allocation78_spill] sm:$0xff]  ;;  %v13371_v2 = vld [vmem:[#allocation79_spill] sm:$0xff] }
 0x5d7   :  { %2281 = vmatpush.msra.mxu3 %v13338_v54  ;;  %2321 = vmatpush.msra.mxu1 %v13339_v63  ;;  %v13372_v54 = vld [vmem:[#allocation81_spill] sm:$0xff]  ;;  %v13373_v63 = vld [vmem:[#allocation83_spill] sm:$0xff] }
 0x5d9   :  { %2282 = vmatpush.msra.mxu3 %v13340_v45  ;;  %2322 = vmatpush.msra.mxu1 %v13341_v11  ;;  %v13374_v45 = vld [vmem:[#allocation84_spill] sm:$0xff]  ;;  %v13375_v11 = vld [vmem:[#allocation85_spill] sm:$0xff] }
 0x5db   :  { %2283 = vmatpush.msra.mxu3 %v13342_v9  ;;  %2323 = vmatpush.msra.mxu1 %v13343_v38  ;;  %v13376_v9 = vld [vmem:[#allocation86_spill] sm:$0xff] }
 0x5dc   :  { %v13377_v38 = vld [vmem:[#allocation54_spill] sm:$0xff] }
 0x5dd   :  { %2284 = vmatpush.msra.mxu3 %v13344_v7  ;;  %2324 = vmatpush.msra.mxu1 %v13345_v18  ;;  %v13378_v7 = vld [vmem:[#allocation56_spill] sm:$0xff]  ;;  %v13379_v18 = vld [vmem:[#allocation87_spill] sm:$0xff] }
 0x5df   :  { %2285 = vmatpush.msra.mxu3 %v13346_v40  ;;  %2325 = vmatpush.msra.mxu1 %v13347_v20  ;;  %v13380_v40 = vld [vmem:[#allocation88_spill] sm:$0xff]  ;;  %v13381_v20 = vld [vmem:[#allocation89_spill] sm:$0xff] }
 0x5e1   :  { %2286 = vmatpush.msra.mxu3 %v13348_v25  ;;  %2326 = vmatpush.msra.mxu1 %v13349_v22  ;;  %v9896_v25 = vld [vmem:[%s12008_s5 + $0x20] sm:$0xff]  ;;  %v13382_v22 = vld [vmem:[#allocation90_spill] sm:$0xff] }
 0x5e3   :  { %2287 = vmatpush.msra.mxu3 %v13350_v29  ;;  %2327 = vmatpush.msra.mxu1 %v13351_v27  ;;  %v9903_v29 = vld [vmem:[%s12008_s5 + $0x8] sm:$0xff]  ;;  %v13383_v27 = vld [vmem:[#allocation91_spill] sm:$0xff] }
 0x5e5   :  { %2288 = vmatpush.msra.mxu3 %v13352_v3  ;;  %2328 = vmatpush.msra.mxu1 %v13353_v19  ;;  %v13384_v3 = vld [vmem:[#allocation92_spill] sm:$0xff]  ;;  %v13385_v19 = vld [vmem:[#allocation93_spill] sm:$0xff] }
 0x5e6   :  { %2289 = vmatmul.f32.vlgmr.msra.gmra.mxu3 %v9825_v44  ;;  %2329 = vmatmul.f32.vlgmr.msra.gmra.mxu1 %v9825_v44 }
 0x5e7   :  { %2407 = vmatpush.msrb.mxu3 %v13354_v24  ;;  %2495 = vmatpush.msrb.mxu1 %v13355_v21  ;;  %v13386_v24 = vld [vmem:[#allocation94_spill] sm:$0xff]  ;;  %v13387_v21 = vld [vmem:[#allocation95_spill] sm:$0xff] }
 0x5e9   :  { %2408 = vmatpush.msrb.mxu3 %v13356_v46  ;;  %2496 = vmatpush.msrb.mxu1 %v13357_v53  ;;  %v13388_v46 = vld [vmem:[#allocation96_spill] sm:$0xff]  ;;  %v13389_v53 = vld [vmem:[#allocation97_spill] sm:$0xff] }
 0x5eb   :  { %2409 = vmatpush.msrb.mxu3 %v13358_v58  ;;  %2497 = vmatpush.msrb.mxu1 %v13359_v34  ;;  %v13390_v58 = vld [vmem:[#allocation98_spill] sm:$0xff]  ;;  %v13391_v34 = vld [vmem:[#allocation99_spill] sm:$0xff] }
 0x5ed   :  { %2410 = vmatpush.msrb.mxu3 %v13360_v32  ;;  %2498 = vmatpush.msrb.mxu1 %v13361_v13  ;;  %v13392_v32 = vld [vmem:[#allocation100_spill] sm:$0xff]  ;;  %v13393_v13 = vld [vmem:[#allocation101_spill] sm:$0xff] }
 0x5ef   :  { %2411 = vmatpush.msrb.mxu3 %v13362_v10  ;;  %2499 = vmatpush.msrb.mxu1 %v13363_v60  ;;  %v13394_v10 = vld [vmem:[#allocation102_spill] sm:$0xff]  ;;  %v13395_v60 = vld [vmem:[#allocation103_spill] sm:$0xff] }
 0x5f1   :  { %2412 = vmatpush.msrb.mxu3 %v13364_v57  ;;  %2500 = vmatpush.msrb.mxu1 %v13365_v42  ;;  %v13396_v57 = vld [vmem:[#allocation104_spill] sm:$0xff]  ;;  %v13397_v42 = vld [vmem:[#allocation105_spill] sm:$0xff] }
 0x5f3   :  { %2413 = vmatpush.msrb.mxu3 %v13366_v12  ;;  %2501 = vmatpush.msrb.mxu1 %v13367_v50  ;;  %v13398_v12 = vld [vmem:[#allocation106_spill] sm:$0xff]  ;;  %v13399_v50 = vld [vmem:[#allocation107_spill] sm:$0xff] }
 0x5f5   :  { %2414 = vmatpush.msrb.mxu3 %v13368_v23  ;;  %2502 = vmatpush.msrb.mxu1 %v13369_v30  ;;  %v13400_v23 = vld [vmem:[#allocation108_spill] sm:$0xff]  ;;  %v13401_v30 = vld [vmem:[#allocation109_spill] sm:$0xff] }
 0x5f7   :  { %2415 = vmatpush.msrb.mxu3 %v13370_v41  ;;  %2503 = vmatpush.msrb.mxu1 %v13371_v2  ;;  %v13402_v41 = vld [vmem:[#allocation110_spill] sm:$0xff]  ;;  %v13403_v2 = vld [vmem:[#allocation111_spill] sm:$0xff] }
 0x5f9   :  { %2416 = vmatpush.msrb.mxu3 %v13372_v54  ;;  %2504 = vmatpush.msrb.mxu1 %v13373_v63  ;;  %v13404_v54 = vld [vmem:[#allocation112_spill] sm:$0xff] }
 0x5fa   :  { %v13405_v63 = vld [vmem:[#allocation24_spill] sm:$0xff] }
 0x5fb   :  { %2417 = vmatpush.msrb.mxu3 %v13374_v45  ;;  %2505 = vmatpush.msrb.mxu1 %v13375_v11  ;;  %v13406_v45 = vld [vmem:[#allocation25_spill] sm:$0xff]  ;;  %v13407_v11 = vld [vmem:[#allocation40_spill] sm:$0xff] }
 0x5fd   :  { %2418 = vmatpush.msrb.mxu3 %v13376_v9  ;;  %2506 = vmatpush.msrb.mxu1 %v13377_v38  ;;  %v13408_v9 = vld [vmem:[#allocation19_spill] sm:$0xff]  ;;  %v13409_v38 = vld [vmem:[#allocation18_spill] sm:$0xff] }
 0x5ff   :  { %2419 = vmatpush.msrb.mxu3 %v13378_v7  ;;  %2507 = vmatpush.msrb.mxu1 %v13379_v18  ;;  %v13410_v7 = vld [vmem:[#allocation80_spill] sm:$0xff]  ;;  %v13411_v18 = vld [vmem:[#allocation82_spill] sm:$0xff] }
 0x601   :  { %2420 = vmatpush.msrb.mxu3 %v13380_v40  ;;  %2508 = vmatpush.msrb.mxu1 %v13381_v20  ;;  %v13412_v40 = vld [vmem:[#allocation32_spill] sm:$0xff] }
 0x602   :  { %v13413_v20 = vld [vmem:[#allocation12_spill] sm:$0xff] }
 0x603   :  { %2421 = vmatpush.msrb.mxu3 %v9896_v25  ;;  %2509 = vmatpush.msrb.mxu1 %v13382_v22  ;;  %v13414_v22 = vld [vmem:[#allocation13_spill] sm:$0xff] }
 0x605   :  { %2422 = vmatpush.msrb.mxu3 %v9903_v29  ;;  %2510 = vmatpush.msrb.mxu1 %v13383_v27  ;;  %v13415_v27 = vld [vmem:[#allocation14_spill] sm:$0xff] }
 0x607   :  { %2535 = vmatpush.msra.mxu3 %v13384_v3  ;;  %2575 = vmatpush.msra.mxu1 %v13385_v19  ;;  %v2150_v3 = vpop.f32.mrf.mxu0 }
 0x609   :  { %2536 = vmatpush.msra.mxu3 %v13386_v24  ;;  %2576 = vmatpush.msra.mxu1 %v13387_v21  ;;  %v13416_v24 = vld [vmem:[#allocation68_spill] sm:$0xff]  ;;  %v13417_v21 = vld [vmem:[#allocation37_spill] sm:$0xff] }
 0x60b   :  { %2537 = vmatpush.msra.mxu3 %v13388_v46  ;;  %2577 = vmatpush.msra.mxu1 %v13389_v53  ;;  %v153_v46 = vadd.f32 %v13417_v21, %v13416_v24 }
 0x60d   :  { %2538 = vmatpush.msra.mxu3 %v13390_v58  ;;  %2578 = vmatpush.msra.mxu1 %v13391_v34 }
 0x60f   :  { %2539 = vmatpush.msra.mxu3 %v13392_v32  ;;  %2579 = vmatpush.msra.mxu1 %v13393_v13  ;;  %v2110_v32 = vpop.f32.mrf.mxu2 }
 0x611   :  { %2540 = vmatpush.msra.mxu3 %v13394_v10  ;;  %2580 = vmatpush.msra.mxu1 %v13395_v60  ;;  %v13418_v10 = vld [vmem:[#allocation70_spill] sm:$0xff]  ;;  %v13419_v60 = vld [vmem:[#allocation36_spill] sm:$0xff] }
 0x613   :  { %2541 = vmatpush.msra.mxu3 %v13396_v57  ;;  %2581 = vmatpush.msra.mxu1 %v13397_v42  ;;  %v112_v57 = vadd.f32 %v13419_v60, %v13418_v10 }
 0x615   :  { %2542 = vmatpush.msra.mxu3 %v13398_v12  ;;  %2582 = vmatpush.msra.mxu1 %v13399_v50 }
 0x617   :  { %2543 = vmatpush.msra.mxu3 %v13400_v23  ;;  %2583 = vmatpush.msra.mxu1 %v13401_v30 }
 0x619   :  { %2544 = vmatpush.msra.mxu3 %v13402_v41  ;;  %2584 = vmatpush.msra.mxu1 %v13403_v2 }
 0x61b   :  { %2545 = vmatpush.msra.mxu3 %v13404_v54  ;;  %2585 = vmatpush.msra.mxu1 %v13405_v63 }
 0x61d   :  { %2546 = vmatpush.msra.mxu3 %v13406_v45  ;;  %2586 = vmatpush.msra.mxu1 %v13407_v11 }
 0x61f   :  { %2547 = vmatpush.msra.mxu3 %v13408_v9  ;;  %2587 = vmatpush.msra.mxu1 %v13409_v38 }
 0x621   :  { %2548 = vmatpush.msra.mxu3 %v13410_v7  ;;  %2588 = vmatpush.msra.mxu1 %v13411_v18  ;;  %v2190_v18 = vpop.f32.mrf.mxu2 }
 0x623   :  { %2549 = vmatpush.msra.mxu3 %v13412_v40  ;;  %2589 = vmatpush.msra.mxu1 %v13413_v20 }
 0x625   :  { %2550 = vmatpush.msra.mxu3 %v13414_v22  ;;  %2590 = vmatpush.msra.mxu1 %v13415_v27 }
 0x643   :  { %v2170_v19 = vpop.f32.mrf.mxu1 }
 0x644   :  { %v2171_v53 = vadd.f32 %v2170_v19, %v2150_v3 }
 0x646   :  { %v2359_v58 = vadd.f32 %v2171_v53, %v153_v46  ;;  %v9946_v53 = vld [vmem:[%s12007_s4] ss:$0 sm:$0xff] }
 0x648   :  { %v3813_v34 = vmul.f32 -1.442695, %v2359_v58 }
 0x649   :  { %v2130_v13 = vpop.f32.mrf.mxu3 }
 0x64a   :  { %3913 = vpow2.f32 %v3813_v34  ;;  %v2131_v42 = vadd.f32 %v2130_v13, %v2110_v32  ;;  %v13420_v13 = vld [vmem:[#allocation60_spill] sm:$0xff] }
 0x64b   :  { %v194_v60 = vadd.f32 %v13420_v13, %v12846_v39  ;;  %v13440_v13 = vld [vmem:[#allocation127_spill] sm:$0xff] }
 0x64c   :  { %v2339_v12 = vadd.f32 %v2131_v42, %v112_v57 }
 0x64e   :  { %v3812_v50 = vmul.f32 -1.442695, %v2339_v12 }
 0x650   :  { %v3914_v23 = vpop.eup %3913  ;;  %3915 = vpow2.f32 %v3812_v50 }
 0x651   :  { %v2363_v30 = vadd.f32 1.0, %v3914_v23  ;;  %v2210_v38 = vpop.f32.mrf.mxu3 }
 0x652   :  { %v2211_v20 = vadd.f32 %v2210_v38, %v2190_v18  ;;  %v10104_v18 = vld [vmem:[%s12005_s2 + $0x370] sm:$0xff] }
 0x653   :  { %3917 = vrcp.f32 %v2363_v30  ;;  %v2375_v57 = vand.u32 2147483648, %v2363_v30  ;;  %vm2369_vm6 = vweird.f32 %v2363_v30  ;;  %v2373_v12 = vand.u32 2147483647, %v2363_v30 }
 0x654   :  { %v2379_v58 = vadd.f32 %v9946_v53, %v2211_v20  ;;  %v13434_v20 = vld [vmem:[#allocation124_spill] sm:$0xff] }
 0x655   :  { %vm2374_vm8 = vcmp.eq.f32.partialorder %v2373_v12, 8.507059e+37  ;;  %v13444_v12 = vld [vmem:[#allocation128_spill] sm:$0xff] }
 0x656   :  { %v3916_v41 = vpop.eup %3915 }
 0x657   :  { %v2343_v2 = vadd.f32 1.0, %v3916_v41  ;;  %v2376_v41 = vor.u32 1.1754944e-38, %v2375_v57  ;;  %v13442_v57 = vld [vmem:[#allocation5_spill] sm:$0xff] }
 0x659   :  { %3919 = vrcp.f32 %v2343_v2  ;;  %v3918_v54 = vpop.eup %3917  ;;  %v2355_v40 = vand.u32 2147483648, %v2343_v2  ;;  %v2353_v27 = vand.u32 2147483647, %v2343_v2  ;;  %vm2349_vm2 = vweird.f32 %v2343_v2 }
 0x65a   :  { %v2365_v63 = vmul.f32 %v3918_v54, %v2363_v30  ;;  %vm2370_vm5 = vweird.f32 %v3918_v54  ;;  %v9963_v30 = vld [vmem:[%s12005_s2 + $0x5e0] sm:$0xff] }
 0x65b   :  { %v2356_v21 = vor.u32 1.1754944e-38, %v2355_v40  ;;  %vm2354_vm4 = vcmp.eq.f32.partialorder %v2353_v27, 8.507059e+37  ;;  %vm2371_vm7 = vmor %vm2369_vm6, %vm2370_vm5  ;;  %v10110_v40 = vld [vmem:[%s12005_s2 + $0x378] sm:$0xff]  ;;  %v13436_v27 = vld [vmem:[#allocation125_spill] sm:$0xff] }
 0x65c   :  { %v2366_v9 = vsub.f32 1.0, %v2365_v63 }
 0x65e   :  { %v2367_v3 = vmul.f32 %v3918_v54, %v2366_v9 }
 0x65f   :  { %v3920_v45 = vpop.eup %3919 }
 0x660   :  { %v2345_v11 = vmul.f32 %v3920_v45, %v2343_v2  ;;  %vm2350_vm1 = vweird.f32 %v3920_v45  ;;  %v2368_v34 = vadd.f32 %v3918_v54, %v2367_v3  ;;  %v10121_v3 = vld [vmem:[%s12005_s2 + $0x340] sm:$0xff] }
 0x661   :  { %vm2351_vm3 = vmor %vm2349_vm2, %vm2350_vm1 }
 0x662   :  { %v2346_v7 = vsub.f32 1.0, %v2345_v11  ;;  %v2372_v23 = vsel %vm2371_vm7, %v3918_v54, %v2368_v34  ;;  %v13432_v54 = vld [vmem:[#allocation16_spill] sm:$0xff]  ;;  %v10141_v34 = vld [vmem:[%s12005_s2 + $0x318] sm:$0xff] }
 0x663   :  { %v2377_v2 = vsel %vm2374_vm8, %v2376_v41, %v2372_v23  ;;  %v13446_v23 = vld [vmem:[#allocation130_spill] sm:$0xff]  ;;  %v13447_v41 = vld [vmem:[#allocation131_spill] sm:$0xff] }
 0x664   :  { %v2347_v22 = vmul.f32 %v3920_v45, %v2346_v7  ;;  %v2383_v63 = vsub.f32 1.0, %v2377_v2  ;;  %v2385_v9 = vmul.f32 %v2377_v2, %v9060_v5  ;;  %v9969_v5 = vld [vmem:[%s12005_s2 + $0x5e8] sm:$0xff]  ;;  %v13433_v7 = vld [vmem:[#allocation123_spill] sm:$0xff] }
 0x665   :  { %v13448_v2 = vld [vmem:[#allocation132_spill] sm:$0xff] }
 0x666   :  { %v2348_v19 = vadd.f32 %v3920_v45, %v2347_v22  ;;  %v13435_v22 = vld [vmem:[#allocation3_spill] sm:$0xff] }
 0x668   :  { %v2352_v46 = vsel %vm2351_vm3, %v3920_v45, %v2348_v19  ;;  %v10127_v19 = vld [vmem:[%s12005_s2 + $0x348] sm:$0xff] }
 0x669   :  { %v2357_v32 = vsel %vm2354_vm4, %v2356_v21, %v2352_v46  ;;  %v13437_v21 = vld [vmem:[#allocation126_spill] sm:$0xff]  ;;  %v13438_v46 = vld [vmem:[#allocation17_spill] sm:$0xff] }
 0x66a   :  { %v2380_v42 = vmul.f32 %v2379_v58, %v2357_v32  ;;  %v10135_v58 = vld [vmem:[%s12005_s2 + $0x310] sm:$0xff]  ;;  %v13439_v32 = vld [vmem:[#allocation4_spill] sm:$0xff] }
 0x66c   :  { %v2381_v50 = vadd.f32 %v2380_v42, %v194_v60  ;;  %v13441_v60 = vld [vmem:[#allocation20_spill] sm:$0xff]  ;;  %v13443_v42 = vld [vmem:[#allocation21_spill] sm:$0xff] }
 0x66e   :  { %3921 = vtanh.f32 %v2381_v50  ;;  %v13445_v50 = vld [vmem:[#allocation129_spill] sm:$0xff] }
 0x674   :  { %v3922_v45 = vpop.eup %3921 }
 0x675   :  { %v2384_v11 = vmul.f32 %v3922_v45, %v2383_v63  ;;  %v13449_v63 = vld [vmem:[#allocation133_spill] sm:$0xff]  ;;  %v13450_v45 = vld [vmem:[#allocation134_spill] sm:$0xff] }
 0x677   :  { %v9952_v38 = vadd.f32 %v2385_v9, %v2384_v11  ;;  %v13451_v11 = vld [vmem:[#allocation135_spill] sm:$0xff]  ;;  %v13452_v9 = vld [vmem:[#allocation136_spill] sm:$0xff] }
 0x679   :  { %2403 = vmatmul.f32.vlgmr.msra.gmra.mxu2 %v9952_v38  ;;  %2423 = vmatmul.f32.vlgmr.msrb.gmra.mxu3 %v9952_v38 }
 0x67a   :  { %2443 = vmatmul.f32.vlgmr.msrb.gmra.mxu0 %v9952_v38  ;;  %2511 = vmatmul.f32.vlgmr.msrb.gmra.mxu1 %v9952_v38 }
 0x67b   :  { %2615 = vmatpush.msrb.mxu3 %v9069_v51  ;;  %2655 = vmatpush.msrb.mxu1 %v9075_v36  ;;  %v9977_v51 = vld [vmem:[%s12005_s2 + $0x5b0] sm:$0xff]  ;;  %v9983_v36 = vld [vmem:[%s12005_s2 + $0x5b8] sm:$0xff] }
 0x67c   :  { %2595 = vmatpush.msra.mxu2 %v9963_v30  ;;  %2635 = vmatpush.msrb.mxu0 %v9969_v5 }
 0x67d   :  { %2616 = vmatpush.msrb.mxu3 %v9083_v1  ;;  %2656 = vmatpush.msrb.mxu1 %v9089_v8  ;;  %v9991_v1 = vld [vmem:[%s12005_s2 + $0x580] sm:$0xff]  ;;  %v9997_v8 = vld [vmem:[%s12005_s2 + $0x588] sm:$0xff] }
 0x67e   :  { %2596 = vmatpush.msra.mxu2 %v9977_v51  ;;  %2636 = vmatpush.msrb.mxu0 %v9983_v36 }
 0x67f   :  { %2617 = vmatpush.msrb.mxu3 %v9097_v37  ;;  %2657 = vmatpush.msrb.mxu1 %v9103_v52  ;;  %v10009_v37 = vld [vmem:[%s12005_s2 + $0x550] sm:$0xff]  ;;  %v10015_v52 = vld [vmem:[%s12005_s2 + $0x558] sm:$0xff] }
 0x680   :  { %2597 = vmatpush.msra.mxu2 %v9991_v1  ;;  %2637 = vmatpush.msrb.mxu0 %v9997_v8 }
 0x681   :  { %2618 = vmatpush.msrb.mxu3 %v9111_v16  ;;  %2658 = vmatpush.msrb.mxu1 %v9117_v61  ;;  %v10023_v16 = vld [vmem:[%s12005_s2 + $0x520] sm:$0xff]  ;;  %v10032_v61 = vld [vmem:[%s12005_s2 + $0x4f0] sm:$0xff] }
 0x682   :  { %2551 = vmatmul.f32.vlgmr.msra.gmra.mxu3 %v9952_v38  ;;  %2591 = vmatmul.f32.vlgmr.msra.gmra.mxu1 %v9952_v38 }
 0x683   :  { %2619 = vmatpush.msrb.mxu3 %v9125_v14  ;;  %2659 = vmatpush.msrb.mxu1 %v9131_v6  ;;  %v10041_v14 = vld [vmem:[%s12005_s2 + $0x4c0] sm:$0xff]  ;;  %v10050_v6 = vld [vmem:[%s12005_s2 + $0x490] sm:$0xff] }
 0x684   :  { %2598 = vmatpush.msra.mxu2 %v10009_v37  ;;  %2638 = vmatpush.msrb.mxu0 %v10015_v52 }
 0x685   :  { %2620 = vmatpush.msrb.mxu3 %v9139_v59  ;;  %2660 = vmatpush.msrb.mxu1 %v9145_v47  ;;  %v10059_v59 = vld [vmem:[%s12005_s2 + $0x460] sm:$0xff] }
 0x686   :  { %2599 = vmatpush.msra.mxu2 %v10023_v16  ;;  %2639 = vmatpush.msrb.mxu0 %v9152_v62  ;;  %v13421_v47 = vld [vmem:[#allocation15_spill] sm:$0xff]  ;;  %v10068_v62 = vld [vmem:[%s12005_s2 + $0x430] sm:$0xff] }
 0x687   :  { %2621 = vmatpush.msrb.mxu3 %v9158_v0  ;;  %2661 = vmatpush.msrb.mxu1 %v9164_v26  ;;  %v13422_v0 = vld [vmem:[#allocation113_spill] sm:$0xff]  ;;  %v13423_v26 = vld [vmem:[#allocation114_spill] sm:$0xff] }
 0x688   :  { %2600 = vmatpush.msra.mxu2 %v10032_v61  ;;  %2640 = vmatpush.msrb.mxu0 %v9171_v49  ;;  %v13424_v49 = vld [vmem:[#allocation115_spill] sm:$0xff] }
 0x689   :  { %2622 = vmatpush.msrb.mxu3 %v9177_v35  ;;  %2662 = vmatpush.msrb.mxu1 %v9183_v4  ;;  %v10077_v35 = vld [vmem:[%s12005_s2 + $0x400] sm:$0xff]  ;;  %v13425_v4 = vld [vmem:[#allocation116_spill] sm:$0xff] }
 0x68a   :  { %2601 = vmatpush.msra.mxu2 %v10041_v14  ;;  %2641 = vmatpush.msrb.mxu0 %v9190_v33  ;;  %v13426_v33 = vld [vmem:[#allocation117_spill] sm:$0xff] }
 0x68b   :  { %2623 = vmatpush.msrb.mxu3 %v9196_v43  ;;  %2663 = vmatpush.msrb.mxu1 %v9202_v48  ;;  %v13427_v43 = vld [vmem:[#allocation118_spill] sm:$0xff]  ;;  %v10086_v48 = vld [vmem:[%s12005_s2 + $0x3d0] sm:$0xff] }
 0x68c   :  { %2602 = vmatpush.msra.mxu2 %v10050_v6  ;;  %2642 = vmatpush.msrb.mxu0 %v9209_v56  ;;  %v13428_v56 = vld [vmem:[#allocation119_spill] sm:$0xff] }
 0x68d   :  { %2624 = vmatpush.msrb.mxu3 %v9215_v15  ;;  %2664 = vmatpush.msrb.mxu1 %v9221_v28  ;;  %v13429_v15 = vld [vmem:[#allocation120_spill] sm:$0xff]  ;;  %v13430_v28 = vld [vmem:[#allocation121_spill] sm:$0xff] }
 0x68e   :  { %2603 = vmatpush.msra.mxu2 %v10059_v59  ;;  %2643 = vmatpush.msrb.mxu0 %v9228_v17  ;;  %v10095_v17 = vld [vmem:[%s12005_s2 + $0x3a0] sm:$0xff] }
 0x68f   :  { %2625 = vmatpush.msrb.mxu3 %v9234_v55  ;;  %2665 = vmatpush.msrb.mxu1 %v13421_v47  ;;  %v13431_v55 = vld [vmem:[#allocation122_spill] sm:$0xff]  ;;  %v13453_v47 = vld [vmem:[#allocation137_spill] sm:$0xff] }
 0x690   :  { %2604 = vmatpush.msra.mxu2 %v10068_v62  ;;  %2644 = vmatpush.msrb.mxu0 %v13422_v0  ;;  %v13454_v0 = vld [vmem:[#allocation138_spill] sm:$0xff] }
 0x691   :  { %2626 = vmatpush.msrb.mxu3 %v13423_v26  ;;  %2666 = vmatpush.msrb.mxu1 %v13424_v49  ;;  %v13455_v26 = vld [vmem:[#allocation139_spill] sm:$0xff]  ;;  %v13456_v49 = vld [vmem:[#allocation140_spill] sm:$0xff] }
 0x692   :  { %2605 = vmatpush.msra.mxu2 %v10077_v35  ;;  %2645 = vmatpush.msrb.mxu0 %v13425_v4  ;;  %v13457_v4 = vld [vmem:[#allocation141_spill] sm:$0xff] }
 0x693   :  { %2627 = vmatpush.msrb.mxu3 %v13426_v33  ;;  %2667 = vmatpush.msrb.mxu1 %v13427_v43  ;;  %v13458_v33 = vld [vmem:[#allocation142_spill] sm:$0xff]  ;;  %v13459_v43 = vld [vmem:[#allocation143_spill] sm:$0xff] }
 0x694   :  { %2606 = vmatpush.msra.mxu2 %v10086_v48  ;;  %2646 = vmatpush.msrb.mxu0 %v13428_v56  ;;  %v13460_v56 = vld [vmem:[#allocation144_spill] sm:$0xff] }
 0x695   :  { %2628 = vmatpush.msrb.mxu3 %v13429_v15  ;;  %2668 = vmatpush.msrb.mxu1 %v13430_v28  ;;  %v13461_v15 = vld [vmem:[#allocation145_spill] sm:$0xff]  ;;  %v13462_v28 = vld [vmem:[#allocation146_spill] sm:$0xff] }
 0x696   :  { %2607 = vmatpush.msra.mxu2 %v10095_v17  ;;  %2647 = vmatpush.msrb.mxu0 %v13431_v55  ;;  %v13463_v55 = vld [vmem:[#allocation147_spill] sm:$0xff] }
 0x697   :  { %2629 = vmatpush.msrb.mxu3 %v13432_v54  ;;  %2669 = vmatpush.msrb.mxu1 %v13433_v7  ;;  %v13464_v54 = vld [vmem:[#allocation148_spill] sm:$0xff]  ;;  %v13465_v7 = vld [vmem:[#allocation149_spill] sm:$0xff] }
 0x698   :  { %2608 = vmatpush.msra.mxu2 %v10104_v18  ;;  %2648 = vmatpush.msrb.mxu0 %v10110_v40 }
 0x699   :  { %2630 = vmatpush.msrb.mxu3 %v13434_v20  ;;  %2670 = vmatpush.msrb.mxu1 %v13435_v22  ;;  %v13466_v20 = vld [vmem:[#allocation150_spill] sm:$0xff]  ;;  %v13467_v22 = vld [vmem:[#allocation151_spill] sm:$0xff] }
 0x69a   :  { %2631 = vmatmul.f32.vlgmr.msrb.gmra.mxu3 %v9952_v38  ;;  %2671 = vmatmul.f32.vlgmr.msrb.gmra.mxu1 %v9952_v38 }
 0x69b   :  { %2695 = vmatpush.msra.mxu3 %v13436_v27  ;;  %2609 = vmatpush.msra.mxu2 %v10121_v3  ;;  %v13468_v27 = vld [vmem:[#allocation152_spill] sm:$0xff] }
 0x69c   :  { %2649 = vmatpush.msrb.mxu0 %v10127_v19  ;;  %2789 = vmatpush.msra.mxu1 %v13437_v21  ;;  %v13469_v21 = vld [vmem:[#allocation153_spill] sm:$0xff] }
 0x69d   :  { %2696 = vmatpush.msra.mxu3 %v13438_v46  ;;  %2610 = vmatpush.msra.mxu2 %v10135_v58  ;;  %v13470_v46 = vld [vmem:[#allocation154_spill] sm:$0xff] }
 0x69e   :  { %2650 = vmatpush.msrb.mxu0 %v10141_v34  ;;  %2790 = vmatpush.msra.mxu1 %v13439_v32  ;;  %v13471_v32 = vld [vmem:[#allocation155_spill] sm:$0xff] }
 0x69f   :  { %2697 = vmatpush.msra.mxu3 %v13440_v13  ;;  %v13472_v13 = vld [vmem:[#allocation156_spill] sm:$0xff] }
 0x6a0   :  { %2791 = vmatpush.msra.mxu1 %v13441_v60  ;;  %v13473_v60 = vld [vmem:[#allocation157_spill] sm:$0xff] }
 0x6a1   :  { %2698 = vmatpush.msra.mxu3 %v13442_v57  ;;  %v13474_v57 = vld [vmem:[#allocation158_spill] sm:$0xff] }
 0x6a2   :  { %2792 = vmatpush.msra.mxu1 %v13443_v42  ;;  %v13475_v42 = vld [vmem:[#allocation159_spill] sm:$0xff] }
 0x6a3   :  { %2699 = vmatpush.msra.mxu3 %v13444_v12  ;;  %v13476_v12 = vld [vmem:[#allocation160_spill] sm:$0xff] }
 0x6a4   :  { %2793 = vmatpush.msra.mxu1 %v13445_v50  ;;  %v13477_v50 = vld [vmem:[#allocation161_spill] sm:$0xff] }
 0x6a5   :  { %2700 = vmatpush.msra.mxu3 %v13446_v23  ;;  %v13478_v23 = vld [vmem:[#allocation162_spill] sm:$0xff] }
 0x6a6   :  { %2794 = vmatpush.msra.mxu1 %v13447_v41  ;;  %v13479_v41 = vld [vmem:[#allocation163_spill] sm:$0xff] }
 0x6a7   :  { %2701 = vmatpush.msra.mxu3 %v13448_v2  ;;  %v13480_v2 = vld [vmem:[#allocation164_spill] sm:$0xff] }
 0x6a8   :  { %2795 = vmatpush.msra.mxu1 %v13449_v63  ;;  %v13481_v63 = vld [vmem:[#allocation165_spill] sm:$0xff] }
 0x6a9   :  { %2702 = vmatpush.msra.mxu3 %v13450_v45  ;;  %v13482_v45 = vld [vmem:[#allocation166_spill] sm:$0xff] }
 0x6aa   :  { %2796 = vmatpush.msra.mxu1 %v13451_v11  ;;  %v13483_v11 = vld [vmem:[#allocation167_spill] sm:$0xff] }
 0x6ab   :  { %2703 = vmatpush.msra.mxu3 %v13452_v9  ;;  %v13484_v9 = vld [vmem:[#allocation168_spill] sm:$0xff] }
 0x6ac   :  { %2797 = vmatpush.msra.mxu1 %v13453_v47  ;;  %v13485_v47 = vld [vmem:[#allocation169_spill] sm:$0xff] }
 0x6ad   :  { %2704 = vmatpush.msra.mxu3 %v13454_v0  ;;  %v13486_v0 = vld [vmem:[#allocation170_spill] sm:$0xff] }
 0x6ae   :  { %2798 = vmatpush.msra.mxu1 %v13455_v26  ;;  %v13487_v26 = vld [vmem:[#allocation171_spill] sm:$0xff] }
 0x6af   :  { %2705 = vmatpush.msra.mxu3 %v13456_v49  ;;  %v13488_v49 = vld [vmem:[#allocation172_spill] sm:$0xff] }
 0x6b0   :  { %2799 = vmatpush.msra.mxu1 %v13457_v4  ;;  %v13489_v4 = vld [vmem:[#allocation173_spill] sm:$0xff] }
 0x6b1   :  { %2706 = vmatpush.msra.mxu3 %v13458_v33  ;;  %v13490_v33 = vld [vmem:[#allocation174_spill] sm:$0xff] }
 0x6b2   :  { %2800 = vmatpush.msra.mxu1 %v13459_v43  ;;  %v13491_v43 = vld [vmem:[#allocation175_spill] sm:$0xff] }
 0x6b3   :  { %2707 = vmatpush.msra.mxu3 %v13460_v56  ;;  %v13492_v56 = vld [vmem:[#allocation176_spill] sm:$0xff] }
 0x6b4   :  { %2801 = vmatpush.msra.mxu1 %v13461_v15  ;;  %v13493_v15 = vld [vmem:[#allocation177_spill] sm:$0xff] }
 0x6b5   :  { %2708 = vmatpush.msra.mxu3 %v13462_v28  ;;  %v13494_v28 = vld [vmem:[#allocation178_spill] sm:$0xff] }
 0x6b6   :  { %2802 = vmatpush.msra.mxu1 %v13463_v55  ;;  %v13495_v55 = vld [vmem:[#allocation179_spill] sm:$0xff] }
 0x6b7   :  { %2709 = vmatpush.msra.mxu3 %v13464_v54  ;;  %v13496_v54 = vld [vmem:[#allocation180_spill] sm:$0xff] }
 0x6b8   :  { %2803 = vmatpush.msra.mxu1 %v13465_v7  ;;  %v13497_v7 = vld [vmem:[#allocation181_spill] sm:$0xff] }
 0x6b9   :  { %2710 = vmatpush.msra.mxu3 %v13466_v20  ;;  %v13498_v20 = vld [vmem:[#allocation182_spill] sm:$0xff] }
 0x6ba   :  { %2711 = vmatmul.f32.vlgmr.msra.gmra.mxu3 %v9952_v38  ;;  %2804 = vmatpush.msra.mxu1 %v13467_v22  ;;  %v13499_v22 = vld [vmem:[#allocation183_spill] sm:$0xff] }
 0x6bb   :  { %2829 = vmatpush.msrb.mxu3 %v13468_v27  ;;  %v13500_v27 = vld [vmem:[#allocation184_spill] sm:$0xff] }
 0x6bc   :  { %2917 = vmatpush.msrb.mxu1 %v13469_v21  ;;  %v13501_v21 = vld [vmem:[#allocation185_spill] sm:$0xff] }
 0x6bd   :  { %2830 = vmatpush.msrb.mxu3 %v13470_v46  ;;  %v13502_v46 = vld [vmem:[#allocation186_spill] sm:$0xff] }
 0x6be   :  { %2918 = vmatpush.msrb.mxu1 %v13471_v32  ;;  %v13503_v32 = vld [vmem:[#allocation187_spill] sm:$0xff] }
 0x6bf   :  { %2831 = vmatpush.msrb.mxu3 %v13472_v13  ;;  %v13504_v13 = vld [vmem:[#allocation188_spill] sm:$0xff] }
 0x6c0   :  { %2919 = vmatpush.msrb.mxu1 %v13473_v60  ;;  %v13505_v60 = vld [vmem:[#allocation189_spill] sm:$0xff] }
 0x6c1   :  { %2832 = vmatpush.msrb.mxu3 %v13474_v57  ;;  %v13506_v57 = vld [vmem:[#allocation190_spill] sm:$0xff] }
 0x6c2   :  { %2920 = vmatpush.msrb.mxu1 %v13475_v42  ;;  %v13507_v42 = vld [vmem:[#allocation191_spill] sm:$0xff] }
 0x6c3   :  { %2833 = vmatpush.msrb.mxu3 %v13476_v12  ;;  %v13508_v12 = vld [vmem:[#allocation192_spill] sm:$0xff] }
 0x6c4   :  { %2921 = vmatpush.msrb.mxu1 %v13477_v50  ;;  %v13509_v50 = vld [vmem:[#allocation193_spill] sm:$0xff] }
 0x6c5   :  { %2834 = vmatpush.msrb.mxu3 %v13478_v23  ;;  %v13510_v23 = vld [vmem:[#allocation194_spill] sm:$0xff] }
 0x6c6   :  { %2922 = vmatpush.msrb.mxu1 %v13479_v41  ;;  %v13511_v41 = vld [vmem:[#allocation195_spill] sm:$0xff] }
 0x6c7   :  { %2835 = vmatpush.msrb.mxu3 %v13480_v2  ;;  %v13512_v2 = vld [vmem:[#allocation196_spill] sm:$0xff] }
 0x6c8   :  { %2923 = vmatpush.msrb.mxu1 %v13481_v63  ;;  %v2270_v63 = vpop.f32.mrf.mxu2 }
 0x6c9   :  { %2836 = vmatpush.msrb.mxu3 %v13482_v45  ;;  %v2290_v45 = vpop.f32.mrf.mxu3 }
 0x6ca   :  { %2924 = vmatpush.msrb.mxu1 %v13483_v11  ;;  %v13513_v11 = vld [vmem:[#allocation197_spill] sm:$0xff] }
 0x6cb   :  { %2837 = vmatpush.msrb.mxu3 %v13484_v9  ;;  %v13514_v9 = vld [vmem:[#allocation198_spill] sm:$0xff] }
 0x6cc   :  { %2925 = vmatpush.msrb.mxu1 %v13485_v47  ;;  %v13515_v47 = vld [vmem:[#allocation199_spill] sm:$0xff] }
 0x6cd   :  { %2838 = vmatpush.msrb.mxu3 %v13486_v0  ;;  %v2250_v0 = vpop.f32.mrf.mxu1 }
 0x6ce   :  { %2926 = vmatpush.msrb.mxu1 %v13487_v26  ;;  %v2230_v26 = vpop.f32.mrf.mxu0 }
 0x6cf   :  { %2839 = vmatpush.msrb.mxu3 %v13488_v49 }
 0x6d0   :  { %2927 = vmatpush.msrb.mxu1 %v13489_v4 }
 0x6d1   :  { %2840 = vmatpush.msrb.mxu3 %v13490_v33  ;;  %v2251_v33 = vadd.f32 %v2250_v0, %v2230_v26 }
 0x6d2   :  { %2928 = vmatpush.msrb.mxu1 %v13491_v43  ;;  %v2291_v43 = vadd.f32 %v2290_v45, %v2270_v63 }
 0x6d3   :  { %2841 = vmatpush.msrb.mxu3 %v13492_v56  ;;  %v13516_v56 = vld [vmem:[#allocation6_spill] sm:$0xff] }
 0x6d4   :  { %2929 = vmatpush.msrb.mxu1 %v13493_v15 }
 0x6d5   :  { %2842 = vmatpush.msrb.mxu3 %v13494_v28  ;;  %v13517_v28 = vld [vmem:[#allocation22_spill] sm:$0xff] }
 0x6d6   :  { %2930 = vmatpush.msrb.mxu1 %v13495_v55 }
 0x6d7   :  { %2843 = vmatpush.msrb.mxu3 %v13496_v54 }
 0x6d8   :  { %2931 = vmatpush.msrb.mxu1 %v13497_v7 }
 0x6d9   :  { %2844 = vmatpush.msrb.mxu3 %v13498_v20 }
 0x6da   :  { %2932 = vmatpush.msrb.mxu1 %v13499_v22 }
 0x6db   :  { %2957 = vmatpush.msra.mxu3 %v13500_v27 }
 0x6dd   :  { %2958 = vmatpush.msra.mxu3 %v13501_v21 }
 0x6df   :  { %2959 = vmatpush.msra.mxu3 %v13502_v46 }
 0x6e1   :  { %2960 = vmatpush.msra.mxu3 %v13503_v32 }
 0x6e3   :  { %2961 = vmatpush.msra.mxu3 %v13504_v13 }
 0x6e5   :  { %2962 = vmatpush.msra.mxu3 %v13505_v60  ;;  %v2310_v60 = vpop.f32.mrf.mxu0 }
 0x6e7   :  { %2963 = vmatpush.msra.mxu3 %v13506_v57 }
 0x6e9   :  { %2964 = vmatpush.msra.mxu3 %v13507_v42 }
 0x6eb   :  { %2965 = vmatpush.msra.mxu3 %v13508_v12  ;;  %v2330_v12 = vpop.f32.mrf.mxu1 }
 0x6ec   :  { %v2331_v63 = vadd.f32 %v2330_v12, %v2310_v60 }
 0x6ed   :  { %2966 = vmatpush.msra.mxu3 %v13509_v50 }
 0x6ef   :  { %2967 = vmatpush.msra.mxu3 %v13510_v23 }
 0x6f1   :  { %2968 = vmatpush.msra.mxu3 %v13511_v41 }
 0x6f3   :  { %2969 = vmatpush.msra.mxu3 %v13512_v2 }
 0x6f5   :  { %2970 = vmatpush.msra.mxu3 %v13513_v11 }
 0x6f7   :  { %2971 = vmatpush.msra.mxu3 %v13514_v9  ;;  %v2444_v0 = vpop.f32.mrf.mxu0 }
 0x6f9   :  { %2972 = vmatpush.msra.mxu3 %v13515_v47 }
 0x6fc   :  { %v2404_v49 = vpop.f32.mrf.mxu2  ;;  %v2424_v4 = vpop.f32.mrf.mxu3 }
 0x6fd   :  { %v2405_v15 = vadd.f32 %v2404_v49, %v13516_v56  ;;  %v2425_v55 = vadd.f32 %v2424_v4, %v13517_v28  ;;  %v10227_v49 = vld [vmem:[%s12010_s7] ss:$0 sm:$0xff] }
 0x6fe   :  { %v2487_v4 = vadd.f32 %v10227_v49, %v2331_v63  ;;  %v10275_v63 = vld [vmem:[%s12005_s2 + $0x560] sm:$0xff] }
 0x6ff   :  { %v2447_v54 = vadd.f32 %v2405_v15, %v2251_v33  ;;  %v2467_v7 = vadd.f32 %v2425_v55, %v2291_v43  ;;  %v2445_v55 = vadd.f32 %v2444_v0, %v6720_v31  ;;  %v10307_v0 = vld [vmem:[%s12005_s2 + $0x508] sm:$0xff] }
 0x700   :  { %13518 = vst [vmem:[#allocation200_spill] sm:$0xff] %v10307_v0 }
 0x701   :  { %v3814_v20 = vmul.f32 -1.442695, %v2447_v54  ;;  %v3815_v22 = vmul.f32 -1.442695, %v2467_v7 }
 0x703   :  { %3923 = vpow2.f32 %v3814_v20 }
 0x704   :  { %3925 = vpow2.f32 %v3815_v22 }
 0x709   :  { %v3924_v27 = vpop.eup %3923 }
 0x70a   :  { %v3926_v21 = vpop.eup %3925  ;;  %v2451_v46 = vadd.f32 1.0, %v3924_v27 }
 0x70b   :  { %v2471_v32 = vadd.f32 1.0, %v3926_v21 }
 0x70c   :  { %3927 = vrcp.f32 %v2451_v46  ;;  %v2463_v41 = vand.u32 2147483648, %v2451_v46  ;;  %v2461_v11 = vand.u32 2147483647, %v2451_v46  ;;  %vm2457_vm10 = vweird.f32 %v2451_v46 }
 0x70d   :  { %3929 = vrcp.f32 %v2471_v32  ;;  %v2483_v7 = vand.u32 2147483648, %v2471_v32  ;;  %vm2477_vm14 = vweird.f32 %v2471_v32  ;;  %v2481_v20 = vand.u32 2147483647, %v2471_v32 }
 0x70e   :  { %v2464_v26 = vor.u32 1.1754944e-38, %v2463_v41  ;;  %vm2462_vm12 = vcmp.eq.f32.partialorder %v2461_v11, 8.507059e+37  ;;  %v10263_v41 = vld [vmem:[%s12005_s2 + $0x590] sm:$0xff] }
 0x70f   :  { %v2484_v21 = vor.u32 1.1754944e-38, %v2483_v7  ;;  %vm2482_vm0 = vcmp.eq.f32.partialorder %v2481_v20, 8.507059e+37  ;;  %v10289_v11 = vld [vmem:[%s12005_s2 + $0x530] sm:$0xff]  ;;  %v10355_v7 = vld [vmem:[%s12005_s2 + $0x448] sm:$0xff] }
 0x710   :  { %13526 = vst [vmem:[#allocation23_spill] sm:$0xff] %v10355_v7  ;;  %v10361_v20 = vld [vmem:[%s12005_s2 + $0x410] sm:$0xff] }
 0x711   :  { %13527 = vst [vmem:[#allocation8_spill] sm:$0xff] %v10361_v20 }
 0x712   :  { %v3928_v13 = vpop.eup %3927 }
 0x713   :  { %v3930_v57 = vpop.eup %3929  ;;  %v2453_v42 = vmul.f32 %v3928_v13, %v2451_v46  ;;  %vm2458_vm9 = vweird.f32 %v3928_v13 }
 0x714   :  { %v2473_v50 = vmul.f32 %v3930_v57, %v2471_v32  ;;  %vm2459_vm11 = vmor %vm2457_vm10, %vm2458_vm9  ;;  %vm2478_vm13 = vweird.f32 %v3930_v57  ;;  %v10239_v32 = vld [vmem:[%s12005_s2 + $0x5f0] sm:$0xff] }
 0x715   :  { %v2454_v23 = vsub.f32 1.0, %v2453_v42  ;;  %vm2479_vm15 = vmor %vm2477_vm14, %vm2478_vm13 }
 0x716   :  { %v2474_v2 = vsub.f32 1.0, %v2473_v50 }
 0x717   :  { %v2455_v45 = vmul.f32 %v3928_v13, %v2454_v23  ;;  %v10257_v23 = vld [vmem:[%s12005_s2 + $0x5c8] sm:$0xff] }
 0x718   :  { %v2475_v9 = vmul.f32 %v3930_v57, %v2474_v2  ;;  %v10269_v2 = vld [vmem:[%s12005_s2 + $0x598] sm:$0xff] }
 0x719   :  { %v2456_v47 = vadd.f32 %v3928_v13, %v2455_v45  ;;  %v10281_v45 = vld [vmem:[%s12005_s2 + $0x568] sm:$0xff] }
 0x71a   :  { %v2476_v15 = vadd.f32 %v3930_v57, %v2475_v9  ;;  %v10295_v9 = vld [vmem:[%s12005_s2 + $0x538] sm:$0xff] }
 0x71b   :  { %v2460_v33 = vsel %vm2459_vm11, %v3928_v13, %v2456_v47  ;;  %v10301_v47 = vld [vmem:[%s12005_s2 + $0x500] sm:$0xff] }
 0x71c   :  { %v2465_v43 = vsel %vm2462_vm12, %v2464_v26, %v2460_v33  ;;  %v2480_v27 = vsel %vm2479_vm15, %v3930_v57, %v2476_v15  ;;  %v10245_v57 = vld [vmem:[%s12005_s2 + $0x5f8] sm:$0xff]  ;;  %v10313_v26 = vld [vmem:[%s12005_s2 + $0x4d0] sm:$0xff]  ;;  %v10325_v33 = vld [vmem:[%s12005_s2 + $0x4a0] sm:$0xff] }
 0x71d   :  { %v2488_v54 = vmul.f32 %v2487_v4, %v2465_v43  ;;  %v2485_v46 = vsel %vm2482_vm0, %v2484_v21, %v2480_v27  ;;  %13519 = vst [vmem:[#allocation201_spill] sm:$0xff] %v10313_v26  ;;  %v10319_v4 = vld [vmem:[%s12005_s2 + $0x4d8] sm:$0xff]  ;;  %v10331_v43 = vld [vmem:[%s12005_s2 + $0x4a8] sm:$0xff]  ;;  %v10337_v15 = vld [vmem:[%s12005_s2 + $0x470] sm:$0xff] }
 0x71e   :  { %v2491_v60 = vsub.f32 1.0, %v2485_v46  ;;  %v2493_v12 = vmul.f32 %v2485_v46, %v9825_v44  ;;  %v10251_v44 = vld [vmem:[%s12005_s2 + $0x5c0] sm:$0xff]  ;;  %13520 = vst [vmem:[#allocation202_spill] sm:$0xff] %v10319_v4  ;;  %v10379_v21 = vld [vmem:[%s12005_s2 + $0x3e8] sm:$0xff]  ;;  %v10385_v46 = vld [vmem:[%s12005_s2 + $0x3b0] sm:$0xff] }
 0x71f   :  { %v2489_v22 = vadd.f32 %v2488_v54, %v2445_v55  ;;  %13521 = vst [vmem:[#allocation203_spill] sm:$0xff] %v10325_v33  ;;  %v10343_v55 = vld [vmem:[%s12005_s2 + $0x478] sm:$0xff]  ;;  %v10349_v54 = vld [vmem:[%s12005_s2 + $0x440] sm:$0xff] }
 0x720   :  { %13522 = vst [vmem:[#allocation29_spill] sm:$0xff] %v10331_v43  ;;  %v10373_v27 = vld [vmem:[%s12005_s2 + $0x3e0] sm:$0xff] }
 0x721   :  { %3931 = vtanh.f32 %v2489_v22  ;;  %13523 = vst [vmem:[#allocation30_spill] sm:$0xff] %v10337_v15  ;;  %v10367_v22 = vld [vmem:[%s12005_s2 + $0x418] sm:$0xff] }
 0x722   :  { %13524 = vst [vmem:[#allocation48_spill] sm:$0xff] %v10343_v55 }
 0x723   :  { %13525 = vst [vmem:[#allocation7_spill] sm:$0xff] %v10349_v54 }
 0x724   :  { %13528 = vst [vmem:[#allocation26_spill] sm:$0xff] %v10367_v22 }
 0x725   :  { %13529 = vst [vmem:[#allocation9_spill] sm:$0xff] %v10373_v27 }
 0x726   :  { %13530 = vst [vmem:[#allocation27_spill] sm:$0xff] %v10379_v21 }
 0x727   :  { %v3932_v42 = vpop.eup %3931  ;;  %13531 = vst [vmem:[#allocation10_spill] sm:$0xff] %v10385_v46 }
 0x728   :  { %v2492_v13 = vmul.f32 %v3932_v42, %v2491_v60  ;;  %v10391_v60 = vld [vmem:[%s12005_s2 + $0x3b8] sm:$0xff]  ;;  %v10397_v42 = vld [vmem:[%s12005_s2 + $0x380] sm:$0xff] }
 0x729   :  { %13532 = vst [vmem:[#allocation28_spill] sm:$0xff] %v10391_v60 }
 0x72a   :  { %v10232_v50 = vadd.f32 %v2493_v12, %v2492_v13  ;;  %13533 = vst [vmem:[#allocation11_spill] sm:$0xff] %v10397_v42  ;;  %v10403_v13 = vld [vmem:[%s12005_s2 + $0x388] sm:$0xff]  ;;  %v10409_v12 = vld [vmem:[%s12005_s2 + $0x350] sm:$0xff] }
 0x72b   :  { %13534 = vst [vmem:[#allocation57_spill] sm:$0xff] %v10403_v13 }
 0x72c   :  { %2531 = vmatmul.f32.vlgmr.msrb.gmra.mxu2 %v10232_v50  ;;  %2571 = vmatmul.f32.vlgmr.msra.gmra.mxu0 %v10232_v50  ;;  %13535 = vst [vmem:[#allocation31_spill] sm:$0xff] %v10409_v12 }
 0x72d   :  { %2675 = vmatpush.msrb.mxu2 %v10239_v32  ;;  %2715 = vmatpush.msra.mxu0 %v10245_v57 }
 0x72f   :  { %2676 = vmatpush.msrb.mxu2 %v10251_v44  ;;  %2716 = vmatpush.msra.mxu0 %v10257_v23 }
 0x731   :  { %2677 = vmatpush.msrb.mxu2 %v10263_v41  ;;  %2717 = vmatpush.msra.mxu0 %v10269_v2 }
 0x733   :  { %2678 = vmatpush.msrb.mxu2 %v10275_v63  ;;  %2718 = vmatpush.msra.mxu0 %v10281_v45 }
 0x734   :  { %2611 = vmatmul.f32.vlgmr.msra.gmra.mxu2 %v10232_v50  ;;  %2651 = vmatmul.f32.vlgmr.msrb.gmra.mxu0 %v10232_v50 }
 0x735   :  { %2679 = vmatpush.msrb.mxu2 %v10289_v11  ;;  %2719 = vmatpush.msra.mxu0 %v10295_v9 }
 0x737   :  { %2680 = vmatpush.msrb.mxu2 %v10301_v47  ;;  %2720 = vmatpush.msra.mxu0 %v10307_v0 }
 0x739   :  { %2681 = vmatpush.msrb.mxu2 %v10313_v26  ;;  %2721 = vmatpush.msra.mxu0 %v10319_v4 }
 0x73b   :  { %2682 = vmatpush.msrb.mxu2 %v10325_v33  ;;  %2722 = vmatpush.msra.mxu0 %v10331_v43 }
 0x73d   :  { %2683 = vmatpush.msrb.mxu2 %v10337_v15  ;;  %2723 = vmatpush.msra.mxu0 %v10343_v55 }
 0x73f   :  { %2684 = vmatpush.msrb.mxu2 %v10349_v54  ;;  %2724 = vmatpush.msra.mxu0 %v10355_v7  ;;  %v13602_v7 = vld [vmem:[#allocation43_spill] sm:$0xff] }
 0x741   :  { %2685 = vmatpush.msrb.mxu2 %v10361_v20  ;;  %2725 = vmatpush.msra.mxu0 %v10367_v22  ;;  %v2512_v22 = vpop.f32.mrf.mxu1 }
 0x743   :  { %2686 = vmatpush.msrb.mxu2 %v10373_v27  ;;  %2726 = vmatpush.msra.mxu0 %v10379_v21 }
 0x745   :  { %2687 = vmatpush.msrb.mxu2 %v10385_v46  ;;  %2727 = vmatpush.msra.mxu0 %v10391_v60  ;;  %v10415_v60 = vld [vmem:[%s12005_s2 + $0x358] sm:$0xff] }
 0x746   :  { %13536 = vst [vmem:[#allocation61_spill] sm:$0xff] %v10415_v60 }
 0x747   :  { %2688 = vmatpush.msrb.mxu2 %v10397_v42  ;;  %2728 = vmatpush.msra.mxu0 %v10403_v13  ;;  %v10421_v42 = vld [vmem:[%s12005_s2 + $0x320] sm:$0xff]  ;;  %v10427_v13 = vld [vmem:[%s12005_s2 + $0x328] sm:$0xff] }
 0x748   :  { %13537 = vst [vmem:[#allocation33_spill] sm:$0xff] %v10421_v42 }
 0x749   :  { %2689 = vmatpush.msrb.mxu2 %v10409_v12  ;;  %2729 = vmatpush.msra.mxu0 %v10415_v60  ;;  %13538 = vst [vmem:[#allocation64_spill] sm:$0xff] %v10427_v13  ;;  %v10435_v60 = vld [vmem:[%s12008_s5 + $0x170] sm:$0xff]  ;;  %v10453_v12 = vld [vmem:[%s12005_s2 + $0x2a0] sm:$0xff]  ;;  %v2592_v26 = vpop.f32.mrf.mxu1 }
 0x74a   :  { %13539 = vst [vmem:[#allocation34_spill] sm:$0xff] %v10435_v60 }
 0x74b   :  { %2690 = vmatpush.msrb.mxu2 %v10421_v42  ;;  %2730 = vmatpush.msra.mxu0 %v10427_v13  ;;  %v10441_v42 = vld [vmem:[%s12005_s2 + $0x2d0] sm:$0xff]  ;;  %v10447_v13 = vld [vmem:[%s12008_s5 + $0x158] sm:$0xff]  ;;  %13542 = vst [vmem:[#allocation69_spill] sm:$0xff] %v10453_v12 }
 0x74c   :  { %2691 = vmatmul.f32.vlgmr.msrb.gmra.mxu2 %v10232_v50  ;;  %2731 = vmatmul.f32.vlgmr.msra.gmra.mxu0 %v10232_v50  ;;  %13540 = vst [vmem:[#allocation66_spill] sm:$0xff] %v10441_v42 }
 0x74d   :  { %2809 = vmatpush.msra.mxu2 %v10435_v60  ;;  %2897 = vmatpush.msrb.mxu0 %v10441_v42  ;;  %13541 = vst [vmem:[#allocation35_spill] sm:$0xff] %v10447_v13  ;;  %v10459_v60 = vld [vmem:[%s12008_s5 + $0x140] sm:$0xff]  ;;  %v10465_v42 = vld [vmem:[%s12005_s2 + $0x270] sm:$0xff] }
 0x74e   :  { %13543 = vst [vmem:[#allocation38_spill] sm:$0xff] %v10459_v60 }
 0x74f   :  { %2810 = vmatpush.msra.mxu2 %v10447_v13  ;;  %2898 = vmatpush.msrb.mxu0 %v10453_v12  ;;  %13544 = vst [vmem:[#allocation39_spill] sm:$0xff] %v10465_v42  ;;  %v10471_v13 = vld [vmem:[%s12008_s5 + $0x128] sm:$0xff]  ;;  %v10477_v12 = vld [vmem:[%s12005_s2 + $0x240] sm:$0xff] }
 0x750   :  { %13545 = vst [vmem:[#allocation41_spill] sm:$0xff] %v10471_v13 }
 0x751   :  { %2811 = vmatpush.msra.mxu2 %v10459_v60  ;;  %2899 = vmatpush.msrb.mxu0 %v10465_v42  ;;  %13546 = vst [vmem:[#allocation42_spill] sm:$0xff] %v10477_v12  ;;  %v10483_v60 = vld [vmem:[%s12008_s5 + $0x110] sm:$0xff] }
 0x752   :  { %13547 = vst [vmem:[#allocation45_spill] sm:$0xff] %v10483_v60  ;;  %v10489_v42 = vld [vmem:[%s12005_s2 + $0x210] sm:$0xff] }
 0x753   :  { %2812 = vmatpush.msra.mxu2 %v10471_v13  ;;  %2900 = vmatpush.msrb.mxu0 %v10477_v12  ;;  %13548 = vst [vmem:[#allocation46_spill] sm:$0xff] %v10489_v42  ;;  %v10495_v13 = vld [vmem:[%s12008_s5 + $0xf8] sm:$0xff]  ;;  %v10501_v12 = vld [vmem:[%s12005_s2 + $0x1e0] sm:$0xff] }
 0x754   :  { %13549 = vst [vmem:[#allocation47_spill] sm:$0xff] %v10495_v13 }
 0x755   :  { %2813 = vmatpush.msra.mxu2 %v10483_v60  ;;  %2901 = vmatpush.msrb.mxu0 %v10489_v42  ;;  %13550 = vst [vmem:[#allocation49_spill] sm:$0xff] %v10501_v12  ;;  %v10507_v60 = vld [vmem:[%s12008_s5 + $0xe0] sm:$0xff]  ;;  %v10513_v42 = vld [vmem:[%s12005_s2 + $0x1b0] sm:$0xff] }
 0x756   :  { %13551 = vst [vmem:[#allocation52_spill] sm:$0xff] %v10507_v60 }
 0x757   :  { %2814 = vmatpush.msra.mxu2 %v10495_v13  ;;  %2902 = vmatpush.msrb.mxu0 %v10501_v12  ;;  %13552 = vst [vmem:[#allocation53_spill] sm:$0xff] %v10513_v42  ;;  %v10519_v13 = vld [vmem:[%s12008_s5 + $0xc8] sm:$0xff]  ;;  %v10525_v12 = vld [vmem:[%s12005_s2 + $0x180] sm:$0xff] }
 0x758   :  { %13553 = vst [vmem:[#allocation55_spill] sm:$0xff] %v10519_v13 }
 0x759   :  { %2815 = vmatpush.msra.mxu2 %v10507_v60  ;;  %2903 = vmatpush.msrb.mxu0 %v10513_v42  ;;  %13554 = vst [vmem:[#allocation58_spill] sm:$0xff] %v10525_v12  ;;  %v10531_v60 = vld [vmem:[%s12008_s5 + $0xb0] sm:$0xff] }
 0x75a   :  { %13555 = vst [vmem:[#allocation63_spill] sm:$0xff] %v10531_v60  ;;  %v10537_v42 = vld [vmem:[%s12005_s2 + $0x150] sm:$0xff] }
 0x75b   :  { %2816 = vmatpush.msra.mxu2 %v10519_v13  ;;  %2904 = vmatpush.msrb.mxu0 %v10525_v12  ;;  %13556 = vst [vmem:[#allocation65_spill] sm:$0xff] %v10537_v42  ;;  %v10543_v13 = vld [vmem:[%s12008_s5 + $0x98] sm:$0xff]  ;;  %v10549_v12 = vld [vmem:[%s12005_s2 + $0x120] sm:$0xff] }
 0x75c   :  { %13557 = vst [vmem:[#allocation67_spill] sm:$0xff] %v10543_v13 }
 0x75d   :  { %2817 = vmatpush.msra.mxu2 %v10531_v60  ;;  %2905 = vmatpush.msrb.mxu0 %v10537_v42  ;;  %13558 = vst [vmem:[#allocation73_spill] sm:$0xff] %v10549_v12  ;;  %v10555_v60 = vld [vmem:[%s12008_s5 + $0x80] sm:$0xff]  ;;  %v10561_v42 = vld [vmem:[%s12005_s2 + $0xf0] sm:$0xff] }
 0x75e   :  { %13559 = vst [vmem:[#allocation74_spill] sm:$0xff] %v10555_v60 }
 0x75f   :  { %2818 = vmatpush.msra.mxu2 %v10543_v13  ;;  %2906 = vmatpush.msrb.mxu0 %v10549_v12  ;;  %13560 = vst [vmem:[#allocation76_spill] sm:$0xff] %v10561_v42  ;;  %v10567_v13 = vld [vmem:[%s12008_s5 + $0x68] sm:$0xff]  ;;  %v10573_v12 = vld [vmem:[%s12005_s2 + $0xc0] sm:$0xff] }
 0x760   :  { %13561 = vst [vmem:[#allocation77_spill] sm:$0xff] %v10567_v13 }
 0x761   :  { %2819 = vmatpush.msra.mxu2 %v10555_v60  ;;  %2907 = vmatpush.msrb.mxu0 %v10561_v42  ;;  %13562 = vst [vmem:[#allocation78_spill] sm:$0xff] %v10573_v12  ;;  %v10579_v60 = vld [vmem:[%s12008_s5 + $0x50] sm:$0xff] }
 0x762   :  { %13563 = vst [vmem:[#allocation79_spill] sm:$0xff] %v10579_v60  ;;  %v10585_v42 = vld [vmem:[%s12005_s2 + $0x90] sm:$0xff] }
 0x763   :  { %2820 = vmatpush.msra.mxu2 %v10567_v13  ;;  %2908 = vmatpush.msrb.mxu0 %v10573_v12  ;;  %13564 = vst [vmem:[#allocation81_spill] sm:$0xff] %v10585_v42  ;;  %v10591_v13 = vld [vmem:[%s12008_s5 + $0x38] sm:$0xff]  ;;  %v10597_v12 = vld [vmem:[%s12005_s2 + $0x60] sm:$0xff] }
 0x764   :  { %13565 = vst [vmem:[#allocation83_spill] sm:$0xff] %v10591_v13 }
 0x765   :  { %2821 = vmatpush.msra.mxu2 %v10579_v60  ;;  %2909 = vmatpush.msrb.mxu0 %v10585_v42  ;;  %13566 = vst [vmem:[#allocation84_spill] sm:$0xff] %v10597_v12  ;;  %v10604_v42 = vld [vmem:[%s12005_s2 + $0x30] sm:$0xff]  ;;  %v13601_v60 = vld [vmem:[#allocation44_spill] sm:$0xff] }
 0x766   :  { %13567 = vst [vmem:[#allocation85_spill] sm:$0xff] %v10604_v42  ;;  %v156_v46 = vadd.f32 %v13601_v60, %v13416_v24 }
 0x767   :  { %2822 = vmatpush.msra.mxu2 %v10591_v13  ;;  %2910 = vmatpush.msrb.mxu0 %v10597_v12  ;;  %v10611_v13 = vld [vmem:[%s12005_s2] sm:$0xff] }
 0x768   :  { %13568 = vst [vmem:[#allocation86_spill] sm:$0xff] %v10611_v13 }
 0x769   :  { %2823 = vmatpush.msra.mxu2 %v9896_v25  ;;  %2911 = vmatpush.msrb.mxu0 %v10604_v42  ;;  %v10617_v25 = vld [vmem:[%s12005_s2 + $0x2d8] sm:$0xff]  ;;  %v10623_v42 = vld [vmem:[%s12005_s2 + $0x2e0] sm:$0xff] }
 0x76a   :  { %13569 = vst [vmem:[#allocation54_spill] sm:$0xff] %v10617_v25 }
 0x76b   :  { %2824 = vmatpush.msra.mxu2 %v9903_v29  ;;  %2912 = vmatpush.msrb.mxu0 %v10611_v13  ;;  %13570 = vst [vmem:[#allocation56_spill] sm:$0xff] %v10623_v42  ;;  %v10629_v29 = vld [vmem:[%s12005_s2 + $0x2a8] sm:$0xff]  ;;  %v10635_v13 = vld [vmem:[%s12005_s2 + $0x2b0] sm:$0xff] }
 0x76c   :  { %13571 = vst [vmem:[#allocation87_spill] sm:$0xff] %v10629_v29 }
 0x76d   :  { %2937 = vmatpush.msrb.mxu2 %v10617_v25  ;;  %2977 = vmatpush.msra.mxu0 %v10623_v42  ;;  %13572 = vst [vmem:[#allocation88_spill] sm:$0xff] %v10635_v13  ;;  %v10641_v25 = vld [vmem:[%s12005_s2 + $0x278] sm:$0xff]  ;;  %v10647_v42 = vld [vmem:[%s12005_s2 + $0x280] sm:$0xff] }
 0x76e   :  { %13573 = vst [vmem:[#allocation89_spill] sm:$0xff] %v10641_v25 }
 0x76f   :  { %2938 = vmatpush.msrb.mxu2 %v10629_v29  ;;  %2978 = vmatpush.msra.mxu0 %v10635_v13  ;;  %13574 = vst [vmem:[#allocation90_spill] sm:$0xff] %v10647_v42  ;;  %v10653_v29 = vld [vmem:[%s12005_s2 + $0x248] sm:$0xff]  ;;  %v10659_v13 = vld [vmem:[%s12005_s2 + $0x250] sm:$0xff] }
 0x770   :  { %13575 = vst [vmem:[#allocation91_spill] sm:$0xff] %v10653_v29 }
 0x771   :  { %2939 = vmatpush.msrb.mxu2 %v10641_v25  ;;  %2979 = vmatpush.msra.mxu0 %v10647_v42  ;;  %13576 = vst [vmem:[#allocation92_spill] sm:$0xff] %v10659_v13  ;;  %v10665_v25 = vld [vmem:[%s12005_s2 + $0x218] sm:$0xff]  ;;  %v10671_v42 = vld [vmem:[%s12005_s2 + $0x220] sm:$0xff] }
 0x772   :  { %13577 = vst [vmem:[#allocation93_spill] sm:$0xff] %v10665_v25 }
 0x773   :  { %2940 = vmatpush.msrb.mxu2 %v10653_v29  ;;  %2980 = vmatpush.msra.mxu0 %v10659_v13  ;;  %13578 = vst [vmem:[#allocation94_spill] sm:$0xff] %v10671_v42  ;;  %v10677_v29 = vld [vmem:[%s12005_s2 + $0x1e8] sm:$0xff]  ;;  %v10683_v13 = vld [vmem:[%s12005_s2 + $0x1f0] sm:$0xff] }
 0x774   :  { %13579 = vst [vmem:[#allocation95_spill] sm:$0xff] %v10677_v29 }
 0x775   :  { %2941 = vmatpush.msrb.mxu2 %v10665_v25  ;;  %2981 = vmatpush.msra.mxu0 %v10671_v42  ;;  %13580 = vst [vmem:[#allocation96_spill] sm:$0xff] %v10683_v13  ;;  %v10689_v25 = vld [vmem:[%s12005_s2 + $0x1b8] sm:$0xff]  ;;  %v10695_v42 = vld [vmem:[%s12005_s2 + $0x1c0] sm:$0xff] }
 0x776   :  { %13581 = vst [vmem:[#allocation97_spill] sm:$0xff] %v10689_v25 }
 0x777   :  { %2942 = vmatpush.msrb.mxu2 %v10677_v29  ;;  %2982 = vmatpush.msra.mxu0 %v10683_v13  ;;  %13582 = vst [vmem:[#allocation98_spill] sm:$0xff] %v10695_v42  ;;  %v10701_v29 = vld [vmem:[%s12005_s2 + $0x188] sm:$0xff]  ;;  %v10707_v13 = vld [vmem:[%s12005_s2 + $0x190] sm:$0xff] }
 0x778   :  { %13583 = vst [vmem:[#allocation99_spill] sm:$0xff] %v10701_v29 }
 0x779   :  { %2943 = vmatpush.msrb.mxu2 %v10689_v25  ;;  %2983 = vmatpush.msra.mxu0 %v10695_v42  ;;  %13584 = vst [vmem:[#allocation100_spill] sm:$0xff] %v10707_v13  ;;  %v10713_v25 = vld [vmem:[%s12005_s2 + $0x158] sm:$0xff]  ;;  %v10719_v42 = vld [vmem:[%s12005_s2 + $0x160] sm:$0xff] }
 0x77a   :  { %13585 = vst [vmem:[#allocation101_spill] sm:$0xff] %v10713_v25 }
 0x77b   :  { %2944 = vmatpush.msrb.mxu2 %v10701_v29  ;;  %2984 = vmatpush.msra.mxu0 %v10707_v13  ;;  %13586 = vst [vmem:[#allocation102_spill] sm:$0xff] %v10719_v42  ;;  %v10725_v29 = vld [vmem:[%s12005_s2 + $0x128] sm:$0xff]  ;;  %v10731_v13 = vld [vmem:[%s12005_s2 + $0x130] sm:$0xff] }
 0x77c   :  { %13587 = vst [vmem:[#allocation103_spill] sm:$0xff] %v10725_v29 }
 0x77d   :  { %2945 = vmatpush.msrb.mxu2 %v10713_v25  ;;  %2985 = vmatpush.msra.mxu0 %v10719_v42  ;;  %13588 = vst [vmem:[#allocation104_spill] sm:$0xff] %v10731_v13  ;;  %v10737_v25 = vld [vmem:[%s12005_s2 + $0xf8] sm:$0xff]  ;;  %v10743_v42 = vld [vmem:[%s12005_s2 + $0x100] sm:$0xff] }
 0x77e   :  { %13589 = vst [vmem:[#allocation105_spill] sm:$0xff] %v10737_v25 }
 0x77f   :  { %2946 = vmatpush.msrb.mxu2 %v10725_v29  ;;  %2986 = vmatpush.msra.mxu0 %v10731_v13  ;;  %13590 = vst [vmem:[#allocation106_spill] sm:$0xff] %v10743_v42  ;;  %v10749_v29 = vld [vmem:[%s12005_s2 + $0xc8] sm:$0xff]  ;;  %v10755_v13 = vld [vmem:[%s12005_s2 + $0xd0] sm:$0xff] }
 0x780   :  { %13591 = vst [vmem:[#allocation107_spill] sm:$0xff] %v10749_v29 }
 0x781   :  { %2947 = vmatpush.msrb.mxu2 %v10737_v25  ;;  %2987 = vmatpush.msra.mxu0 %v10743_v42  ;;  %13592 = vst [vmem:[#allocation108_spill] sm:$0xff] %v10755_v13  ;;  %v10761_v25 = vld [vmem:[%s12005_s2 + $0x98] sm:$0xff]  ;;  %v10767_v42 = vld [vmem:[%s12005_s2 + $0xa0] sm:$0xff] }
 0x782   :  { %13593 = vst [vmem:[#allocation109_spill] sm:$0xff] %v10761_v25 }
 0x783   :  { %2948 = vmatpush.msrb.mxu2 %v10749_v29  ;;  %2988 = vmatpush.msra.mxu0 %v10755_v13  ;;  %13594 = vst [vmem:[#allocation110_spill] sm:$0xff] %v10767_v42  ;;  %v10773_v29 = vld [vmem:[%s12005_s2 + $0x68] sm:$0xff]  ;;  %v10779_v13 = vld [vmem:[%s12005_s2 + $0x70] sm:$0xff] }
 0x784   :  { %13595 = vst [vmem:[#allocation111_spill] sm:$0xff] %v10773_v29 }
 0x785   :  { %2949 = vmatpush.msrb.mxu2 %v10761_v25  ;;  %2989 = vmatpush.msra.mxu0 %v10767_v42  ;;  %13596 = vst [vmem:[#allocation112_spill] sm:$0xff] %v10779_v13  ;;  %v10785_v25 = vld [vmem:[%s12005_s2 + $0x38] sm:$0xff]  ;;  %v10791_v42 = vld [vmem:[%s12005_s2 + $0x40] sm:$0xff] }
 0x786   :  { %13597 = vst [vmem:[#allocation24_spill] sm:$0xff] %v10785_v25 }
 0x787   :  { %2950 = vmatpush.msrb.mxu2 %v10773_v29  ;;  %2990 = vmatpush.msra.mxu0 %v10779_v13  ;;  %13598 = vst [vmem:[#allocation25_spill] sm:$0xff] %v10791_v42  ;;  %v10797_v29 = vld [vmem:[%s12005_s2 + $0x8] sm:$0xff]  ;;  %v10803_v13 = vld [vmem:[%s12005_s2 + $0x10] sm:$0xff] }
 0x788   :  { %13599 = vst [vmem:[#allocation40_spill] sm:$0xff] %v10797_v29 }
 0x789   :  { %2951 = vmatpush.msrb.mxu2 %v10785_v25  ;;  %2991 = vmatpush.msra.mxu0 %v10791_v42  ;;  %13600 = vst [vmem:[#allocation19_spill] sm:$0xff] %v10803_v13  ;;  %v2552_v25 = vpop.f32.mrf.mxu3 }
 0x78b   :  { %2952 = vmatpush.msrb.mxu2 %v10797_v29  ;;  %2992 = vmatpush.msra.mxu0 %v10803_v13  ;;  %v115_v29 = vadd.f32 %v13602_v7, %v13418_v10 }
 0x7a9   :  { %v2572_v12 = vpop.f32.mrf.mxu0 }
 0x7aa   :  { %v2573_v42 = vadd.f32 %v2572_v12, %v2552_v25 }
 0x7ac   :  { %v2761_v21 = vadd.f32 %v2573_v42, %v156_v46 }
 0x7ae   :  { %v3817_v27 = vmul.f32 -1.442695, %v2761_v21 }
 0x7af   :  { %v2532_v20 = vpop.f32.mrf.mxu2 }
 0x7b0   :  { %3933 = vpow2.f32 %v3817_v27  ;;  %v2533_v54 = vadd.f32 %v2532_v20, %v2512_v22 }
 0x7b2   :  { %v2741_v55 = vadd.f32 %v2533_v54, %v115_v29 }
 0x7b4   :  { %v3816_v15 = vmul.f32 -1.442695, %v2741_v55 }
 0x7b6   :  { %v3934_v43 = vpop.eup %3933  ;;  %3935 = vpow2.f32 %v3816_v15 }
 0x7b7   :  { %v2765_v13 = vadd.f32 1.0, %v3934_v43  ;;  %v2612_v25 = vpop.f32.mrf.mxu2 }
 0x7b8   :  { %v2613_v27 = vadd.f32 %v2612_v25, %v2592_v26 }
 0x7b9   :  { %3937 = vrcp.f32 %v2765_v13  ;;  %v2777_v0 = vand.u32 2147483648, %v2765_v13  ;;  %vm2771_vm6 = vweird.f32 %v2765_v13 }
 0x7ba   :  { %v2781_v22 = vadd.f32 %v9946_v53, %v2613_v27 }
 0x7bc   :  { %v3936_v33 = vpop.eup %3935 }
 0x7bd   :  { %v2745_v4 = vadd.f32 1.0, %v3936_v33 }
 0x7bf   :  { %3939 = vrcp.f32 %v2745_v4  ;;  %v3938_v60 = vpop.eup %3937  ;;  %v2757_v7 = vand.u32 2147483648, %v2745_v4  ;;  %v2755_v55 = vand.u32 2147483647, %v2745_v4  ;;  %vm2751_vm2 = vweird.f32 %v2745_v4 }
 0x7c0   :  { %v2767_v12 = vmul.f32 %v3938_v60, %v2765_v13  ;;  %vm2772_vm5 = vweird.f32 %v3938_v60 }
 0x7c1   :  { %v2758_v43 = vor.u32 1.1754944e-38, %v2757_v7  ;;  %vm2756_vm4 = vcmp.eq.f32.partialorder %v2755_v55, 8.507059e+37  ;;  %vm2773_vm7 = vmor %vm2771_vm6, %vm2772_vm5 }
 0x7c2   :  { %v2768_v42 = vsub.f32 1.0, %v2767_v12 }
 0x7c4   :  { %v2769_v54 = vmul.f32 %v3938_v60, %v2768_v42 }
 0x7c5   :  { %v3940_v46 = vpop.eup %3939 }
 0x7c6   :  { %v2747_v21 = vmul.f32 %v3940_v46, %v2745_v4  ;;  %vm2752_vm1 = vweird.f32 %v3940_v46  ;;  %v2770_v29 = vadd.f32 %v3938_v60, %v2769_v54  ;;  %v2778_v4 = vor.u32 1.1754944e-38, %v2777_v0  ;;  %v10837_v0 = vld [vmem:[%s12005_s2 + $0x2b8] sm:$0xff]  ;;  %v10899_v54 = vld [vmem:[%s12005_s2 + $0x200] sm:$0xff] }
 0x7c7   :  { %vm2753_vm3 = vmor %vm2751_vm2, %vm2752_vm1 }
 0x7c8   :  { %v2748_v24 = vsub.f32 1.0, %v2747_v21  ;;  %v13603_v21 = vld [vmem:[#allocation71_spill] sm:$0xff]  ;;  %v2774_v25 = vsel %vm2773_vm7, %v3938_v60, %v2770_v29  ;;  %v10893_v60 = vld [vmem:[%s12005_s2 + $0x1f8] sm:$0xff]  ;;  %v10956_v29 = vld [vmem:[%s12005_s2 + $0x170] sm:$0xff] }
 0x7c9   :  { %v197_v10 = vadd.f32 %v13603_v21, %v12846_v39  ;;  %v10975_v21 = vld [vmem:[%s12005_s2 + $0x140] sm:$0xff] }
 0x7ca   :  { %v2749_v20 = vmul.f32 %v3940_v46, %v2748_v24  ;;  %v2775_v24 = vand.u32 2147483647, %v2765_v13  ;;  %v10843_v13 = vld [vmem:[%s12005_s2 + $0x2c0] sm:$0xff] }
 0x7cc   :  { %v2750_v15 = vadd.f32 %v3940_v46, %v2749_v20  ;;  %vm2776_vm8 = vcmp.eq.f32.partialorder %v2775_v24, 8.507059e+37  ;;  %v10994_v24 = vld [vmem:[%s12005_s2 + $0x110] sm:$0xff] }
 0x7cd   :  { %13605 = vst [vmem:[#allocation80_spill] sm:$0xff] %v10994_v24 }
 0x7ce   :  { %v2754_v33 = vsel %vm2753_vm3, %v3940_v46, %v2750_v15  ;;  %v2779_v46 = vsel %vm2776_vm8, %v2778_v4, %v2774_v25  ;;  %v10918_v15 = vld [vmem:[%s12005_s2 + $0x1d0] sm:$0xff]  ;;  %v11013_v25 = vld [vmem:[%s12005_s2 + $0xe0] sm:$0xff]  ;;  %v11026_v4 = vld [vmem:[%s12005_s2 + $0xa8] sm:$0xff] }
 0x7cf   :  { %v2759_v12 = vsel %vm2756_vm4, %v2758_v43, %v2754_v33  ;;  %v2785_v7 = vsub.f32 1.0, %v2779_v46  ;;  %v2787_v27 = vmul.f32 %v2779_v46, %v9952_v38  ;;  %v10829_v38 = vld [vmem:[%s12005_s2 + $0x2f0] sm:$0xff]  ;;  %v10931_v43 = vld [vmem:[%s12005_s2 + $0x198] sm:$0xff]  ;;  %v10937_v33 = vld [vmem:[%s12005_s2 + $0x1a0] sm:$0xff]  ;;  %13608 = vst [vmem:[#allocation12_spill] sm:$0xff] %v11013_v25 }
 0x7d0   :  { %v2782_v26 = vmul.f32 %v2781_v22, %v2759_v12  ;;  %v10950_v22 = vld [vmem:[%s12005_s2 + $0x168] sm:$0xff]  ;;  %v10969_v12 = vld [vmem:[%s12005_s2 + $0x138] sm:$0xff]  ;;  %13610 = vst [vmem:[#allocation14_spill] sm:$0xff] %v11026_v4  ;;  %v11032_v46 = vld [vmem:[%s12005_s2 + $0xb0] sm:$0xff] }
 0x7d1   :  { %13611 = vst [vmem:[#allocation37_spill] sm:$0xff] %v11032_v46 }
 0x7d2   :  { %v2783_v42 = vadd.f32 %v2782_v26, %v197_v10  ;;  %v10823_v10 = vld [vmem:[%s12005_s2 + $0x2e8] sm:$0xff] }
 0x7d3   :  { %v10988_v26 = vld [vmem:[%s12005_s2 + $0x108] sm:$0xff] }
 0x7d4   :  { %3941 = vtanh.f32 %v2783_v42  ;;  %13604 = vst [vmem:[#allocation18_spill] sm:$0xff] %v10988_v26  ;;  %v11007_v42 = vld [vmem:[%s12005_s2 + $0xd8] sm:$0xff] }
 0x7d5   :  { %13607 = vst [vmem:[#allocation32_spill] sm:$0xff] %v11007_v42 }
 0x7da   :  { %v3942_v20 = vpop.eup %3941 }
 0x7db   :  { %v2786_v53 = vmul.f32 %v3942_v20, %v2785_v7  ;;  %v11045_v7 = vld [vmem:[%s12005_s2 + $0x78] sm:$0xff]  ;;  %v11051_v20 = vld [vmem:[%s12005_s2 + $0x80] sm:$0xff] }
 0x7dc   :  { %13613 = vst [vmem:[#allocation60_spill] sm:$0xff] %v11045_v7 }
 0x7dd   :  { %v10814_v55 = vadd.f32 %v2787_v27, %v2786_v53  ;;  %13614 = vst [vmem:[#allocation15_spill] sm:$0xff] %v11051_v20  ;;  %v11064_v53 = vld [vmem:[%s12005_s2 + $0x48] sm:$0xff]  ;;  %v11070_v27 = vld [vmem:[%s12005_s2 + $0x50] sm:$0xff] }
 0x7de   :  { %13616 = vst [vmem:[#allocation114_spill] sm:$0xff] %v11064_v53 }
 0x7df   :  { %2805 = vmatmul.f32.vlgmr.msra.gmra.mxu1 %v10814_v55  ;;  %2825 = vmatmul.f32.vlgmr.msra.gmra.mxu2 %v10814_v55  ;;  %13617 = vst [vmem:[#allocation115_spill] sm:$0xff] %v11070_v27 }
 0x7e0   :  { %2845 = vmatmul.f32.vlgmr.msrb.gmra.mxu3 %v10814_v55  ;;  %2913 = vmatmul.f32.vlgmr.msrb.gmra.mxu0 %v10814_v55 }
 0x7e1   :  { %3017 = vmatpush.msra.mxu2 %v10823_v10  ;;  %3057 = vmatpush.msrb.mxu0 %v10829_v38 }
 0x7e2   :  { %2997 = vmatpush.msra.mxu1 %v9963_v30  ;;  %3037 = vmatpush.msrb.mxu3 %v9969_v5  ;;  %v10851_v30 = vld [vmem:[%s12005_s2 + $0x288] sm:$0xff]  ;;  %v10857_v5 = vld [vmem:[%s12005_s2 + $0x290] sm:$0xff] }
 0x7e3   :  { %3018 = vmatpush.msra.mxu2 %v10837_v0  ;;  %3058 = vmatpush.msrb.mxu0 %v10843_v13 }
 0x7e4   :  { %2998 = vmatpush.msra.mxu1 %v9977_v51  ;;  %3038 = vmatpush.msrb.mxu3 %v9983_v36  ;;  %v10865_v51 = vld [vmem:[%s12005_s2 + $0x258] sm:$0xff]  ;;  %v10871_v36 = vld [vmem:[%s12005_s2 + $0x260] sm:$0xff] }
 0x7e5   :  { %3019 = vmatpush.msra.mxu2 %v10851_v30  ;;  %3059 = vmatpush.msrb.mxu0 %v10857_v5 }
 0x7e6   :  { %2999 = vmatpush.msra.mxu1 %v9991_v1  ;;  %3039 = vmatpush.msrb.mxu3 %v9997_v8  ;;  %v10879_v1 = vld [vmem:[%s12005_s2 + $0x228] sm:$0xff]  ;;  %v10885_v8 = vld [vmem:[%s12005_s2 + $0x230] sm:$0xff] }
 0x7e7   :  { %3020 = vmatpush.msra.mxu2 %v10865_v51  ;;  %3060 = vmatpush.msrb.mxu0 %v10871_v36 }
 0x7e8   :  { %2953 = vmatmul.f32.vlgmr.msrb.gmra.mxu2 %v10814_v55  ;;  %2993 = vmatmul.f32.vlgmr.msra.gmra.mxu0 %v10814_v55 }
 0x7e9   :  { %3021 = vmatpush.msra.mxu2 %v10879_v1  ;;  %3061 = vmatpush.msrb.mxu0 %v10885_v8 }
 0x7ea   :  { %3000 = vmatpush.msra.mxu1 %v10009_v37  ;;  %3040 = vmatpush.msrb.mxu3 %v10015_v52  ;;  %v10906_v37 = vld [vmem:[%s12005_s2 + $0x528] sm:$0xff] }
 0x7eb   :  { %3022 = vmatpush.msra.mxu2 %v10893_v60  ;;  %3062 = vmatpush.msrb.mxu0 %v10899_v54  ;;  %v10912_v52 = vld [vmem:[%s12005_s2 + $0x1c8] sm:$0xff] }
 0x7ec   :  { %3001 = vmatpush.msra.mxu1 %v10023_v16  ;;  %3041 = vmatpush.msrb.mxu3 %v10906_v37  ;;  %v10925_v16 = vld [vmem:[%s12005_s2 + $0x4f8] sm:$0xff] }
 0x7ed   :  { %3023 = vmatpush.msra.mxu2 %v10912_v52  ;;  %3063 = vmatpush.msrb.mxu0 %v10918_v15 }
 0x7ee   :  { %3002 = vmatpush.msra.mxu1 %v10032_v61  ;;  %3042 = vmatpush.msrb.mxu3 %v10925_v16  ;;  %v10944_v61 = vld [vmem:[%s12005_s2 + $0x4c8] sm:$0xff] }
 0x7ef   :  { %3024 = vmatpush.msra.mxu2 %v10931_v43  ;;  %3064 = vmatpush.msrb.mxu0 %v10937_v33 }
 0x7f0   :  { %3003 = vmatpush.msra.mxu1 %v10041_v14  ;;  %3043 = vmatpush.msrb.mxu3 %v10944_v61  ;;  %v10963_v14 = vld [vmem:[%s12005_s2 + $0x498] sm:$0xff] }
 0x7f1   :  { %3025 = vmatpush.msra.mxu2 %v10950_v22  ;;  %3065 = vmatpush.msrb.mxu0 %v10956_v29 }
 0x7f2   :  { %3004 = vmatpush.msra.mxu1 %v10050_v6  ;;  %3044 = vmatpush.msrb.mxu3 %v10963_v14  ;;  %v10982_v6 = vld [vmem:[%s12005_s2 + $0x468] sm:$0xff] }
 0x7f3   :  { %3026 = vmatpush.msra.mxu2 %v10969_v12  ;;  %3066 = vmatpush.msrb.mxu0 %v10975_v21 }
 0x7f4   :  { %3005 = vmatpush.msra.mxu1 %v10059_v59  ;;  %3045 = vmatpush.msrb.mxu3 %v10982_v6  ;;  %v11001_v59 = vld [vmem:[%s12005_s2 + $0x438] sm:$0xff] }
 0x7f5   :  { %3027 = vmatpush.msra.mxu2 %v10988_v26  ;;  %3067 = vmatpush.msrb.mxu0 %v10994_v24  ;;  %13606 = vst [vmem:[#allocation82_spill] sm:$0xff] %v11001_v59 }
 0x7f6   :  { %3006 = vmatpush.msra.mxu1 %v10068_v62  ;;  %3046 = vmatpush.msrb.mxu3 %v11001_v59  ;;  %v11020_v62 = vld [vmem:[%s12005_s2 + $0x408] sm:$0xff] }
 0x7f7   :  { %3028 = vmatpush.msra.mxu2 %v11007_v42  ;;  %3068 = vmatpush.msrb.mxu0 %v11013_v25  ;;  %13609 = vst [vmem:[#allocation13_spill] sm:$0xff] %v11020_v62 }
 0x7f8   :  { %3007 = vmatpush.msra.mxu1 %v10077_v35  ;;  %3047 = vmatpush.msrb.mxu3 %v11020_v62  ;;  %v11039_v35 = vld [vmem:[%s12005_s2 + $0x3d8] sm:$0xff] }
 0x7f9   :  { %3029 = vmatpush.msra.mxu2 %v11026_v4  ;;  %3069 = vmatpush.msrb.mxu0 %v11032_v46  ;;  %13612 = vst [vmem:[#allocation36_spill] sm:$0xff] %v11039_v35 }
 0x7fa   :  { %3008 = vmatpush.msra.mxu1 %v10086_v48  ;;  %3048 = vmatpush.msrb.mxu3 %v11039_v35  ;;  %v11058_v48 = vld [vmem:[%s12005_s2 + $0x3a8] sm:$0xff] }
 0x7fb   :  { %3030 = vmatpush.msra.mxu2 %v11045_v7  ;;  %3070 = vmatpush.msrb.mxu0 %v11051_v20  ;;  %13615 = vst [vmem:[#allocation113_spill] sm:$0xff] %v11058_v48 }
 0x7fc   :  { %3009 = vmatpush.msra.mxu1 %v10095_v17  ;;  %3049 = vmatpush.msrb.mxu3 %v11058_v48  ;;  %v11078_v17 = vld [vmem:[%s12005_s2 + $0x18] sm:$0xff] }
 0x7fd   :  { %3031 = vmatpush.msra.mxu2 %v11064_v53  ;;  %3071 = vmatpush.msrb.mxu0 %v11070_v27  ;;  %13618 = vst [vmem:[#allocation116_spill] sm:$0xff] %v11078_v17  ;;  %v11084_v53 = vld [vmem:[%s12005_s2 + $0x20] sm:$0xff] }
 0x7fe   :  { %3010 = vmatpush.msra.mxu1 %v10104_v18  ;;  %3050 = vmatpush.msrb.mxu3 %v10110_v40  ;;  %13619 = vst [vmem:[#allocation117_spill] sm:$0xff] %v11084_v53  ;;  %v11092_v18 = vld [vmem:[%s12005_s2 + $0x2f8] sm:$0xff]  ;;  %v11100_v40 = vld [vmem:[%s12008_s5 + $0x168] sm:$0xff] }
 0x7ff   :  { %3032 = vmatpush.msra.mxu2 %v11078_v17  ;;  %3072 = vmatpush.msrb.mxu0 %v11084_v53  ;;  %13620 = vst [vmem:[#allocation118_spill] sm:$0xff] %v11092_v18  ;;  %v11106_v53 = vld [vmem:[%s12005_s2 + $0x2c8] sm:$0xff]  ;;  %v2632_v17 = vpop.f32.mrf.mxu3 }
 0x800   :  { %3033 = vmatmul.f32.vlgmr.msra.gmra.mxu2 %v10814_v55  ;;  %3073 = vmatmul.f32.vlgmr.msrb.gmra.mxu0 %v10814_v55  ;;  %13621 = vst [vmem:[#allocation119_spill] sm:$0xff] %v11100_v40 }
 0x801   :  { %3097 = vmatpush.msrb.mxu2 %v11092_v18  ;;  %3011 = vmatpush.msra.mxu1 %v10121_v3  ;;  %13622 = vst [vmem:[#allocation120_spill] sm:$0xff] %v11106_v53  ;;  %v11114_v3 = vld [vmem:[%s12008_s5 + $0x150] sm:$0xff]  ;;  %v2692_v18 = vpop.f32.mrf.mxu2 }
 0x802   :  { %3051 = vmatpush.msrb.mxu3 %v10127_v19  ;;  %3191 = vmatpush.msra.mxu0 %v11100_v40  ;;  %13623 = vst [vmem:[#allocation121_spill] sm:$0xff] %v11114_v3  ;;  %v11120_v19 = vld [vmem:[%s12005_s2 + $0x298] sm:$0xff]  ;;  %v2652_v40 = vpop.f32.mrf.mxu0 }
 0x803   :  { %3098 = vmatpush.msrb.mxu2 %v11106_v53  ;;  %3012 = vmatpush.msra.mxu1 %v10135_v58  ;;  %13624 = vst [vmem:[#allocation122_spill] sm:$0xff] %v11120_v19  ;;  %v11126_v58 = vld [vmem:[%s12008_s5 + $0x138] sm:$0xff] }
 0x804   :  { %3052 = vmatpush.msrb.mxu3 %v10141_v34  ;;  %3192 = vmatpush.msra.mxu0 %v11114_v3  ;;  %13625 = vst [vmem:[#allocation16_spill] sm:$0xff] %v11126_v58  ;;  %v11132_v34 = vld [vmem:[%s12005_s2 + $0x268] sm:$0xff]  ;;  %v11138_v3 = vld [vmem:[%s12008_s5 + $0x120] sm:$0xff]  ;;  %v4737_v53 = vld [vmem:[%s12005_s2 + $0x578] sm:$0xff] }
 0x805   :  { %3099 = vmatpush.msrb.mxu2 %v11120_v19  ;;  %13626 = vst [vmem:[#allocation123_spill] sm:$0xff] %v11132_v34  ;;  %v11144_v19 = vld [vmem:[%s12005_s2 + $0x238] sm:$0xff] }
 0x806   :  { %3193 = vmatpush.msra.mxu0 %v11126_v58  ;;  %13627 = vst [vmem:[#allocation124_spill] sm:$0xff] %v11138_v3  ;;  %v11150_v58 = vld [vmem:[%s12008_s5 + $0x108] sm:$0xff] }
 0x807   :  { %3100 = vmatpush.msrb.mxu2 %v11132_v34  ;;  %13628 = vst [vmem:[#allocation3_spill] sm:$0xff] %v11144_v19  ;;  %v11156_v34 = vld [vmem:[%s12005_s2 + $0x208] sm:$0xff] }
 0x808   :  { %3194 = vmatpush.msra.mxu0 %v11138_v3  ;;  %13629 = vst [vmem:[#allocation125_spill] sm:$0xff] %v11150_v58  ;;  %v11162_v3 = vld [vmem:[%s12008_s5 + $0xf0] sm:$0xff] }
 0x809   :  { %3101 = vmatpush.msrb.mxu2 %v11144_v19  ;;  %13630 = vst [vmem:[#allocation126_spill] sm:$0xff] %v11156_v34  ;;  %v11168_v19 = vld [vmem:[%s12005_s2 + $0x1d8] sm:$0xff] }
 0x80a   :  { %3195 = vmatpush.msra.mxu0 %v11150_v58  ;;  %13631 = vst [vmem:[#allocation17_spill] sm:$0xff] %v11162_v3  ;;  %v11174_v58 = vld [vmem:[%s12008_s5 + $0xd8] sm:$0xff] }
 0x80b   :  { %3102 = vmatpush.msrb.mxu2 %v11156_v34  ;;  %13632 = vst [vmem:[#allocation4_spill] sm:$0xff] %v11168_v19  ;;  %v11180_v34 = vld [vmem:[%s12005_s2 + $0x1a8] sm:$0xff] }
 0x80c   :  { %3196 = vmatpush.msra.mxu0 %v11162_v3  ;;  %13633 = vst [vmem:[#allocation127_spill] sm:$0xff] %v11174_v58  ;;  %v11186_v3 = vld [vmem:[%s12008_s5 + $0xc0] sm:$0xff] }
 0x80d   :  { %3103 = vmatpush.msrb.mxu2 %v11168_v19  ;;  %13634 = vst [vmem:[#allocation20_spill] sm:$0xff] %v11180_v34  ;;  %v11192_v19 = vld [vmem:[%s12005_s2 + $0x178] sm:$0xff] }
 0x80e   :  { %3197 = vmatpush.msra.mxu0 %v11174_v58  ;;  %13635 = vst [vmem:[#allocation5_spill] sm:$0xff] %v11186_v3  ;;  %v11198_v58 = vld [vmem:[%s12008_s5 + $0xa8] sm:$0xff] }
 0x80f   :  { %3104 = vmatpush.msrb.mxu2 %v11180_v34  ;;  %13636 = vst [vmem:[#allocation21_spill] sm:$0xff] %v11192_v19  ;;  %v11204_v34 = vld [vmem:[%s12005_s2 + $0x148] sm:$0xff] }
 0x810   :  { %3198 = vmatpush.msra.mxu0 %v11186_v3  ;;  %13637 = vst [vmem:[#allocation128_spill] sm:$0xff] %v11198_v58  ;;  %v11210_v3 = vld [vmem:[%s12008_s5 + $0x90] sm:$0xff] }
 0x811   :  { %3105 = vmatpush.msrb.mxu2 %v11192_v19  ;;  %13638 = vst [vmem:[#allocation129_spill] sm:$0xff] %v11204_v34  ;;  %v11216_v19 = vld [vmem:[%s12005_s2 + $0x118] sm:$0xff] }
 0x812   :  { %3199 = vmatpush.msra.mxu0 %v11198_v58  ;;  %13639 = vst [vmem:[#allocation130_spill] sm:$0xff] %v11210_v3  ;;  %v11222_v58 = vld [vmem:[%s12008_s5 + $0x78] sm:$0xff] }
 0x813   :  { %3106 = vmatpush.msrb.mxu2 %v11204_v34  ;;  %13640 = vst [vmem:[#allocation131_spill] sm:$0xff] %v11216_v19  ;;  %v11228_v34 = vld [vmem:[%s12005_s2 + $0xe8] sm:$0xff] }
 0x814   :  { %3200 = vmatpush.msra.mxu0 %v11210_v3  ;;  %13641 = vst [vmem:[#allocation132_spill] sm:$0xff] %v11222_v58  ;;  %v11234_v3 = vld [vmem:[%s12008_s5 + $0x60] sm:$0xff] }
 0x815   :  { %3107 = vmatpush.msrb.mxu2 %v11216_v19  ;;  %13642 = vst [vmem:[#allocation133_spill] sm:$0xff] %v11228_v34  ;;  %v11240_v19 = vld [vmem:[%s12005_s2 + $0xb8] sm:$0xff] }
 0x816   :  { %3201 = vmatpush.msra.mxu0 %v11222_v58  ;;  %13643 = vst [vmem:[#allocation134_spill] sm:$0xff] %v11234_v3  ;;  %v11246_v58 = vld [vmem:[%s12008_s5 + $0x48] sm:$0xff] }
 0x817   :  { %3108 = vmatpush.msrb.mxu2 %v11228_v34  ;;  %13644 = vst [vmem:[#allocation135_spill] sm:$0xff] %v11240_v19  ;;  %v11252_v34 = vld [vmem:[%s12005_s2 + $0x88] sm:$0xff] }
 0x818   :  { %3202 = vmatpush.msra.mxu0 %v11234_v3  ;;  %13645 = vst [vmem:[#allocation136_spill] sm:$0xff] %v11246_v58  ;;  %v11258_v3 = vld [vmem:[%s12008_s5 + $0x30] sm:$0xff] }
 0x819   :  { %3109 = vmatpush.msrb.mxu2 %v11240_v19  ;;  %13646 = vst [vmem:[#allocation137_spill] sm:$0xff] %v11252_v34  ;;  %v11264_v19 = vld [vmem:[%s12005_s2 + $0x58] sm:$0xff] }
 0x81a   :  { %3203 = vmatpush.msra.mxu0 %v11246_v58  ;;  %13647 = vst [vmem:[#allocation138_spill] sm:$0xff] %v11258_v3  ;;  %v11270_v58 = vld [vmem:[%s12008_s5 + $0x18] sm:$0xff] }
 0x81b   :  { %3110 = vmatpush.msrb.mxu2 %v11252_v34  ;;  %13648 = vst [vmem:[#allocation139_spill] sm:$0xff] %v11264_v19  ;;  %v11276_v34 = vld [vmem:[%s12005_s2 + $0x28] sm:$0xff] }
 0x81c   :  { %3204 = vmatpush.msra.mxu0 %v11258_v3  ;;  %13649 = vst [vmem:[#allocation140_spill] sm:$0xff] %v11270_v58  ;;  %v11298_v3 = vld [vmem:[%s12008_s5 + $0x160] sm:$0xff] }
 0x81d   :  { %3111 = vmatpush.msrb.mxu2 %v11264_v19  ;;  %13650 = vst [vmem:[#allocation141_spill] sm:$0xff] %v11276_v34  ;;  %v11283_v19 = vld [vmem:[%s12008_s5] sm:$0xff] }
 0x81e   :  { %3205 = vmatpush.msra.mxu0 %v11270_v58  ;;  %13651 = vst [vmem:[#allocation142_spill] sm:$0xff] %v11283_v19  ;;  %v11289_v58 = vld [vmem:[%s12008_s5 + $0x178] sm:$0xff] }
 0x81f   :  { %3112 = vmatpush.msrb.mxu2 %v11276_v34  ;;  %13652 = vst [vmem:[#allocation143_spill] sm:$0xff] %v11289_v58  ;;  %v4704_v34 = vld [vmem:[%s12005_s2 + $0x5d0] sm:$0xff] }
 0x820   :  { %3113 = vmatmul.f32.vlgmr.msrb.gmra.mxu2 %v10814_v55  ;;  %3206 = vmatpush.msra.mxu0 %v11283_v19  ;;  %13653 = vst [vmem:[#allocation144_spill] sm:$0xff] %v11298_v3  ;;  %v4706_v19 = vld [vmem:[%s12005_s2 + $0x5a0] sm:$0xff] }
 0x821   :  { %3231 = vmatpush.msra.mxu2 %v11289_v58  ;;  %v11307_v58 = vld [vmem:[%s12008_s5 + $0x148] sm:$0xff] }
 0x822   :  { %3319 = vmatpush.msrb.mxu0 %v4704_v34  ;;  %13654 = vst [vmem:[#allocation145_spill] sm:$0xff] %v11307_v58  ;;  %v4708_v34 = vld [vmem:[%s12005_s2 + $0x570] sm:$0xff] }
 0x823   :  { %3232 = vmatpush.msra.mxu2 %v11298_v3  ;;  %v11316_v3 = vld [vmem:[%s12008_s5 + $0x130] sm:$0xff] }
 0x824   :  { %3320 = vmatpush.msrb.mxu0 %v4706_v19  ;;  %13655 = vst [vmem:[#allocation146_spill] sm:$0xff] %v11316_v3  ;;  %v4710_v19 = vld [vmem:[%s12005_s2 + $0x540] sm:$0xff] }
 0x825   :  { %3233 = vmatpush.msra.mxu2 %v11307_v58  ;;  %v11325_v58 = vld [vmem:[%s12008_s5 + $0x118] sm:$0xff] }
 0x826   :  { %3321 = vmatpush.msrb.mxu0 %v4708_v34  ;;  %13656 = vst [vmem:[#allocation147_spill] sm:$0xff] %v11325_v58  ;;  %v4712_v34 = vld [vmem:[%s12005_s2 + $0x510] sm:$0xff] }
 0x827   :  { %3234 = vmatpush.msra.mxu2 %v11316_v3  ;;  %v11334_v3 = vld [vmem:[%s12008_s5 + $0x100] sm:$0xff] }
 0x828   :  { %3322 = vmatpush.msrb.mxu0 %v4710_v19  ;;  %13657 = vst [vmem:[#allocation148_spill] sm:$0xff] %v11334_v3  ;;  %v4714_v19 = vld [vmem:[%s12005_s2 + $0x4e0] sm:$0xff] }
 0x829   :  { %3235 = vmatpush.msra.mxu2 %v11325_v58  ;;  %v11343_v58 = vld [vmem:[%s12008_s5 + $0xe8] sm:$0xff] }
 0x82a   :  { %3323 = vmatpush.msrb.mxu0 %v4712_v34  ;;  %13658 = vst [vmem:[#allocation149_spill] sm:$0xff] %v11343_v58  ;;  %v4716_v34 = vld [vmem:[%s12005_s2 + $0x4b0] sm:$0xff] }
 0x82b   :  { %3236 = vmatpush.msra.mxu2 %v11334_v3  ;;  %v11352_v3 = vld [vmem:[%s12008_s5 + $0xd0] sm:$0xff] }
 0x82c   :  { %3324 = vmatpush.msrb.mxu0 %v4714_v19  ;;  %13659 = vst [vmem:[#allocation150_spill] sm:$0xff] %v11352_v3  ;;  %v4718_v19 = vld [vmem:[%s12005_s2 + $0x480] sm:$0xff] }
 0x82d   :  { %3237 = vmatpush.msra.mxu2 %v11343_v58  ;;  %v11361_v58 = vld [vmem:[%s12008_s5 + $0xb8] sm:$0xff] }
 0x82e   :  { %3325 = vmatpush.msrb.mxu0 %v4716_v34  ;;  %13660 = vst [vmem:[#allocation151_spill] sm:$0xff] %v11361_v58  ;;  %v4720_v34 = vld [vmem:[%s12005_s2 + $0x450] sm:$0xff] }
 0x82f   :  { %3238 = vmatpush.msra.mxu2 %v11352_v3  ;;  %v11370_v3 = vld [vmem:[%s12008_s5 + $0xa0] sm:$0xff] }
 0x830   :  { %3326 = vmatpush.msrb.mxu0 %v4718_v19  ;;  %13661 = vst [vmem:[#allocation152_spill] sm:$0xff] %v11370_v3  ;;  %v4722_v19 = vld [vmem:[%s12005_s2 + $0x420] sm:$0xff] }
 0x831   :  { %3239 = vmatpush.msra.mxu2 %v11361_v58  ;;  %v11379_v58 = vld [vmem:[%s12008_s5 + $0x88] sm:$0xff] }
 0x832   :  { %3327 = vmatpush.msrb.mxu0 %v4720_v34  ;;  %13662 = vst [vmem:[#allocation153_spill] sm:$0xff] %v11379_v58  ;;  %v4724_v34 = vld [vmem:[%s12005_s2 + $0x3f0] sm:$0xff] }
 0x833   :  { %3240 = vmatpush.msra.mxu2 %v11370_v3  ;;  %v11388_v3 = vld [vmem:[%s12008_s5 + $0x70] sm:$0xff] }
 0x834   :  { %3328 = vmatpush.msrb.mxu0 %v4722_v19  ;;  %13663 = vst [vmem:[#allocation154_spill] sm:$0xff] %v11388_v3  ;;  %v4726_v19 = vld [vmem:[%s12005_s2 + $0x3c0] sm:$0xff] }
 0x835   :  { %3241 = vmatpush.msra.mxu2 %v11379_v58  ;;  %v11397_v58 = vld [vmem:[%s12008_s5 + $0x58] sm:$0xff] }
 0x836   :  { %3329 = vmatpush.msrb.mxu0 %v4724_v34  ;;  %13664 = vst [vmem:[#allocation155_spill] sm:$0xff] %v11397_v58  ;;  %v4728_v34 = vld [vmem:[%s12005_s2 + $0x390] sm:$0xff] }
 0x837   :  { %3242 = vmatpush.msra.mxu2 %v11388_v3  ;;  %v11406_v3 = vld [vmem:[%s12008_s5 + $0x40] sm:$0xff] }
 0x838   :  { %3330 = vmatpush.msrb.mxu0 %v4726_v19  ;;  %13665 = vst [vmem:[#allocation156_spill] sm:$0xff] %v11406_v3  ;;  %v4730_v19 = vld [vmem:[%s12005_s2 + $0x360] sm:$0xff] }
 0x839   :  { %3243 = vmatpush.msra.mxu2 %v11397_v58  ;;  %v11415_v58 = vld [vmem:[%s12008_s5 + $0x28] sm:$0xff] }
 0x83a   :  { %3331 = vmatpush.msrb.mxu0 %v4728_v34  ;;  %13666 = vst [vmem:[#allocation157_spill] sm:$0xff] %v11415_v58  ;;  %v4732_v34 = vld [vmem:[%s12005_s2 + $0x330] sm:$0xff] }
 0x83b   :  { %3244 = vmatpush.msra.mxu2 %v11406_v3  ;;  %v11424_v3 = vld [vmem:[%s12008_s5 + $0x10] sm:$0xff] }
 0x83c   :  { %3332 = vmatpush.msrb.mxu0 %v4730_v19  ;;  %13667 = vst [vmem:[#allocation158_spill] sm:$0xff] %v11424_v3  ;;  %v4734_v19 = vld [vmem:[%s12005_s2 + $0x300] sm:$0xff] }
 0x83d   :  { %3245 = vmatpush.msra.mxu2 %v11415_v58  ;;  %v4735_v58 = vld [vmem:[%s12005_s2 + $0x5d8] sm:$0xff] }
 0x83e   :  { %3333 = vmatpush.msrb.mxu0 %v4732_v34  ;;  %v4736_v34 = vld [vmem:[%s12005_s2 + $0x5a8] sm:$0xff] }
 0x83f   :  { %3246 = vmatpush.msra.mxu2 %v11424_v3  ;;  %v4738_v3 = vld [vmem:[%s12005_s2 + $0x548] sm:$0xff] }
 0x840   :  { %3334 = vmatpush.msrb.mxu0 %v4734_v19  ;;  %v4739_v19 = vld [vmem:[%s12005_s2 + $0x518] sm:$0xff] }
 0x841   :  { %3359 = vmatpush.msrb.mxu2 %v4735_v58  ;;  %v4740_v58 = vld [vmem:[%s12005_s2 + $0x4e8] sm:$0xff] }
 0x843   :  { %3360 = vmatpush.msrb.mxu2 %v4736_v34  ;;  %v4741_v34 = vld [vmem:[%s12005_s2 + $0x4b8] sm:$0xff] }
 0x845   :  { %3361 = vmatpush.msrb.mxu2 %v4737_v53  ;;  %v4742_v53 = vld [vmem:[%s12005_s2 + $0x488] sm:$0xff] }
 0x847   :  { %3362 = vmatpush.msrb.mxu2 %v4738_v3  ;;  %v4743_v3 = vld [vmem:[%s12005_s2 + $0x458] sm:$0xff] }
 0x849   :  { %3363 = vmatpush.msrb.mxu2 %v4739_v19  ;;  %v4744_v19 = vld [vmem:[%s12005_s2 + $0x428] sm:$0xff] }
 0x84b   :  { %3364 = vmatpush.msrb.mxu2 %v4740_v58  ;;  %v2672_v58 = vpop.f32.mrf.mxu1 }
 0x84c   :  { %v2693_v46 = vadd.f32 %v2692_v18, %v2672_v58 }
 0x84d   :  { %3365 = vmatpush.msrb.mxu2 %v4741_v34  ;;  %v4745_v34 = vld [vmem:[%s12005_s2 + $0x3f8] sm:$0xff] }
 0x84f   :  { %3366 = vmatpush.msrb.mxu2 %v4742_v53  ;;  %v4746_v53 = vld [vmem:[%s12005_s2 + $0x3c8] sm:$0xff] }
 0x851   :  { %3367 = vmatpush.msrb.mxu2 %v4743_v3  ;;  %v4747_v3 = vld [vmem:[%s12005_s2 + $0x398] sm:$0xff] }
 0x853   :  { %3368 = vmatpush.msrb.mxu2 %v4744_v19  ;;  %v4748_v19 = vld [vmem:[%s12005_s2 + $0x368] sm:$0xff] }
 0x855   :  { %3369 = vmatpush.msrb.mxu2 %v4745_v34  ;;  %v4749_v34 = vld [vmem:[%s12005_s2 + $0x338] sm:$0xff] }
 0x857   :  { %3370 = vmatpush.msrb.mxu2 %v4746_v53  ;;  %v2653_v53 = vadd.f32 %v2652_v40, %v2632_v17  ;;  %v2712_v40 = vpop.f32.mrf.mxu3 }
 0x859   :  { %3371 = vmatpush.msrb.mxu2 %v4747_v3  ;;  %v4750_v3 = vld [vmem:[%s12005_s2 + $0x308] sm:$0xff] }
 0x85b   :  { %3372 = vmatpush.msrb.mxu2 %v4748_v19 }
 0x85c   :  { %v2806_v27 = vpop.f32.mrf.mxu1 }
 0x85d   :  { %3373 = vmatpush.msrb.mxu2 %v4749_v34  ;;  %v2807_v48 = vadd.f32 %v2806_v27, %v13516_v56 }
 0x85f   :  { %3374 = vmatpush.msrb.mxu2 %v4750_v3  ;;  %v2849_v20 = vadd.f32 %v2807_v48, %v2653_v53  ;;  %v2732_v3 = vpop.f32.mrf.mxu0 }
 0x860   :  { %v2733_v53 = vadd.f32 %v2732_v3, %v2712_v40 }
 0x861   :  { %v3818_v7 = vmul.f32 -1.442695, %v2849_v20 }
 0x862   :  { %v2826_v35 = vpop.f32.mrf.mxu2 }
 0x863   :  { %3943 = vpow2.f32 %v3818_v7  ;;  %v2827_v19 = vadd.f32 %v2826_v35, %v13517_v28 }
 0x865   :  { %v2869_v4 = vadd.f32 %v2827_v19, %v2693_v46 }
 0x867   :  { %v3819_v62 = vmul.f32 -1.442695, %v2869_v4  ;;  %v2846_v4 = vpop.f32.mrf.mxu3 }
 0x868   :  { %v2847_v28 = vadd.f32 %v2846_v4, %v6720_v31  ;;  %v13686_v4 = vld [vmem:[#allocation61_spill] sm:$0xff] }
 0x869   :  { %v3944_v25 = vpop.eup %3943  ;;  %3945 = vpow2.f32 %v3819_v62  ;;  %v2889_v62 = vadd.f32 %v10227_v49, %v2733_v53 }
 0x86a   :  { %v2853_v34 = vadd.f32 1.0, %v3944_v25 }
 0x86c   :  { %3947 = vrcp.f32 %v2853_v34  ;;  %v2865_v20 = vand.u32 2147483648, %v2853_v34  ;;  %v2863_v7 = vand.u32 2147483647, %v2853_v34  ;;  %vm2859_vm10 = vweird.f32 %v2853_v34 }
 0x86e   :  { %v2866_v25 = vor.u32 1.1754944e-38, %v2865_v20  ;;  %vm2864_vm12 = vcmp.eq.f32.partialorder %v2863_v7, 8.507059e+37 }
 0x86f   :  { %v3946_v17 = vpop.eup %3945 }
 0x870   :  { %v2873_v27 = vadd.f32 1.0, %v3946_v17 }
 0x872   :  { %v3948_v56 = vpop.eup %3947  ;;  %3949 = vrcp.f32 %v2873_v27  ;;  %v2885_v40 = vand.u32 2147483648, %v2873_v27  ;;  %vm2879_vm14 = vweird.f32 %v2873_v27 }
 0x873   :  { %v2855_v42 = vmul.f32 %v3948_v56, %v2853_v34  ;;  %vm2860_vm9 = vweird.f32 %v3948_v56 }
 0x874   :  { %vm2861_vm11 = vmor %vm2859_vm10, %vm2860_vm9 }
 0x875   :  { %v2856_v48 = vsub.f32 1.0, %v2855_v42 }
 0x877   :  { %v2857_v18 = vmul.f32 %v3948_v56, %v2856_v48  ;;  %v2883_v48 = vand.u32 2147483647, %v2873_v27 }
 0x878   :  { %v3950_v35 = vpop.eup %3949 }
 0x879   :  { %v2875_v46 = vmul.f32 %v3950_v35, %v2873_v27  ;;  %v2858_v58 = vadd.f32 %v3948_v56, %v2857_v18  ;;  %vm2880_vm13 = vweird.f32 %v3950_v35  ;;  %v2886_v18 = vor.u32 1.1754944e-38, %v2885_v40  ;;  %v13684_v27 = vld [vmem:[#allocation57_spill] sm:$0xff]  ;;  %v13693_v40 = vld [vmem:[#allocation38_spill] sm:$0xff] }
 0x87a   :  { %vm2881_vm15 = vmor %vm2879_vm14, %vm2880_vm13  ;;  %vm2884_vm0 = vcmp.eq.f32.partialorder %v2883_v48, 8.507059e+37  ;;  %v13695_v48 = vld [vmem:[#allocation41_spill] sm:$0xff] }
 0x87b   :  { %v2876_v19 = vsub.f32 1.0, %v2875_v46  ;;  %v2862_v17 = vsel %vm2861_vm11, %v3948_v56, %v2858_v58  ;;  %v13687_v58 = vld [vmem:[#allocation33_spill] sm:$0xff] }
 0x87c   :  { %v2867_v42 = vsel %vm2864_vm12, %v2866_v25, %v2862_v17  ;;  %v13688_v25 = vld [vmem:[#allocation64_spill] sm:$0xff]  ;;  %v13691_v17 = vld [vmem:[#allocation35_spill] sm:$0xff] }
 0x87d   :  { %v2877_v59 = vmul.f32 %v3950_v35, %v2876_v19  ;;  %v2890_v3 = vmul.f32 %v2889_v62, %v2867_v42  ;;  %v13689_v62 = vld [vmem:[#allocation34_spill] sm:$0xff]  ;;  %v13692_v42 = vld [vmem:[#allocation69_spill] sm:$0xff] }
 0x87e   :  { %v13690_v19 = vld [vmem:[#allocation66_spill] sm:$0xff] }
 0x87f   :  { %v2878_v24 = vadd.f32 %v3950_v35, %v2877_v59  ;;  %v2891_v26 = vadd.f32 %v2890_v3, %v2847_v28  ;;  %v13668_v28 = vld [vmem:[#allocation200_spill] sm:$0xff]  ;;  %v13683_v59 = vld [vmem:[#allocation11_spill] sm:$0xff] }
 0x880   :  { %v13694_v3 = vld [vmem:[#allocation39_spill] sm:$0xff] }
 0x881   :  { %v2882_v34 = vsel %vm2881_vm15, %v3950_v35, %v2878_v24  ;;  %3951 = vtanh.f32 %v2891_v26  ;;  %v13681_v26 = vld [vmem:[#allocation10_spill] sm:$0xff]  ;;  %v13682_v24 = vld [vmem:[#allocation28_spill] sm:$0xff]  ;;  %v13685_v35 = vld [vmem:[#allocation31_spill] sm:$0xff] }
 0x882   :  { %v2887_v49 = vsel %vm2884_vm0, %v2886_v18, %v2882_v34  ;;  %v13696_v34 = vld [vmem:[#allocation42_spill] sm:$0xff]  ;;  %v13697_v18 = vld [vmem:[#allocation45_spill] sm:$0xff] }
 0x883   :  { %v2893_v20 = vsub.f32 1.0, %v2887_v49  ;;  %v2895_v7 = vmul.f32 %v2887_v49, %v10232_v50  ;;  %v13669_v50 = vld [vmem:[#allocation201_spill] sm:$0xff]  ;;  %v13698_v49 = vld [vmem:[#allocation46_spill] sm:$0xff] }
 0x887   :  { %v3952_v56 = vpop.eup %3951 }
 0x888   :  { %v2894_v53 = vmul.f32 %v3952_v56, %v2893_v20  ;;  %v13699_v20 = vld [vmem:[#allocation47_spill] sm:$0xff]  ;;  %v13700_v56 = vld [vmem:[#allocation49_spill] sm:$0xff] }
 0x88a   :  { %v11483_v46 = vadd.f32 %v2895_v7, %v2894_v53  ;;  %v13701_v53 = vld [vmem:[#allocation52_spill] sm:$0xff]  ;;  %v13702_v7 = vld [vmem:[#allocation53_spill] sm:$0xff] }
 0x88c   :  { %2933 = vmatmul.f32.vlgmr.msrb.gmra.mxu1 %v11483_v46  ;;  %2973 = vmatmul.f32.vlgmr.msra.gmra.mxu3 %v11483_v46 }
 0x88d   :  { %3077 = vmatpush.msrb.mxu1 %v10239_v32  ;;  %3117 = vmatpush.msra.mxu3 %v10245_v57  ;;  %v13670_v32 = vld [vmem:[#allocation202_spill] sm:$0xff]  ;;  %v13671_v57 = vld [vmem:[#allocation203_spill] sm:$0xff] }
 0x88f   :  { %3078 = vmatpush.msrb.mxu1 %v10251_v44  ;;  %3118 = vmatpush.msra.mxu3 %v10257_v23  ;;  %v13672_v44 = vld [vmem:[#allocation29_spill] sm:$0xff]  ;;  %v13673_v23 = vld [vmem:[#allocation30_spill] sm:$0xff] }
 0x891   :  { %3079 = vmatpush.msrb.mxu1 %v10263_v41  ;;  %3119 = vmatpush.msra.mxu3 %v10269_v2  ;;  %v13674_v41 = vld [vmem:[#allocation48_spill] sm:$0xff]  ;;  %v13675_v2 = vld [vmem:[#allocation7_spill] sm:$0xff] }
 0x893   :  { %3080 = vmatpush.msrb.mxu1 %v10275_v63  ;;  %3120 = vmatpush.msra.mxu3 %v10281_v45  ;;  %v13676_v63 = vld [vmem:[#allocation23_spill] sm:$0xff]  ;;  %v13677_v45 = vld [vmem:[#allocation8_spill] sm:$0xff] }
 0x894   :  { %3013 = vmatmul.f32.vlgmr.msra.gmra.mxu1 %v11483_v46  ;;  %3053 = vmatmul.f32.vlgmr.msrb.gmra.mxu3 %v11483_v46 }
 0x895   :  { %3081 = vmatpush.msrb.mxu1 %v10289_v11  ;;  %3121 = vmatpush.msra.mxu3 %v10295_v9  ;;  %v13678_v11 = vld [vmem:[#allocation26_spill] sm:$0xff]  ;;  %v13679_v9 = vld [vmem:[#allocation9_spill] sm:$0xff] }
 0x897   :  { %3082 = vmatpush.msrb.mxu1 %v10301_v47  ;;  %3122 = vmatpush.msra.mxu3 %v13668_v28  ;;  %v13680_v47 = vld [vmem:[#allocation27_spill] sm:$0xff] }
 0x898   :  { %v13703_v28 = vld [vmem:[#allocation55_spill] sm:$0xff] }
 0x899   :  { %3083 = vmatpush.msrb.mxu1 %v13669_v50  ;;  %3123 = vmatpush.msra.mxu3 %v13670_v32  ;;  %v13704_v50 = vld [vmem:[#allocation58_spill] sm:$0xff]  ;;  %v13705_v32 = vld [vmem:[#allocation63_spill] sm:$0xff] }
 0x89b   :  { %3084 = vmatpush.msrb.mxu1 %v13671_v57  ;;  %3124 = vmatpush.msra.mxu3 %v13672_v44  ;;  %v13706_v57 = vld [vmem:[#allocation65_spill] sm:$0xff]  ;;  %v13707_v44 = vld [vmem:[#allocation67_spill] sm:$0xff] }
 0x89d   :  { %3085 = vmatpush.msrb.mxu1 %v13673_v23  ;;  %3125 = vmatpush.msra.mxu3 %v13674_v41  ;;  %v13708_v23 = vld [vmem:[#allocation73_spill] sm:$0xff]  ;;  %v13709_v41 = vld [vmem:[#allocation74_spill] sm:$0xff] }
 0x89f   :  { %3086 = vmatpush.msrb.mxu1 %v13675_v2  ;;  %3126 = vmatpush.msra.mxu3 %v13676_v63  ;;  %v13710_v2 = vld [vmem:[#allocation76_spill] sm:$0xff]  ;;  %v13711_v63 = vld [vmem:[#allocation77_spill] sm:$0xff] }
 0x8a1   :  { %3087 = vmatpush.msrb.mxu1 %v13677_v45  ;;  %3127 = vmatpush.msra.mxu3 %v13678_v11  ;;  %v13712_v45 = vld [vmem:[#allocation78_spill] sm:$0xff]  ;;  %v13713_v11 = vld [vmem:[#allocation79_spill] sm:$0xff] }
 0x8a3   :  { %3088 = vmatpush.msrb.mxu1 %v13679_v9  ;;  %3128 = vmatpush.msra.mxu3 %v13680_v47  ;;  %v13714_v9 = vld [vmem:[#allocation81_spill] sm:$0xff]  ;;  %v13715_v47 = vld [vmem:[#allocation83_spill] sm:$0xff] }
 0x8a5   :  { %3089 = vmatpush.msrb.mxu1 %v13681_v26  ;;  %3129 = vmatpush.msra.mxu3 %v13682_v24  ;;  %v13716_v26 = vld [vmem:[#allocation84_spill] sm:$0xff]  ;;  %v11554_v24 = vld [vmem:[%s12008_s5 + $0x20] sm:$0xff] }
 0x8a7   :  { %3090 = vmatpush.msrb.mxu1 %v13683_v59  ;;  %3130 = vmatpush.msra.mxu3 %v13684_v27  ;;  %v13717_v59 = vld [vmem:[#allocation85_spill] sm:$0xff]  ;;  %v11561_v27 = vld [vmem:[%s12008_s5 + $0x8] sm:$0xff] }
 0x8a9   :  { %3091 = vmatpush.msrb.mxu1 %v13685_v35  ;;  %3131 = vmatpush.msra.mxu3 %v13686_v4  ;;  %v13718_v35 = vld [vmem:[#allocation86_spill] sm:$0xff] }
 0x8aa   :  { %v13719_v4 = vld [vmem:[#allocation54_spill] sm:$0xff] }
 0x8ab   :  { %3092 = vmatpush.msrb.mxu1 %v13687_v58  ;;  %3132 = vmatpush.msra.mxu3 %v13688_v25  ;;  %v13720_v58 = vld [vmem:[#allocation56_spill] sm:$0xff]  ;;  %v13721_v25 = vld [vmem:[#allocation87_spill] sm:$0xff] }
 0x8ac   :  { %3093 = vmatmul.f32.vlgmr.msrb.gmra.mxu1 %v11483_v46  ;;  %3133 = vmatmul.f32.vlgmr.msra.gmra.mxu3 %v11483_v46 }
 0x8ad   :  { %3211 = vmatpush.msra.mxu1 %v13689_v62  ;;  %3299 = vmatpush.msrb.mxu3 %v13690_v19  ;;  %v13722_v62 = vld [vmem:[#allocation88_spill] sm:$0xff]  ;;  %v13723_v19 = vld [vmem:[#allocation89_spill] sm:$0xff] }
 0x8af   :  { %3212 = vmatpush.msra.mxu1 %v13691_v17  ;;  %3300 = vmatpush.msrb.mxu3 %v13692_v42  ;;  %v13724_v17 = vld [vmem:[#allocation90_spill] sm:$0xff]  ;;  %v13725_v42 = vld [vmem:[#allocation91_spill] sm:$0xff] }
 0x8b1   :  { %3213 = vmatpush.msra.mxu1 %v13693_v40  ;;  %3301 = vmatpush.msrb.mxu3 %v13694_v3  ;;  %v13726_v40 = vld [vmem:[#allocation92_spill] sm:$0xff]  ;;  %v13727_v3 = vld [vmem:[#allocation93_spill] sm:$0xff] }
 0x8b3   :  { %3214 = vmatpush.msra.mxu1 %v13695_v48  ;;  %3302 = vmatpush.msrb.mxu3 %v13696_v34  ;;  %v13728_v48 = vld [vmem:[#allocation94_spill] sm:$0xff]  ;;  %v13729_v34 = vld [vmem:[#allocation95_spill] sm:$0xff] }
 0x8b5   :  { %3215 = vmatpush.msra.mxu1 %v13697_v18  ;;  %3303 = vmatpush.msrb.mxu3 %v13698_v49  ;;  %v13730_v18 = vld [vmem:[#allocation96_spill] sm:$0xff]  ;;  %v13731_v49 = vld [vmem:[#allocation97_spill] sm:$0xff] }
 0x8b7   :  { %3216 = vmatpush.msra.mxu1 %v13699_v20  ;;  %3304 = vmatpush.msrb.mxu3 %v13700_v56  ;;  %v13732_v20 = vld [vmem:[#allocation98_spill] sm:$0xff]  ;;  %v13733_v56 = vld [vmem:[#allocation99_spill] sm:$0xff] }
 0x8b9   :  { %3217 = vmatpush.msra.mxu1 %v13701_v53  ;;  %3305 = vmatpush.msrb.mxu3 %v13702_v7  ;;  %v13734_v53 = vld [vmem:[#allocation100_spill] sm:$0xff]  ;;  %v13735_v7 = vld [vmem:[#allocation101_spill] sm:$0xff] }
 0x8bb   :  { %3218 = vmatpush.msra.mxu1 %v13703_v28  ;;  %3306 = vmatpush.msrb.mxu3 %v13704_v50  ;;  %v13736_v28 = vld [vmem:[#allocation102_spill] sm:$0xff]  ;;  %v13737_v50 = vld [vmem:[#allocation103_spill] sm:$0xff] }
 0x8bd   :  { %3219 = vmatpush.msra.mxu1 %v13705_v32  ;;  %3307 = vmatpush.msrb.mxu3 %v13706_v57  ;;  %v13738_v32 = vld [vmem:[#allocation104_spill] sm:$0xff]  ;;  %v13739_v57 = vld [vmem:[#allocation105_spill] sm:$0xff] }
 0x8bf   :  { %3220 = vmatpush.msra.mxu1 %v13707_v44  ;;  %3308 = vmatpush.msrb.mxu3 %v13708_v23  ;;  %v13740_v44 = vld [vmem:[#allocation106_spill] sm:$0xff]  ;;  %v13741_v23 = vld [vmem:[#allocation107_spill] sm:$0xff] }
 0x8c1   :  { %3221 = vmatpush.msra.mxu1 %v13709_v41  ;;  %3309 = vmatpush.msrb.mxu3 %v13710_v2  ;;  %v13742_v41 = vld [vmem:[#allocation108_spill] sm:$0xff]  ;;  %v13743_v2 = vld [vmem:[#allocation109_spill] sm:$0xff] }
 0x8c3   :  { %3222 = vmatpush.msra.mxu1 %v13711_v63  ;;  %3310 = vmatpush.msrb.mxu3 %v13712_v45  ;;  %v13744_v63 = vld [vmem:[#allocation110_spill] sm:$0xff]  ;;  %v13745_v45 = vld [vmem:[#allocation111_spill] sm:$0xff] }
 0x8c5   :  { %3223 = vmatpush.msra.mxu1 %v13713_v11  ;;  %3311 = vmatpush.msrb.mxu3 %v13714_v9  ;;  %v13746_v11 = vld [vmem:[#allocation112_spill] sm:$0xff] }
 0x8c6   :  { %v13747_v9 = vld [vmem:[#allocation24_spill] sm:$0xff] }
 0x8c7   :  { %3224 = vmatpush.msra.mxu1 %v13715_v47  ;;  %3312 = vmatpush.msrb.mxu3 %v13716_v26  ;;  %v13748_v47 = vld [vmem:[#allocation25_spill] sm:$0xff]  ;;  %v13749_v26 = vld [vmem:[#allocation40_spill] sm:$0xff] }
 0x8c9   :  { %3225 = vmatpush.msra.mxu1 %v11554_v24  ;;  %3313 = vmatpush.msrb.mxu3 %v13717_v59  ;;  %v13750_v59 = vld [vmem:[#allocation19_spill] sm:$0xff] }
 0x8cb   :  { %3226 = vmatpush.msra.mxu1 %v11561_v27  ;;  %3314 = vmatpush.msrb.mxu3 %v13718_v35  ;;  %v2914_v35 = vpop.f32.mrf.mxu0 }
 0x8cd   :  { %3339 = vmatpush.msrb.mxu1 %v13719_v4  ;;  %3379 = vmatpush.msra.mxu3 %v13720_v58  ;;  %v13751_v58 = vld [vmem:[#allocation70_spill] sm:$0xff] }
 0x8cf   :  { %3340 = vmatpush.msrb.mxu1 %v13721_v25  ;;  %3380 = vmatpush.msra.mxu3 %v13722_v62  ;;  %v13752_v25 = vld [vmem:[#allocation50_spill] sm:$0xff] }
 0x8d0   :  { %v118_v62 = vadd.f32 %v13752_v25, %v13751_v58  ;;  %v11604_v25 = vld [vmem:[%s12007_s4] ss:$0 sm:$0xff] }
 0x8d1   :  { %3341 = vmatpush.msrb.mxu1 %v13723_v19  ;;  %3381 = vmatpush.msra.mxu3 %v13724_v17 }
 0x8d3   :  { %3342 = vmatpush.msrb.mxu1 %v13725_v42  ;;  %3382 = vmatpush.msra.mxu3 %v13726_v40  ;;  %v2954_v40 = vpop.f32.mrf.mxu2 }
 0x8d5   :  { %3343 = vmatpush.msrb.mxu1 %v13727_v3  ;;  %3383 = vmatpush.msra.mxu3 %v13728_v48  ;;  %v13753_v48 = vld [vmem:[#allocation68_spill] sm:$0xff] }
 0x8d7   :  { %3344 = vmatpush.msrb.mxu1 %v13729_v34  ;;  %3384 = vmatpush.msra.mxu3 %v13730_v18  ;;  %v13754_v34 = vld [vmem:[#allocation51_spill] sm:$0xff] }
 0x8d8   :  { %v159_v18 = vadd.f32 %v13754_v34, %v13753_v48 }
 0x8d9   :  { %3345 = vmatpush.msrb.mxu1 %v13731_v49  ;;  %3385 = vmatpush.msra.mxu3 %v13732_v20 }
 0x8db   :  { %3346 = vmatpush.msrb.mxu1 %v13733_v56  ;;  %3386 = vmatpush.msra.mxu3 %v13734_v53 }
 0x8dd   :  { %3347 = vmatpush.msrb.mxu1 %v13735_v7  ;;  %3387 = vmatpush.msra.mxu3 %v13736_v28 }
 0x8df   :  { %3348 = vmatpush.msrb.mxu1 %v13737_v50  ;;  %3388 = vmatpush.msra.mxu3 %v13738_v32 }
 0x8e1   :  { %3349 = vmatpush.msrb.mxu1 %v13739_v57  ;;  %3389 = vmatpush.msra.mxu3 %v13740_v44 }
 0x8e3   :  { %3350 = vmatpush.msrb.mxu1 %v13741_v23  ;;  %3390 = vmatpush.msra.mxu3 %v13742_v41  ;;  %v2994_v41 = vpop.f32.mrf.mxu0 }
 0x8e5   :  { %3351 = vmatpush.msrb.mxu1 %v13743_v2  ;;  %3391 = vmatpush.msra.mxu3 %v13744_v63 }
 0x8e7   :  { %3352 = vmatpush.msrb.mxu1 %v13745_v45  ;;  %3392 = vmatpush.msra.mxu3 %v13746_v11 }
 0x8e9   :  { %3353 = vmatpush.msrb.mxu1 %v13747_v9  ;;  %3393 = vmatpush.msra.mxu3 %v13748_v47 }
 0x8eb   :  { %3354 = vmatpush.msrb.mxu1 %v13749_v26  ;;  %3394 = vmatpush.msra.mxu3 %v13750_v59 }
 0x909   :  { %v2934_v4 = vpop.f32.mrf.mxu1 }
 0x90a   :  { %v2935_v19 = vadd.f32 %v2934_v4, %v2914_v35 }
 0x90c   :  { %v3143_v17 = vadd.f32 %v2935_v19, %v118_v62  ;;  %v13755_v19 = vld [vmem:[#allocation72_spill] sm:$0xff] }
 0x90e   :  { %v3820_v42 = vmul.f32 -1.442695, %v3143_v17  ;;  %v200_v17 = vadd.f32 %v13755_v19, %v12846_v39  ;;  %v13774_v19 = vld [vmem:[#allocation120_spill] sm:$0xff] }
 0x90f   :  { %v2974_v3 = vpop.f32.mrf.mxu3 }
 0x910   :  { %3953 = vpow2.f32 %v3820_v42  ;;  %v2975_v49 = vadd.f32 %v2974_v3, %v2954_v40 }
 0x911   :  { %v3014_v44 = vpop.f32.mrf.mxu1 }
 0x912   :  { %v3163_v20 = vadd.f32 %v2975_v49, %v159_v18  ;;  %v3015_v63 = vadd.f32 %v3014_v44, %v2994_v41  ;;  %v4770_v41 = vld [vmem:[%s12005_s2 + $0x3a0] sm:$0xff] }
 0x914   :  { %v3821_v56 = vmul.f32 -1.442695, %v3163_v20  ;;  %v3183_v62 = vadd.f32 %v11604_v25, %v3015_v63  ;;  %v13768_v63 = vld [vmem:[#allocation114_spill] sm:$0xff] }
 0x916   :  { %v3954_v53 = vpop.eup %3953  ;;  %3955 = vpow2.f32 %v3821_v56 }
 0x917   :  { %v3147_v7 = vadd.f32 1.0, %v3954_v53 }
 0x919   :  { %3957 = vrcp.f32 %v3147_v7  ;;  %v3159_v2 = vand.u32 2147483648, %v3147_v7  ;;  %v3157_v11 = vand.u32 2147483647, %v3147_v7  ;;  %vm3153_vm2 = vweird.f32 %v3147_v7 }
 0x91b   :  { %v3160_v59 = vor.u32 1.1754944e-38, %v3159_v2  ;;  %vm3158_vm4 = vcmp.eq.f32.partialorder %v3157_v11, 8.507059e+37  ;;  %v13767_v2 = vld [vmem:[#allocation113_spill] sm:$0xff] }
 0x91c   :  { %v3956_v28 = vpop.eup %3955  ;;  %v4771_v11 = vld [vmem:[%s12005_s2 + $0x370] sm:$0xff] }
 0x91d   :  { %v3167_v50 = vadd.f32 1.0, %v3956_v28 }
 0x91f   :  { %v3958_v32 = vpop.eup %3957  ;;  %3959 = vrcp.f32 %v3167_v50  ;;  %v3179_v3 = vand.u32 2147483648, %v3167_v50  ;;  %v3177_v18 = vand.u32 2147483647, %v3167_v50  ;;  %vm3173_vm6 = vweird.f32 %v3167_v50 }
 0x920   :  { %v3149_v57 = vmul.f32 %v3958_v32, %v3147_v7  ;;  %vm3154_vm1 = vweird.f32 %v3958_v32 }
 0x921   :  { %vm3155_vm3 = vmor %vm3153_vm2, %vm3154_vm1  ;;  %v3180_v56 = vor.u32 1.1754944e-38, %v3179_v3  ;;  %vm3178_vm8 = vcmp.eq.f32.partialorder %v3177_v18, 8.507059e+37  ;;  %v13776_v3 = vld [vmem:[#allocation122_spill] sm:$0xff]  ;;  %v13778_v18 = vld [vmem:[#allocation123_spill] sm:$0xff] }
 0x922   :  { %v3150_v23 = vsub.f32 1.0, %v3149_v57 }
 0x924   :  { %v3151_v45 = vmul.f32 %v3958_v32, %v3150_v23 }
 0x925   :  { %v3960_v9 = vpop.eup %3959 }
 0x926   :  { %v3169_v47 = vmul.f32 %v3960_v9, %v3167_v50  ;;  %v3152_v26 = vadd.f32 %v3958_v32, %v3151_v45  ;;  %vm3174_vm5 = vweird.f32 %v3960_v9  ;;  %v4754_v50 = vld [vmem:[%s12005_s2 + $0x5e0] sm:$0xff] }
 0x927   :  { %vm3175_vm7 = vmor %vm3173_vm6, %vm3174_vm5  ;;  %v13769_v45 = vld [vmem:[#allocation115_spill] sm:$0xff] }
 0x928   :  { %v3170_v35 = vsub.f32 1.0, %v3169_v47  ;;  %v3156_v4 = vsel %vm3155_vm3, %v3958_v32, %v3152_v26  ;;  %v13770_v47 = vld [vmem:[#allocation116_spill] sm:$0xff]  ;;  %v13771_v26 = vld [vmem:[#allocation117_spill] sm:$0xff] }
 0x929   :  { %v3161_v42 = vsel %vm3158_vm4, %v3160_v59, %v3156_v4  ;;  %v13772_v59 = vld [vmem:[#allocation118_spill] sm:$0xff]  ;;  %v4774_v4 = vld [vmem:[%s12005_s2 + $0x348] sm:$0xff] }
 0x92a   :  { %v3171_v40 = vmul.f32 %v3960_v9, %v3170_v35  ;;  %v3184_v34 = vmul.f32 %v3183_v62, %v3161_v42  ;;  %v4773_v35 = vld [vmem:[%s12005_s2 + $0x340] sm:$0xff]  ;;  %v4776_v42 = vld [vmem:[%s12005_s2 + $0x318] sm:$0xff] }
 0x92b   :  { %v13773_v62 = vld [vmem:[#allocation119_spill] sm:$0xff] }
 0x92c   :  { %v3172_v49 = vadd.f32 %v3960_v9, %v3171_v40  ;;  %v3185_v20 = vadd.f32 %v3184_v34, %v200_v17  ;;  %v4775_v17 = vld [vmem:[%s12005_s2 + $0x310] sm:$0xff]  ;;  %v13777_v34 = vld [vmem:[#allocation16_spill] sm:$0xff] }
 0x92d   :  { %v13775_v40 = vld [vmem:[#allocation121_spill] sm:$0xff] }
 0x92e   :  { %v3176_v53 = vsel %vm3175_vm7, %v3960_v9, %v3172_v49  ;;  %3961 = vtanh.f32 %v3185_v20  ;;  %v4772_v9 = vld [vmem:[%s12005_s2 + $0x378] sm:$0xff]  ;;  %v13779_v49 = vld [vmem:[#allocation124_spill] sm:$0xff]  ;;  %v13780_v20 = vld [vmem:[#allocation3_spill] sm:$0xff] }
 0x92f   :  { %v3181_v7 = vsel %vm3178_vm8, %v3180_v56, %v3176_v53  ;;  %v13781_v56 = vld [vmem:[#allocation125_spill] sm:$0xff]  ;;  %v13782_v53 = vld [vmem:[#allocation126_spill] sm:$0xff] }
 0x930   :  { %v3187_v28 = vsub.f32 1.0, %v3181_v7  ;;  %v3189_v44 = vmul.f32 %v3181_v7, %v10814_v55  ;;  %v4755_v55 = vld [vmem:[%s12005_s2 + $0x5e8] sm:$0xff]  ;;  %v13783_v7 = vld [vmem:[#allocation17_spill] sm:$0xff] }
 0x934   :  { %v3962_v32 = vpop.eup %3961 }
 0x935   :  { %v3188_v57 = vmul.f32 %v3962_v32, %v3187_v28  ;;  %v13784_v28 = vld [vmem:[#allocation4_spill] sm:$0xff]  ;;  %v13785_v32 = vld [vmem:[#allocation127_spill] sm:$0xff] }
 0x937   :  { %v11610_v23 = vadd.f32 %v3189_v44, %v3188_v57  ;;  %v13786_v57 = vld [vmem:[#allocation20_spill] sm:$0xff]  ;;  %v13787_v44 = vld [vmem:[#allocation5_spill] sm:$0xff] }
 0x939   :  { %3207 = vmatmul.f32.vlgmr.msra.gmra.mxu0 %v11610_v23  ;;  %3227 = vmatmul.f32.vlgmr.msra.gmra.mxu1 %v11610_v23 }
 0x93a   :  { %3247 = vmatmul.f32.vlgmr.msra.gmra.mxu2 %v11610_v23  ;;  %3315 = vmatmul.f32.vlgmr.msrb.gmra.mxu3 %v11610_v23 }
 0x93b   :  { %3419 = vmatpush.msra.mxu1 %v10823_v10  ;;  %3459 = vmatpush.msrb.mxu3 %v10829_v38  ;;  %v4756_v10 = vld [vmem:[%s12005_s2 + $0x5b0] sm:$0xff]  ;;  %v4757_v38 = vld [vmem:[%s12005_s2 + $0x5b8] sm:$0xff] }
 0x93c   :  { %3399 = vmatpush.msra.mxu0 %v4754_v50  ;;  %3439 = vmatpush.msra.mxu2 %v4755_v55  ;;  %v13788_v50 = vld [vmem:[#allocation21_spill] sm:$0xff]  ;;  %v13789_v55 = vld [vmem:[#allocation128_spill] sm:$0xff] }
 0x93d   :  { %3420 = vmatpush.msra.mxu1 %v10837_v0  ;;  %3460 = vmatpush.msrb.mxu3 %v10843_v13  ;;  %v4758_v0 = vld [vmem:[%s12005_s2 + $0x580] sm:$0xff]  ;;  %v4759_v13 = vld [vmem:[%s12005_s2 + $0x588] sm:$0xff] }
 0x93e   :  { %3400 = vmatpush.msra.mxu0 %v4756_v10  ;;  %3440 = vmatpush.msra.mxu2 %v4757_v38  ;;  %v13790_v10 = vld [vmem:[#allocation129_spill] sm:$0xff]  ;;  %v13791_v38 = vld [vmem:[#allocation130_spill] sm:$0xff] }
 0x93f   :  { %3421 = vmatpush.msra.mxu1 %v10851_v30  ;;  %3461 = vmatpush.msrb.mxu3 %v10857_v5  ;;  %v4760_v30 = vld [vmem:[%s12005_s2 + $0x550] sm:$0xff]  ;;  %v4761_v5 = vld [vmem:[%s12005_s2 + $0x558] sm:$0xff] }
 0x940   :  { %3401 = vmatpush.msra.mxu0 %v4758_v0  ;;  %3441 = vmatpush.msra.mxu2 %v4759_v13  ;;  %v13792_v0 = vld [vmem:[#allocation131_spill] sm:$0xff]  ;;  %v13793_v13 = vld [vmem:[#allocation132_spill] sm:$0xff] }
 0x941   :  { %3422 = vmatpush.msra.mxu1 %v10865_v51  ;;  %3462 = vmatpush.msrb.mxu3 %v10871_v36  ;;  %v4762_v51 = vld [vmem:[%s12005_s2 + $0x520] sm:$0xff]  ;;  %v4763_v36 = vld [vmem:[%s12005_s2 + $0x4f0] sm:$0xff] }
 0x942   :  { %3355 = vmatmul.f32.vlgmr.msrb.gmra.mxu1 %v11610_v23  ;;  %3395 = vmatmul.f32.vlgmr.msra.gmra.mxu3 %v11610_v23 }
 0x943   :  { %3423 = vmatpush.msra.mxu1 %v10879_v1  ;;  %3463 = vmatpush.msrb.mxu3 %v10885_v8  ;;  %v4764_v1 = vld [vmem:[%s12005_s2 + $0x4c0] sm:$0xff]  ;;  %v4765_v8 = vld [vmem:[%s12005_s2 + $0x490] sm:$0xff] }
 0x944   :  { %3402 = vmatpush.msra.mxu0 %v4760_v30  ;;  %3442 = vmatpush.msra.mxu2 %v4761_v5  ;;  %v13794_v30 = vld [vmem:[#allocation133_spill] sm:$0xff]  ;;  %v13795_v5 = vld [vmem:[#allocation134_spill] sm:$0xff] }
 0x945   :  { %3424 = vmatpush.msra.mxu1 %v10893_v60  ;;  %3464 = vmatpush.msrb.mxu3 %v10899_v54  ;;  %v4766_v60 = vld [vmem:[%s12005_s2 + $0x460] sm:$0xff]  ;;  %v13756_v54 = vld [vmem:[#allocation18_spill] sm:$0xff] }
 0x946   :  { %3403 = vmatpush.msra.mxu0 %v4762_v51  ;;  %3443 = vmatpush.msra.mxu2 %v10906_v37  ;;  %v13757_v37 = vld [vmem:[#allocation80_spill] sm:$0xff]  ;;  %v13796_v51 = vld [vmem:[#allocation135_spill] sm:$0xff] }
 0x947   :  { %3425 = vmatpush.msra.mxu1 %v10912_v52  ;;  %3465 = vmatpush.msrb.mxu3 %v10918_v15  ;;  %v4767_v52 = vld [vmem:[%s12005_s2 + $0x430] sm:$0xff]  ;;  %v13758_v15 = vld [vmem:[#allocation82_spill] sm:$0xff] }
 0x948   :  { %3404 = vmatpush.msra.mxu0 %v4763_v36  ;;  %3444 = vmatpush.msra.mxu2 %v10925_v16  ;;  %v13759_v16 = vld [vmem:[#allocation32_spill] sm:$0xff] }
 0x949   :  { %3426 = vmatpush.msra.mxu1 %v10931_v43  ;;  %3466 = vmatpush.msrb.mxu3 %v10937_v33  ;;  %v13760_v43 = vld [vmem:[#allocation12_spill] sm:$0xff]  ;;  %v4768_v33 = vld [vmem:[%s12005_s2 + $0x400] sm:$0xff] }
 0x94a   :  { %3405 = vmatpush.msra.mxu0 %v4764_v1  ;;  %3445 = vmatpush.msra.mxu2 %v10944_v61  ;;  %v13761_v61 = vld [vmem:[#allocation13_spill] sm:$0xff]  ;;  %v13797_v36 = vld [vmem:[#allocation136_spill] sm:$0xff] }
 0x94b   :  { %3427 = vmatpush.msra.mxu1 %v10950_v22  ;;  %3467 = vmatpush.msrb.mxu3 %v10956_v29  ;;  %v13762_v22 = vld [vmem:[#allocation14_spill] sm:$0xff]  ;;  %v13763_v29 = vld [vmem:[#allocation37_spill] sm:$0xff] }
 0x94c   :  { %3406 = vmatpush.msra.mxu0 %v4765_v8  ;;  %3446 = vmatpush.msra.mxu2 %v10963_v14  ;;  %v4769_v14 = vld [vmem:[%s12005_s2 + $0x3d0] sm:$0xff]  ;;  %v13799_v8 = vld [vmem:[#allocation138_spill] sm:$0xff] }
 0x94d   :  { %3428 = vmatpush.msra.mxu1 %v10969_v12  ;;  %3468 = vmatpush.msrb.mxu3 %v10975_v21  ;;  %v13764_v12 = vld [vmem:[#allocation36_spill] sm:$0xff]  ;;  %v13798_v1 = vld [vmem:[#allocation137_spill] sm:$0xff] }
 0x94e   :  { %3407 = vmatpush.msra.mxu0 %v4766_v60  ;;  %3447 = vmatpush.msra.mxu2 %v10982_v6  ;;  %v13765_v21 = vld [vmem:[#allocation60_spill] sm:$0xff]  ;;  %v13766_v6 = vld [vmem:[#allocation15_spill] sm:$0xff] }
 0x94f   :  { %3429 = vmatpush.msra.mxu1 %v13756_v54  ;;  %3469 = vmatpush.msrb.mxu3 %v13757_v37  ;;  %v13800_v60 = vld [vmem:[#allocation139_spill] sm:$0xff]  ;;  %v13801_v54 = vld [vmem:[#allocation140_spill] sm:$0xff]  ;;  %v13802_v37 = vld [vmem:[#allocation141_spill] sm:$0xff] }
 0x950   :  { %3408 = vmatpush.msra.mxu0 %v4767_v52  ;;  %3448 = vmatpush.msra.mxu2 %v13758_v15  ;;  %v13803_v52 = vld [vmem:[#allocation142_spill] sm:$0xff]  ;;  %v13804_v15 = vld [vmem:[#allocation143_spill] sm:$0xff] }
 0x951   :  { %3430 = vmatpush.msra.mxu1 %v13759_v16  ;;  %3470 = vmatpush.msrb.mxu3 %v13760_v43  ;;  %v13805_v16 = vld [vmem:[#allocation144_spill] sm:$0xff]  ;;  %v13806_v43 = vld [vmem:[#allocation145_spill] sm:$0xff] }
 0x952   :  { %3409 = vmatpush.msra.mxu0 %v4768_v33  ;;  %3449 = vmatpush.msra.mxu2 %v13761_v61  ;;  %v13807_v33 = vld [vmem:[#allocation146_spill] sm:$0xff]  ;;  %v13808_v61 = vld [vmem:[#allocation147_spill] sm:$0xff] }
 0x953   :  { %3431 = vmatpush.msra.mxu1 %v13762_v22  ;;  %3471 = vmatpush.msrb.mxu3 %v13763_v29  ;;  %v13809_v22 = vld [vmem:[#allocation148_spill] sm:$0xff]  ;;  %v13810_v29 = vld [vmem:[#allocation149_spill] sm:$0xff] }
 0x954   :  { %3410 = vmatpush.msra.mxu0 %v4769_v14  ;;  %3450 = vmatpush.msra.mxu2 %v13764_v12  ;;  %v13811_v14 = vld [vmem:[#allocation150_spill] sm:$0xff]  ;;  %v13812_v12 = vld [vmem:[#allocation151_spill] sm:$0xff] }
 0x955   :  { %3432 = vmatpush.msra.mxu1 %v13765_v21  ;;  %3472 = vmatpush.msrb.mxu3 %v13766_v6  ;;  %v13813_v21 = vld [vmem:[#allocation152_spill] sm:$0xff]  ;;  %v13814_v6 = vld [vmem:[#allocation153_spill] sm:$0xff] }
 0x956   :  { %3411 = vmatpush.msra.mxu0 %v4770_v41  ;;  %3451 = vmatpush.msra.mxu2 %v13767_v2  ;;  %v13815_v41 = vld [vmem:[#allocation154_spill] sm:$0xff]  ;;  %v13816_v2 = vld [vmem:[#allocation155_spill] sm:$0xff] }
 0x957   :  { %3433 = vmatpush.msra.mxu1 %v13768_v63  ;;  %3473 = vmatpush.msrb.mxu3 %v13769_v45  ;;  %v13817_v63 = vld [vmem:[#allocation156_spill] sm:$0xff]  ;;  %v13818_v45 = vld [vmem:[#allocation157_spill] sm:$0xff] }
 0x958   :  { %3412 = vmatpush.msra.mxu0 %v4771_v11  ;;  %3452 = vmatpush.msra.mxu2 %v4772_v9  ;;  %v13819_v11 = vld [vmem:[#allocation158_spill] sm:$0xff]  ;;  %v3074_v9 = vpop.f32.mrf.mxu0 }
 0x959   :  { %3434 = vmatpush.msra.mxu1 %v13770_v47  ;;  %3474 = vmatpush.msrb.mxu3 %v13771_v26  ;;  %v3094_v47 = vpop.f32.mrf.mxu1  ;;  %v3054_v26 = vpop.f32.mrf.mxu3 }
 0x95a   :  { %3435 = vmatmul.f32.vlgmr.msra.gmra.mxu1 %v11610_v23  ;;  %3475 = vmatmul.f32.vlgmr.msrb.gmra.mxu3 %v11610_v23 }
 0x95b   :  { %3499 = vmatpush.msrb.mxu1 %v13772_v59  ;;  %3413 = vmatpush.msra.mxu0 %v4773_v35  ;;  %v3034_v59 = vpop.f32.mrf.mxu2 }
 0x95c   :  { %3453 = vmatpush.msra.mxu2 %v4774_v4  ;;  %3593 = vmatpush.msra.mxu3 %v13773_v62  ;;  %v3055_v62 = vadd.f32 %v3054_v26, %v3034_v59  ;;  %v4782_v26 = vld [vmem:[%s12005_s2 + $0x590] sm:$0xff]  ;;  %v4783_v59 = vld [vmem:[%s12005_s2 + $0x598] sm:$0xff] }
 0x95d   :  { %3500 = vmatpush.msrb.mxu1 %v13774_v19  ;;  %3414 = vmatpush.msra.mxu0 %v4775_v17  ;;  %v3095_v19 = vadd.f32 %v3094_v47, %v3074_v9  ;;  %v13820_v17 = vld [vmem:[#allocation6_spill] sm:$0xff]  ;;  %v4781_v47 = vld [vmem:[%s12005_s2 + $0x5c8] sm:$0xff] }
 0x95e   :  { %3454 = vmatpush.msra.mxu2 %v4776_v42  ;;  %3594 = vmatpush.msra.mxu3 %v13775_v40  ;;  %v13821_v40 = vld [vmem:[#allocation22_spill] sm:$0xff] }
 0x95f   :  { %3501 = vmatpush.msrb.mxu1 %v13776_v3  ;;  %v4779_v9 = vld [vmem:[%s12005_s2 + $0x5f8] sm:$0xff] }
 0x960   :  { %3595 = vmatpush.msra.mxu3 %v13777_v34 }
 0x961   :  { %3502 = vmatpush.msrb.mxu1 %v13778_v18 }
 0x962   :  { %3596 = vmatpush.msra.mxu3 %v13779_v49 }
 0x963   :  { %3503 = vmatpush.msrb.mxu1 %v13780_v20 }
 0x964   :  { %3597 = vmatpush.msra.mxu3 %v13781_v56 }
 0x965   :  { %3504 = vmatpush.msrb.mxu1 %v13782_v53 }
 0x966   :  { %3598 = vmatpush.msra.mxu3 %v13783_v7 }
 0x967   :  { %3505 = vmatpush.msrb.mxu1 %v13784_v28 }
 0x968   :  { %3599 = vmatpush.msra.mxu3 %v13785_v32 }
 0x969   :  { %3506 = vmatpush.msrb.mxu1 %v13786_v57  ;;  %v3114_v57 = vpop.f32.mrf.mxu2 }
 0x96a   :  { %3600 = vmatpush.msra.mxu3 %v13787_v44 }
 0x96b   :  { %3507 = vmatpush.msrb.mxu1 %v13788_v50 }
 0x96c   :  { %3601 = vmatpush.msra.mxu3 %v13789_v55  ;;  %v3134_v55 = vpop.f32.mrf.mxu3 }
 0x96d   :  { %3508 = vmatpush.msrb.mxu1 %v13790_v10 }
 0x96e   :  { %3602 = vmatpush.msra.mxu3 %v13791_v38 }
 0x96f   :  { %3509 = vmatpush.msrb.mxu1 %v13792_v0 }
 0x970   :  { %3603 = vmatpush.msra.mxu3 %v13793_v13 }
 0x971   :  { %3510 = vmatpush.msrb.mxu1 %v13794_v30  ;;  %v3135_v30 = vadd.f32 %v3134_v55, %v3114_v57  ;;  %v4799_v57 = vld [vmem:[%s12005_s2 + $0x418] sm:$0xff]  ;;  %v4802_v55 = vld [vmem:[%s12005_s2 + $0x3b0] sm:$0xff] }
 0x972   :  { %3604 = vmatpush.msra.mxu3 %v13795_v5 }
 0x973   :  { %3511 = vmatpush.msrb.mxu1 %v13796_v51 }
 0x974   :  { %3605 = vmatpush.msra.mxu3 %v13797_v36 }
 0x975   :  { %3512 = vmatpush.msrb.mxu1 %v13798_v1 }
 0x976   :  { %3606 = vmatpush.msra.mxu3 %v13799_v8 }
 0x977   :  { %3513 = vmatpush.msrb.mxu1 %v13800_v60 }
 0x978   :  { %3607 = vmatpush.msra.mxu3 %v13801_v54  ;;  %v11784_v54 = vld [vmem:[%s12010_s7] ss:$0 sm:$0xff] }
 0x979   :  { %3514 = vmatpush.msrb.mxu1 %v13802_v37  ;;  %v3291_v37 = vadd.f32 %v11784_v54, %v3135_v30  ;;  %v4807_v30 = vld [vmem:[%s12005_s2 + $0x358] sm:$0xff] }
 0x97a   :  { %3515 = vmatmul.f32.vlgmr.msrb.gmra.mxu1 %v11610_v23  ;;  %3608 = vmatpush.msra.mxu3 %v13803_v52 }
 0x97b   :  { %3633 = vmatpush.msra.mxu1 %v13804_v15 }
 0x97d   :  { %3634 = vmatpush.msra.mxu1 %v13805_v16 }
 0x97f   :  { %3635 = vmatpush.msra.mxu1 %v13806_v43 }
 0x981   :  { %3636 = vmatpush.msra.mxu1 %v13807_v33 }
 0x983   :  { %3637 = vmatpush.msra.mxu1 %v13808_v61 }
 0x985   :  { %3638 = vmatpush.msra.mxu1 %v13809_v22 }
 0x987   :  { %3639 = vmatpush.msra.mxu1 %v13810_v29 }
 0x989   :  { %3640 = vmatpush.msra.mxu1 %v13811_v14 }
 0x98b   :  { %3641 = vmatpush.msra.mxu1 %v13812_v12 }
 0x98d   :  { %3642 = vmatpush.msra.mxu1 %v13813_v21 }
 0x98f   :  { %3643 = vmatpush.msra.mxu1 %v13814_v6 }
 0x991   :  { %3644 = vmatpush.msra.mxu1 %v13815_v41 }
 0x993   :  { %3645 = vmatpush.msra.mxu1 %v13816_v2 }
 0x995   :  { %3646 = vmatpush.msra.mxu1 %v13817_v63 }
 0x997   :  { %3647 = vmatpush.msra.mxu1 %v13818_v45 }
 0x999   :  { %3648 = vmatpush.msra.mxu1 %v13819_v11  ;;  %v4778_v11 = vld [vmem:[%s12005_s2 + $0x5f0] sm:$0xff] }
 0x9b6   :  { %v3208_v35 = vpop.f32.mrf.mxu0  ;;  %v3228_v4 = vpop.f32.mrf.mxu1 }
 0x9b7   :  { %v3209_v42 = vadd.f32 %v3208_v35, %v13820_v17  ;;  %v3229_v3 = vadd.f32 %v3228_v4, %v13821_v40  ;;  %v4784_v35 = vld [vmem:[%s12005_s2 + $0x560] sm:$0xff]  ;;  %v4785_v4 = vld [vmem:[%s12005_s2 + $0x568] sm:$0xff] }
 0x9b9   :  { %v3251_v34 = vadd.f32 %v3209_v42, %v3055_v62  ;;  %v3271_v18 = vadd.f32 %v3229_v3, %v3095_v19  ;;  %v4786_v62 = vld [vmem:[%s12005_s2 + $0x530] sm:$0xff]  ;;  %v4787_v19 = vld [vmem:[%s12005_s2 + $0x538] sm:$0xff]  ;;  %v4788_v42 = vld [vmem:[%s12005_s2 + $0x500] sm:$0xff] }
 0x9ba   :  { %v4789_v3 = vld [vmem:[%s12005_s2 + $0x508] sm:$0xff] }
 0x9bb   :  { %v3822_v49 = vmul.f32 -1.442695, %v3251_v34  ;;  %v3823_v20 = vmul.f32 -1.442695, %v3271_v18  ;;  %v4790_v34 = vld [vmem:[%s12005_s2 + $0x4d0] sm:$0xff]  ;;  %v4791_v18 = vld [vmem:[%s12005_s2 + $0x4d8] sm:$0xff] }
 0x9bd   :  { %3963 = vpow2.f32 %v3822_v49  ;;  %v3248_v8 = vpop.f32.mrf.mxu2  ;;  %v4792_v49 = vld [vmem:[%s12005_s2 + $0x4a0] sm:$0xff] }
 0x9be   :  { %3965 = vpow2.f32 %v3823_v20  ;;  %v3249_v33 = vadd.f32 %v3248_v8, %v6720_v31  ;;  %v4793_v20 = vld [vmem:[%s12005_s2 + $0x4a8] sm:$0xff]  ;;  %v4812_v8 = vld [vmem:[%s12008_s5 + $0x140] sm:$0xff] }
 0x9c3   :  { %v3964_v56 = vpop.eup %3963 }
 0x9c4   :  { %v3966_v53 = vpop.eup %3965  ;;  %v3255_v7 = vadd.f32 1.0, %v3964_v56  ;;  %v4794_v56 = vld [vmem:[%s12005_s2 + $0x470] sm:$0xff] }
 0x9c5   :  { %v3275_v28 = vadd.f32 1.0, %v3966_v53  ;;  %v4795_v53 = vld [vmem:[%s12005_s2 + $0x478] sm:$0xff] }
 0x9c6   :  { %3967 = vrcp.f32 %v3255_v7  ;;  %v3267_v13 = vand.u32 2147483648, %v3255_v7  ;;  %v3265_v51 = vand.u32 2147483647, %v3255_v7  ;;  %vm3261_vm10 = vweird.f32 %v3255_v7 }
 0x9c7   :  { %3969 = vrcp.f32 %v3275_v28  ;;  %v3287_v43 = vand.u32 2147483648, %v3275_v28  ;;  %vm3281_vm14 = vweird.f32 %v3275_v28  ;;  %v3285_v22 = vand.u32 2147483647, %v3275_v28 }
 0x9c8   :  { %v3268_v60 = vor.u32 1.1754944e-38, %v3267_v13  ;;  %vm3266_vm12 = vcmp.eq.f32.partialorder %v3265_v51, 8.507059e+37  ;;  %v4806_v13 = vld [vmem:[%s12005_s2 + $0x350] sm:$0xff]  ;;  %v4809_v51 = vld [vmem:[%s12005_s2 + $0x328] sm:$0xff] }
 0x9c9   :  { %v3288_v12 = vor.u32 1.1754944e-38, %v3287_v43  ;;  %vm3286_vm0 = vcmp.eq.f32.partialorder %v3285_v22, 8.507059e+37  ;;  %v4818_v43 = vld [vmem:[%s12008_s5 + $0xb0] sm:$0xff]  ;;  %v4821_v22 = vld [vmem:[%s12008_s5 + $0x68] sm:$0xff] }
 0x9cc   :  { %v3968_v32 = vpop.eup %3967 }
 0x9cd   :  { %v3970_v44 = vpop.eup %3969  ;;  %v3257_v50 = vmul.f32 %v3968_v32, %v3255_v7  ;;  %vm3262_vm9 = vweird.f32 %v3968_v32  ;;  %v4796_v7 = vld [vmem:[%s12005_s2 + $0x440] sm:$0xff] }
 0x9ce   :  { %v3277_v10 = vmul.f32 %v3970_v44, %v3275_v28  ;;  %vm3263_vm11 = vmor %vm3261_vm10, %vm3262_vm9  ;;  %vm3282_vm13 = vweird.f32 %v3970_v44  ;;  %v4797_v28 = vld [vmem:[%s12005_s2 + $0x448] sm:$0xff] }
 0x9cf   :  { %v3258_v38 = vsub.f32 1.0, %v3257_v50  ;;  %vm3283_vm15 = vmor %vm3281_vm14, %vm3282_vm13  ;;  %v4801_v50 = vld [vmem:[%s12005_s2 + $0x3e8] sm:$0xff] }
 0x9d0   :  { %v3278_v0 = vsub.f32 1.0, %v3277_v10  ;;  %v4803_v10 = vld [vmem:[%s12005_s2 + $0x3b8] sm:$0xff] }
 0x9d1   :  { %v3259_v5 = vmul.f32 %v3968_v32, %v3258_v38  ;;  %v4804_v38 = vld [vmem:[%s12005_s2 + $0x380] sm:$0xff] }
 0x9d2   :  { %v3279_v36 = vmul.f32 %v3970_v44, %v3278_v0  ;;  %v4805_v0 = vld [vmem:[%s12005_s2 + $0x388] sm:$0xff] }
 0x9d3   :  { %v3260_v1 = vadd.f32 %v3968_v32, %v3259_v5  ;;  %v4808_v5 = vld [vmem:[%s12005_s2 + $0x320] sm:$0xff] }
 0x9d4   :  { %v3280_v16 = vadd.f32 %v3970_v44, %v3279_v36  ;;  %v4810_v36 = vld [vmem:[%s12008_s5 + $0x170] sm:$0xff] }
 0x9d5   :  { %v3264_v52 = vsel %vm3263_vm11, %v3968_v32, %v3260_v1  ;;  %v4798_v32 = vld [vmem:[%s12005_s2 + $0x410] sm:$0xff]  ;;  %v4811_v1 = vld [vmem:[%s12008_s5 + $0x158] sm:$0xff] }
 0x9d6   :  { %v3269_v15 = vsel %vm3266_vm12, %v3268_v60, %v3264_v52  ;;  %v3284_v14 = vsel %vm3283_vm15, %v3970_v44, %v3280_v16  ;;  %v4800_v44 = vld [vmem:[%s12005_s2 + $0x3e0] sm:$0xff]  ;;  %v4813_v60 = vld [vmem:[%s12008_s5 + $0x128] sm:$0xff]  ;;  %v4815_v52 = vld [vmem:[%s12008_s5 + $0xf8] sm:$0xff] }
 0x9d7   :  { %v3292_v61 = vmul.f32 %v3291_v37, %v3269_v15  ;;  %v3289_v21 = vsel %vm3286_vm0, %v3288_v12, %v3284_v14  ;;  %v4814_v37 = vld [vmem:[%s12008_s5 + $0x110] sm:$0xff]  ;;  %v4816_v15 = vld [vmem:[%s12008_s5 + $0xe0] sm:$0xff]  ;;  %v4817_v16 = vld [vmem:[%s12008_s5 + $0xc8] sm:$0xff]  ;;  %v3316_v12 = vpop.f32.mrf.mxu3 }
 0x9d8   :  { %v3295_v6 = vsub.f32 1.0, %v3289_v21  ;;  %v3297_v63 = vmul.f32 %v3289_v21, %v11483_v46  ;;  %v4780_v46 = vld [vmem:[%s12005_s2 + $0x5c0] sm:$0xff]  ;;  %v4823_v14 = vld [vmem:[%s12008_s5 + $0x38] sm:$0xff] }
 0x9d9   :  { %v3293_v29 = vadd.f32 %v3292_v61, %v3249_v33  ;;  %v4819_v33 = vld [vmem:[%s12008_s5 + $0x98] sm:$0xff]  ;;  %v4820_v61 = vld [vmem:[%s12008_s5 + $0x80] sm:$0xff] }
 0x9db   :  { %3971 = vtanh.f32 %v3293_v29  ;;  %v4822_v29 = vld [vmem:[%s12008_s5 + $0x50] sm:$0xff] }
 0x9e1   :  { %v3972_v41 = vpop.eup %3971 }
 0x9e2   :  { %v3296_v2 = vmul.f32 %v3972_v41, %v3295_v6  ;;  %v13822_v6 = vld [vmem:[#allocation59_spill] sm:$0xff] }
 0x9e3   :  { %v121_v41 = vadd.f32 %v13822_v6, %v13751_v58 }
 0x9e4   :  { %v11789_v45 = vadd.f32 %v3297_v63, %v3296_v2 }
 0x9e6   :  { %3335 = vmatmul.f32.vlgmr.msrb.gmra.mxu0 %v11789_v45  ;;  %3375 = vmatmul.f32.vlgmr.msrb.gmra.mxu2 %v11789_v45 }
 0x9e7   :  { %3479 = vmatpush.msrb.mxu0 %v4778_v11  ;;  %3519 = vmatpush.msrb.mxu2 %v4779_v9  ;;  %v3356_v9 = vpop.f32.mrf.mxu1 }
 0x9e9   :  { %3480 = vmatpush.msrb.mxu0 %v4780_v46  ;;  %3520 = vmatpush.msrb.mxu2 %v4781_v47  ;;  %v13823_v47 = vld [vmem:[#allocation62_spill] sm:$0xff] }
 0x9eb   :  { %3481 = vmatpush.msrb.mxu0 %v4782_v26  ;;  %3521 = vmatpush.msrb.mxu2 %v4783_v59  ;;  %v162_v26 = vadd.f32 %v13823_v47, %v13753_v48 }
 0x9ed   :  { %3482 = vmatpush.msrb.mxu0 %v4784_v35  ;;  %3522 = vmatpush.msrb.mxu2 %v4785_v4 }
 0x9ee   :  { %3415 = vmatmul.f32.vlgmr.msra.gmra.mxu0 %v11789_v45  ;;  %3455 = vmatmul.f32.vlgmr.msra.gmra.mxu2 %v11789_v45 }
 0x9ef   :  { %3483 = vmatpush.msrb.mxu0 %v4786_v62  ;;  %3523 = vmatpush.msrb.mxu2 %v4787_v19 }
 0x9f1   :  { %3484 = vmatpush.msrb.mxu0 %v4788_v42  ;;  %3524 = vmatpush.msrb.mxu2 %v4789_v3 }
 0x9f3   :  { %3485 = vmatpush.msrb.mxu0 %v4790_v34  ;;  %3525 = vmatpush.msrb.mxu2 %v4791_v18  ;;  %v3396_v18 = vpop.f32.mrf.mxu3 }
 0x9f5   :  { %3486 = vmatpush.msrb.mxu0 %v4792_v49  ;;  %3526 = vmatpush.msrb.mxu2 %v4793_v20 }
 0x9f7   :  { %3487 = vmatpush.msrb.mxu0 %v4794_v56  ;;  %3527 = vmatpush.msrb.mxu2 %v4795_v53 }
 0x9f9   :  { %3488 = vmatpush.msrb.mxu0 %v4796_v7  ;;  %3528 = vmatpush.msrb.mxu2 %v4797_v28 }
 0x9fb   :  { %3489 = vmatpush.msrb.mxu0 %v4798_v32  ;;  %3529 = vmatpush.msrb.mxu2 %v4799_v57 }
 0x9fd   :  { %3490 = vmatpush.msrb.mxu0 %v4800_v44  ;;  %3530 = vmatpush.msrb.mxu2 %v4801_v50 }
 0x9ff   :  { %3491 = vmatpush.msrb.mxu0 %v4802_v55  ;;  %3531 = vmatpush.msrb.mxu2 %v4803_v10  ;;  %v13824_v55 = vld [vmem:[#allocation75_spill] sm:$0xff] }
 0xa00   :  { %v203_v10 = vadd.f32 %v13824_v55, %v12846_v39 }
 0xa01   :  { %3492 = vmatpush.msrb.mxu0 %v4804_v38  ;;  %3532 = vmatpush.msrb.mxu2 %v4805_v0 }
 0xa03   :  { %3493 = vmatpush.msrb.mxu0 %v4806_v13  ;;  %3533 = vmatpush.msrb.mxu2 %v4807_v30 }
 0xa05   :  { %3494 = vmatpush.msrb.mxu0 %v4808_v5  ;;  %3534 = vmatpush.msrb.mxu2 %v4809_v51 }
 0xa06   :  { %3495 = vmatmul.f32.vlgmr.msrb.gmra.mxu0 %v11789_v45  ;;  %3535 = vmatmul.f32.vlgmr.msrb.gmra.mxu2 %v11789_v45 }
 0xa07   :  { %3613 = vmatpush.msra.mxu0 %v4810_v36 }
 0xa09   :  { %3614 = vmatpush.msra.mxu0 %v4811_v1 }
 0xa0b   :  { %3615 = vmatpush.msra.mxu0 %v4812_v8 }
 0xa0d   :  { %3616 = vmatpush.msra.mxu0 %v4813_v60 }
 0xa0f   :  { %3617 = vmatpush.msra.mxu0 %v4814_v37 }
 0xa11   :  { %3618 = vmatpush.msra.mxu0 %v4815_v52 }
 0xa13   :  { %3619 = vmatpush.msra.mxu0 %v4816_v15 }
 0xa15   :  { %3620 = vmatpush.msra.mxu0 %v4817_v16 }
 0xa17   :  { %3621 = vmatpush.msra.mxu0 %v4818_v43  ;;  %v3716_v43 = vld [vmem:[%s12013_s8 + $0x78] sm:$0xff] }
 0xa18   :  { %3721 = vmatpush.msra.mxu2 %v3716_v43 }
 0xa19   :  { %3622 = vmatpush.msra.mxu0 %v4819_v33  ;;  %v3715_v33 = vld [vmem:[%s12013_s8 + $0x70] sm:$0xff] }
 0xa1a   :  { %3722 = vmatpush.msra.mxu2 %v3715_v33 }
 0xa1b   :  { %3623 = vmatpush.msra.mxu0 %v4820_v61  ;;  %v3714_v61 = vld [vmem:[%s12013_s8 + $0x68] sm:$0xff] }
 0xa1c   :  { %3723 = vmatpush.msra.mxu2 %v3714_v61 }
 0xa1d   :  { %3624 = vmatpush.msra.mxu0 %v4821_v22  ;;  %v3713_v22 = vld [vmem:[%s12013_s8 + $0x60] sm:$0xff] }
 0xa1e   :  { %3724 = vmatpush.msra.mxu2 %v3713_v22 }
 0xa1f   :  { %3625 = vmatpush.msra.mxu0 %v4822_v29 }
 0xa21   :  { %3626 = vmatpush.msra.mxu0 %v4823_v14 }
 0xa23   :  { %3627 = vmatpush.msra.mxu0 %v11554_v24 }
 0xa25   :  { %3628 = vmatpush.msra.mxu0 %v11561_v27 }
 0xa63   :  { %v3336_v21 = vpop.f32.mrf.mxu0 }
 0xa64   :  { %v3337_v2 = vadd.f32 %v3336_v21, %v3316_v12  ;;  %v3712_v21 = vld [vmem:[%s12013_s8 + $0x58] sm:$0xff] }
 0xa65   :  { %3725 = vmatpush.msra.mxu2 %v3712_v21 }
 0xa66   :  { %v3545_v63 = vadd.f32 %v3337_v2, %v121_v41  ;;  %v3711_v41 = vld [vmem:[%s12013_s8 + $0x50] sm:$0xff] }
 0xa67   :  { %3726 = vmatpush.msra.mxu2 %v3711_v41 }
 0xa68   :  { %v3824_v11 = vmul.f32 -1.442695, %v3545_v63 }
 0xa69   :  { %v3376_v46 = vpop.f32.mrf.mxu2 }
 0xa6a   :  { %3973 = vpow2.f32 %v3824_v11  ;;  %v3377_v59 = vadd.f32 %v3376_v46, %v3356_v9  ;;  %v3710_v11 = vld [vmem:[%s12013_s8 + $0x48] sm:$0xff]  ;;  %v3436_v9 = vpop.f32.mrf.mxu1 }
 0xa6b   :  { %v3416_v3 = vpop.f32.mrf.mxu0  ;;  %3727 = vmatpush.msra.mxu2 %v3710_v11 }
 0xa6c   :  { %v3565_v35 = vadd.f32 %v3377_v59, %v162_v26  ;;  %v3417_v20 = vadd.f32 %v3416_v3, %v3396_v18  ;;  %v3709_v26 = vld [vmem:[%s12013_s8 + $0x40] sm:$0xff]  ;;  %v3708_v59 = vld [vmem:[%s12013_s8 + $0x38] sm:$0xff] }
 0xa6d   :  { %3728 = vmatpush.msra.mxu2 %v3709_v26 }
 0xa6e   :  { %v3825_v4 = vmul.f32 -1.442695, %v3565_v35  ;;  %v3585_v50 = vadd.f32 %v11604_v25, %v3417_v20 }
 0xa6f   :  { %3729 = vmatpush.msra.mxu2 %v3708_v59 }
 0xa70   :  { %v3974_v24 = vpop.eup %3973  ;;  %3975 = vpow2.f32 %v3825_v4  ;;  %v3707_v4 = vld [vmem:[%s12013_s8 + $0x30] sm:$0xff] }
 0xa71   :  { %v3549_v27 = vadd.f32 1.0, %v3974_v24  ;;  %v3456_v2 = vpop.f32.mrf.mxu2  ;;  %3730 = vmatpush.msra.mxu2 %v3707_v4 }
 0xa73   :  { %3977 = vrcp.f32 %v3549_v27  ;;  %v3561_v49 = vand.u32 2147483648, %v3549_v27  ;;  %v3559_v48 = vand.u32 2147483647, %v3549_v27  ;;  %vm3555_vm2 = vweird.f32 %v3549_v27 }
 0xa75   :  { %v3562_v32 = vor.u32 1.1754944e-38, %v3561_v49  ;;  %vm3560_vm4 = vcmp.eq.f32.partialorder %v3559_v48, 8.507059e+37  ;;  %v3701_v49 = vld [vmem:[%s12013_s8] sm:$0xff] }
 0xa76   :  { %v3976_v62 = vpop.eup %3975 }
 0xa77   :  { %v3569_v19 = vadd.f32 1.0, %v3976_v62  ;;  %v3705_v62 = vld [vmem:[%s12013_s8 + $0x20] sm:$0xff] }
 0xa79   :  { %v3978_v42 = vpop.eup %3977  ;;  %3979 = vrcp.f32 %v3569_v19  ;;  %v3581_v13 = vand.u32 2147483648, %v3569_v19  ;;  %v3579_v5 = vand.u32 2147483647, %v3569_v19  ;;  %vm3575_vm6 = vweird.f32 %v3569_v19 }
 0xa7a   :  { %v3551_v58 = vmul.f32 %v3978_v42, %v3549_v27  ;;  %vm3556_vm1 = vweird.f32 %v3978_v42 }
 0xa7b   :  { %vm3557_vm3 = vmor %vm3555_vm2, %vm3556_vm1  ;;  %v3582_v1 = vor.u32 1.1754944e-38, %v3581_v13  ;;  %vm3580_vm8 = vcmp.eq.f32.partialorder %v3579_v5, 8.507059e+37 }
 0xa7c   :  { %v3552_v34 = vsub.f32 1.0, %v3551_v58  ;;  %v3703_v58 = vld [vmem:[%s12013_s8 + $0x10] sm:$0xff] }
 0xa7e   :  { %v3553_v56 = vmul.f32 %v3978_v42, %v3552_v34  ;;  %v3702_v34 = vld [vmem:[%s12013_s8 + $0x8] sm:$0xff] }
 0xa7f   :  { %v3980_v53 = vpop.eup %3979 }
 0xa80   :  { %v3571_v7 = vmul.f32 %v3980_v53, %v3569_v19  ;;  %v3554_v28 = vadd.f32 %v3978_v42, %v3553_v56  ;;  %vm3576_vm5 = vweird.f32 %v3980_v53 }
 0xa81   :  { %vm3577_vm7 = vmor %vm3575_vm6, %vm3576_vm5 }
 0xa82   :  { %v3572_v57 = vsub.f32 1.0, %v3571_v7  ;;  %v3558_v44 = vsel %vm3557_vm3, %v3978_v42, %v3554_v28  ;;  %v3704_v42 = vld [vmem:[%s12013_s8 + $0x18] sm:$0xff] }
 0xa83   :  { %v3563_v38 = vsel %vm3560_vm4, %v3562_v32, %v3558_v44  ;;  %v3496_v16 = vpop.f32.mrf.mxu0 }
 0xa84   :  { %v3573_v0 = vmul.f32 %v3980_v53, %v3572_v57  ;;  %v3586_v30 = vmul.f32 %v3585_v50, %v3563_v38 }
 0xa86   :  { %v3587_v51 = vadd.f32 %v3586_v30, %v203_v10  ;;  %v3574_v36 = vadd.f32 %v3980_v53, %v3573_v0 }
 0xa88   :  { %3981 = vtanh.f32 %v3587_v51  ;;  %v3578_v8 = vsel %vm3577_vm7, %v3980_v53, %v3574_v36  ;;  %v3516_v53 = vpop.f32.mrf.mxu1 }
 0xa89   :  { %v3583_v60 = vsel %vm3580_vm8, %v3582_v1, %v3578_v8  ;;  %v3536_v28 = vpop.f32.mrf.mxu2 }
 0xa8a   :  { %v3589_v37 = vsub.f32 1.0, %v3583_v60  ;;  %v3591_v39 = vmul.f32 %v3583_v60, %v11610_v23  ;;  %v3476_v23 = vpop.f32.mrf.mxu3  ;;  %v3537_v50 = vadd.f32 %v3536_v28, %v3516_v53 }
 0xa8b   :  { %v3497_v14 = vadd.f32 %v3496_v16, %v3476_v23 }
 0xa8c   :  { %v3693_v5 = vadd.f32 %v11784_v54, %v3537_v50 }
 0xa8e   :  { %v3982_v25 = vpop.eup %3981 }
 0xa8f   :  { %v3590_v52 = vmul.f32 %v3982_v25, %v3589_v37 }
 0xa91   :  { %v3592_v15 = vadd.f32 %v3591_v39, %v3590_v52 }
 0xa93   :  { %3609 = vmatmul.f32.vlgmr.msra.gmra.mxu3 %v3592_v15  ;;  %3629 = vmatmul.f32.vlgmr.msra.gmra.mxu0 %v3592_v15 }
 0xa94   :  { %3649 = vmatmul.f32.vlgmr.msra.gmra.mxu1 %v3592_v15 }
 0xb10   :  { %v3630_v29 = vpop.f32.mrf.mxu0 }
 0xb11   :  { %v3631_v12 = vadd.f32 %v3630_v29, %v13821_v40  ;;  %v3457_v40 = vadd.f32 %v3456_v2, %v3436_v9  ;;  %v3650_v13 = vpop.f32.mrf.mxu1 }
 0xb12   :  { %v3651_v60 = vadd.f32 %v3650_v13, %v6720_v31  ;;  %v3832_v31 = vld [vmem:[%s12012_s9] ss:$0 sm:$0xff] }
 0xb13   :  { %v3673_v6 = vadd.f32 %v3631_v12, %v3497_v14 }
 0xb15   :  { %v3827_v63 = vmul.f32 -1.442695, %v3673_v6 }
 0xb16   :  { %v3610_v46 = vpop.f32.mrf.mxu3 }
 0xb17   :  { %3983 = vpow2.f32 %v3827_v63  ;;  %v3611_v47 = vadd.f32 %v3610_v46, %v13820_v17  ;;  %v3706_v17 = vld [vmem:[%s12013_s8 + $0x28] sm:$0xff] }
 0xb18   :  { %3731 = vmatpush.msra.mxu2 %v3706_v17 }
 0xb19   :  { %v3653_v35 = vadd.f32 %v3611_v47, %v3457_v40 }
 0xb1a   :  { %3732 = vmatpush.msra.mxu2 %v3705_v62 }
 0xb1b   :  { %v3826_v24 = vmul.f32 -1.442695, %v3653_v35 }
 0xb1c   :  { %3733 = vmatpush.msra.mxu2 %v3704_v42 }
 0xb1d   :  { %v3984_v27 = vpop.eup %3983  ;;  %3985 = vpow2.f32 %v3826_v24 }
 0xb1e   :  { %v3677_v19 = vadd.f32 1.0, %v3984_v27  ;;  %3734 = vmatpush.msra.mxu2 %v3703_v58 }
 0xb20   :  { %3987 = vrcp.f32 %v3677_v19  ;;  %3735 = vmatpush.msra.mxu2 %v3702_v34  ;;  %v3689_v8 = vand.u32 2147483648, %v3677_v19  ;;  %vm3683_vm14 = vweird.f32 %v3677_v19  ;;  %v3687_v25 = vand.u32 2147483647, %v3677_v19 }
 0xb22   :  { %3736 = vmatpush.msra.mxu2 %v3701_v49  ;;  %v3690_v15 = vor.u32 1.1754944e-38, %v3689_v8  ;;  %vm3688_vm0 = vcmp.eq.f32.partialorder %v3687_v25, 8.507059e+37 }
 0xb23   :  { %v3986_v3 = vpop.eup %3985 }
 0xb24   :  { %v3657_v18 = vadd.f32 1.0, %v3986_v3 }
 0xb26   :  { %3989 = vrcp.f32 %v3657_v18  ;;  %v3988_v20 = vpop.eup %3987  ;;  %v3669_v44 = vand.u32 2147483648, %v3657_v18  ;;  %v3667_v10 = vand.u32 2147483647, %v3657_v18  ;;  %vm3663_vm10 = vweird.f32 %v3657_v18 }
 0xb27   :  { %v3679_v56 = vmul.f32 %v3988_v20, %v3677_v19  ;;  %vm3684_vm13 = vweird.f32 %v3988_v20 }
 0xb28   :  { %v3670_v30 = vor.u32 1.1754944e-38, %v3669_v44  ;;  %vm3668_vm12 = vcmp.eq.f32.partialorder %v3667_v10, 8.507059e+37  ;;  %vm3685_vm15 = vmor %vm3683_vm14, %vm3684_vm13 }
 0xb29   :  { %v3680_v32 = vsub.f32 1.0, %v3679_v56 }
 0xb2b   :  { %v3681_v38 = vmul.f32 %v3988_v20, %v3680_v32 }
 0xb2c   :  { %v3990_v48 = vpop.eup %3989 }
 0xb2d   :  { %v3659_v7 = vmul.f32 %v3990_v48, %v3657_v18  ;;  %vm3664_vm9 = vweird.f32 %v3990_v48  ;;  %v3682_v1 = vadd.f32 %v3988_v20, %v3681_v38 }
 0xb2e   :  { %vm3665_vm11 = vmor %vm3663_vm10, %vm3664_vm9 }
 0xb2f   :  { %v3660_v57 = vsub.f32 1.0, %v3659_v7  ;;  %v3686_v39 = vsel %vm3685_vm15, %v3988_v20, %v3682_v1 }
 0xb30   :  { %v3691_v16 = vsel %vm3688_vm0, %v3690_v15, %v3686_v39 }
 0xb31   :  { %v3661_v55 = vmul.f32 %v3990_v48, %v3660_v57  ;;  %v3697_v43 = vsub.f32 1.0, %v3691_v16  ;;  %v3699_v61 = vmul.f32 %v3691_v16, %v11789_v45 }
 0xb33   :  { %v3662_v0 = vadd.f32 %v3990_v48, %v3661_v55 }
 0xb35   :  { %v3666_v51 = vsel %vm3665_vm11, %v3990_v48, %v3662_v0 }
 0xb36   :  { %v3671_v36 = vsel %vm3668_vm12, %v3670_v30, %v3666_v51 }
 0xb37   :  { %v3694_v37 = vmul.f32 %v3693_v5, %v3671_v36 }
 0xb39   :  { %v3695_v52 = vadd.f32 %v3694_v37, %v3651_v60 }
 0xb3b   :  { %3991 = vtanh.f32 %v3695_v52 }
 0xb41   :  { %v3992_v54 = vpop.eup %3991 }
 0xb42   :  { %v3698_v33 = vmul.f32 %v3992_v54, %v3697_v43 }
 0xb44   :  { %v3700_v23 = vadd.f32 %v3699_v61, %v3698_v33 }
 0xb46   :  { %3737 = vmatmul.f32.vlgmr.msra.gmra.mxu2 %v3700_v23 }
 0xbc9   :  { %v3738_v22 = vpop.f32.mrf.mxu2 }
 0xbca   :  { %v3739_v29 = vadd.f32 %v3832_v31, %v3738_v22 }
 0xbcc   :  { %v3828_v14 = vmul.f32 -1.442695, %v3739_v29 }
 0xbce   :  { %3993 = vpow2.f32 %v3828_v14 }
 0xbd4   :  { %v3994_v12 = vpop.eup %3993 }
 0xbd5   :  { %v3744_v21 = vadd.f32 1.0, %v3994_v12 }
 0xbd7   :  { %3995 = vrcp.f32 %v3744_v21  ;;  %v3756_v63 = vand.u32 2147483648, %v3744_v21  ;;  %v3754_v45 = vand.u32 2147483647, %v3744_v21  ;;  %vm3750_vm2 = vweird.f32 %v3744_v21 }
 0xbd9   :  { %v3757_v46 = vor.u32 1.1754944e-38, %v3756_v63  ;;  %vm3755_vm4 = vcmp.eq.f32.partialorder %v3754_v45, 8.507059e+37 }
 0xbdd   :  { %v3996_v6 = vpop.eup %3995 }
 0xbde   :  { %v3746_v41 = vmul.f32 %v3996_v6, %v3744_v21  ;;  %vm3751_vm1 = vweird.f32 %v3996_v6 }
 0xbdf   :  { %vm3752_vm3 = vmor %vm3750_vm2, %vm3751_vm1 }
 0xbe0   :  { %v3747_v2 = vsub.f32 1.0, %v3746_v41 }
 0xbe2   :  { %v3748_v11 = vmul.f32 %v3996_v6, %v3747_v2 }
 0xbe4   :  { %v3749_v9 = vadd.f32 %v3996_v6, %v3748_v11 }
 0xbe6   :  { %v3753_v40 = vsel %vm3752_vm3, %v3996_v6, %v3749_v9 }
 0xbe7   :  { %v3758_v47 = vsel %vm3755_vm4, %v3757_v46, %v3753_v40 }
 0xbe8   :  { %3760 = vst [vmem:[%s12014_s10] sm:$0xff] %v3758_v47 }

</bundles_post_ra>
